<compile_context>
chip_gen: v5e
topology: v5e:2x2
jax: 0.10.0
libtpu: 0.0.40
codegen_flags: <defaults>
</compile_context>

<pallas_src>
import functools
import math

import jax
import jax.numpy as jnp
from jax.experimental import pallas as pl
from jax.experimental.pallas import tpu as pltpu

# ----------------------------- model config ---------------------------------
DIM = 32        # embedding dim (c)
DEPTH = 2       # number of encoder layers
OUT_DIM = 16    # SeparateFCs output channels
PARTS = 4       # parts_num (p)
NUM_HEAD = 4    # attention heads
FFN = 256       # TransformerEncoderLayer dim_feedforward
SEQ = 8         # sequence length (s)
N = 2           # batch (n)
LN_EPS = 1e-5


def _gelu_erf(x):
    # exact (erf-based) GELU, matching PyTorch activation='gelu' default
    return 0.5 * x * (1.0 + jax.lax.erf(x * 0.7071067811865476))


# ------------------------------ fused kernel ---------------------------------
def fused_kernel(x_ref, g1_ref, b1_ref, wqkv_ref, bqkv_ref, wo_ref, bo_ref,
                 g2_ref, b2_ref, w1_ref, b1f_ref, w2_ref, b2f_ref, fc_ref,
                 o_ref, *, depth, num_head, head_dim, seq_len):
    bn, total, dim = x_ref.shape          # (block_n, P*S, D)
    parts = total // seq_len
    rows = bn * total

    x = x_ref[...].reshape(rows, dim)     # (block_n*P*S, D) fp32

    # per-head lane masks (hoisted: built once, reused by every layer)
    lane = jax.lax.broadcasted_iota(jnp.int32, (1, dim), 1)
    head_masks = [((lane >= h * head_dim) & (lane < (h + 1) * head_dim))
                  .astype(jnp.float32) for h in range(num_head)]

    def layer_norm(z, g, b):
        mu = jnp.mean(z, axis=-1, keepdims=True)
        var = jnp.mean((z - mu) ** 2, axis=-1, keepdims=True)
        return (z - mu) * jax.lax.rsqrt(var + LN_EPS) * g + b

    for l in range(depth):
        # ---- pre-norm 1 + multi-head self attention ----
        xn = layer_norm(x, g1_ref[l], b1_ref[l])              # (rows, D)
        # full-width projections (1/sqrt(hd) folded into Q weights/bias)
        q = jnp.dot(xn, wqkv_ref[l, 0],
                    preferred_element_type=jnp.float32) + bqkv_ref[l, 0]
        k = jnp.dot(xn, wqkv_ref[l, 1],
                    preferred_element_type=jnp.float32) + bqkv_ref[l, 1]
        v = jnp.dot(xn, wqkv_ref[l, 2],
                    preferred_element_type=jnp.float32) + bqkv_ref[l, 2]
        k3 = k.reshape(bn * parts, seq_len, dim)              # (B*P, S, D)

        attn_cat = jnp.zeros((bn * parts, seq_len, dim), jnp.float32)
        for h in range(num_head):
            m = head_masks[h]                                 # (1, D) lane mask
            q3 = (q * m).reshape(bn * parts, seq_len, dim)    # only head-h lanes live
            v3 = (v * m).reshape(bn * parts, seq_len, dim)
            s = jnp.einsum('bqe,bke->bqk', q3, k3,
                           preferred_element_type=jnp.float32)   # (B*P, S, S)
            s = s - jnp.max(s, axis=-1, keepdims=True)
            pr = jnp.exp(s)
            pr = pr * pl.reciprocal(jnp.sum(pr, axis=-1, keepdims=True),
                                    approx=True)
            # masked V => per-head output lands in its own lanes; summing heads
            # reassembles the concat without any lane shuffles.
            attn_cat = attn_cat + jnp.einsum('bqk,bke->bqe', pr, v3,
                                             preferred_element_type=jnp.float32)
        attn = jnp.dot(attn_cat.reshape(rows, dim), wo_ref[l],
                       preferred_element_type=jnp.float32) + bo_ref[l]
        x = x + attn                          # dropout -> identity (eval)

        # ---- pre-norm 2 + feed-forward ----
        xn2 = layer_norm(x, g2_ref[l], b2_ref[l])
        h1 = _gelu_erf(jnp.dot(xn2, w1_ref[l],
                               preferred_element_type=jnp.float32) + b1f_ref[l])
        x = x + jnp.dot(h1, w2_ref[l],
                        preferred_element_type=jnp.float32) + b2f_ref[l]

    # ---- token 0 of every (sample, part) + SeparateFCs, lane-dense output ----
    res = []
    for p_idx in range(parts):
        tok = [x[(b * parts + p_idx) * seq_len:(b * parts + p_idx) * seq_len + 1, :]
               for b in range(bn)]
        feats = tok[0] if bn == 1 else jnp.concatenate(tok, axis=0)   # (bn, D)
        res.append(jnp.dot(feats, fc_ref[p_idx],
                           preferred_element_type=jnp.float32))        # (bn, O)
    o_ref[...] = jnp.concatenate(res, axis=1)                          # (bn, P*O)


def fused_forward(xb, packed, fc_bin, *, num_head, seq_len, block_n):
    """xb: (n, P*S, D) -> (n, P*O) (lane-dense; reshaped by caller)."""
    n, total, d = xb.shape
    assert n % block_n == 0
    depth = packed['wqkv'].shape[0]
    head_dim = d // num_head
    parts = total // seq_len
    out_dim = fc_bin.shape[-1]

    names = ('g1', 'b1', 'wqkv', 'bqkv', 'wo', 'bo',
             'g2', 'b2', 'w1', 'b1f', 'w2', 'b2f')
    weights = [packed[k] for k in names] + [fc_bin]

    def const_spec(w):
        return pl.BlockSpec(w.shape, lambda i, _n=w.ndim: (0,) * _n)

    in_specs = [pl.BlockSpec((block_n, total, d), lambda i: (i, 0, 0))]
    in_specs += [const_spec(w) for w in weights]

    return pl.pallas_call(
        functools.partial(fused_kernel, depth=depth, num_head=num_head,
                          head_dim=head_dim, seq_len=seq_len),
        out_shape=jax.ShapeDtypeStruct((n, parts * out_dim), jnp.float32),
        grid_spec=pltpu.PrefetchScalarGridSpec(
            num_scalar_prefetch=0,
            grid=(n // block_n,),
            in_specs=in_specs,
            out_specs=pl.BlockSpec((block_n, parts * out_dim), lambda i: (i, 0)),
        ),
        compiler_params=pltpu.CompilerParams(dimension_semantics=("parallel",)),
    )(xb, *weights)


def _pick_block_n(n):
    # Keep the output block's second-to-last dim either == n (full) or a
    # multiple of 8, so the (8,128) tiling constraint is always satisfied.
    if n <= 8 or n % 8 != 0:
        return n
    return 8


# ------------------------------- full forward --------------------------------
def l_transformer_forward(x, packed, fc_bin):
    """x: (n, c, s, p)  ->  (n, out_dim, p)."""
    n, c, s, p = x.shape
    out_dim = fc_bin.shape[-1]
    # rearrange 'n c s p -> n (p s) c'; batch stays leading so the grid can
    # block over samples; parts*seq flattened into one slab per sample.
    xb = jnp.transpose(x, (0, 3, 2, 1)).reshape(n, p * s, c).astype(jnp.float32)
    bn = _pick_block_n(n)
    out_flat = fused_forward(xb, packed, fc_bin, num_head=NUM_HEAD,
                             seq_len=s, block_n=bn)            # (n, p*out)
    out_npo = out_flat.reshape(n, p, out_dim)
    return jnp.transpose(out_npo, (0, 2, 1))                   # (n, out, p)


# --------------------- parameter packing (one-time prep) ---------------------
def pack_params(layer_params, dim, num_head):
    """Repack per-layer weights into stacked, kernel-friendly tensors."""
    hd = dim // num_head
    scale = 1.0 / math.sqrt(hd)

    def stack(fn):
        return jnp.stack([fn(lp) for lp in layer_params], axis=0)

    def qkv_w(lp):              # (D, 3D) -> (3, D, D), scale folded into Q
        w = lp['wqkv_t']
        return jnp.stack([w[:, :dim] * scale, w[:, dim:2 * dim], w[:, 2 * dim:]],
                         axis=0)

    def qkv_b(lp):              # (1, 3D) -> (3, 1, D), scale folded into Q
        b = lp['bqkv']
        return jnp.stack([b[:, :dim] * scale, b[:, dim:2 * dim], b[:, 2 * dim:]],
                         axis=0)

    return dict(
        g1=stack(lambda lp: lp['g1']),          # (L, 1, D)
        b1=stack(lambda lp: lp['b1']),
        wqkv=stack(qkv_w),                      # (L, 3, D, D)
        bqkv=stack(qkv_b),                      # (L, 3, 1, D)
        wo=stack(lambda lp: lp['wo_t']),        # (L, D, D)
        bo=stack(lambda lp: lp['bo']),          # (L, 1, D)
        g2=stack(lambda lp: lp['g2']),
        b2=stack(lambda lp: lp['b2']),
        w1=stack(lambda lp: lp['w1_t']),        # (L, D, FFN)
        b1f=stack(lambda lp: lp['b1f']),        # (L, 1, FFN)
        w2=stack(lambda lp: lp['w2_t']),        # (L, FFN, D)
        b2f=stack(lambda lp: lp['b2f']),        # (L, 1, D)
    )


# ------------------------------ pure-JAX reference ---------------------------
def _ref_layer(x, lp):
    def ln(z, g, b):
        mu = z.mean(-1, keepdims=True)
        var = ((z - mu) ** 2).mean(-1, keepdims=True)
        return (z - mu) / jnp.sqrt(var + LN_EPS) * g + b

    B, S, D = x.shape
    hd = D // NUM_HEAD
    xn = ln(x, lp['g1'][0], lp['b1'][0])
    qkv = xn @ lp['wqkv_t'] + lp['bqkv'][0]
    q, k, v = jnp.split(qkv, 3, axis=-1)
    q = q.reshape(B, S, NUM_HEAD, hd).transpose(0, 2, 1, 3)
    k = k.reshape(B, S, NUM_HEAD, hd).transpose(0, 2, 1, 3)
    v = v.reshape(B, S, NUM_HEAD, hd).transpose(0, 2, 1, 3)
    s = jnp.einsum('bhqd,bhkd->bhqk', q, k) / math.sqrt(hd)
    a = jax.nn.softmax(s, -1)
    o = jnp.einsum('bhqk,bhkd->bhqd', a, v).transpose(0, 2, 1, 3).reshape(B, S, D)
    x = x + (o @ lp['wo_t'] + lp['bo'][0])
    xn2 = ln(x, lp['g2'][0], lp['b2'][0])
    h = jax.nn.gelu(xn2 @ lp['w1_t'] + lp['b1f'][0], approximate=False)
    return x + (h @ lp['w2_t'] + lp['b2f'][0])


def ref_forward(x, layer_params, fc_bin):
    n, c, s, p = x.shape
    xb = jnp.transpose(x, (0, 3, 2, 1)).reshape(n * p, s, c).astype(jnp.float32)
    for lp in layer_params:
        xb = _ref_layer(xb, lp)
    feat = xb[:, 0].reshape(n, p, c).transpose(0, 2, 1)        # (n, c, p)
    return jnp.einsum('ncp,pco->nop', feat, fc_bin)


# ------------------------------ parameter init --------------------------------
def init_params(key, dim, depth, out_dim, parts, ffn):
    layer_params = []
    for d in range(depth):
        k = jax.random.fold_in(key, d)
        k1, k2, k3, k4 = jax.random.split(k, 4)
        layer_params.append(dict(
            g1=jnp.ones((1, dim), jnp.float32),
            b1=jnp.zeros((1, dim), jnp.float32),
            wqkv_t=0.05 * jax.random.normal(k1, (dim, 3 * dim), jnp.float32),
            bqkv=jnp.zeros((1, 3 * dim), jnp.float32),
            wo_t=0.05 * jax.random.normal(k2, (dim, dim), jnp.float32),
            bo=jnp.zeros((1, dim), jnp.float32),
            g2=jnp.ones((1, dim), jnp.float32),
            b2=jnp.zeros((1, dim), jnp.float32),
            w1_t=0.05 * jax.random.normal(k3, (dim, ffn), jnp.float32),
            b1f=jnp.zeros((1, ffn), jnp.float32),
            w2_t=0.05 * jax.random.normal(k4, (ffn, dim), jnp.float32),
            b2f=jnp.zeros((1, dim), jnp.float32),
        ))
    kfc = jax.random.fold_in(key, 1000)
    xavier = math.sqrt(6.0 / (dim + out_dim))
    fc_bin = jax.random.uniform(kfc, (parts, dim, out_dim), jnp.float32,
                                minval=-xavier, maxval=xavier)
    return layer_params, fc_bin


# ------------------------------------ main -------------------------------------
if __name__ == "__main__":
    key = jax.random.PRNGKey(0)
    kx, kp = jax.random.split(key)
    x = jax.random.normal(kx, (N, DIM, SEQ, PARTS), jnp.float32)   # (n, c, s, p)
    layer_params, fc_bin = init_params(kp, DIM, DEPTH, OUT_DIM, PARTS, FFN)
    packed = pack_params(layer_params, DIM, NUM_HEAD)              # one-time repack

    fwd = jax.jit(l_transformer_forward)
    out = jax.block_until_ready(fwd(x, packed, fc_bin))

    ref = jax.block_until_ready(ref_forward(x, layer_params, fc_bin))
    assert out.shape == (N, OUT_DIM, PARTS), out.shape
    err = float(jnp.max(jnp.abs(out - ref)))
    # 3e-3 tolerance: approx EUP reciprocal in the softmax adds ~1e-4..1e-3 vs exact divide
    assert jnp.allclose(out, ref, atol=3e-3, rtol=3e-3), err
    print("KERNEL_OK")
</pallas_src>

<mosaic_0001>
module attributes {stable_mosaic.version = 11 : i64} {
  func.func @fused_kernel(%arg0: i32, %arg1: memref<2x32x32xf32, #tpu.memory_space<vmem>>, %arg2: memref<2x1x32xf32, #tpu.memory_space<vmem>>, %arg3: memref<2x1x32xf32, #tpu.memory_space<vmem>>, %arg4: memref<2x3x32x32xf32, #tpu.memory_space<vmem>>, %arg5: memref<2x3x1x32xf32, #tpu.memory_space<vmem>>, %arg6: memref<2x32x32xf32, #tpu.memory_space<vmem>>, %arg7: memref<2x1x32xf32, #tpu.memory_space<vmem>>, %arg8: memref<2x1x32xf32, #tpu.memory_space<vmem>>, %arg9: memref<2x1x32xf32, #tpu.memory_space<vmem>>, %arg10: memref<2x32x256xf32, #tpu.memory_space<vmem>>, %arg11: memref<2x1x256xf32, #tpu.memory_space<vmem>>, %arg12: memref<2x256x32xf32, #tpu.memory_space<vmem>>, %arg13: memref<2x1x32xf32, #tpu.memory_space<vmem>>, %arg14: memref<4x32x16xf32, #tpu.memory_space<vmem>>, %arg15: memref<2x64xf32, #tpu.memory_space<vmem>>) attributes {dimension_semantics = [#tpu.dimension_semantics<parallel>], iteration_bounds = array<i64: 1>, scalar_prefetch = 0 : i64, scratch_operands = 0 : i64, tpu.core_type = #tpu.core_type<tc>, window_params = [{transform_indices = @transform_0, window_bounds = array<i64: 2, 32, 32>}, {pipeline_mode = #tpu.pipeline_mode<synchronous>, transform_indices = @transform_1, window_bounds = array<i64: 2, 1, 32>}, {pipeline_mode = #tpu.pipeline_mode<synchronous>, transform_indices = @transform_2, window_bounds = array<i64: 2, 1, 32>}, {pipeline_mode = #tpu.pipeline_mode<synchronous>, transform_indices = @transform_3, window_bounds = array<i64: 2, 3, 32, 32>}, {pipeline_mode = #tpu.pipeline_mode<synchronous>, transform_indices = @transform_4, window_bounds = array<i64: 2, 3, 1, 32>}, {pipeline_mode = #tpu.pipeline_mode<synchronous>, transform_indices = @transform_5, window_bounds = array<i64: 2, 32, 32>}, {pipeline_mode = #tpu.pipeline_mode<synchronous>, transform_indices = @transform_6, window_bounds = array<i64: 2, 1, 32>}, {pipeline_mode = #tpu.pipeline_mode<synchronous>, transform_indices = @transform_7, window_bounds = array<i64: 2, 1, 32>}, {pipeline_mode = #tpu.pipeline_mode<synchronous>, transform_indices = @transform_8, window_bounds = array<i64: 2, 1, 32>}, {pipeline_mode = #tpu.pipeline_mode<synchronous>, transform_indices = @transform_9, window_bounds = array<i64: 2, 32, 256>}, {pipeline_mode = #tpu.pipeline_mode<synchronous>, transform_indices = @transform_10, window_bounds = array<i64: 2, 1, 256>}, {pipeline_mode = #tpu.pipeline_mode<synchronous>, transform_indices = @transform_11, window_bounds = array<i64: 2, 256, 32>}, {pipeline_mode = #tpu.pipeline_mode<synchronous>, transform_indices = @transform_12, window_bounds = array<i64: 2, 1, 32>}, {pipeline_mode = #tpu.pipeline_mode<synchronous>, transform_indices = @transform_13, window_bounds = array<i64: 4, 32, 16>}, {transform_indices = @transform_14, window_bounds = array<i64: 2, 64>}]} {
    %c0 = arith.constant 0 : index
    %c0_0 = arith.constant 0 : index
    %c0_1 = arith.constant 0 : index
    %0 = vector.load %arg1[%c0, %c0_0, %c0_1] : memref<2x32x32xf32, #tpu.memory_space<vmem>>, vector<2x32x32xf32>
    %1 = vector.shape_cast %0 : vector<2x32x32xf32> to vector<64x32xf32>
    %2 = tpu.iota {dimensions = array<i32: 1>} : vector<1x32xi32>
    %c0_i32 = arith.constant 0 : i32
    %3 = vector.broadcast %c0_i32 : i32 to vector<1x32xi32>
    %4 = arith.cmpi sge, %2, %3 : vector<1x32xi32>
    %c8_i32 = arith.constant 8 : i32
    %5 = vector.broadcast %c8_i32 : i32 to vector<1x32xi32>
    %6 = arith.cmpi slt, %2, %5 : vector<1x32xi32>
    %7 = arith.andi %4, %6 : vector<1x32xi1>
    %8 = arith.extui %7 : vector<1x32xi1> to vector<1x32xi32>
    %9 = arith.sitofp %8 : vector<1x32xi32> to vector<1x32xf32>
    %c8_i32_2 = arith.constant 8 : i32
    %10 = vector.broadcast %c8_i32_2 : i32 to vector<1x32xi32>
    %11 = arith.cmpi sge, %2, %10 : vector<1x32xi32>
    %c16_i32 = arith.constant 16 : i32
    %12 = vector.broadcast %c16_i32 : i32 to vector<1x32xi32>
    %13 = arith.cmpi slt, %2, %12 : vector<1x32xi32>
    %14 = arith.andi %11, %13 : vector<1x32xi1>
    %15 = arith.extui %14 : vector<1x32xi1> to vector<1x32xi32>
    %16 = arith.sitofp %15 : vector<1x32xi32> to vector<1x32xf32>
    %c16_i32_3 = arith.constant 16 : i32
    %17 = vector.broadcast %c16_i32_3 : i32 to vector<1x32xi32>
    %18 = arith.cmpi sge, %2, %17 : vector<1x32xi32>
    %c24_i32 = arith.constant 24 : i32
    %19 = vector.broadcast %c24_i32 : i32 to vector<1x32xi32>
    %20 = arith.cmpi slt, %2, %19 : vector<1x32xi32>
    %21 = arith.andi %18, %20 : vector<1x32xi1>
    %22 = arith.extui %21 : vector<1x32xi1> to vector<1x32xi32>
    %23 = arith.sitofp %22 : vector<1x32xi32> to vector<1x32xf32>
    %c24_i32_4 = arith.constant 24 : i32
    %24 = vector.broadcast %c24_i32_4 : i32 to vector<1x32xi32>
    %25 = arith.cmpi sge, %2, %24 : vector<1x32xi32>
    %c32_i32 = arith.constant 32 : i32
    %26 = vector.broadcast %c32_i32 : i32 to vector<1x32xi32>
    %27 = arith.cmpi slt, %2, %26 : vector<1x32xi32>
    %28 = arith.andi %25, %27 : vector<1x32xi1>
    %29 = arith.extui %28 : vector<1x32xi1> to vector<1x32xi32>
    %30 = arith.sitofp %29 : vector<1x32xi32> to vector<1x32xf32>
    %c0_5 = arith.constant 0 : index
    %c0_6 = arith.constant 0 : index
    %c0_7 = arith.constant 0 : index
    %31 = vector.load %arg2[%c0_5, %c0_6, %c0_7] : memref<2x1x32xf32, #tpu.memory_space<vmem>>, vector<1x1x32xf32>
    %32 = vector.shape_cast %31 : vector<1x1x32xf32> to vector<1x32xf32>
    %c0_8 = arith.constant 0 : index
    %c0_9 = arith.constant 0 : index
    %c0_10 = arith.constant 0 : index
    %33 = vector.load %arg3[%c0_8, %c0_9, %c0_10] : memref<2x1x32xf32, #tpu.memory_space<vmem>>, vector<1x1x32xf32>
    %34 = vector.shape_cast %33 : vector<1x1x32xf32> to vector<1x32xf32>
    %cst = arith.constant dense<0.000000e+00> : vector<64xf32>
    %35 = vector.multi_reduction <add>, %1, %cst [1] : vector<64x32xf32> to vector<64xf32>
    %36 = vector.shape_cast %35 : vector<64xf32> to vector<64x1xf32>
    %cst_11 = arith.constant 3.200000e+01 : f32
    %37 = vector.broadcast %cst_11 : f32 to vector<64x1xf32>
    %38 = arith.divf %36, %37 : vector<64x1xf32>
    %39 = vector.broadcast %38 : vector<64x1xf32> to vector<64x32xf32>
    %40 = arith.subf %1, %39 : vector<64x32xf32>
    %41 = arith.mulf %40, %40 : vector<64x32xf32>
    %cst_12 = arith.constant dense<0.000000e+00> : vector<64xf32>
    %42 = vector.multi_reduction <add>, %41, %cst_12 [1] : vector<64x32xf32> to vector<64xf32>
    %43 = vector.shape_cast %42 : vector<64xf32> to vector<64x1xf32>
    %cst_13 = arith.constant 3.200000e+01 : f32
    %44 = vector.broadcast %cst_13 : f32 to vector<64x1xf32>
    %45 = arith.divf %43, %44 : vector<64x1xf32>
    %46 = vector.broadcast %38 : vector<64x1xf32> to vector<64x32xf32>
    %47 = arith.subf %1, %46 : vector<64x32xf32>
    %cst_14 = arith.constant 9.99999974E-6 : f32
    %48 = vector.broadcast %cst_14 : f32 to vector<64x1xf32>
    %49 = arith.addf %45, %48 : vector<64x1xf32>
    %50 = math.rsqrt %49 : vector<64x1xf32>
    %51 = vector.broadcast %50 : vector<64x1xf32> to vector<64x32xf32>
    %52 = arith.mulf %47, %51 : vector<64x32xf32>
    %53 = vector.broadcast %32 : vector<1x32xf32> to vector<64x32xf32>
    %54 = arith.mulf %52, %53 : vector<64x32xf32>
    %55 = vector.broadcast %34 : vector<1x32xf32> to vector<64x32xf32>
    %56 = arith.addf %54, %55 : vector<64x32xf32>
    %c0_15 = arith.constant 0 : index
    %c0_16 = arith.constant 0 : index
    %c0_17 = arith.constant 0 : index
    %c0_18 = arith.constant 0 : index
    %57 = vector.load %arg4[%c0_15, %c0_16, %c0_17, %c0_18] : memref<2x3x32x32xf32, #tpu.memory_space<vmem>>, vector<1x1x32x32xf32>
    %58 = vector.shape_cast %57 : vector<1x1x32x32xf32> to vector<32x32xf32>
    %cst_19 = arith.constant dense<0.000000e+00> : vector<64x32xf32>
    %59 = tpu.matmul %56, %58, %cst_19 {dimension_numbers = #tpu.dot_dimension_numbers<[1], [0], [0], [1], [0, 0, 1, 1], [], []>} : vector<64x32xf32>, vector<32x32xf32>, vector<64x32xf32> -> vector<64x32xf32>
    %c0_20 = arith.constant 0 : index
    %c0_21 = arith.constant 0 : index
    %c0_22 = arith.constant 0 : index
    %c0_23 = arith.constant 0 : index
    %60 = vector.load %arg5[%c0_20, %c0_21, %c0_22, %c0_23] : memref<2x3x1x32xf32, #tpu.memory_space<vmem>>, vector<1x1x1x32xf32>
    %61 = vector.shape_cast %60 : vector<1x1x1x32xf32> to vector<1x32xf32>
    %62 = vector.broadcast %61 : vector<1x32xf32> to vector<64x32xf32>
    %63 = arith.addf %59, %62 : vector<64x32xf32>
    %c0_24 = arith.constant 0 : index
    %c1 = arith.constant 1 : index
    %c0_25 = arith.constant 0 : index
    %c0_26 = arith.constant 0 : index
    %64 = vector.load %arg4[%c0_24, %c1, %c0_25, %c0_26] : memref<2x3x32x32xf32, #tpu.memory_space<vmem>>, vector<1x1x32x32xf32>
    %65 = vector.shape_cast %64 : vector<1x1x32x32xf32> to vector<32x32xf32>
    %cst_27 = arith.constant dense<0.000000e+00> : vector<64x32xf32>
    %66 = tpu.matmul %56, %65, %cst_27 {dimension_numbers = #tpu.dot_dimension_numbers<[1], [0], [0], [1], [0, 0, 1, 1], [], []>} : vector<64x32xf32>, vector<32x32xf32>, vector<64x32xf32> -> vector<64x32xf32>
    %c0_28 = arith.constant 0 : index
    %c1_29 = arith.constant 1 : index
    %c0_30 = arith.constant 0 : index
    %c0_31 = arith.constant 0 : index
    %67 = vector.load %arg5[%c0_28, %c1_29, %c0_30, %c0_31] : memref<2x3x1x32xf32, #tpu.memory_space<vmem>>, vector<1x1x1x32xf32>
    %68 = vector.shape_cast %67 : vector<1x1x1x32xf32> to vector<1x32xf32>
    %69 = vector.broadcast %68 : vector<1x32xf32> to vector<64x32xf32>
    %70 = arith.addf %66, %69 : vector<64x32xf32>
    %c0_32 = arith.constant 0 : index
    %c2 = arith.constant 2 : index
    %c0_33 = arith.constant 0 : index
    %c0_34 = arith.constant 0 : index
    %71 = vector.load %arg4[%c0_32, %c2, %c0_33, %c0_34] : memref<2x3x32x32xf32, #tpu.memory_space<vmem>>, vector<1x1x32x32xf32>
    %72 = vector.shape_cast %71 : vector<1x1x32x32xf32> to vector<32x32xf32>
    %cst_35 = arith.constant dense<0.000000e+00> : vector<64x32xf32>
    %73 = tpu.matmul %56, %72, %cst_35 {dimension_numbers = #tpu.dot_dimension_numbers<[1], [0], [0], [1], [0, 0, 1, 1], [], []>} : vector<64x32xf32>, vector<32x32xf32>, vector<64x32xf32> -> vector<64x32xf32>
    %c0_36 = arith.constant 0 : index
    %c2_37 = arith.constant 2 : index
    %c0_38 = arith.constant 0 : index
    %c0_39 = arith.constant 0 : index
    %74 = vector.load %arg5[%c0_36, %c2_37, %c0_38, %c0_39] : memref<2x3x1x32xf32, #tpu.memory_space<vmem>>, vector<1x1x1x32xf32>
    %75 = vector.shape_cast %74 : vector<1x1x1x32xf32> to vector<1x32xf32>
    %76 = vector.broadcast %75 : vector<1x32xf32> to vector<64x32xf32>
    %77 = arith.addf %73, %76 : vector<64x32xf32>
    %78 = vector.shape_cast %70 : vector<64x32xf32> to vector<8x8x32xf32>
    %cst_40 = arith.constant 0.000000e+00 : f32
    %79 = vector.broadcast %cst_40 : f32 to vector<8x8x32xf32>
    %80 = vector.broadcast %9 : vector<1x32xf32> to vector<64x32xf32>
    %81 = arith.mulf %63, %80 : vector<64x32xf32>
    %82 = vector.shape_cast %81 : vector<64x32xf32> to vector<8x8x32xf32>
    %83 = vector.broadcast %9 : vector<1x32xf32> to vector<64x32xf32>
    %84 = arith.mulf %77, %83 : vector<64x32xf32>
    %85 = vector.shape_cast %84 : vector<64x32xf32> to vector<8x8x32xf32>
    "tpu.trace_start"() <{level = 10 : i32, message = "bqe,bke->bqk"}> : () -> ()
    %cst_41 = arith.constant dense<0.000000e+00> : vector<8x8x8xf32>
    %86 = tpu.matmul %82, %78, %cst_41 {dimension_numbers = #tpu.dot_dimension_numbers<[2], [2], [1], [1], [0, 0, 0, 1, 1, 1], [0], [0]>} : vector<8x8x32xf32>, vector<8x8x32xf32>, vector<8x8x8xf32> -> vector<8x8x8xf32>
    "tpu.trace_stop"() : () -> ()
    %cst_42 = arith.constant dense<0xFF800000> : vector<8x8xf32>
    %87 = vector.multi_reduction <maximumf>, %86, %cst_42 [2] : vector<8x8x8xf32> to vector<8x8xf32>
    %88 = vector.shape_cast %87 : vector<8x8xf32> to vector<8x8x1xf32>
    %89 = vector.broadcast %88 : vector<8x8x1xf32> to vector<8x8x8xf32>
    %90 = arith.subf %86, %89 : vector<8x8x8xf32>
    %91 = math.exp %90 : vector<8x8x8xf32>
    %cst_43 = arith.constant dense<0.000000e+00> : vector<8x8xf32>
    %92 = vector.multi_reduction <add>, %91, %cst_43 [2] : vector<8x8x8xf32> to vector<8x8xf32>
    %93 = vector.shape_cast %92 : vector<8x8xf32> to vector<8x8x1xf32>
    %94 = tpu.reciprocal %93 {approx = true} : vector<8x8x1xf32> -> vector<8x8x1xf32>
    %95 = vector.broadcast %94 : vector<8x8x1xf32> to vector<8x8x8xf32>
    %96 = arith.mulf %91, %95 : vector<8x8x8xf32>
    "tpu.trace_start"() <{level = 10 : i32, message = "bqk,bke->bqe"}> : () -> ()
    %cst_44 = arith.constant dense<0.000000e+00> : vector<8x8x32xf32>
    %97 = tpu.matmul %96, %85, %cst_44 {dimension_numbers = #tpu.dot_dimension_numbers<[2], [1], [1], [2], [0, 0, 0, 1, 1, 2], [0], [0]>} : vector<8x8x8xf32>, vector<8x8x32xf32>, vector<8x8x32xf32> -> vector<8x8x32xf32>
    "tpu.trace_stop"() : () -> ()
    %98 = arith.addf %79, %97 : vector<8x8x32xf32>
    %99 = vector.broadcast %16 : vector<1x32xf32> to vector<64x32xf32>
    %100 = arith.mulf %63, %99 : vector<64x32xf32>
    %101 = vector.shape_cast %100 : vector<64x32xf32> to vector<8x8x32xf32>
    %102 = vector.broadcast %16 : vector<1x32xf32> to vector<64x32xf32>
    %103 = arith.mulf %77, %102 : vector<64x32xf32>
    %104 = vector.shape_cast %103 : vector<64x32xf32> to vector<8x8x32xf32>
    "tpu.trace_start"() <{level = 10 : i32, message = "bqe,bke->bqk"}> : () -> ()
    %cst_45 = arith.constant dense<0.000000e+00> : vector<8x8x8xf32>
    %105 = tpu.matmul %101, %78, %cst_45 {dimension_numbers = #tpu.dot_dimension_numbers<[2], [2], [1], [1], [0, 0, 0, 1, 1, 1], [0], [0]>} : vector<8x8x32xf32>, vector<8x8x32xf32>, vector<8x8x8xf32> -> vector<8x8x8xf32>
    "tpu.trace_stop"() : () -> ()
    %cst_46 = arith.constant dense<0xFF800000> : vector<8x8xf32>
    %106 = vector.multi_reduction <maximumf>, %105, %cst_46 [2] : vector<8x8x8xf32> to vector<8x8xf32>
    %107 = vector.shape_cast %106 : vector<8x8xf32> to vector<8x8x1xf32>
    %108 = vector.broadcast %107 : vector<8x8x1xf32> to vector<8x8x8xf32>
    %109 = arith.subf %105, %108 : vector<8x8x8xf32>
    %110 = math.exp %109 : vector<8x8x8xf32>
    %cst_47 = arith.constant dense<0.000000e+00> : vector<8x8xf32>
    %111 = vector.multi_reduction <add>, %110, %cst_47 [2] : vector<8x8x8xf32> to vector<8x8xf32>
    %112 = vector.shape_cast %111 : vector<8x8xf32> to vector<8x8x1xf32>
    %113 = tpu.reciprocal %112 {approx = true} : vector<8x8x1xf32> -> vector<8x8x1xf32>
    %114 = vector.broadcast %113 : vector<8x8x1xf32> to vector<8x8x8xf32>
    %115 = arith.mulf %110, %114 : vector<8x8x8xf32>
    "tpu.trace_start"() <{level = 10 : i32, message = "bqk,bke->bqe"}> : () -> ()
    %cst_48 = arith.constant dense<0.000000e+00> : vector<8x8x32xf32>
    %116 = tpu.matmul %115, %104, %cst_48 {dimension_numbers = #tpu.dot_dimension_numbers<[2], [1], [1], [2], [0, 0, 0, 1, 1, 2], [0], [0]>} : vector<8x8x8xf32>, vector<8x8x32xf32>, vector<8x8x32xf32> -> vector<8x8x32xf32>
    "tpu.trace_stop"() : () -> ()
    %117 = arith.addf %98, %116 : vector<8x8x32xf32>
    %118 = vector.broadcast %23 : vector<1x32xf32> to vector<64x32xf32>
    %119 = arith.mulf %63, %118 : vector<64x32xf32>
    %120 = vector.shape_cast %119 : vector<64x32xf32> to vector<8x8x32xf32>
    %121 = vector.broadcast %23 : vector<1x32xf32> to vector<64x32xf32>
    %122 = arith.mulf %77, %121 : vector<64x32xf32>
    %123 = vector.shape_cast %122 : vector<64x32xf32> to vector<8x8x32xf32>
    "tpu.trace_start"() <{level = 10 : i32, message = "bqe,bke->bqk"}> : () -> ()
    %cst_49 = arith.constant dense<0.000000e+00> : vector<8x8x8xf32>
    %124 = tpu.matmul %120, %78, %cst_49 {dimension_numbers = #tpu.dot_dimension_numbers<[2], [2], [1], [1], [0, 0, 0, 1, 1, 1], [0], [0]>} : vector<8x8x32xf32>, vector<8x8x32xf32>, vector<8x8x8xf32> -> vector<8x8x8xf32>
    "tpu.trace_stop"() : () -> ()
    %cst_50 = arith.constant dense<0xFF800000> : vector<8x8xf32>
    %125 = vector.multi_reduction <maximumf>, %124, %cst_50 [2] : vector<8x8x8xf32> to vector<8x8xf32>
    %126 = vector.shape_cast %125 : vector<8x8xf32> to vector<8x8x1xf32>
    %127 = vector.broadcast %126 : vector<8x8x1xf32> to vector<8x8x8xf32>
    %128 = arith.subf %124, %127 : vector<8x8x8xf32>
    %129 = math.exp %128 : vector<8x8x8xf32>
    %cst_51 = arith.constant dense<0.000000e+00> : vector<8x8xf32>
    %130 = vector.multi_reduction <add>, %129, %cst_51 [2] : vector<8x8x8xf32> to vector<8x8xf32>
    %131 = vector.shape_cast %130 : vector<8x8xf32> to vector<8x8x1xf32>
    %132 = tpu.reciprocal %131 {approx = true} : vector<8x8x1xf32> -> vector<8x8x1xf32>
    %133 = vector.broadcast %132 : vector<8x8x1xf32> to vector<8x8x8xf32>
    %134 = arith.mulf %129, %133 : vector<8x8x8xf32>
    "tpu.trace_start"() <{level = 10 : i32, message = "bqk,bke->bqe"}> : () -> ()
    %cst_52 = arith.constant dense<0.000000e+00> : vector<8x8x32xf32>
    %135 = tpu.matmul %134, %123, %cst_52 {dimension_numbers = #tpu.dot_dimension_numbers<[2], [1], [1], [2], [0, 0, 0, 1, 1, 2], [0], [0]>} : vector<8x8x8xf32>, vector<8x8x32xf32>, vector<8x8x32xf32> -> vector<8x8x32xf32>
    "tpu.trace_stop"() : () -> ()
    %136 = arith.addf %117, %135 : vector<8x8x32xf32>
    %137 = vector.broadcast %30 : vector<1x32xf32> to vector<64x32xf32>
    %138 = arith.mulf %63, %137 : vector<64x32xf32>
    %139 = vector.shape_cast %138 : vector<64x32xf32> to vector<8x8x32xf32>
    %140 = vector.broadcast %30 : vector<1x32xf32> to vector<64x32xf32>
    %141 = arith.mulf %77, %140 : vector<64x32xf32>
    %142 = vector.shape_cast %141 : vector<64x32xf32> to vector<8x8x32xf32>
    "tpu.trace_start"() <{level = 10 : i32, message = "bqe,bke->bqk"}> : () -> ()
    %cst_53 = arith.constant dense<0.000000e+00> : vector<8x8x8xf32>
    %143 = tpu.matmul %139, %78, %cst_53 {dimension_numbers = #tpu.dot_dimension_numbers<[2], [2], [1], [1], [0, 0, 0, 1, 1, 1], [0], [0]>} : vector<8x8x32xf32>, vector<8x8x32xf32>, vector<8x8x8xf32> -> vector<8x8x8xf32>
    "tpu.trace_stop"() : () -> ()
    %cst_54 = arith.constant dense<0xFF800000> : vector<8x8xf32>
    %144 = vector.multi_reduction <maximumf>, %143, %cst_54 [2] : vector<8x8x8xf32> to vector<8x8xf32>
    %145 = vector.shape_cast %144 : vector<8x8xf32> to vector<8x8x1xf32>
    %146 = vector.broadcast %145 : vector<8x8x1xf32> to vector<8x8x8xf32>
    %147 = arith.subf %143, %146 : vector<8x8x8xf32>
    %148 = math.exp %147 : vector<8x8x8xf32>
    %cst_55 = arith.constant dense<0.000000e+00> : vector<8x8xf32>
    %149 = vector.multi_reduction <add>, %148, %cst_55 [2] : vector<8x8x8xf32> to vector<8x8xf32>
    %150 = vector.shape_cast %149 : vector<8x8xf32> to vector<8x8x1xf32>
    %151 = tpu.reciprocal %150 {approx = true} : vector<8x8x1xf32> -> vector<8x8x1xf32>
    %152 = vector.broadcast %151 : vector<8x8x1xf32> to vector<8x8x8xf32>
    %153 = arith.mulf %148, %152 : vector<8x8x8xf32>
    "tpu.trace_start"() <{level = 10 : i32, message = "bqk,bke->bqe"}> : () -> ()
    %cst_56 = arith.constant dense<0.000000e+00> : vector<8x8x32xf32>
    %154 = tpu.matmul %153, %142, %cst_56 {dimension_numbers = #tpu.dot_dimension_numbers<[2], [1], [1], [2], [0, 0, 0, 1, 1, 2], [0], [0]>} : vector<8x8x8xf32>, vector<8x8x32xf32>, vector<8x8x32xf32> -> vector<8x8x32xf32>
    "tpu.trace_stop"() : () -> ()
    %155 = arith.addf %136, %154 : vector<8x8x32xf32>
    %156 = vector.shape_cast %155 : vector<8x8x32xf32> to vector<64x32xf32>
    %c0_57 = arith.constant 0 : index
    %c0_58 = arith.constant 0 : index
    %c0_59 = arith.constant 0 : index
    %157 = vector.load %arg6[%c0_57, %c0_58, %c0_59] : memref<2x32x32xf32, #tpu.memory_space<vmem>>, vector<1x32x32xf32>
    %158 = vector.shape_cast %157 : vector<1x32x32xf32> to vector<32x32xf32>
    %cst_60 = arith.constant dense<0.000000e+00> : vector<64x32xf32>
    %159 = tpu.matmul %156, %158, %cst_60 {dimension_numbers = #tpu.dot_dimension_numbers<[1], [0], [0], [1], [0, 0, 1, 1], [], []>} : vector<64x32xf32>, vector<32x32xf32>, vector<64x32xf32> -> vector<64x32xf32>
    %c0_61 = arith.constant 0 : index
    %c0_62 = arith.constant 0 : index
    %c0_63 = arith.constant 0 : index
    %160 = vector.load %arg7[%c0_61, %c0_62, %c0_63] : memref<2x1x32xf32, #tpu.memory_space<vmem>>, vector<1x1x32xf32>
    %161 = vector.shape_cast %160 : vector<1x1x32xf32> to vector<1x32xf32>
    %162 = vector.broadcast %161 : vector<1x32xf32> to vector<64x32xf32>
    %163 = arith.addf %159, %162 : vector<64x32xf32>
    %164 = arith.addf %1, %163 : vector<64x32xf32>
    %c0_64 = arith.constant 0 : index
    %c0_65 = arith.constant 0 : index
    %c0_66 = arith.constant 0 : index
    %165 = vector.load %arg8[%c0_64, %c0_65, %c0_66] : memref<2x1x32xf32, #tpu.memory_space<vmem>>, vector<1x1x32xf32>
    %166 = vector.shape_cast %165 : vector<1x1x32xf32> to vector<1x32xf32>
    %c0_67 = arith.constant 0 : index
    %c0_68 = arith.constant 0 : index
    %c0_69 = arith.constant 0 : index
    %167 = vector.load %arg9[%c0_67, %c0_68, %c0_69] : memref<2x1x32xf32, #tpu.memory_space<vmem>>, vector<1x1x32xf32>
    %168 = vector.shape_cast %167 : vector<1x1x32xf32> to vector<1x32xf32>
    %cst_70 = arith.constant dense<0.000000e+00> : vector<64xf32>
    %169 = vector.multi_reduction <add>, %164, %cst_70 [1] : vector<64x32xf32> to vector<64xf32>
    %170 = vector.shape_cast %169 : vector<64xf32> to vector<64x1xf32>
    %cst_71 = arith.constant 3.200000e+01 : f32
    %171 = vector.broadcast %cst_71 : f32 to vector<64x1xf32>
    %172 = arith.divf %170, %171 : vector<64x1xf32>
    %173 = vector.broadcast %172 : vector<64x1xf32> to vector<64x32xf32>
    %174 = arith.subf %164, %173 : vector<64x32xf32>
    %175 = arith.mulf %174, %174 : vector<64x32xf32>
    %cst_72 = arith.constant dense<0.000000e+00> : vector<64xf32>
    %176 = vector.multi_reduction <add>, %175, %cst_72 [1] : vector<64x32xf32> to vector<64xf32>
    %177 = vector.shape_cast %176 : vector<64xf32> to vector<64x1xf32>
    %cst_73 = arith.constant 3.200000e+01 : f32
    %178 = vector.broadcast %cst_73 : f32 to vector<64x1xf32>
    %179 = arith.divf %177, %178 : vector<64x1xf32>
    %180 = vector.broadcast %172 : vector<64x1xf32> to vector<64x32xf32>
    %181 = arith.subf %164, %180 : vector<64x32xf32>
    %cst_74 = arith.constant 9.99999974E-6 : f32
    %182 = vector.broadcast %cst_74 : f32 to vector<64x1xf32>
    %183 = arith.addf %179, %182 : vector<64x1xf32>
    %184 = math.rsqrt %183 : vector<64x1xf32>
    %185 = vector.broadcast %184 : vector<64x1xf32> to vector<64x32xf32>
    %186 = arith.mulf %181, %185 : vector<64x32xf32>
    %187 = vector.broadcast %166 : vector<1x32xf32> to vector<64x32xf32>
    %188 = arith.mulf %186, %187 : vector<64x32xf32>
    %189 = vector.broadcast %168 : vector<1x32xf32> to vector<64x32xf32>
    %190 = arith.addf %188, %189 : vector<64x32xf32>
    %c0_75 = arith.constant 0 : index
    %c0_76 = arith.constant 0 : index
    %c0_77 = arith.constant 0 : index
    %191 = vector.load %arg10[%c0_75, %c0_76, %c0_77] : memref<2x32x256xf32, #tpu.memory_space<vmem>>, vector<1x32x256xf32>
    %192 = vector.shape_cast %191 : vector<1x32x256xf32> to vector<32x256xf32>
    %cst_78 = arith.constant dense<0.000000e+00> : vector<64x256xf32>
    %193 = tpu.matmul %190, %192, %cst_78 {dimension_numbers = #tpu.dot_dimension_numbers<[1], [0], [0], [1], [0, 0, 1, 1], [], []>} : vector<64x32xf32>, vector<32x256xf32>, vector<64x256xf32> -> vector<64x256xf32>
    %c0_79 = arith.constant 0 : index
    %c0_80 = arith.constant 0 : index
    %c0_81 = arith.constant 0 : index
    %194 = vector.load %arg11[%c0_79, %c0_80, %c0_81] : memref<2x1x256xf32, #tpu.memory_space<vmem>>, vector<1x1x256xf32>
    %195 = vector.shape_cast %194 : vector<1x1x256xf32> to vector<1x256xf32>
    %196 = vector.broadcast %195 : vector<1x256xf32> to vector<64x256xf32>
    %197 = arith.addf %193, %196 : vector<64x256xf32>
    %cst_82 = arith.constant 5.000000e-01 : f32
    %198 = vector.broadcast %cst_82 : f32 to vector<64x256xf32>
    %199 = arith.mulf %198, %197 : vector<64x256xf32>
    %cst_83 = arith.constant 0.707106769 : f32
    %200 = vector.broadcast %cst_83 : f32 to vector<64x256xf32>
    %201 = arith.mulf %197, %200 : vector<64x256xf32>
    %202 = math.erf %201 : vector<64x256xf32>
    %cst_84 = arith.constant 1.000000e+00 : f32
    %203 = vector.broadcast %cst_84 : f32 to vector<64x256xf32>
    %204 = arith.addf %203, %202 : vector<64x256xf32>
    %205 = arith.mulf %199, %204 : vector<64x256xf32>
    %c0_85 = arith.constant 0 : index
    %c0_86 = arith.constant 0 : index
    %c0_87 = arith.constant 0 : index
    %206 = vector.load %arg12[%c0_85, %c0_86, %c0_87] : memref<2x256x32xf32, #tpu.memory_space<vmem>>, vector<1x256x32xf32>
    %207 = vector.shape_cast %206 : vector<1x256x32xf32> to vector<256x32xf32>
    %cst_88 = arith.constant dense<0.000000e+00> : vector<64x32xf32>
    %208 = tpu.matmul %205, %207, %cst_88 {dimension_numbers = #tpu.dot_dimension_numbers<[1], [0], [0], [1], [0, 0, 1, 1], [], []>} : vector<64x256xf32>, vector<256x32xf32>, vector<64x32xf32> -> vector<64x32xf32>
    %209 = arith.addf %164, %208 : vector<64x32xf32>
    %c0_89 = arith.constant 0 : index
    %c0_90 = arith.constant 0 : index
    %c0_91 = arith.constant 0 : index
    %210 = vector.load %arg13[%c0_89, %c0_90, %c0_91] : memref<2x1x32xf32, #tpu.memory_space<vmem>>, vector<1x1x32xf32>
    %211 = vector.shape_cast %210 : vector<1x1x32xf32> to vector<1x32xf32>
    %212 = vector.broadcast %211 : vector<1x32xf32> to vector<64x32xf32>
    %213 = arith.addf %209, %212 : vector<64x32xf32>
    %c1_92 = arith.constant 1 : index
    %c0_93 = arith.constant 0 : index
    %c0_94 = arith.constant 0 : index
    %214 = vector.load %arg2[%c1_92, %c0_93, %c0_94] : memref<2x1x32xf32, #tpu.memory_space<vmem>>, vector<1x1x32xf32>
    %215 = vector.shape_cast %214 : vector<1x1x32xf32> to vector<1x32xf32>
    %c1_95 = arith.constant 1 : index
    %c0_96 = arith.constant 0 : index
    %c0_97 = arith.constant 0 : index
    %216 = vector.load %arg3[%c1_95, %c0_96, %c0_97] : memref<2x1x32xf32, #tpu.memory_space<vmem>>, vector<1x1x32xf32>
    %217 = vector.shape_cast %216 : vector<1x1x32xf32> to vector<1x32xf32>
    %cst_98 = arith.constant dense<0.000000e+00> : vector<64xf32>
    %218 = vector.multi_reduction <add>, %213, %cst_98 [1] : vector<64x32xf32> to vector<64xf32>
    %219 = vector.shape_cast %218 : vector<64xf32> to vector<64x1xf32>
    %cst_99 = arith.constant 3.200000e+01 : f32
    %220 = vector.broadcast %cst_99 : f32 to vector<64x1xf32>
    %221 = arith.divf %219, %220 : vector<64x1xf32>
    %222 = vector.broadcast %221 : vector<64x1xf32> to vector<64x32xf32>
    %223 = arith.subf %213, %222 : vector<64x32xf32>
    %224 = arith.mulf %223, %223 : vector<64x32xf32>
    %cst_100 = arith.constant dense<0.000000e+00> : vector<64xf32>
    %225 = vector.multi_reduction <add>, %224, %cst_100 [1] : vector<64x32xf32> to vector<64xf32>
    %226 = vector.shape_cast %225 : vector<64xf32> to vector<64x1xf32>
    %cst_101 = arith.constant 3.200000e+01 : f32
    %227 = vector.broadcast %cst_101 : f32 to vector<64x1xf32>
    %228 = arith.divf %226, %227 : vector<64x1xf32>
    %229 = vector.broadcast %221 : vector<64x1xf32> to vector<64x32xf32>
    %230 = arith.subf %213, %229 : vector<64x32xf32>
    %cst_102 = arith.constant 9.99999974E-6 : f32
    %231 = vector.broadcast %cst_102 : f32 to vector<64x1xf32>
    %232 = arith.addf %228, %231 : vector<64x1xf32>
    %233 = math.rsqrt %232 : vector<64x1xf32>
    %234 = vector.broadcast %233 : vector<64x1xf32> to vector<64x32xf32>
    %235 = arith.mulf %230, %234 : vector<64x32xf32>
    %236 = vector.broadcast %215 : vector<1x32xf32> to vector<64x32xf32>
    %237 = arith.mulf %235, %236 : vector<64x32xf32>
    %238 = vector.broadcast %217 : vector<1x32xf32> to vector<64x32xf32>
    %239 = arith.addf %237, %238 : vector<64x32xf32>
    %c1_103 = arith.constant 1 : index
    %c0_104 = arith.constant 0 : index
    %c0_105 = arith.constant 0 : index
    %c0_106 = arith.constant 0 : index
    %240 = vector.load %arg4[%c1_103, %c0_104, %c0_105, %c0_106] : memref<2x3x32x32xf32, #tpu.memory_space<vmem>>, vector<1x1x32x32xf32>
    %241 = vector.shape_cast %240 : vector<1x1x32x32xf32> to vector<32x32xf32>
    %cst_107 = arith.constant dense<0.000000e+00> : vector<64x32xf32>
    %242 = tpu.matmul %239, %241, %cst_107 {dimension_numbers = #tpu.dot_dimension_numbers<[1], [0], [0], [1], [0, 0, 1, 1], [], []>} : vector<64x32xf32>, vector<32x32xf32>, vector<64x32xf32> -> vector<64x32xf32>
    %c1_108 = arith.constant 1 : index
    %c0_109 = arith.constant 0 : index
    %c0_110 = arith.constant 0 : index
    %c0_111 = arith.constant 0 : index
    %243 = vector.load %arg5[%c1_108, %c0_109, %c0_110, %c0_111] : memref<2x3x1x32xf32, #tpu.memory_space<vmem>>, vector<1x1x1x32xf32>
    %244 = vector.shape_cast %243 : vector<1x1x1x32xf32> to vector<1x32xf32>
    %245 = vector.broadcast %244 : vector<1x32xf32> to vector<64x32xf32>
    %246 = arith.addf %242, %245 : vector<64x32xf32>
    %c1_112 = arith.constant 1 : index
    %c1_113 = arith.constant 1 : index
    %c0_114 = arith.constant 0 : index
    %c0_115 = arith.constant 0 : index
    %247 = vector.load %arg4[%c1_112, %c1_113, %c0_114, %c0_115] : memref<2x3x32x32xf32, #tpu.memory_space<vmem>>, vector<1x1x32x32xf32>
    %248 = vector.shape_cast %247 : vector<1x1x32x32xf32> to vector<32x32xf32>
    %cst_116 = arith.constant dense<0.000000e+00> : vector<64x32xf32>
    %249 = tpu.matmul %239, %248, %cst_116 {dimension_numbers = #tpu.dot_dimension_numbers<[1], [0], [0], [1], [0, 0, 1, 1], [], []>} : vector<64x32xf32>, vector<32x32xf32>, vector<64x32xf32> -> vector<64x32xf32>
    %c1_117 = arith.constant 1 : index
    %c1_118 = arith.constant 1 : index
    %c0_119 = arith.constant 0 : index
    %c0_120 = arith.constant 0 : index
    %250 = vector.load %arg5[%c1_117, %c1_118, %c0_119, %c0_120] : memref<2x3x1x32xf32, #tpu.memory_space<vmem>>, vector<1x1x1x32xf32>
    %251 = vector.shape_cast %250 : vector<1x1x1x32xf32> to vector<1x32xf32>
    %252 = vector.broadcast %251 : vector<1x32xf32> to vector<64x32xf32>
    %253 = arith.addf %249, %252 : vector<64x32xf32>
    %c1_121 = arith.constant 1 : index
    %c2_122 = arith.constant 2 : index
    %c0_123 = arith.constant 0 : index
    %c0_124 = arith.constant 0 : index
    %254 = vector.load %arg4[%c1_121, %c2_122, %c0_123, %c0_124] : memref<2x3x32x32xf32, #tpu.memory_space<vmem>>, vector<1x1x32x32xf32>
    %255 = vector.shape_cast %254 : vector<1x1x32x32xf32> to vector<32x32xf32>
    %cst_125 = arith.constant dense<0.000000e+00> : vector<64x32xf32>
    %256 = tpu.matmul %239, %255, %cst_125 {dimension_numbers = #tpu.dot_dimension_numbers<[1], [0], [0], [1], [0, 0, 1, 1], [], []>} : vector<64x32xf32>, vector<32x32xf32>, vector<64x32xf32> -> vector<64x32xf32>
    %c1_126 = arith.constant 1 : index
    %c2_127 = arith.constant 2 : index
    %c0_128 = arith.constant 0 : index
    %c0_129 = arith.constant 0 : index
    %257 = vector.load %arg5[%c1_126, %c2_127, %c0_128, %c0_129] : memref<2x3x1x32xf32, #tpu.memory_space<vmem>>, vector<1x1x1x32xf32>
    %258 = vector.shape_cast %257 : vector<1x1x1x32xf32> to vector<1x32xf32>
    %259 = vector.broadcast %258 : vector<1x32xf32> to vector<64x32xf32>
    %260 = arith.addf %256, %259 : vector<64x32xf32>
    %261 = vector.shape_cast %253 : vector<64x32xf32> to vector<8x8x32xf32>
    %cst_130 = arith.constant 0.000000e+00 : f32
    %262 = vector.broadcast %cst_130 : f32 to vector<8x8x32xf32>
    %263 = vector.broadcast %9 : vector<1x32xf32> to vector<64x32xf32>
    %264 = arith.mulf %246, %263 : vector<64x32xf32>
    %265 = vector.shape_cast %264 : vector<64x32xf32> to vector<8x8x32xf32>
    %266 = vector.broadcast %9 : vector<1x32xf32> to vector<64x32xf32>
    %267 = arith.mulf %260, %266 : vector<64x32xf32>
    %268 = vector.shape_cast %267 : vector<64x32xf32> to vector<8x8x32xf32>
    "tpu.trace_start"() <{level = 10 : i32, message = "bqe,bke->bqk"}> : () -> ()
    %cst_131 = arith.constant dense<0.000000e+00> : vector<8x8x8xf32>
    %269 = tpu.matmul %265, %261, %cst_131 {dimension_numbers = #tpu.dot_dimension_numbers<[2], [2], [1], [1], [0, 0, 0, 1, 1, 1], [0], [0]>} : vector<8x8x32xf32>, vector<8x8x32xf32>, vector<8x8x8xf32> -> vector<8x8x8xf32>
    "tpu.trace_stop"() : () -> ()
    %cst_132 = arith.constant dense<0xFF800000> : vector<8x8xf32>
    %270 = vector.multi_reduction <maximumf>, %269, %cst_132 [2] : vector<8x8x8xf32> to vector<8x8xf32>
    %271 = vector.shape_cast %270 : vector<8x8xf32> to vector<8x8x1xf32>
    %272 = vector.broadcast %271 : vector<8x8x1xf32> to vector<8x8x8xf32>
    %273 = arith.subf %269, %272 : vector<8x8x8xf32>
    %274 = math.exp %273 : vector<8x8x8xf32>
    %cst_133 = arith.constant dense<0.000000e+00> : vector<8x8xf32>
    %275 = vector.multi_reduction <add>, %274, %cst_133 [2] : vector<8x8x8xf32> to vector<8x8xf32>
    %276 = vector.shape_cast %275 : vector<8x8xf32> to vector<8x8x1xf32>
    %277 = tpu.reciprocal %276 {approx = true} : vector<8x8x1xf32> -> vector<8x8x1xf32>
    %278 = vector.broadcast %277 : vector<8x8x1xf32> to vector<8x8x8xf32>
    %279 = arith.mulf %274, %278 : vector<8x8x8xf32>
    "tpu.trace_start"() <{level = 10 : i32, message = "bqk,bke->bqe"}> : () -> ()
    %cst_134 = arith.constant dense<0.000000e+00> : vector<8x8x32xf32>
    %280 = tpu.matmul %279, %268, %cst_134 {dimension_numbers = #tpu.dot_dimension_numbers<[2], [1], [1], [2], [0, 0, 0, 1, 1, 2], [0], [0]>} : vector<8x8x8xf32>, vector<8x8x32xf32>, vector<8x8x32xf32> -> vector<8x8x32xf32>
    "tpu.trace_stop"() : () -> ()
    %281 = arith.addf %262, %280 : vector<8x8x32xf32>
    %282 = vector.broadcast %16 : vector<1x32xf32> to vector<64x32xf32>
    %283 = arith.mulf %246, %282 : vector<64x32xf32>
    %284 = vector.shape_cast %283 : vector<64x32xf32> to vector<8x8x32xf32>
    %285 = vector.broadcast %16 : vector<1x32xf32> to vector<64x32xf32>
    %286 = arith.mulf %260, %285 : vector<64x32xf32>
    %287 = vector.shape_cast %286 : vector<64x32xf32> to vector<8x8x32xf32>
    "tpu.trace_start"() <{level = 10 : i32, message = "bqe,bke->bqk"}> : () -> ()
    %cst_135 = arith.constant dense<0.000000e+00> : vector<8x8x8xf32>
    %288 = tpu.matmul %284, %261, %cst_135 {dimension_numbers = #tpu.dot_dimension_numbers<[2], [2], [1], [1], [0, 0, 0, 1, 1, 1], [0], [0]>} : vector<8x8x32xf32>, vector<8x8x32xf32>, vector<8x8x8xf32> -> vector<8x8x8xf32>
    "tpu.trace_stop"() : () -> ()
    %cst_136 = arith.constant dense<0xFF800000> : vector<8x8xf32>
    %289 = vector.multi_reduction <maximumf>, %288, %cst_136 [2] : vector<8x8x8xf32> to vector<8x8xf32>
    %290 = vector.shape_cast %289 : vector<8x8xf32> to vector<8x8x1xf32>
    %291 = vector.broadcast %290 : vector<8x8x1xf32> to vector<8x8x8xf32>
    %292 = arith.subf %288, %291 : vector<8x8x8xf32>
    %293 = math.exp %292 : vector<8x8x8xf32>
    %cst_137 = arith.constant dense<0.000000e+00> : vector<8x8xf32>
    %294 = vector.multi_reduction <add>, %293, %cst_137 [2] : vector<8x8x8xf32> to vector<8x8xf32>
    %295 = vector.shape_cast %294 : vector<8x8xf32> to vector<8x8x1xf32>
    %296 = tpu.reciprocal %295 {approx = true} : vector<8x8x1xf32> -> vector<8x8x1xf32>
    %297 = vector.broadcast %296 : vector<8x8x1xf32> to vector<8x8x8xf32>
    %298 = arith.mulf %293, %297 : vector<8x8x8xf32>
    "tpu.trace_start"() <{level = 10 : i32, message = "bqk,bke->bqe"}> : () -> ()
    %cst_138 = arith.constant dense<0.000000e+00> : vector<8x8x32xf32>
    %299 = tpu.matmul %298, %287, %cst_138 {dimension_numbers = #tpu.dot_dimension_numbers<[2], [1], [1], [2], [0, 0, 0, 1, 1, 2], [0], [0]>} : vector<8x8x8xf32>, vector<8x8x32xf32>, vector<8x8x32xf32> -> vector<8x8x32xf32>
    "tpu.trace_stop"() : () -> ()
    %300 = arith.addf %281, %299 : vector<8x8x32xf32>
    %301 = vector.broadcast %23 : vector<1x32xf32> to vector<64x32xf32>
    %302 = arith.mulf %246, %301 : vector<64x32xf32>
    %303 = vector.shape_cast %302 : vector<64x32xf32> to vector<8x8x32xf32>
    %304 = vector.broadcast %23 : vector<1x32xf32> to vector<64x32xf32>
    %305 = arith.mulf %260, %304 : vector<64x32xf32>
    %306 = vector.shape_cast %305 : vector<64x32xf32> to vector<8x8x32xf32>
    "tpu.trace_start"() <{level = 10 : i32, message = "bqe,bke->bqk"}> : () -> ()
    %cst_139 = arith.constant dense<0.000000e+00> : vector<8x8x8xf32>
    %307 = tpu.matmul %303, %261, %cst_139 {dimension_numbers = #tpu.dot_dimension_numbers<[2], [2], [1], [1], [0, 0, 0, 1, 1, 1], [0], [0]>} : vector<8x8x32xf32>, vector<8x8x32xf32>, vector<8x8x8xf32> -> vector<8x8x8xf32>
    "tpu.trace_stop"() : () -> ()
    %cst_140 = arith.constant dense<0xFF800000> : vector<8x8xf32>
    %308 = vector.multi_reduction <maximumf>, %307, %cst_140 [2] : vector<8x8x8xf32> to vector<8x8xf32>
    %309 = vector.shape_cast %308 : vector<8x8xf32> to vector<8x8x1xf32>
    %310 = vector.broadcast %309 : vector<8x8x1xf32> to vector<8x8x8xf32>
    %311 = arith.subf %307, %310 : vector<8x8x8xf32>
    %312 = math.exp %311 : vector<8x8x8xf32>
    %cst_141 = arith.constant dense<0.000000e+00> : vector<8x8xf32>
    %313 = vector.multi_reduction <add>, %312, %cst_141 [2] : vector<8x8x8xf32> to vector<8x8xf32>
    %314 = vector.shape_cast %313 : vector<8x8xf32> to vector<8x8x1xf32>
    %315 = tpu.reciprocal %314 {approx = true} : vector<8x8x1xf32> -> vector<8x8x1xf32>
    %316 = vector.broadcast %315 : vector<8x8x1xf32> to vector<8x8x8xf32>
    %317 = arith.mulf %312, %316 : vector<8x8x8xf32>
    "tpu.trace_start"() <{level = 10 : i32, message = "bqk,bke->bqe"}> : () -> ()
    %cst_142 = arith.constant dense<0.000000e+00> : vector<8x8x32xf32>
    %318 = tpu.matmul %317, %306, %cst_142 {dimension_numbers = #tpu.dot_dimension_numbers<[2], [1], [1], [2], [0, 0, 0, 1, 1, 2], [0], [0]>} : vector<8x8x8xf32>, vector<8x8x32xf32>, vector<8x8x32xf32> -> vector<8x8x32xf32>
    "tpu.trace_stop"() : () -> ()
    %319 = arith.addf %300, %318 : vector<8x8x32xf32>
    %320 = vector.broadcast %30 : vector<1x32xf32> to vector<64x32xf32>
    %321 = arith.mulf %246, %320 : vector<64x32xf32>
    %322 = vector.shape_cast %321 : vector<64x32xf32> to vector<8x8x32xf32>
    %323 = vector.broadcast %30 : vector<1x32xf32> to vector<64x32xf32>
    %324 = arith.mulf %260, %323 : vector<64x32xf32>
    %325 = vector.shape_cast %324 : vector<64x32xf32> to vector<8x8x32xf32>
    "tpu.trace_start"() <{level = 10 : i32, message = "bqe,bke->bqk"}> : () -> ()
    %cst_143 = arith.constant dense<0.000000e+00> : vector<8x8x8xf32>
    %326 = tpu.matmul %322, %261, %cst_143 {dimension_numbers = #tpu.dot_dimension_numbers<[2], [2], [1], [1], [0, 0, 0, 1, 1, 1], [0], [0]>} : vector<8x8x32xf32>, vector<8x8x32xf32>, vector<8x8x8xf32> -> vector<8x8x8xf32>
    "tpu.trace_stop"() : () -> ()
    %cst_144 = arith.constant dense<0xFF800000> : vector<8x8xf32>
    %327 = vector.multi_reduction <maximumf>, %326, %cst_144 [2] : vector<8x8x8xf32> to vector<8x8xf32>
    %328 = vector.shape_cast %327 : vector<8x8xf32> to vector<8x8x1xf32>
    %329 = vector.broadcast %328 : vector<8x8x1xf32> to vector<8x8x8xf32>
    %330 = arith.subf %326, %329 : vector<8x8x8xf32>
    %331 = math.exp %330 : vector<8x8x8xf32>
    %cst_145 = arith.constant dense<0.000000e+00> : vector<8x8xf32>
    %332 = vector.multi_reduction <add>, %331, %cst_145 [2] : vector<8x8x8xf32> to vector<8x8xf32>
    %333 = vector.shape_cast %332 : vector<8x8xf32> to vector<8x8x1xf32>
    %334 = tpu.reciprocal %333 {approx = true} : vector<8x8x1xf32> -> vector<8x8x1xf32>
    %335 = vector.broadcast %334 : vector<8x8x1xf32> to vector<8x8x8xf32>
    %336 = arith.mulf %331, %335 : vector<8x8x8xf32>
    "tpu.trace_start"() <{level = 10 : i32, message = "bqk,bke->bqe"}> : () -> ()
    %cst_146 = arith.constant dense<0.000000e+00> : vector<8x8x32xf32>
    %337 = tpu.matmul %336, %325, %cst_146 {dimension_numbers = #tpu.dot_dimension_numbers<[2], [1], [1], [2], [0, 0, 0, 1, 1, 2], [0], [0]>} : vector<8x8x8xf32>, vector<8x8x32xf32>, vector<8x8x32xf32> -> vector<8x8x32xf32>
    "tpu.trace_stop"() : () -> ()
    %338 = arith.addf %319, %337 : vector<8x8x32xf32>
    %339 = vector.shape_cast %338 : vector<8x8x32xf32> to vector<64x32xf32>
    %c1_147 = arith.constant 1 : index
    %c0_148 = arith.constant 0 : index
    %c0_149 = arith.constant 0 : index
    %340 = vector.load %arg6[%c1_147, %c0_148, %c0_149] : memref<2x32x32xf32, #tpu.memory_space<vmem>>, vector<1x32x32xf32>
    %341 = vector.shape_cast %340 : vector<1x32x32xf32> to vector<32x32xf32>
    %cst_150 = arith.constant dense<0.000000e+00> : vector<64x32xf32>
    %342 = tpu.matmul %339, %341, %cst_150 {dimension_numbers = #tpu.dot_dimension_numbers<[1], [0], [0], [1], [0, 0, 1, 1], [], []>} : vector<64x32xf32>, vector<32x32xf32>, vector<64x32xf32> -> vector<64x32xf32>
    %c1_151 = arith.constant 1 : index
    %c0_152 = arith.constant 0 : index
    %c0_153 = arith.constant 0 : index
    %343 = vector.load %arg7[%c1_151, %c0_152, %c0_153] : memref<2x1x32xf32, #tpu.memory_space<vmem>>, vector<1x1x32xf32>
    %344 = vector.shape_cast %343 : vector<1x1x32xf32> to vector<1x32xf32>
    %345 = vector.broadcast %344 : vector<1x32xf32> to vector<64x32xf32>
    %346 = arith.addf %342, %345 : vector<64x32xf32>
    %347 = arith.addf %213, %346 : vector<64x32xf32>
    %c1_154 = arith.constant 1 : index
    %c0_155 = arith.constant 0 : index
    %c0_156 = arith.constant 0 : index
    %348 = vector.load %arg8[%c1_154, %c0_155, %c0_156] : memref<2x1x32xf32, #tpu.memory_space<vmem>>, vector<1x1x32xf32>
    %349 = vector.shape_cast %348 : vector<1x1x32xf32> to vector<1x32xf32>
    %c1_157 = arith.constant 1 : index
    %c0_158 = arith.constant 0 : index
    %c0_159 = arith.constant 0 : index
    %350 = vector.load %arg9[%c1_157, %c0_158, %c0_159] : memref<2x1x32xf32, #tpu.memory_space<vmem>>, vector<1x1x32xf32>
    %351 = vector.shape_cast %350 : vector<1x1x32xf32> to vector<1x32xf32>
    %cst_160 = arith.constant dense<0.000000e+00> : vector<64xf32>
    %352 = vector.multi_reduction <add>, %347, %cst_160 [1] : vector<64x32xf32> to vector<64xf32>
    %353 = vector.shape_cast %352 : vector<64xf32> to vector<64x1xf32>
    %cst_161 = arith.constant 3.200000e+01 : f32
    %354 = vector.broadcast %cst_161 : f32 to vector<64x1xf32>
    %355 = arith.divf %353, %354 : vector<64x1xf32>
    %356 = vector.broadcast %355 : vector<64x1xf32> to vector<64x32xf32>
    %357 = arith.subf %347, %356 : vector<64x32xf32>
    %358 = arith.mulf %357, %357 : vector<64x32xf32>
    %cst_162 = arith.constant dense<0.000000e+00> : vector<64xf32>
    %359 = vector.multi_reduction <add>, %358, %cst_162 [1] : vector<64x32xf32> to vector<64xf32>
    %360 = vector.shape_cast %359 : vector<64xf32> to vector<64x1xf32>
    %cst_163 = arith.constant 3.200000e+01 : f32
    %361 = vector.broadcast %cst_163 : f32 to vector<64x1xf32>
    %362 = arith.divf %360, %361 : vector<64x1xf32>
    %363 = vector.broadcast %355 : vector<64x1xf32> to vector<64x32xf32>
    %364 = arith.subf %347, %363 : vector<64x32xf32>
    %cst_164 = arith.constant 9.99999974E-6 : f32
    %365 = vector.broadcast %cst_164 : f32 to vector<64x1xf32>
    %366 = arith.addf %362, %365 : vector<64x1xf32>
    %367 = math.rsqrt %366 : vector<64x1xf32>
    %368 = vector.broadcast %367 : vector<64x1xf32> to vector<64x32xf32>
    %369 = arith.mulf %364, %368 : vector<64x32xf32>
    %370 = vector.broadcast %349 : vector<1x32xf32> to vector<64x32xf32>
    %371 = arith.mulf %369, %370 : vector<64x32xf32>
    %372 = vector.broadcast %351 : vector<1x32xf32> to vector<64x32xf32>
    %373 = arith.addf %371, %372 : vector<64x32xf32>
    %c1_165 = arith.constant 1 : index
    %c0_166 = arith.constant 0 : index
    %c0_167 = arith.constant 0 : index
    %374 = vector.load %arg10[%c1_165, %c0_166, %c0_167] : memref<2x32x256xf32, #tpu.memory_space<vmem>>, vector<1x32x256xf32>
    %375 = vector.shape_cast %374 : vector<1x32x256xf32> to vector<32x256xf32>
    %cst_168 = arith.constant dense<0.000000e+00> : vector<64x256xf32>
    %376 = tpu.matmul %373, %375, %cst_168 {dimension_numbers = #tpu.dot_dimension_numbers<[1], [0], [0], [1], [0, 0, 1, 1], [], []>} : vector<64x32xf32>, vector<32x256xf32>, vector<64x256xf32> -> vector<64x256xf32>
    %c1_169 = arith.constant 1 : index
    %c0_170 = arith.constant 0 : index
    %c0_171 = arith.constant 0 : index
    %377 = vector.load %arg11[%c1_169, %c0_170, %c0_171] : memref<2x1x256xf32, #tpu.memory_space<vmem>>, vector<1x1x256xf32>
    %378 = vector.shape_cast %377 : vector<1x1x256xf32> to vector<1x256xf32>
    %379 = vector.broadcast %378 : vector<1x256xf32> to vector<64x256xf32>
    %380 = arith.addf %376, %379 : vector<64x256xf32>
    %cst_172 = arith.constant 5.000000e-01 : f32
    %381 = vector.broadcast %cst_172 : f32 to vector<64x256xf32>
    %382 = arith.mulf %381, %380 : vector<64x256xf32>
    %cst_173 = arith.constant 0.707106769 : f32
    %383 = vector.broadcast %cst_173 : f32 to vector<64x256xf32>
    %384 = arith.mulf %380, %383 : vector<64x256xf32>
    %385 = math.erf %384 : vector<64x256xf32>
    %cst_174 = arith.constant 1.000000e+00 : f32
    %386 = vector.broadcast %cst_174 : f32 to vector<64x256xf32>
    %387 = arith.addf %386, %385 : vector<64x256xf32>
    %388 = arith.mulf %382, %387 : vector<64x256xf32>
    %c1_175 = arith.constant 1 : index
    %c0_176 = arith.constant 0 : index
    %c0_177 = arith.constant 0 : index
    %389 = vector.load %arg12[%c1_175, %c0_176, %c0_177] : memref<2x256x32xf32, #tpu.memory_space<vmem>>, vector<1x256x32xf32>
    %390 = vector.shape_cast %389 : vector<1x256x32xf32> to vector<256x32xf32>
    %cst_178 = arith.constant dense<0.000000e+00> : vector<64x32xf32>
    %391 = tpu.matmul %388, %390, %cst_178 {dimension_numbers = #tpu.dot_dimension_numbers<[1], [0], [0], [1], [0, 0, 1, 1], [], []>} : vector<64x256xf32>, vector<256x32xf32>, vector<64x32xf32> -> vector<64x32xf32>
    %392 = arith.addf %347, %391 : vector<64x32xf32>
    %c1_179 = arith.constant 1 : index
    %c0_180 = arith.constant 0 : index
    %c0_181 = arith.constant 0 : index
    %393 = vector.load %arg13[%c1_179, %c0_180, %c0_181] : memref<2x1x32xf32, #tpu.memory_space<vmem>>, vector<1x1x32xf32>
    %394 = vector.shape_cast %393 : vector<1x1x32xf32> to vector<1x32xf32>
    %395 = vector.broadcast %394 : vector<1x32xf32> to vector<64x32xf32>
    %396 = arith.addf %392, %395 : vector<64x32xf32>
    %397 = vector.extract_strided_slice %396 {offsets = [0, 0], sizes = [1, 32], strides = [1, 1]} : vector<64x32xf32> to vector<1x32xf32>
    %398 = vector.extract_strided_slice %396 {offsets = [32, 0], sizes = [1, 32], strides = [1, 1]} : vector<64x32xf32> to vector<1x32xf32>
    %399 = tpu.concatenate %397, %398 in 0 : vector<1x32xf32>, vector<1x32xf32> -> vector<2x32xf32>
    %c0_182 = arith.constant 0 : index
    %c0_183 = arith.constant 0 : index
    %c0_184 = arith.constant 0 : index
    %400 = vector.load %arg14[%c0_182, %c0_183, %c0_184] : memref<4x32x16xf32, #tpu.memory_space<vmem>>, vector<1x32x16xf32>
    %401 = vector.shape_cast %400 : vector<1x32x16xf32> to vector<32x16xf32>
    %cst_185 = arith.constant dense<0.000000e+00> : vector<2x16xf32>
    %402 = tpu.matmul %399, %401, %cst_185 {dimension_numbers = #tpu.dot_dimension_numbers<[1], [0], [0], [1], [0, 0, 1, 1], [], []>} : vector<2x32xf32>, vector<32x16xf32>, vector<2x16xf32> -> vector<2x16xf32>
    %403 = vector.extract_strided_slice %396 {offsets = [8, 0], sizes = [1, 32], strides = [1, 1]} : vector<64x32xf32> to vector<1x32xf32>
    %404 = vector.extract_strided_slice %396 {offsets = [40, 0], sizes = [1, 32], strides = [1, 1]} : vector<64x32xf32> to vector<1x32xf32>
    %405 = tpu.concatenate %403, %404 in 0 : vector<1x32xf32>, vector<1x32xf32> -> vector<2x32xf32>
    %c1_186 = arith.constant 1 : index
    %c0_187 = arith.constant 0 : index
    %c0_188 = arith.constant 0 : index
    %406 = vector.load %arg14[%c1_186, %c0_187, %c0_188] : memref<4x32x16xf32, #tpu.memory_space<vmem>>, vector<1x32x16xf32>
    %407 = vector.shape_cast %406 : vector<1x32x16xf32> to vector<32x16xf32>
    %cst_189 = arith.constant dense<0.000000e+00> : vector<2x16xf32>
    %408 = tpu.matmul %405, %407, %cst_189 {dimension_numbers = #tpu.dot_dimension_numbers<[1], [0], [0], [1], [0, 0, 1, 1], [], []>} : vector<2x32xf32>, vector<32x16xf32>, vector<2x16xf32> -> vector<2x16xf32>
    %409 = vector.extract_strided_slice %396 {offsets = [16, 0], sizes = [1, 32], strides = [1, 1]} : vector<64x32xf32> to vector<1x32xf32>
    %410 = vector.extract_strided_slice %396 {offsets = [48, 0], sizes = [1, 32], strides = [1, 1]} : vector<64x32xf32> to vector<1x32xf32>
    %411 = tpu.concatenate %409, %410 in 0 : vector<1x32xf32>, vector<1x32xf32> -> vector<2x32xf32>
    %c2_190 = arith.constant 2 : index
    %c0_191 = arith.constant 0 : index
    %c0_192 = arith.constant 0 : index
    %412 = vector.load %arg14[%c2_190, %c0_191, %c0_192] : memref<4x32x16xf32, #tpu.memory_space<vmem>>, vector<1x32x16xf32>
    %413 = vector.shape_cast %412 : vector<1x32x16xf32> to vector<32x16xf32>
    %cst_193 = arith.constant dense<0.000000e+00> : vector<2x16xf32>
    %414 = tpu.matmul %411, %413, %cst_193 {dimension_numbers = #tpu.dot_dimension_numbers<[1], [0], [0], [1], [0, 0, 1, 1], [], []>} : vector<2x32xf32>, vector<32x16xf32>, vector<2x16xf32> -> vector<2x16xf32>
    %415 = vector.extract_strided_slice %396 {offsets = [24, 0], sizes = [1, 32], strides = [1, 1]} : vector<64x32xf32> to vector<1x32xf32>
    %416 = vector.extract_strided_slice %396 {offsets = [56, 0], sizes = [1, 32], strides = [1, 1]} : vector<64x32xf32> to vector<1x32xf32>
    %417 = tpu.concatenate %415, %416 in 0 : vector<1x32xf32>, vector<1x32xf32> -> vector<2x32xf32>
    %c3 = arith.constant 3 : index
    %c0_194 = arith.constant 0 : index
    %c0_195 = arith.constant 0 : index
    %418 = vector.load %arg14[%c3, %c0_194, %c0_195] : memref<4x32x16xf32, #tpu.memory_space<vmem>>, vector<1x32x16xf32>
    %419 = vector.shape_cast %418 : vector<1x32x16xf32> to vector<32x16xf32>
    %cst_196 = arith.constant dense<0.000000e+00> : vector<2x16xf32>
    %420 = tpu.matmul %417, %419, %cst_196 {dimension_numbers = #tpu.dot_dimension_numbers<[1], [0], [0], [1], [0, 0, 1, 1], [], []>} : vector<2x32xf32>, vector<32x16xf32>, vector<2x16xf32> -> vector<2x16xf32>
    %421 = tpu.concatenate %402, %408, %414, %420 in 1 : vector<2x16xf32>, vector<2x16xf32>, vector<2x16xf32>, vector<2x16xf32> -> vector<2x64xf32>
    %c0_197 = arith.constant 0 : index
    %c0_198 = arith.constant 0 : index
    %422 = vector.load %arg15[%c0_197, %c0_198] : memref<2x64xf32, #tpu.memory_space<vmem>>, vector<2x64xf32>
    tpu.vector_store %arg15[%c0_197, %c0_198], %421 {strides = array<i32>} : memref<2x64xf32, #tpu.memory_space<vmem>>, vector<2x64xf32>,
    return
  }
  func.func @transform_0(%arg0: i32) -> (i32, i32, i32) {
    %c0_i32 = arith.constant 0 : i32
    %c0_i32_0 = arith.constant 0 : i32
    %c0_i32_1 = arith.constant 0 : i32
    return %arg0, %c0_i32, %c0_i32_0 : i32, i32, i32
  }
  func.func @transform_1(%arg0: i32) -> (i32, i32, i32) {
    %c0_i32 = arith.constant 0 : i32
    %c0_i32_0 = arith.constant 0 : i32
    %c0_i32_1 = arith.constant 0 : i32
    %c0_i32_2 = arith.constant 0 : i32
    return %c0_i32, %c0_i32_0, %c0_i32_1 : i32, i32, i32
  }
  func.func @transform_2(%arg0: i32) -> (i32, i32, i32) {
    %c0_i32 = arith.constant 0 : i32
    %c0_i32_0 = arith.constant 0 : i32
    %c0_i32_1 = arith.constant 0 : i32
    %c0_i32_2 = arith.constant 0 : i32
    return %c0_i32, %c0_i32_0, %c0_i32_1 : i32, i32, i32
  }
  func.func @transform_3(%arg0: i32) -> (i32, i32, i32, i32) {
    %c0_i32 = arith.constant 0 : i32
    %c0_i32_0 = arith.constant 0 : i32
    %c0_i32_1 = arith.constant 0 : i32
    %c0_i32_2 = arith.constant 0 : i32
    %c0_i32_3 = arith.constant 0 : i32
    return %c0_i32, %c0_i32_0, %c0_i32_1, %c0_i32_2 : i32, i32, i32, i32
  }
  func.func @transform_4(%arg0: i32) -> (i32, i32, i32, i32) {
    %c0_i32 = arith.constant 0 : i32
    %c0_i32_0 = arith.constant 0 : i32
    %c0_i32_1 = arith.constant 0 : i32
    %c0_i32_2 = arith.constant 0 : i32
    %c0_i32_3 = arith.constant 0 : i32
    return %c0_i32, %c0_i32_0, %c0_i32_1, %c0_i32_2 : i32, i32, i32, i32
  }
  func.func @transform_5(%arg0: i32) -> (i32, i32, i32) {
    %c0_i32 = arith.constant 0 : i32
    %c0_i32_0 = arith.constant 0 : i32
    %c0_i32_1 = arith.constant 0 : i32
    %c0_i32_2 = arith.constant 0 : i32
    return %c0_i32, %c0_i32_0, %c0_i32_1 : i32, i32, i32
  }
  func.func @transform_6(%arg0: i32) -> (i32, i32, i32) {
    %c0_i32 = arith.constant 0 : i32
    %c0_i32_0 = arith.constant 0 : i32
    %c0_i32_1 = arith.constant 0 : i32
    %c0_i32_2 = arith.constant 0 : i32
    return %c0_i32, %c0_i32_0, %c0_i32_1 : i32, i32, i32
  }
  func.func @transform_7(%arg0: i32) -> (i32, i32, i32) {
    %c0_i32 = arith.constant 0 : i32
    %c0_i32_0 = arith.constant 0 : i32
    %c0_i32_1 = arith.constant 0 : i32
    %c0_i32_2 = arith.constant 0 : i32
    return %c0_i32, %c0_i32_0, %c0_i32_1 : i32, i32, i32
  }
  func.func @transform_8(%arg0: i32) -> (i32, i32, i32) {
    %c0_i32 = arith.constant 0 : i32
    %c0_i32_0 = arith.constant 0 : i32
    %c0_i32_1 = arith.constant 0 : i32
    %c0_i32_2 = arith.constant 0 : i32
    return %c0_i32, %c0_i32_0, %c0_i32_1 : i32, i32, i32
  }
  func.func @transform_9(%arg0: i32) -> (i32, i32, i32) {
    %c0_i32 = arith.constant 0 : i32
    %c0_i32_0 = arith.constant 0 : i32
    %c0_i32_1 = arith.constant 0 : i32
    %c0_i32_2 = arith.constant 0 : i32
    return %c0_i32, %c0_i32_0, %c0_i32_1 : i32, i32, i32
  }
  func.func @transform_10(%arg0: i32) -> (i32, i32, i32) {
    %c0_i32 = arith.constant 0 : i32
    %c0_i32_0 = arith.constant 0 : i32
    %c0_i32_1 = arith.constant 0 : i32
    %c0_i32_2 = arith.constant 0 : i32
    return %c0_i32, %c0_i32_0, %c0_i32_1 : i32, i32, i32
  }
  func.func @transform_11(%arg0: i32) -> (i32, i32, i32) {
    %c0_i32 = arith.constant 0 : i32
    %c0_i32_0 = arith.constant 0 : i32
    %c0_i32_1 = arith.constant 0 : i32
    %c0_i32_2 = arith.constant 0 : i32
    return %c0_i32, %c0_i32_0, %c0_i32_1 : i32, i32, i32
  }
  func.func @transform_12(%arg0: i32) -> (i32, i32, i32) {
    %c0_i32 = arith.constant 0 : i32
    %c0_i32_0 = arith.constant 0 : i32
    %c0_i32_1 = arith.constant 0 : i32
    %c0_i32_2 = arith.constant 0 : i32
    return %c0_i32, %c0_i32_0, %c0_i32_1 : i32, i32, i32
  }
  func.func @transform_13(%arg0: i32) -> (i32, i32, i32) {
    %c0_i32 = arith.constant 0 : i32
    %c0_i32_0 = arith.constant 0 : i32
    %c0_i32_1 = arith.constant 0 : i32
    %c0_i32_2 = arith.constant 0 : i32
    return %c0_i32, %c0_i32_0, %c0_i32_1 : i32, i32, i32
  }
  func.func @transform_14(%arg0: i32) -> (i32, i32) {
    %c0_i32 = arith.constant 0 : i32
    %c0_i32_0 = arith.constant 0 : i32
    return %arg0, %c0_i32 : i32, i32
  }
}

</mosaic_0001>

<bundles_post_ra>
// kernel: l_transformer_forward.1
= control target key start
LH: loop header
LB: loop body
LE: loop exit
PB: predicated region body
PF: predicated region fallthrough
CT: control target
= control target key end

     0   :  { %vm79_vm0 = vcmask 261120   ;;  %v8170_v14 = vmov 32.0   ;;  %s8174_s22 = smov 48   ;;  %s11817_s0 = inlined_call_operand.vmem [shape: f32[2,32,32], index: 0, kind: input, shape index: {}]   ;;  %s11818_s1 = inlined_call_operand.vmem [shape: f32[2,1,32], index: 1, kind: input, shape index: {}]   ;;  %s11819_s2 = inlined_call_operand.vmem [shape: f32[2,1,32], index: 2, kind: input, shape index: {}]   ;;  %s11820_s3 = inlined_call_operand.vmem [shape: f32[2,3,32,32], index: 3, kind: input, shape index: {}]   ;;  %s11821_s4 = inlined_call_operand.vmem [shape: f32[2,3,1,32], index: 4, kind: input, shape index: {}]   ;;  %s11822_s5 = inlined_call_operand.vmem [shape: f32[2,32,32], index: 5, kind: input, shape index: {}]   ;;  %s11823_s6 = inlined_call_operand.vmem [shape: f32[2,1,32], index: 6, kind: input, shape index: {}]   ;;  %s11824_s7 = inlined_call_operand.vmem [shape: f32[2,1,32], index: 7, kind: input, shape index: {}]   ;;  %s11825_s8 = inlined_call_operand.vmem [shape: f32[2,1,32], index: 8, kind: input, shape index: {}]   ;;  %s11826_s9 = inlined_call_operand.vmem [shape: f32[2,32,256], index: 9, kind: input, shape index: {}]   ;;  %s11827_s10 = inlined_call_operand.vmem [shape: f32[2,1,256], index: 10, kind: input, shape index: {}]   ;;  %s11828_s11 = inlined_call_operand.vmem [shape: f32[2,256,32], index: 11, kind: input, shape index: {}]   ;;  %s11829_s12 = inlined_call_operand.vmem [shape: f32[2,1,32], index: 12, kind: input, shape index: {}]   ;;  %s11830_s13 = inlined_call_operand.vmem [shape: f32[4,32,16], index: 13, kind: input, shape index: {}]   ;;  %s11831_s14 = inlined_call_operand.vmem [shape: f32[2,64], index: 14, kind: output, shape index: {}]  }
   0x1   :  { %v51_v0 = vld [vmem:[%s11817_s0 + $0x20] sm:$0xff]  ;;  %v49_v1 = vld [vmem:[%s11817_s0 + $0x10] sm:$0xff]  ;;  %v52_v6 = vld [vmem:[%s11817_s0 + $0x28] sm:$0xff]  ;;  %7776 = vrcp.f32 %v8170_v14 }
   0x2   :  { %v47_v2 = vld [vmem:[%s11817_s0] sm:$0xff]  ;;  %v92_v3 = vsel %vm79_vm0, %v51_v0, 0.0  ;;  %v86_v4 = vsel %vm79_vm0, %v49_v1, 0.0  ;;  %v50_v7 = vld [vmem:[%s11817_s0 + $0x18] sm:$0xff]  ;;  %v48_v8 = vld [vmem:[%s11817_s0 + $0x8] sm:$0xff]  ;;  %v95_v9 = vsel %vm79_vm0, %v52_v6, 0.0 }
   0x3   :  { %v80_v5 = vsel %vm79_vm0, %v47_v2, 0.0  ;;  %93 = vadd.xlane.f32.xlu2 %v92_v3  ;;  %87 = vadd.xlane.f32.xlu1 %v86_v4  ;;  %v89_v10 = vsel %vm79_vm0, %v50_v7, 0.0  ;;  %v83_v11 = vsel %vm79_vm0, %v48_v8, 0.0  ;;  %v53_v12 = vld [vmem:[%s11817_s0 + $0x30] sm:$0xff]  ;;  %v8301_v40 = vld [vmem:[%s11817_s0 + $0x38] sm:$0xff]  ;;  %v285_v3 = vld [vmem:[%s11820_s3] sm:$0xff] }
   0x4   :  { %81 = vadd.xlane.f32.xlu0 %v80_v5  ;;  %v98_v13 = vsel %vm79_vm0, %v53_v12, 0.0  ;;  %v101_v45 = vsel %vm79_vm0, %v8301_v40, 0.0  ;;  %v288_v58 = vld [vmem:[%s11820_s3 + $0x18] sm:$0xff]  ;;  %v287_v61 = vld [vmem:[%s11820_s3 + $0x10] sm:$0xff]  ;;  %v7345_v4 = vld [vmem:[%s11820_s3 + $0x20] sm:$0xff] }
   0x5   :  { %v7348_v59 = vld [vmem:[%s11820_s3 + $0x38] sm:$0xff]  ;;  %329 = vmatpush.msra.mxu0 %v288_v58  ;;  %v7347_v62 = vld [vmem:[%s11820_s3 + $0x30] sm:$0xff]  ;;  %v7358_v5 = vld [vmem:[%s11820_s3 + $0x40] sm:$0xff] }
   0x6   :  { %v7361_v60 = vld [vmem:[%s11820_s3 + $0x58] sm:$0xff]  ;;  %380 = vmatpush.msra.mxu1 %v7348_v59  ;;  %v7360_v63 = vld [vmem:[%s11820_s3 + $0x50] sm:$0xff] }
   0x7   :  { %v7777_v15 = vpop.eup %7776  ;;  %431 = vmatpush.msra.mxu2 %v7361_v60  ;;  %330 = vmatpush.msra.mxu0 %v287_v61 }
   0x8   :  { %v105_v16 = vmul.f32 32.0, %v7777_v15  ;;  %vm109_vm1 = vweird.f32 %v7777_v15  ;;  %381 = vmatpush.msra.mxu1 %v7347_v62 }
   0x9   :  { %432 = vmatpush.msra.mxu2 %v7360_v63 }
   0xa   :  { %v106_v17 = vsub.f32 1.0, %v105_v16 }
   0xb   :  { %96 = vadd.xlane.f32.xlu2 %v95_v9  ;;  %90 = vadd.xlane.f32.xlu1 %v89_v10 }
   0xc   :  { %84 = vadd.xlane.f32.xlu0 %v83_v11  ;;  %v107_v18 = vmul.f32 %v7777_v15, %v106_v17 }
   0xe   :  { %v108_v19 = vadd.f32 %v7777_v15, %v107_v18 }
  0x10   :  { %v8278_v20 = vsel %vm109_vm1, %v7777_v15, %v108_v19 }
  0x11   :  { %11859 = vst [vmem:[#allocation2_spill] sm:$0xff] %v8278_v20 }
  0x13   :  { %99 = vadd.xlane.f32.xlu1 %v98_v13 }
  0x76   :  { %v94_v21 = vpop.xlane.xlu2 %93  ;;  %v88_v22 = vpop.xlane.xlu1 %87 }
  0x77   :  { %v113_v23 = vmul.f32 %v8278_v20, %v88_v22  ;;  %v82_v24 = vpop.xlane.xlu0 %81  ;;  %v115_v36 = vmul.f32 %v8278_v20, %v94_v21 }
  0x78   :  { %v111_v25 = vmul.f32 %v8278_v20, %v82_v24 }
  0x79   :  { %v8282_v26 = vsub.f32 %v49_v1, %v113_v23  ;;  %v8307_v43 = vsub.f32 %v51_v0, %v115_v36  ;;  %v286_v0 = vld [vmem:[%s11820_s3 + $0x8] sm:$0xff] }
  0x7a   :  { %v8284_v27 = vsub.f32 %v47_v2, %v111_v25  ;;  %v7346_v1 = vld [vmem:[%s11820_s3 + $0x28] sm:$0xff]  ;;  %331 = vmatpush.msra.mxu0 %v286_v0 }
  0x7b   :  { %v129_v28 = vmul.f32 %v8282_v26, %v8282_v26  ;;  %v131_v51 = vmul.f32 %v8307_v43, %v8307_v43  ;;  %v7359_v2 = vld [vmem:[%s11820_s3 + $0x48] sm:$0xff]  ;;  %382 = vmatpush.msra.mxu1 %v7346_v1 }
  0x7c   :  { %v127_v29 = vmul.f32 %v8284_v27, %v8284_v27  ;;  %433 = vmatpush.msra.mxu2 %v7359_v2  ;;  %332 = vmatpush.msra.mxu0 %v285_v3 }
  0x7d   :  { %v141_v30 = vsel %vm79_vm0, %v129_v28, 0.0  ;;  %v147_v54 = vsel %vm79_vm0, %v131_v51, 0.0  ;;  %383 = vmatpush.msra.mxu1 %v7345_v4 }
  0x7e   :  { %v97_v31 = vpop.xlane.xlu2 %96  ;;  %142 = vadd.xlane.f32.xlu1 %v141_v30  ;;  %v135_v32 = vsel %vm79_vm0, %v127_v29, 0.0  ;;  %v91_v33 = vpop.xlane.xlu1 %90  ;;  %434 = vmatpush.msra.mxu2 %v7358_v5 }
  0x7f   :  { %v116_v34 = vmul.f32 %v8278_v20, %v97_v31  ;;  %136 = vadd.xlane.f32.xlu0 %v135_v32  ;;  %v85_v35 = vpop.xlane.xlu0 %84  ;;  %v114_v38 = vmul.f32 %v8278_v20, %v91_v33 }
  0x80   :  { %v112_v37 = vmul.f32 %v8278_v20, %v85_v35 }
  0x81   :  { %v8296_v39 = vsub.f32 %v52_v6, %v116_v34  ;;  %v8309_v44 = vsub.f32 %v50_v7, %v114_v38 }
  0x82   :  { %v8303_v41 = vsub.f32 %v48_v8, %v112_v37 }
  0x83   :  { %v132_v42 = vmul.f32 %v8296_v39, %v8296_v39  ;;  %v130_v52 = vmul.f32 %v8309_v44, %v8309_v44 }
  0x84   :  { %v128_v46 = vmul.f32 %v8303_v41, %v8303_v41 }
  0x85   :  { %v150_v47 = vsel %vm79_vm0, %v132_v42, 0.0  ;;  %v144_v55 = vsel %vm79_vm0, %v130_v52, 0.0  ;;  %v8400_v52 = vld [vmem:[%s11819_s2] ss:$0 sm:$0xff] }
  0x86   :  { %151 = vadd.xlane.f32.xlu1 %v150_v47  ;;  %v138_v48 = vsel %vm79_vm0, %v128_v46, 0.0  ;;  %v100_v49 = vpop.xlane.xlu1 %99  ;;  %v8391_v47 = vld [vmem:[%s11818_s1] ss:$0 sm:$0xff] }
  0x87   :  { %102 = vadd.xlane.f32.xlu0 %v101_v45  ;;  %139 = vadd.xlane.f32.xlu2 %v138_v48  ;;  %v117_v50 = vmul.f32 %v8278_v20, %v100_v49 }
  0x89   :  { %v8322_v53 = vsub.f32 %v53_v12, %v117_v50 }
  0x8b   :  { %v133_v56 = vmul.f32 %v8322_v53, %v8322_v53 }
  0x8d   :  { %v153_v57 = vsel %vm79_vm0, %v133_v56, 0.0 }
  0x8f   :  { %148 = vadd.xlane.f32.xlu0 %v147_v54  ;;  %145 = vadd.xlane.f32.xlu2 %v144_v55 }
  0x97   :  { %154 = vadd.xlane.f32.xlu2 %v153_v57 }
  0xf1   :  { %v143_v6 = vpop.xlane.xlu1 %142 }
  0xf2   :  { %v161_v7 = vmul.f32 %v143_v6, %v8278_v20  ;;  %v137_v8 = vpop.xlane.xlu0 %136 }
  0xf3   :  { %v159_v9 = vmul.f32 %v137_v8, %v8278_v20 }
  0xf4   :  { %v8367_v10 = vadd.f32 1e-05, %v161_v7 }
  0xf5   :  { %v167_v11 = vadd.f32 1e-05, %v159_v9 }
  0xf6   :  { %7778 = vrsqrt.f32 %v8367_v10  ;;  %vm201_vm7 = vweird.f32 %v8367_v10 }
  0xf7   :  { %7780 = vrsqrt.f32 %v167_v11  ;;  %vm181_vm3 = vweird.f32 %v167_v11 }
  0xf9   :  { %v152_v25 = vpop.xlane.xlu1 %151 }
  0xfa   :  { %v140_v12 = vpop.xlane.xlu2 %139  ;;  %v103_v13 = vpop.xlane.xlu0 %102  ;;  %v164_v37 = vmul.f32 %v152_v25, %v8278_v20 }
  0xfb   :  { %v160_v14 = vmul.f32 %v140_v12, %v8278_v20  ;;  %v118_v15 = vmul.f32 %v8278_v20, %v103_v13 }
  0xfc   :  { %v8372_v16 = vpop.eup %7778  ;;  %v8394_v50 = vadd.f32 1e-05, %v164_v37 }
  0xfd   :  { %v7781_v17 = vpop.eup %7780  ;;  %v168_v18 = vadd.f32 1e-05, %v160_v14  ;;  %v8375_v19 = vsub.f32 %v8301_v40, %v118_v15  ;;  %v196_v21 = vmul.f32 %v8372_v16, %v8367_v10  ;;  %vm202_vm8 = vweird.f32 %v8372_v16 }
  0xfe   :  { %v176_v22 = vmul.f32 %v7781_v17, %v167_v11  ;;  %vm182_vm2 = vweird.f32 %v7781_v17  ;;  %vm8409_vm10 = vmor %vm201_vm7, %vm202_vm8 }
  0xff   :  { %7782 = vrsqrt.f32 %v168_v18  ;;  %v134_v23 = vmul.f32 %v8375_v19, %v8375_v19  ;;  %v197_v29 = vmul.f32 %v8372_v16, %v196_v21  ;;  %vm183_vm4 = vmor %vm181_vm3, %vm182_vm2  ;;  %vm191_vm5 = vweird.f32 %v168_v18 }
 0x100   :  { %v177_v24 = vmul.f32 %v7781_v17, %v176_v22  ;;  %vm231_vm2 = vweird.f32 %v8394_v50 }
 0x101   :  { %v156_v28 = vsel %vm79_vm0, %v134_v23, 0.0  ;;  %v198_v40 = vmul.f32 0.5, %v197_v29 }
 0x102   :  { %v178_v30 = vmul.f32 0.5, %v177_v24  ;;  %v146_v31 = vpop.xlane.xlu2 %145  ;;  %157 = vadd.xlane.f32.xlu0 %v156_v28  ;;  %v149_v32 = vpop.xlane.xlu0 %148 }
 0x103   :  { %v162_v33 = vmul.f32 %v146_v31, %v8278_v20  ;;  %v163_v34 = vmul.f32 %v149_v32, %v8278_v20  ;;  %v199_v54 = vsub.f32 1.5, %v198_v40 }
 0x104   :  { %v179_v35 = vsub.f32 1.5, %v178_v30 }
 0x105   :  { %v7783_v36 = vpop.eup %7782  ;;  %v170_v38 = vadd.f32 1e-05, %v162_v33  ;;  %v8386_v46 = vadd.f32 1e-05, %v163_v34  ;;  %v200_v62 = vmul.f32 %v8372_v16, %v199_v54  ;;  %v55_v54 = vlaneseq }
 0x106   :  { %v180_v42 = vmul.f32 %v7781_v17, %v179_v35  ;;  %v186_v45 = vmul.f32 %v7783_v36, %v168_v18  ;;  %vm192_vm6 = vweird.f32 %v7783_v36 }
 0x107   :  { %7784 = vrsqrt.f32 %v170_v38  ;;  %vm193_vm9 = vmor %vm191_vm5, %vm192_vm6  ;;  %v204_v9 = vsel %vm8409_vm10, %v8372_v16, %v200_v62  ;;  %vm211_vm11 = vweird.f32 %v170_v38  ;;  %vm221_vm14 = vweird.f32 %v8386_v46 }
 0x108   :  { %v187_v48 = vmul.f32 %v7783_v36, %v186_v45  ;;  %7786 = vrsqrt.f32 %v8386_v46  ;;  %v184_v49 = vsel %vm183_vm4, %v7781_v17, %v180_v42  ;;  %v257_v14 = vmul.f32 %v204_v9, %v8282_v26  ;;  %v8479_v9 = vld [vmem:[%s11821_s4] ss:$0 sm:$0xff] }
 0x109   :  { %v255_v51 = vmul.f32 %v184_v49, %v8284_v27  ;;  %7788 = vrsqrt.f32 %v8394_v50 }
 0x10a   :  { %v188_v55 = vmul.f32 0.5, %v187_v48  ;;  %v155_v56 = vpop.xlane.xlu2 %154  ;;  %v268_v16 = vmul.f32 %v8391_v47, %v257_v14 }
 0x10b   :  { %v266_v57 = vmul.f32 %v8391_v47, %v255_v51  ;;  %v165_v27 = vmul.f32 %v155_v56, %v8278_v20 }
 0x10c   :  { %v189_v58 = vsub.f32 1.5, %v188_v55  ;;  %v279_v26 = vadd.f32 %v8400_v52, %v268_v16  ;;  %v56_v55 = vand.u32 127, %v55_v54 }
 0x10d   :  { %v7785_v59 = vpop.eup %7784  ;;  %v277_v60 = vadd.f32 %v8400_v52, %v266_v57  ;;  %v173_v5 = vadd.f32 1e-05, %v165_v27 }
 0x10e   :  { %v7787_v61 = vpop.eup %7786  ;;  %v190_v63 = vmul.f32 %v7783_v36, %v189_v58  ;;  %v206_v0 = vmul.f32 %v7785_v59, %v170_v38  ;;  %vm212_vm12 = vweird.f32 %v7785_v59  ;;  %vm67_vm8 = vcmp.ge.s32.totalorder %v56_v55, 16 }
 0x10f   :  { %v216_v2 = vmul.f32 %v7787_v61, %v8386_v46  ;;  %7337 = vmatmul.msk.f32.vlgmr.msra.gmra.mxu0 %vm79_vm0, %v277_v60  ;;  %7350 = vmatmul.msk.f32.vlgmr.msra.gmra.mxu1 %vm79_vm0, %v277_v60  ;;  %v7789_v10 = vpop.eup %7788  ;;  %7790 = vrsqrt.f32 %v173_v5  ;;  %vm213_vm13 = vmor %vm211_vm11, %vm212_vm12  ;;  %vm222_vm15 = vweird.f32 %v7787_v61  ;;  %vm241_vm5 = vweird.f32 %v173_v5 }
 0x110   :  { %v207_v3 = vmul.f32 %v7785_v59, %v206_v0  ;;  %7363 = vmatmul.msk.f32.vlgmr.msra.gmra.mxu2 %vm79_vm0, %v277_v60  ;;  %v194_v4 = vsel %vm193_vm9, %v7783_v36, %v190_v63  ;;  %v226_v15 = vmul.f32 %v7789_v10, %v8394_v50  ;;  %vm223_vm1 = vmor %vm221_vm14, %vm222_vm15  ;;  %vm232_vm3 = vweird.f32 %v7789_v10 }
 0x111   :  { %v256_v6 = vmul.f32 %v194_v4, %v8303_v41  ;;  %v217_v8 = vmul.f32 %v7787_v61, %v216_v2  ;;  %vm233_vm4 = vmor %vm231_vm2, %vm232_vm3  ;;  %vm68_vm9 = vcmp.lt.s32.totalorder %v56_v55, 24  ;;  %vm72_vm10 = vcmp.ge.s32.totalorder %v56_v55, 24  ;;  %v8467_v2 = vld [vmem:[%s11821_s4 + $0x1] ss:$0 sm:$0xff] }
 0x112   :  { %v208_v7 = vmul.f32 0.5, %v207_v3  ;;  %v227_v18 = vmul.f32 %v7789_v10, %v226_v15  ;;  %vm73_vm11 = vcmp.lt.s32.totalorder %v56_v55, 32  ;;  %vm69_vm12 = vmand %vm67_vm8, %vm68_vm9  ;;  %vm58_vm2 = vcmp.lt.s32.totalorder %v56_v55, 8 }
 0x113   :  { %v267_v11 = vmul.f32 %v8391_v47, %v256_v6  ;;  %v218_v17 = vmul.f32 0.5, %v217_v8  ;;  %vm62_vm3 = vcmp.ge.s32.totalorder %v56_v55, 8 }
 0x114   :  { %v209_v12 = vsub.f32 1.5, %v208_v7  ;;  %v228_v25 = vmul.f32 0.5, %v227_v18 }
 0x115   :  { %v278_v13 = vadd.f32 %v8400_v52, %v267_v11  ;;  %v219_v21 = vsub.f32 1.5, %v218_v17  ;;  %v7791_v23 = vpop.eup %7790 }
 0x116   :  { %v210_v41 = vmul.f32 %v7785_v59, %v209_v12  ;;  %v236_v29 = vmul.f32 %v7791_v23, %v173_v5  ;;  %v229_v31 = vsub.f32 1.5, %v228_v25  ;;  %vm242_vm6 = vweird.f32 %v7791_v23 }
 0x117   :  { %7338 = vmatmul.msk.f32.gmra.mxu0 %vm79_vm0, %v278_v13  ;;  %7351 = vmatmul.msk.f32.gmra.mxu1 %vm79_vm0, %v278_v13  ;;  %v220_v28 = vmul.f32 %v7787_v61, %v219_v21  ;;  %vm243_vm7 = vmor %vm241_vm5, %vm242_vm6  ;;  %vm684_vm6 = vcmask 64512  }
 0x118   :  { %7364 = vmatmul.msk.f32.gmra.mxu2 %vm79_vm0, %v278_v13  ;;  %v214_v22 = vsel %vm213_vm13, %v7785_v59, %v210_v41  ;;  %v237_v32 = vmul.f32 %v7791_v23, %v236_v29  ;;  %v230_v35 = vmul.f32 %v7789_v10, %v229_v31  ;;  %vm74_vm13 = vmand %vm72_vm10, %vm73_vm11 }
 0x119   :  { %v258_v24 = vmul.f32 %v214_v22, %v8309_v44  ;;  %v224_v33 = vsel %vm223_vm1, %v7787_v61, %v220_v28 }
 0x11a   :  { %v259_v34 = vmul.f32 %v224_v33, %v8307_v43  ;;  %v238_v36 = vmul.f32 0.5, %v237_v32  ;;  %v234_v40 = vsel %vm233_vm4, %v7789_v10, %v230_v35  ;;  %vm63_vm4 = vcmp.lt.s32.totalorder %v56_v55, 16 }
 0x11b   :  { %v269_v30 = vmul.f32 %v8391_v47, %v258_v24  ;;  %v260_v45 = vmul.f32 %v234_v40, %v8296_v39  ;;  %vm64_vm5 = vmand %vm62_vm3, %vm63_vm4 }
 0x11c   :  { %v270_v37 = vmul.f32 %v8391_v47, %v259_v34  ;;  %v239_v38 = vsub.f32 1.5, %v238_v36 }
 0x11d   :  { %v280_v44 = vadd.f32 %v8400_v52, %v269_v30  ;;  %v271_v46 = vmul.f32 %v8391_v47, %v260_v45 }
 0x11e   :  { %v281_v42 = vadd.f32 %v8400_v52, %v270_v37  ;;  %v240_v43 = vmul.f32 %v7791_v23, %v239_v38 }
 0x11f   :  { %7339 = vmatmul.msk.f32.gmra.mxu0 %vm79_vm0, %v279_v26  ;;  %7352 = vmatmul.msk.f32.gmra.mxu1 %vm79_vm0, %v279_v26  ;;  %v282_v49 = vadd.f32 %v8400_v52, %v271_v46 }
 0x120   :  { %7365 = vmatmul.msk.f32.gmra.mxu2 %vm79_vm0, %v279_v26  ;;  %v244_v48 = vsel %vm243_vm7, %v7791_v23, %v240_v43 }
 0x121   :  { %v261_v50 = vmul.f32 %v244_v48, %v8322_v53  ;;  %v8171_v53 = vmov 0.0  }
 0x122   :  { %v8459_v56 = vsel %vm69_vm12, 1.0, %v8171_v53  ;;  %v8461_v57 = vsel %vm74_vm13, 1.0, %v8171_v53  ;;  %v8514_v23 = vsel %vm64_vm5, 1.0, %v8171_v53 }
 0x123   :  { %v272_v39 = vmul.f32 %v8391_v47, %v261_v50  ;;  %11862 = vst [vmem:[#allocation3_spill] sm:$0xff] %v8459_v56 }
 0x124   :  { %11863 = vst [vmem:[#allocation4_spill] sm:$0xff] %v8461_v57 }
 0x125   :  { %v283_v51 = vadd.f32 %v8400_v52, %v272_v39  ;;  %11865 = vst [vmem:[#allocation6_spill] sm:$0xff] %v8514_v23 }
 0x127   :  { %7340 = vmatmul.msk.f32.gmra.mxu0 %vm79_vm0, %v280_v44  ;;  %7353 = vmatmul.msk.f32.gmra.mxu1 %vm79_vm0, %v280_v44 }
 0x128   :  { %7366 = vmatmul.msk.f32.gmra.mxu2 %vm79_vm0, %v280_v44 }
 0x12f   :  { %7341 = vmatmul.msk.f32.gmra.mxu0 %vm79_vm0, %v281_v42  ;;  %7354 = vmatmul.msk.f32.gmra.mxu1 %vm79_vm0, %v281_v42 }
 0x130   :  { %7367 = vmatmul.msk.f32.gmra.mxu2 %vm79_vm0, %v281_v42  ;;  %v8558_v42 = vld [vmem:[%s11821_s4 + $0x2] ss:$0 sm:$0xff] }
 0x137   :  { %7342 = vmatmul.msk.f32.gmra.mxu0 %vm79_vm0, %v282_v49  ;;  %7355 = vmatmul.msk.f32.gmra.mxu1 %vm79_vm0, %v282_v49 }
 0x138   :  { %7368 = vmatmul.msk.f32.gmra.mxu2 %vm79_vm0, %v282_v49 }
 0x13f   :  { %7343 = vmatmul.msk.f32.gmra.mxu0 %vm79_vm0, %v283_v51  ;;  %7356 = vmatmul.msk.f32.gmra.mxu1 %vm79_vm0, %v283_v51 }
 0x140   :  { %7369 = vmatmul.msk.f32.gmra.mxu2 %vm79_vm0, %v283_v51 }
 0x175   :  { %v158_v58 = vpop.xlane.xlu0 %157 }
 0x176   :  { %v166_v59 = vmul.f32 %v158_v58, %v8278_v20 }
 0x178   :  { %v174_v27 = vadd.f32 1e-05, %v166_v59 }
 0x17a   :  { %7792 = vrsqrt.f32 %v174_v27  ;;  %vm251_vm15 = vweird.f32 %v174_v27 }
 0x180   :  { %v7793_v60 = vpop.eup %7792 }
 0x181   :  { %v246_v61 = vmul.f32 %v7793_v60, %v174_v27  ;;  %vm252_vm14 = vweird.f32 %v7793_v60 }
 0x182   :  { %vm253_vm1 = vmor %vm251_vm15, %vm252_vm14 }
 0x183   :  { %v247_v62 = vmul.f32 %v7793_v60, %v246_v61 }
 0x185   :  { %v248_v63 = vmul.f32 0.5, %v247_v62 }
 0x187   :  { %v249_v0 = vsub.f32 1.5, %v248_v63 }
 0x189   :  { %v250_v1 = vmul.f32 %v7793_v60, %v249_v0 }
 0x18b   :  { %v254_v3 = vsel %vm253_vm1, %v7793_v60, %v250_v1 }
 0x18c   :  { %v334_v4 = vpop.f32.mrf.mxu0  ;;  %v385_v5 = vpop.f32.mrf.mxu1  ;;  %v262_v6 = vmul.f32 %v254_v3, %v8375_v19 }
 0x18d   :  { %v8471_v7 = vadd.f32 %v8467_v2, %v385_v5 }
 0x18e   :  { %v273_v8 = vmul.f32 %v8391_v47, %v262_v6  ;;  %v8488_v47 = vadd.f32 %v8479_v9, %v334_v4 }
 0x18f   :  { %7371 = vmatpush.xpose.msk.msrb.mxu0 %vm79_vm0, %v8471_v7 }
 0x190   :  { %v284_v10 = vadd.f32 %v8400_v52, %v273_v8  ;;  %v8496_v52 = vsel %vm58_vm2, 1.0, %v8171_v53 }
 0x191   :  { %11864 = vst [vmem:[#allocation5_spill] sm:$0xff] %v8496_v52  ;;  %v460_v15 = vmul.f32 %v8496_v52, %v8488_v47 }
 0x192   :  { %7344 = vmatmul.msk.f32.gmra.mxu0 %vm79_vm0, %v284_v10  ;;  %7357 = vmatmul.msk.f32.gmra.mxu1 %vm79_vm0, %v284_v10 }
 0x193   :  { %v8484_v19 = vpop.f32.mrf.mxu2  ;;  %7370 = vmatmul.msk.f32.gmra.mxu2 %vm79_vm0, %v284_v10 }
 0x194   :  { %v337_v11 = vpop.f32.mrf.mxu0  ;;  %v388_v12 = vpop.f32.mrf.mxu1 }
 0x195   :  { %v8491_v13 = vadd.f32 %v8479_v9, %v337_v11  ;;  %v8494_v14 = vadd.f32 %v8467_v2, %v388_v12 }
 0x197   :  { %7373 = vmatpush.xpose.msk.msra.mxu3 %vm79_vm0, %v8494_v14  ;;  %7389 = vmatpush.xpose.msk.msra.mxu0 %vm79_vm0, %v8494_v14  ;;  %v461_v41 = vmul.f32 %v8496_v52, %v8491_v13  ;;  %v774_v24 = vmul.f32 %v8514_v23, %v8491_v13 }
 0x19a   :  { %7372 = vmatmul.msk.f32.vlgmr.msrb.gmra.mxu0 %vm79_vm0, %v460_v15  ;;  %7374 = vmatmul.msk.f32.vlgmr.msra.gmra.mxu3 %vm79_vm0, %v461_v41 }
 0x19b   :  { %v439_v17 = vpop.f32.mrf.mxu2 }
 0x19c   :  { %v340_v16 = vpop.f32.mrf.mxu0  ;;  %v391_v18 = vpop.f32.mrf.mxu1  ;;  %v8562_v45 = vadd.f32 %v8558_v42, %v439_v17 }
 0x19d   :  { %v8509_v21 = vadd.f32 %v8479_v9, %v340_v16  ;;  %v8512_v22 = vadd.f32 %v8467_v2, %v391_v18  ;;  %v8647_v18 = vadd.f32 %v8558_v42, %v8484_v19 }
 0x19e   :  { %v782_v54 = vmul.f32 %v8514_v23, %v8562_v45 }
 0x19f   :  { %7375 = vmatpush.xpose.msk.msrb.mxu3 %vm79_vm0, %v8512_v22  ;;  %7391 = vmatpush.xpose.msk.msrb.mxu1 %vm79_vm0, %v8512_v22  ;;  %v462_v26 = vmul.f32 %v8496_v52, %v8509_v21  ;;  %v775_v25 = vmul.f32 %v8514_v23, %v8509_v21 }
 0x1a2   :  { %7376 = vmatmul.msk.f32.vlgmr.msrb.gmra.mxu3 %vm79_vm0, %v462_v26  ;;  %7390 = vmatmul.msk.f32.vlgmr.msra.gmra.mxu0 %vm79_vm0, %v774_v24 }
 0x1a3   :  { %v442_v28 = vpop.f32.mrf.mxu2  ;;  %7392 = vmatmul.msk.f32.vlgmr.msrb.gmra.mxu1 %vm79_vm0, %v775_v25  ;;  %v773_v25 = vmul.f32 %v8514_v23, %v8488_v47 }
 0x1a4   :  { %v343_v29 = vpop.f32.mrf.mxu0  ;;  %v394_v30 = vpop.f32.mrf.mxu1  ;;  %v8584_v55 = vadd.f32 %v8558_v42, %v442_v28  ;;  %v781_v28 = vmul.f32 %v8514_v23, %v8647_v18 }
 0x1a5   :  { %v8530_v31 = vadd.f32 %v8479_v9, %v343_v29  ;;  %v8533_v32 = vadd.f32 %v8467_v2, %v394_v30 }
 0x1a6   :  { %v783_v1 = vmul.f32 %v8514_v23, %v8584_v55 }
 0x1a7   :  { %v463_v33 = vmul.f32 %v8496_v52, %v8530_v31  ;;  %7377 = vmatpush.xpose.msk.msra.mxu3 %vm79_vm0, %v8533_v32  ;;  %7393 = vmatpush.xpose.msk.msrb.mxu2 %vm79_vm0, %v8533_v32  ;;  %v776_v44 = vmul.f32 %v8514_v23, %v8530_v31 }
 0x1aa   :  { %7378 = vmatmul.msk.f32.vlgmr.msra.gmra.mxu3 %vm79_vm0, %v463_v33  ;;  %7394 = vmatmul.msk.f32.vlgmr.msrb.gmra.mxu2 %vm79_vm0, %v776_v44 }
 0x1ab   :  { %v445_v34 = vpop.f32.mrf.mxu2 }
 0x1ac   :  { %v346_v35 = vpop.f32.mrf.mxu0  ;;  %v397_v36 = vpop.f32.mrf.mxu1  ;;  %v8616_v6 = vadd.f32 %v8558_v42, %v445_v34 }
 0x1ad   :  { %v8546_v37 = vadd.f32 %v8479_v9, %v346_v35  ;;  %v8549_v38 = vadd.f32 %v8467_v2, %v397_v36 }
 0x1ae   :  { %v784_v17 = vmul.f32 %v8514_v23, %v8616_v6 }
 0x1af   :  { %v464_v40 = vmul.f32 %v8496_v52, %v8546_v37  ;;  %7379 = vmatpush.xpose.msk.msrb.mxu3 %vm79_vm0, %v8549_v38  ;;  %v777_v44 = vmul.f32 %v8514_v23, %v8546_v37 }
 0x1b2   :  { %7380 = vmatmul.msk.f32.vlgmr.msrb.gmra.mxu3 %vm79_vm0, %v464_v40 }
 0x1b3   :  { %v8564_v43 = vpop.f32.mrf.mxu2 }
 0x1b4   :  { %v349_v46 = vpop.f32.mrf.mxu0  ;;  %v400_v48 = vpop.f32.mrf.mxu1  ;;  %v8664_v30 = vadd.f32 %v8558_v42, %v8564_v43 }
 0x1b5   :  { %v8567_v49 = vadd.f32 %v8479_v9, %v349_v46  ;;  %v8570_v50 = vadd.f32 %v8467_v2, %v400_v48 }
 0x1b6   :  { %v785_v34 = vmul.f32 %v8514_v23, %v8664_v30 }
 0x1b7   :  { %v465_v39 = vmul.f32 %v8496_v52, %v8567_v49  ;;  %v778_v51 = vmul.f32 %v8514_v23, %v8567_v49  ;;  %7381 = vmatpush.xpose.msk.msra.mxu3 %vm79_vm0, %v8570_v50  ;;  %7397 = vmatpush.xpose.msk.msrb.mxu0 %vm79_vm0, %v8570_v50 }
 0x1ba   :  { %7382 = vmatmul.msk.f32.vlgmr.msra.gmra.mxu3 %vm79_vm0, %v465_v39  ;;  %7398 = vmatmul.msk.f32.vlgmr.msrb.gmra.mxu0 %vm79_vm0, %v778_v51 }
 0x1bb   :  { %1102 = vmatpush.msra.mxu0 %v782_v54  ;;  %v451_v53 = vpop.f32.mrf.mxu2 }
 0x1bc   :  { %v8588_v58 = vadd.f32 %v8558_v42, %v451_v53  ;;  %v352_v59 = vpop.f32.mrf.mxu0  ;;  %v403_v27 = vpop.f32.mrf.mxu1 }
 0x1bd   :  { %v8591_v60 = vadd.f32 %v8479_v9, %v352_v59  ;;  %v8594_v61 = vadd.f32 %v8467_v2, %v403_v27 }
 0x1be   :  { %v786_v62 = vmul.f32 %v8514_v23, %v8588_v58 }
 0x1bf   :  { %v466_v63 = vmul.f32 %v8496_v52, %v8591_v60  ;;  %v779_v0 = vmul.f32 %v8514_v23, %v8591_v60  ;;  %7383 = vmatpush.xpose.msk.msrb.mxu3 %vm79_vm0, %v8594_v61  ;;  %7399 = vmatpush.xpose.msk.msra.mxu1 %vm79_vm0, %v8594_v61 }
 0x1c0   :  { %1194 = vmatpush.msrb.mxu0 %v786_v62 }
 0x1c2   :  { %7384 = vmatmul.msk.f32.vlgmr.msrb.gmra.mxu3 %vm79_vm0, %v466_v63  ;;  %7400 = vmatmul.msk.f32.vlgmr.msra.gmra.mxu1 %vm79_vm0, %v779_v0 }
 0x1c3   :  { %1125 = vmatpush.msrb.mxu1 %v783_v1  ;;  %v454_v3 = vpop.f32.mrf.mxu2 }
 0x1c4   :  { %v8611_v4 = vadd.f32 %v8558_v42, %v454_v3 }
 0x1c6   :  { %v787_v5 = vmul.f32 %v8514_v23, %v8611_v4 }
 0x1c8   :  { %1217 = vmatpush.msra.mxu1 %v787_v5 }
 0x20f   :  { %v355_v8 = vpop.f32.mrf.mxu0  ;;  %v406_v10 = vpop.f32.mrf.mxu1 }
 0x210   :  { %v8619_v11 = vadd.f32 %v8479_v9, %v355_v8  ;;  %v8622_v12 = vadd.f32 %v8467_v2, %v406_v10 }
 0x212   :  { %v467_v15 = vmul.f32 %v8496_v52, %v8619_v11  ;;  %v780_v41 = vmul.f32 %v8514_v23, %v8619_v11  ;;  %7385 = vmatpush.xpose.msk.msra.mxu3 %vm79_vm0, %v8622_v12  ;;  %7401 = vmatpush.xpose.msk.msra.mxu2 %vm79_vm0, %v8622_v12 }
 0x215   :  { %7386 = vmatmul.msk.f32.vlgmr.msra.gmra.mxu3 %vm79_vm0, %v467_v15  ;;  %7402 = vmatmul.msk.f32.vlgmr.msra.gmra.mxu2 %vm79_vm0, %v780_v41 }
 0x216   :  { %7387 = vmatpush.xpose.msk.msrb.mxu3 %vm79_vm0, %v8471_v7  ;;  %1148 = vmatpush.msrb.mxu2 %v784_v17  ;;  %v457_v2 = vpop.f32.mrf.mxu2 }
 0x217   :  { %v8641_v9 = vadd.f32 %v8558_v42, %v457_v2  ;;  %v8643_v16 = vpop.f32.mrf.mxu0 }
 0x218   :  { %v685_v26 = vsel %vm684_vm6, %v8643_v16, -inf }
 0x219   :  { %686 = vmax.xlane.f32.xlu0 %v685_v26  ;;  %v788_v24 = vmul.f32 %v8514_v23, %v8641_v9 }
 0x21a   :  { %7395 = vmatpush.xpose.msk.msra.mxu3 %vm79_vm0, %v8549_v38 }
 0x21b   :  { %1240 = vmatpush.msra.mxu2 %v788_v24 }
 0x21d   :  { %7388 = vmatmul.msk.f32.vlgmr.msrb.gmra.mxu3 %vm79_vm0, %v773_v25  ;;  %v8658_v29 = vpop.f32.mrf.mxu3 }
 0x21e   :  { %1079 = vmatpush.msrb.mxu3 %v781_v28  ;;  %v688_v17 = vsel %vm684_vm6, %v8658_v29, -inf }
 0x21f   :  { %v8660_v19 = vpop.f32.mrf.mxu0 }
 0x220   :  { %v976_v33 = vsel %vm684_vm6, %v8660_v19, -inf  ;;  %v8677_v40 = vpop.f32.mrf.mxu1 }
 0x221   :  { %977 = vmax.xlane.f32.xlu0 %v976_v33  ;;  %v979_v41 = vsel %vm684_vm6, %v8677_v40, -inf }
 0x225   :  { %7396 = vmatmul.msk.f32.vlgmr.msra.gmra.mxu3 %vm79_vm0, %v777_v44  ;;  %v8673_v35 = vpop.f32.mrf.mxu3 }
 0x226   :  { %1171 = vmatpush.msra.mxu3 %v785_v34  ;;  %v691_v26 = vsel %vm684_vm6, %v8673_v35, -inf }
 0x22d   :  { %v8675_v36 = vpop.f32.mrf.mxu3  ;;  %v878_v63 = vpop.f32.mrf.mxu2 }
 0x22e   :  { %v982_v10 = vsel %vm684_vm6, %v878_v63, -inf  ;;  %v694_v15 = vsel %vm684_vm6, %v8675_v36, -inf }
 0x235   :  { %v603_v46 = vpop.f32.mrf.mxu3 }
 0x236   :  { %v697_v1 = vsel %vm684_vm6, %v603_v46, -inf }
 0x237   :  { %v8679_v42 = vpop.f32.mrf.mxu0 }
 0x238   :  { %v988_v43 = vsel %vm684_vm6, %v8679_v42, -inf }
 0x239   :  { %989 = vmax.xlane.f32.xlu0 %v988_v43 }
 0x23d   :  { %v8687_v51 = vpop.f32.mrf.mxu3 }
 0x23e   :  { %v700_v54 = vsel %vm684_vm6, %v8687_v51, -inf }
 0x23f   :  { %v8683_v48 = vpop.f32.mrf.mxu1 }
 0x240   :  { %v991_v39 = vsel %vm684_vm6, %v8683_v48, -inf }
 0x241   :  { %992 = vmax.xlane.f32.xlu0 %v991_v39 }
 0x245   :  { %v8691_v53 = vpop.f32.mrf.mxu3 }
 0x246   :  { %v703_v24 = vsel %vm684_vm6, %v8691_v53, -inf }
 0x249   :  { %701 = vmax.xlane.f32.xlu0 %v700_v54 }
 0x28c   :  { %v687_v25 = vpop.xlane.xlu0 %686 }
 0x28d   :  { %v709_v44 = vsub.f32 %v8643_v16, %v687_v25 }
 0x28f   :  { %v717_v39 = vmul.f32 1.442695, %v709_v44 }
 0x294   :  { %v978_v34 = vpop.xlane.xlu0 %977 }
 0x298   :  { %v8693_v59 = vpop.f32.mrf.mxu3  ;;  %v970_v5 = vpop.f32.mrf.mxu2 }
 0x299   :  { %v994_v8 = vsel %vm684_vm6, %v970_v5, -inf  ;;  %v706_v2 = vsel %vm684_vm6, %v8693_v59, -inf }
 0x2a0   :  { %v809_v27 = vpop.f32.mrf.mxu3 }
 0x2a1   :  { %v973_v62 = vsel %vm684_vm6, %v809_v27, -inf }
 0x2a2   :  { %974 = vmax.xlane.f32.xlu1 %v973_v62 }
 0x2a8   :  { %v901_v0 = vpop.f32.mrf.mxu3 }
 0x2a9   :  { %v985_v3 = vsel %vm684_vm6, %v901_v0, -inf }
 0x2aa   :  { %698 = vmax.xlane.f32.xlu1 %v697_v1  ;;  %986 = vmax.xlane.f32.xlu2 %v985_v3 }
 0x2b2   :  { %995 = vmax.xlane.f32.xlu1 %v994_v8  ;;  %983 = vmax.xlane.f32.xlu2 %v982_v10  ;;  %v998_v10 = vsub.f32 %v8660_v19, %v978_v34 }
 0x2b4   :  { %v1007_v16 = vmul.f32 1.442695, %v998_v10 }
 0x2ba   :  { %695 = vmax.xlane.f32.xlu1 %v694_v15  ;;  %980 = vmax.xlane.f32.xlu2 %v979_v41  ;;  %v990_v15 = vpop.xlane.xlu0 %989 }
 0x2bb   :  { %v1002_v19 = vsub.f32 %v8679_v42, %v990_v15 }
 0x2bd   :  { %v1015_v42 = vmul.f32 1.442695, %v1002_v19 }
 0x2c2   :  { %689 = vmax.xlane.f32.xlu2 %v688_v17  ;;  %707 = vmax.xlane.f32.xlu1 %v706_v2 }
 0x2ca   :  { %692 = vmax.xlane.f32.xlu2 %v691_v26 }
 0x2d2   :  { %704 = vmax.xlane.f32.xlu2 %v703_v24 }
 0x315   :  { %v975_v28 = vpop.xlane.xlu1 %974 }
 0x316   :  { %v997_v33 = vsub.f32 %v809_v27, %v975_v28 }
 0x318   :  { %v1005_v43 = vmul.f32 1.442695, %v997_v33 }
 0x31a   :  { %7794 = vpow2.f32 %v1005_v43 }
 0x31b   :  { %7796 = vpow2.f32 %v717_v39  ;;  %v993_v39 = vpop.xlane.xlu0 %992 }
 0x31c   :  { %v1003_v15 = vsub.f32 %v8683_v48, %v993_v39 }
 0x31d   :  { %v699_v54 = vpop.xlane.xlu1 %698  ;;  %v987_v62 = vpop.xlane.xlu2 %986 }
 0x31e   :  { %v713_v1 = vsub.f32 %v603_v46, %v699_v54  ;;  %v1001_v3 = vsub.f32 %v901_v0, %v987_v62 }
 0x320   :  { %v8713_v8 = vpop.eup %7794  ;;  %v725_v41 = vmul.f32 1.442695, %v713_v1  ;;  %v1013_v17 = vmul.f32 1.442695, %v1001_v3 }
 0x321   :  { %v1021_v27 = vsel %vm684_vm6, %v8713_v8, 0.0  ;;  %v8718_v24 = vpop.eup %7796 }
 0x322   :  { %7798 = vpow2.f32 %v725_v41  ;;  %1022 = vadd.xlane.f32.xlu1 %v1021_v27  ;;  %v733_v43 = vsel %vm684_vm6, %v8718_v24, 0.0 }
 0x323   :  { %7800 = vpow2.f32 %v1013_v17  ;;  %v702_v48 = vpop.xlane.xlu0 %701 }
 0x324   :  { %7802 = vpow2.f32 %v1007_v16 }
 0x325   :  { %v996_v2 = vpop.xlane.xlu1 %995  ;;  %v984_v26 = vpop.xlane.xlu2 %983 }
 0x326   :  { %v1004_v46 = vsub.f32 %v970_v5, %v996_v2  ;;  %v1000_v0 = vsub.f32 %v878_v63, %v984_v26 }
 0x328   :  { %v8720_v25 = vpop.eup %7798  ;;  %v1019_v28 = vmul.f32 1.442695, %v1004_v46  ;;  %v1011_v33 = vmul.f32 1.442695, %v1000_v0 }
 0x329   :  { %v8723_v44 = vpop.eup %7800  ;;  %v745_v34 = vsel %vm684_vm6, %v8720_v25, 0.0 }
 0x32a   :  { %7804 = vpow2.f32 %v1019_v28  ;;  %746 = vadd.xlane.f32.xlu2 %v745_v34  ;;  %v1033_v63 = vsel %vm684_vm6, %v8723_v44, 0.0  ;;  %734 = vadd.xlane.f32.xlu1 %v733_v43  ;;  %v8731_v62 = vpop.eup %7802  ;;  %v714_v34 = vsub.f32 %v8687_v51, %v702_v48 }
 0x32b   :  { %7806 = vpow2.f32 %v1011_v33  ;;  %1034 = vadd.xlane.f32.xlu0 %v1033_v63  ;;  %v1024_v2 = vsel %vm684_vm6, %v8731_v62, 0.0 }
 0x32c   :  { %7808 = vpow2.f32 %v1015_v42 }
 0x32d   :  { %v696_v5 = vpop.xlane.xlu1 %695  ;;  %v981_v54 = vpop.xlane.xlu2 %980 }
 0x32e   :  { %v712_v1 = vsub.f32 %v8675_v36, %v696_v5  ;;  %v999_v3 = vsub.f32 %v8677_v40, %v981_v54  ;;  %v1017_v40 = vmul.f32 1.442695, %v1003_v15 }
 0x330   :  { %v8735_v10 = vpop.eup %7804  ;;  %v723_v41 = vmul.f32 1.442695, %v712_v1  ;;  %v1009_v17 = vmul.f32 1.442695, %v999_v3 }
 0x331   :  { %v8738_v27 = vpop.eup %7806  ;;  %v1042_v16 = vsel %vm684_vm6, %v8735_v10, 0.0 }
 0x332   :  { %7810 = vpow2.f32 %v723_v41  ;;  %1043 = vadd.xlane.f32.xlu2 %v1042_v16  ;;  %v1030_v36 = vsel %vm684_vm6, %v8738_v27, 0.0  ;;  %1025 = vadd.xlane.f32.xlu1 %v1024_v2  ;;  %v8746_v0 = vpop.eup %7808 }
 0x333   :  { %7812 = vpow2.f32 %v1009_v17  ;;  %1031 = vadd.xlane.f32.xlu0 %v1030_v36  ;;  %v1036_v5 = vsel %vm684_vm6, %v8746_v0, 0.0 }
 0x334   :  { %7814 = vpow2.f32 %v1017_v40 }
 0x335   :  { %v690_v26 = vpop.xlane.xlu2 %689  ;;  %v708_v46 = vpop.xlane.xlu1 %707 }
 0x336   :  { %v710_v19 = vsub.f32 %v8658_v29, %v690_v26  ;;  %v716_v28 = vsub.f32 %v8693_v59, %v708_v46  ;;  %v727_v59 = vmul.f32 1.442695, %v714_v34 }
 0x338   :  { %v8750_v33 = vpop.eup %7810  ;;  %v719_v43 = vmul.f32 1.442695, %v710_v19  ;;  %v731_v39 = vmul.f32 1.442695, %v716_v28 }
 0x339   :  { %v8753_v63 = vpop.eup %7812  ;;  %v742_v42 = vsel %vm684_vm6, %v8750_v33, 0.0 }
 0x33a   :  { %7816 = vpow2.f32 %v719_v43  ;;  %743 = vadd.xlane.f32.xlu2 %v742_v42  ;;  %v1027_v29 = vsel %vm684_vm6, %v8753_v63, 0.0  ;;  %1037 = vadd.xlane.f32.xlu1 %v1036_v5  ;;  %v8761_v54 = vpop.eup %7814 }
 0x33b   :  { %7818 = vpow2.f32 %v731_v39  ;;  %1028 = vadd.xlane.f32.xlu0 %v1027_v29  ;;  %v1039_v16 = vsel %vm684_vm6, %v8761_v54, 0.0 }
 0x33c   :  { %7820 = vpow2.f32 %v727_v59  ;;  %v468_v59 = vmul.f32 %v8496_v52, %v8647_v18 }
 0x33d   :  { %v693_v51 = vpop.xlane.xlu2 %692 }
 0x33e   :  { %v711_v1 = vsub.f32 %v8673_v35, %v693_v51 }
 0x340   :  { %v8764_v3 = vpop.eup %7816  ;;  %v721_v15 = vmul.f32 1.442695, %v711_v1 }
 0x341   :  { %v8766_v41 = vpop.eup %7818  ;;  %v736_v17 = vsel %vm684_vm6, %v8764_v3, 0.0 }
 0x342   :  { %7822 = vpow2.f32 %v721_v15  ;;  %1040 = vadd.xlane.f32.xlu1 %v1039_v16  ;;  %v754_v2 = vsel %vm684_vm6, %v8766_v41, 0.0  ;;  %v8774_v36 = vpop.eup %7820 }
 0x343   :  { %737 = vadd.xlane.f32.xlu0 %v736_v17  ;;  %755 = vadd.xlane.f32.xlu2 %v754_v2  ;;  %v748_v19 = vsel %vm684_vm6, %v8774_v36, 0.0 }
 0x345   :  { %v705_v35 = vpop.xlane.xlu2 %704 }
 0x346   :  { %v715_v40 = vsub.f32 %v8691_v53, %v705_v35 }
 0x348   :  { %v8777_v48 = vpop.eup %7822  ;;  %v729_v26 = vmul.f32 1.442695, %v715_v40 }
 0x349   :  { %v739_v46 = vsel %vm684_vm6, %v8777_v48, 0.0 }
 0x34a   :  { %7824 = vpow2.f32 %v729_v26  ;;  %749 = vadd.xlane.f32.xlu1 %v748_v19 }
 0x34b   :  { %740 = vadd.xlane.f32.xlu0 %v739_v46 }
 0x350   :  { %v8783_v28 = vpop.eup %7824 }
 0x351   :  { %v751_v34 = vsel %vm684_vm6, %v8783_v28, 0.0 }
 0x352   :  { %752 = vadd.xlane.f32.xlu2 %v751_v34 }
 0x395   :  { %v1023_v43 = vpop.xlane.xlu1 %1022 }
 0x396   :  { %7826 = vrcp.f32 %v1023_v43  ;;  %v471_v43 = vmul.f32 %v8496_v52, %v8616_v6 }
 0x39c   :  { %v7827_v53 = vpop.eup %7826 }
 0x39d   :  { %v1053_v39 = vmul.f32 %v7827_v53, %v8713_v8  ;;  %v747_v42 = vpop.xlane.xlu2 %746  ;;  %v735_v5 = vpop.xlane.xlu1 %734  ;;  %v472_v8 = vmul.f32 %v8496_v52, %v8664_v30 }
 0x39e   :  { %v1035_v29 = vpop.xlane.xlu0 %1034 }
 0x39f   :  { %7828 = vrcp.f32 %v1035_v29  ;;  %7403 = vmatmul.msk.f32.vlgmr.msrb.gmra.mxu3 %vm684_vm6, %v1053_v39  ;;  %v469_v39 = vmul.f32 %v8496_v52, %v8562_v45 }
 0x3a0   :  { %1263 = vmatpush.msrb.mxu3 %v468_v59  ;;  %7830 = vrcp.f32 %v735_v5 }
 0x3a5   :  { %v7829_v51 = vpop.eup %7828  ;;  %v1026_v1 = vpop.xlane.xlu1 %1025 }
 0x3a6   :  { %v1057_v15 = vmul.f32 %v7829_v51, %v8723_v44  ;;  %v1032_v17 = vpop.xlane.xlu0 %1031  ;;  %v1044_v16 = vpop.xlane.xlu2 %1043 }
 0x3a7   :  { %7832 = vrcp.f32 %v1032_v17  ;;  %v7831_v2 = vpop.eup %7830 }
 0x3a8   :  { %7834 = vrcp.f32 %v1026_v1  ;;  %7407 = vmatmul.msk.f32.vlgmr.msra.gmra.mxu3 %vm684_vm6, %v1057_v15  ;;  %v765_v46 = vmul.f32 %v7831_v2, %v8718_v24  ;;  %v470_v15 = vmul.f32 %v8496_v52, %v8584_v55 }
 0x3a9   :  { %1355 = vmatpush.msra.mxu3 %v472_v8  ;;  %7836 = vrcp.f32 %v1044_v16  ;;  %v473_v16 = vmul.f32 %v8496_v52, %v8588_v58 }
 0x3aa   :  { %7838 = vrcp.f32 %v747_v42 }
 0x3ad   :  { %v7833_v35 = vpop.eup %7832  ;;  %v1038_v40 = vpop.xlane.xlu1 %1037 }
 0x3ae   :  { %v7835_v26 = vpop.eup %7834  ;;  %v1056_v44 = vmul.f32 %v7833_v35, %v8738_v27  ;;  %v1029_v19 = vpop.xlane.xlu0 %1028 }
 0x3af   :  { %v1054_v34 = vmul.f32 %v7835_v26, %v8731_v62  ;;  %7840 = vrcp.f32 %v1029_v19  ;;  %v744_v53 = vpop.xlane.xlu2 %743  ;;  %v7837_v24 = vpop.eup %7836  ;;  %v1429_v19 = vmul.f32 %v8459_v56, %v8488_v47 }
 0x3b0   :  { %7842 = vrcp.f32 %v1038_v40  ;;  %7406 = vmatmul.msk.f32.vlgmr.msrb.gmra.mxu2 %vm684_vm6, %v1056_v44  ;;  %7411 = vmatmul.msk.f32.vlgmr.msrb.gmra.mxu3 %vm684_vm6, %v765_v46  ;;  %v7839_v62 = vpop.eup %7838  ;;  %v1060_v29 = vmul.f32 %v7837_v24, %v8735_v10  ;;  %v475_v10 = vmul.f32 %v8496_v52, %v8641_v9  ;;  %v474_v44 = vmul.f32 %v8496_v52, %v8611_v4 }
 0x3b1   :  { %7404 = vmatmul.msk.f32.vlgmr.msra.gmra.mxu0 %vm684_vm6, %v1054_v34  ;;  %1332 = vmatpush.msrb.mxu2 %v471_v43  ;;  %7844 = vrcp.f32 %v744_v53  ;;  %v769_v17 = vmul.f32 %v7839_v62, %v8720_v25  ;;  %v1433_v62 = vmul.f32 %v8459_v56, %v8546_v37 }
 0x3b2   :  { %1286 = vmatpush.msra.mxu0 %v469_v39  ;;  %7419 = vmatpush.xpose.msk.msrb.mxu3 %vm79_vm0, %v8471_v7 }
 0x3b5   :  { %v7841_v27 = vpop.eup %7840  ;;  %v1041_v42 = vpop.xlane.xlu1 %1040 }
 0x3b6   :  { %v7843_v5 = vpop.eup %7842  ;;  %v1055_v59 = vmul.f32 %v7841_v27, %v8753_v63  ;;  %v738_v51 = vpop.xlane.xlu0 %737  ;;  %7846 = vrcp.f32 %v1041_v42  ;;  %v1432_v27 = vmul.f32 %v8459_v56, %v8530_v31  ;;  %v1430_v42 = vmul.f32 %v8459_v56, %v8491_v13 }
 0x3b7   :  { %v1058_v1 = vmul.f32 %v7843_v5, %v8746_v0  ;;  %7848 = vrcp.f32 %v738_v51  ;;  %v756_v0 = vpop.xlane.xlu2 %755  ;;  %v7845_v63 = vpop.eup %7844  ;;  %v1438_v5 = vmul.f32 %v8459_v56, %v8562_v45  ;;  %v1434_v51 = vmul.f32 %v8459_v56, %v8567_v49 }
 0x3b8   :  { %7405 = vmatmul.msk.f32.vlgmr.msrb.gmra.mxu1 %vm684_vm6, %v1055_v59  ;;  %7410 = vmatmul.msk.f32.vlgmr.msra.gmra.mxu2 %vm684_vm6, %v1060_v29  ;;  %7850 = vrcp.f32 %v756_v0  ;;  %v768_v40 = vmul.f32 %v7845_v63, %v8750_v33  ;;  %v1437_v33 = vmul.f32 %v8459_v56, %v8647_v18  ;;  %v1440_v29 = vmul.f32 %v8459_v56, %v8616_v6 }
 0x3b9   :  { %7408 = vmatmul.msk.f32.vlgmr.msrb.gmra.mxu0 %vm684_vm6, %v1058_v1  ;;  %1309 = vmatpush.msrb.mxu1 %v470_v15  ;;  %v1436_v59 = vmul.f32 %v8459_v56, %v8619_v11  ;;  %v1439_v1 = vmul.f32 %v8459_v56, %v8584_v55  ;;  %v1442_v15 = vmul.f32 %v8459_v56, %v8588_v58 }
 0x3ba   :  { %7415 = vmatmul.msk.f32.vlgmr.msra.gmra.mxu3 %vm684_vm6, %v769_v17  ;;  %1378 = vmatpush.msrb.mxu0 %v473_v16  ;;  %v1444_v17 = vmul.f32 %v8459_v56, %v8641_v9  ;;  %v1435_v16 = vmul.f32 %v8459_v56, %v8591_v60 }
 0x3bb   :  { %1424 = vmatpush.msra.mxu2 %v475_v10  ;;  %7427 = vmatpush.xpose.msk.msra.mxu3 %vm79_vm0, %v8549_v38  ;;  %v1443_v10 = vmul.f32 %v8459_v56, %v8611_v4 }
 0x3bc   :  { %v7847_v25 = vpop.eup %7846 }
 0x3bd   :  { %v7849_v8 = vpop.eup %7848  ;;  %v1059_v2 = vmul.f32 %v7847_v25, %v8761_v54  ;;  %v750_v35 = vpop.xlane.xlu1 %749 }
 0x3be   :  { %v766_v26 = vmul.f32 %v7849_v8, %v8764_v3  ;;  %v741_v46 = vpop.xlane.xlu0 %740  ;;  %7852 = vrcp.f32 %v750_v35  ;;  %v7851_v54 = vpop.eup %7850 }
 0x3bf   :  { %7854 = vrcp.f32 %v741_v46  ;;  %v772_v39 = vmul.f32 %v7851_v54, %v8766_v41 }
 0x3c0   :  { %7409 = vmatmul.msk.f32.vlgmr.msra.gmra.mxu1 %vm684_vm6, %v1059_v2  ;;  %7414 = vmatmul.msk.f32.vlgmr.msrb.gmra.mxu2 %vm684_vm6, %v768_v40 }
 0x3c1   :  { %7412 = vmatmul.msk.f32.vlgmr.msra.gmra.mxu0 %vm684_vm6, %v766_v26  ;;  %1401 = vmatpush.msra.mxu1 %v474_v44 }
 0x3c2   :  { %7420 = vmatmul.msk.f32.vlgmr.msrb.gmra.mxu3 %vm79_vm0, %v1429_v19  ;;  %7421 = vmatpush.xpose.msk.msra.mxu0 %vm79_vm0, %v8494_v14 }
 0x3c3   :  { %7425 = vmatpush.xpose.msk.msrb.mxu2 %vm79_vm0, %v8533_v32  ;;  %1735 = vmatpush.msrb.mxu3 %v1437_v33 }
 0x3c4   :  { %v7853_v3 = vpop.eup %7852 }
 0x3c5   :  { %v7855_v34 = vpop.eup %7854  ;;  %v770_v43 = vmul.f32 %v7853_v3, %v8774_v36  ;;  %v753_v53 = vpop.xlane.xlu2 %752  ;;  %v1441_v36 = vmul.f32 %v8459_v56, %v8664_v30 }
 0x3c6   :  { %v767_v24 = vmul.f32 %v7855_v34, %v8777_v48  ;;  %7856 = vrcp.f32 %v753_v53 }
 0x3c8   :  { %7413 = vmatmul.msk.f32.vlgmr.msrb.gmra.mxu1 %vm684_vm6, %v767_v24  ;;  %7418 = vmatmul.msk.f32.vlgmr.msra.gmra.mxu2 %vm684_vm6, %v772_v39 }
 0x3c9   :  { %7416 = vmatmul.msk.f32.vlgmr.msrb.gmra.mxu0 %vm684_vm6, %v770_v43  ;;  %7423 = vmatpush.xpose.msk.msrb.mxu1 %vm79_vm0, %v8512_v22 }
 0x3ca   :  { %7428 = vmatmul.msk.f32.vlgmr.msra.gmra.mxu3 %vm79_vm0, %v1433_v62  ;;  %7429 = vmatpush.xpose.msk.msrb.mxu0 %vm79_vm0, %v8570_v50 }
 0x3cb   :  { %7433 = vmatpush.xpose.msk.msra.mxu2 %vm79_vm0, %v8622_v12  ;;  %1827 = vmatpush.msra.mxu3 %v1441_v36 }
 0x3cc   :  { %v7857_v41 = vpop.eup %7856 }
 0x3cd   :  { %v771_v48 = vmul.f32 %v7857_v41, %v8783_v28  ;;  %v1431_v28 = vmul.f32 %v8459_v56, %v8509_v21 }
 0x3d0   :  { %7417 = vmatmul.msk.f32.vlgmr.msra.gmra.mxu1 %vm684_vm6, %v771_v48  ;;  %7426 = vmatmul.msk.f32.vlgmr.msrb.gmra.mxu2 %vm79_vm0, %v1432_v27 }
 0x3d1   :  { %7422 = vmatmul.msk.f32.vlgmr.msra.gmra.mxu0 %vm79_vm0, %v1430_v42  ;;  %7431 = vmatpush.xpose.msk.msra.mxu1 %vm79_vm0, %v8594_v61 }
 0x3d2   :  { %1758 = vmatpush.msra.mxu0 %v1438_v5  ;;  %1804 = vmatpush.msrb.mxu2 %v1440_v29 }
 0x3d8   :  { %7424 = vmatmul.msk.f32.vlgmr.msrb.gmra.mxu1 %vm79_vm0, %v1431_v28  ;;  %7434 = vmatmul.msk.f32.vlgmr.msra.gmra.mxu2 %vm79_vm0, %v1436_v59 }
 0x3d9   :  { %7430 = vmatmul.msk.f32.vlgmr.msrb.gmra.mxu0 %vm79_vm0, %v1434_v51  ;;  %1781 = vmatpush.msrb.mxu1 %v1439_v1 }
 0x3da   :  { %1850 = vmatpush.msrb.mxu0 %v1442_v15  ;;  %1896 = vmatpush.msra.mxu2 %v1444_v17 }
 0x3e0   :  { %7432 = vmatmul.msk.f32.vlgmr.msra.gmra.mxu1 %vm79_vm0, %v1435_v16 }
 0x3e1   :  { %1873 = vmatpush.msra.mxu1 %v1443_v10 }
 0x422   :  { %v8891_v0 = vpop.f32.mrf.mxu3 }
 0x42b   :  { %v8893_v63 = vpop.f32.mrf.mxu3 }
 0x42e   :  { %v8895_v25 = vpop.f32.mrf.mxu0 }
 0x433   :  { %v8897_v8 = vpop.f32.mrf.mxu2  ;;  %v8899_v2 = vpop.f32.mrf.mxu3 }
 0x435   :  { %v8901_v35 = vpop.f32.mrf.mxu1 }
 0x436   :  { %v8903_v40 = vpop.f32.mrf.mxu0 }
 0x43b   :  { %v8905_v26 = vpop.f32.mrf.mxu2 }
 0x43d   :  { %v8907_v46 = vpop.f32.mrf.mxu3  ;;  %v8909_v44 = vpop.f32.mrf.mxu1 }
 0x43e   :  { %v8911_v19 = vpop.f32.mrf.mxu0 }
 0x443   :  { %v8913_v33 = vpop.f32.mrf.mxu2 }
 0x445   :  { %v1465_v54 = vpop.f32.mrf.mxu3  ;;  %v8915_v3 = vpop.f32.mrf.mxu1 }
 0x446   :  { %v1629_v34 = vsel %vm684_vm6, %v1465_v54, -inf  ;;  %v8918_v43 = vpop.f32.mrf.mxu0 }
 0x447   :  { %1630 = vmax.xlane.f32.xlu0 %v1629_v34 }
 0x44b   :  { %v8920_v53 = vpop.f32.mrf.mxu2 }
 0x44c   :  { %11866 = vst [vmem:[#allocation7_spill] sm:$0xff] %v8920_v53 }
 0x44d   :  { %v1557_v39 = vpop.f32.mrf.mxu3  ;;  %v8922_v24 = vpop.f32.mrf.mxu1 }
 0x44e   :  { %v1641_v62 = vsel %vm684_vm6, %v1557_v39, -inf  ;;  %v1488_v36 = vpop.f32.mrf.mxu0 }
 0x44f   :  { %1642 = vmax.xlane.f32.xlu1 %v1641_v62  ;;  %v1632_v41 = vsel %vm684_vm6, %v1488_v36, -inf }
 0x450   :  { %1633 = vmax.xlane.f32.xlu2 %v1632_v41 }
 0x453   :  { %v1534_v48 = vpop.f32.mrf.mxu2 }
 0x454   :  { %v1638_v27 = vsel %vm684_vm6, %v1534_v48, -inf }
 0x455   :  { %1639 = vmax.xlane.f32.xlu0 %v1638_v27  ;;  %v1511_v42 = vpop.f32.mrf.mxu1 }
 0x456   :  { %v1580_v5 = vpop.f32.mrf.mxu0  ;;  %v1635_v29 = vsel %vm684_vm6, %v1511_v42, -inf }
 0x457   :  { %1636 = vmax.xlane.f32.xlu1 %v1635_v29  ;;  %v1644_v28 = vsel %vm684_vm6, %v1580_v5, -inf }
 0x458   :  { %1645 = vmax.xlane.f32.xlu2 %v1644_v28 }
 0x45b   :  { %v1626_v59 = vpop.f32.mrf.mxu2 }
 0x45c   :  { %v1650_v51 = vsel %vm684_vm6, %v1626_v59, -inf }
 0x45d   :  { %1651 = vmax.xlane.f32.xlu0 %v1650_v51  ;;  %v1603_v1 = vpop.f32.mrf.mxu1 }
 0x45e   :  { %v1647_v15 = vsel %vm684_vm6, %v1603_v1, -inf }
 0x45f   :  { %1648 = vmax.xlane.f32.xlu1 %v1647_v15 }
 0x4ba   :  { %v1631_v17 = vpop.xlane.xlu0 %1630 }
 0x4bb   :  { %v1653_v16 = vsub.f32 %v1465_v54, %v1631_v17 }
 0x4bd   :  { %v1661_v10 = vmul.f32 1.442695, %v1653_v16 }
 0x4bf   :  { %7858 = vpow2.f32 %v1661_v10 }
 0x4c2   :  { %v1643_v34 = vpop.xlane.xlu1 %1642 }
 0x4c3   :  { %v1657_v62 = vsub.f32 %v1557_v39, %v1643_v34  ;;  %v1634_v41 = vpop.xlane.xlu2 %1633 }
 0x4c4   :  { %v1654_v27 = vsub.f32 %v1488_v36, %v1634_v41 }
 0x4c5   :  { %v7859_v29 = vpop.eup %7858  ;;  %v1669_v56 = vmul.f32 1.442695, %v1657_v62 }
 0x4c6   :  { %v1663_v23 = vmul.f32 1.442695, %v1654_v27  ;;  %v1677_v28 = vsel %vm684_vm6, %v7859_v29, 0.0 }
 0x4c7   :  { %7860 = vpow2.f32 %v1669_v56  ;;  %1678 = vadd.xlane.f32.xlu2 %v1677_v28 }
 0x4c8   :  { %7862 = vpow2.f32 %v1663_v23  ;;  %v1640_v51 = vpop.xlane.xlu0 %1639 }
 0x4c9   :  { %v1656_v52 = vsub.f32 %v1534_v48, %v1640_v51 }
 0x4ca   :  { %v1637_v20 = vpop.xlane.xlu1 %1636 }
 0x4cb   :  { %v1667_v15 = vmul.f32 1.442695, %v1656_v52  ;;  %v1646_v53 = vpop.xlane.xlu2 %1645  ;;  %v1655_v54 = vsub.f32 %v1511_v42, %v1637_v20 }
 0x4cc   :  { %v1658_v17 = vsub.f32 %v1580_v5, %v1646_v53 }
 0x4cd   :  { %v7861_v16 = vpop.eup %7860  ;;  %7864 = vpow2.f32 %v1667_v15  ;;  %v1665_v39 = vmul.f32 1.442695, %v1655_v54 }
 0x4ce   :  { %v7863_v10 = vpop.eup %7862  ;;  %v1671_v36 = vmul.f32 1.442695, %v1658_v17  ;;  %v1689_v34 = vsel %vm684_vm6, %v7861_v16, 0.0 }
 0x4cf   :  { %7866 = vpow2.f32 %v1665_v39  ;;  %1690 = vadd.xlane.f32.xlu0 %v1689_v34  ;;  %v1680_v56 = vsel %vm684_vm6, %v7863_v10, 0.0 }
 0x4d0   :  { %7868 = vpow2.f32 %v1671_v36  ;;  %1681 = vadd.xlane.f32.xlu1 %v1680_v56  ;;  %v1652_v23 = vpop.xlane.xlu0 %1651 }
 0x4d1   :  { %v1660_v48 = vsub.f32 %v1626_v59, %v1652_v23 }
 0x4d2   :  { %v1649_v62 = vpop.xlane.xlu1 %1648 }
 0x4d3   :  { %v7865_v52 = vpop.eup %7864  ;;  %v1675_v41 = vmul.f32 1.442695, %v1660_v48  ;;  %v1659_v20 = vsub.f32 %v1603_v1, %v1649_v62 }
 0x4d4   :  { %v1686_v53 = vsel %vm684_vm6, %v7865_v52, 0.0 }
 0x4d5   :  { %v7867_v42 = vpop.eup %7866  ;;  %7870 = vpow2.f32 %v1675_v41  ;;  %v1673_v5 = vmul.f32 1.442695, %v1659_v20  ;;  %1687 = vadd.xlane.f32.xlu2 %v1686_v53 }
 0x4d6   :  { %v7869_v27 = vpop.eup %7868  ;;  %v1683_v28 = vsel %vm684_vm6, %v7867_v42, 0.0 }
 0x4d7   :  { %7872 = vpow2.f32 %v1673_v5  ;;  %v1692_v51 = vsel %vm684_vm6, %v7869_v27, 0.0  ;;  %1684 = vadd.xlane.f32.xlu0 %v1683_v28 }
 0x4d8   :  { %1693 = vadd.xlane.f32.xlu1 %v1692_v51 }
 0x4db   :  { %v7871_v15 = vpop.eup %7870 }
 0x4dc   :  { %v1698_v59 = vsel %vm684_vm6, %v7871_v15, 0.0 }
 0x4dd   :  { %v7873_v54 = vpop.eup %7872  ;;  %1699 = vadd.xlane.f32.xlu2 %v1698_v59 }
 0x4de   :  { %v1695_v1 = vsel %vm684_vm6, %v7873_v54, 0.0 }
 0x4df   :  { %1696 = vadd.xlane.f32.xlu0 %v1695_v1 }
 0x53a   :  { %v1679_v17 = vpop.xlane.xlu2 %1678 }
 0x53b   :  { %7874 = vrcp.f32 %v1679_v17 }
 0x541   :  { %v7875_v39 = vpop.eup %7874 }
 0x542   :  { %v1709_v36 = vmul.f32 %v7875_v39, %v7859_v29  ;;  %v1691_v34 = vpop.xlane.xlu0 %1690 }
 0x543   :  { %7876 = vrcp.f32 %v1691_v34  ;;  %v1682_v56 = vpop.xlane.xlu1 %1681 }
 0x544   :  { %7435 = vmatmul.msk.f32.vlgmr.msrb.gmra.mxu3 %vm684_vm6, %v1709_v36  ;;  %7878 = vrcp.f32 %v1682_v56 }
 0x545   :  { %7443 = vmatpush.xpose.msk.msrb.mxu3 %vm79_vm0, %v8471_v7 }
 0x548   :  { %v1688_v23 = vpop.xlane.xlu2 %1687 }
 0x549   :  { %v7877_v48 = vpop.eup %7876  ;;  %7880 = vrcp.f32 %v1688_v23 }
 0x54a   :  { %v7879_v62 = vpop.eup %7878  ;;  %v1713_v41 = vmul.f32 %v7877_v48, %v7861_v16  ;;  %v1685_v20 = vpop.xlane.xlu0 %1684 }
 0x54b   :  { %v1710_v53 = vmul.f32 %v7879_v62, %v7863_v10  ;;  %7882 = vrcp.f32 %v1685_v20  ;;  %v1694_v5 = vpop.xlane.xlu1 %1693  ;;  %v1909_v10 = vmul.f32 %v8461_v57, %v8488_v47 }
 0x54c   :  { %7439 = vmatmul.msk.f32.vlgmr.msra.gmra.mxu3 %vm684_vm6, %v1713_v41  ;;  %7884 = vrcp.f32 %v1694_v5 }
 0x54d   :  { %7451 = vmatpush.xpose.msk.msra.mxu3 %vm79_vm0, %v8549_v38  ;;  %7436 = vmatmul.msk.f32.vlgmr.msra.gmra.mxu0 %vm684_vm6, %v1710_v53 }
 0x54e   :  { %7445 = vmatpush.xpose.msk.msra.mxu0 %vm79_vm0, %v8494_v14  ;;  %v1917_v14 = vmul.f32 %v8461_v57, %v8647_v18  ;;  %v1913_v18 = vmul.f32 %v8461_v57, %v8546_v37  ;;  %v1920_v37 = vmul.f32 %v8461_v57, %v8616_v6 }
 0x54f   :  { %v7881_v7 = vpop.eup %7880 }
 0x550   :  { %v1712_v29 = vmul.f32 %v7881_v7, %v7865_v52  ;;  %v1700_v28 = vpop.xlane.xlu2 %1699 }
 0x551   :  { %v7883_v51 = vpop.eup %7882  ;;  %7886 = vrcp.f32 %v1700_v28 }
 0x552   :  { %v7885_v16 = vpop.eup %7884  ;;  %v1711_v59 = vmul.f32 %v7883_v51, %v7867_v42  ;;  %7438 = vmatmul.msk.f32.vlgmr.msrb.gmra.mxu2 %vm684_vm6, %v1712_v29  ;;  %v1697_v1 = vpop.xlane.xlu0 %1696  ;;  %v1910_v42 = vmul.f32 %v8461_v57, %v8491_v13  ;;  %v1912_v13 = vmul.f32 %v8461_v57, %v8530_v31  ;;  %v1922_v31 = vmul.f32 %v8461_v57, %v8588_v58 }
 0x553   :  { %v1714_v17 = vmul.f32 %v7885_v16, %v7869_v27  ;;  %7449 = vmatpush.xpose.msk.msrb.mxu2 %vm79_vm0, %v8533_v32  ;;  %7888 = vrcp.f32 %v1697_v1 }
 0x554   :  { %7444 = vmatmul.msk.f32.vlgmr.msrb.gmra.mxu3 %vm79_vm0, %v1909_v10  ;;  %7437 = vmatmul.msk.f32.vlgmr.msrb.gmra.mxu1 %vm684_vm6, %v1711_v59 }
 0x555   :  { %2215 = vmatpush.msrb.mxu3 %v1917_v14  ;;  %7440 = vmatmul.msk.f32.vlgmr.msrb.gmra.mxu0 %vm684_vm6, %v1714_v17 }
 0x556   :  { %7447 = vmatpush.xpose.msk.msrb.mxu1 %vm79_vm0, %v8512_v22  ;;  %7453 = vmatpush.xpose.msk.msrb.mxu0 %vm79_vm0, %v8570_v50  ;;  %v1921_v22 = vmul.f32 %v8461_v57, %v8664_v30  ;;  %v1918_v50 = vmul.f32 %v8461_v57, %v8562_v45  ;;  %v1914_v45 = vmul.f32 %v8461_v57, %v8567_v49 }
 0x557   :  { %v7887_v47 = vpop.eup %7886  ;;  %v1919_v30 = vmul.f32 %v8461_v57, %v8584_v55  ;;  %v1915_v49 = vmul.f32 %v8461_v57, %v8591_v60  ;;  %v1923_v55 = vmul.f32 %v8461_v57, %v8611_v4 }
 0x558   :  { %v1716_v38 = vmul.f32 %v7887_v47, %v7871_v15 }
 0x559   :  { %v7889_v32 = vpop.eup %7888 }
 0x55a   :  { %v1715_v52 = vmul.f32 %v7889_v32, %v7873_v54  ;;  %7442 = vmatmul.msk.f32.vlgmr.msra.gmra.mxu2 %vm684_vm6, %v1716_v38 }
 0x55b   :  { %7457 = vmatpush.xpose.msk.msra.mxu2 %vm79_vm0, %v8622_v12  ;;  %v1911_v12 = vmul.f32 %v8461_v57, %v8509_v21  ;;  %v1916_v21 = vmul.f32 %v8461_v57, %v8619_v11 }
 0x55c   :  { %7452 = vmatmul.msk.f32.vlgmr.msra.gmra.mxu3 %vm79_vm0, %v1913_v18  ;;  %7441 = vmatmul.msk.f32.vlgmr.msra.gmra.mxu1 %vm684_vm6, %v1715_v52 }
 0x55d   :  { %2307 = vmatpush.msra.mxu3 %v1921_v22  ;;  %7446 = vmatmul.msk.f32.vlgmr.msra.gmra.mxu0 %vm79_vm0, %v1910_v42 }
 0x55e   :  { %7455 = vmatpush.xpose.msk.msra.mxu1 %vm79_vm0, %v8594_v61  ;;  %2238 = vmatpush.msra.mxu0 %v1918_v50  ;;  %v1924_v61 = vmul.f32 %v8461_v57, %v8641_v9 }
 0x562   :  { %7450 = vmatmul.msk.f32.vlgmr.msrb.gmra.mxu2 %vm79_vm0, %v1912_v13 }
 0x563   :  { %2284 = vmatpush.msrb.mxu2 %v1920_v37 }
 0x564   :  { %7448 = vmatmul.msk.f32.vlgmr.msrb.gmra.mxu1 %vm79_vm0, %v1911_v12 }
 0x565   :  { %7454 = vmatmul.msk.f32.vlgmr.msrb.gmra.mxu0 %vm79_vm0, %v1914_v45  ;;  %2261 = vmatpush.msrb.mxu1 %v1919_v30 }
 0x566   :  { %2330 = vmatpush.msrb.mxu0 %v1922_v31 }
 0x56a   :  { %7458 = vmatmul.msk.f32.vlgmr.msra.gmra.mxu2 %vm79_vm0, %v1916_v21 }
 0x56b   :  { %2376 = vmatpush.msra.mxu2 %v1924_v61 }
 0x56c   :  { %7456 = vmatmul.msk.f32.vlgmr.msra.gmra.mxu1 %vm79_vm0, %v1915_v49 }
 0x56d   :  { %2353 = vmatpush.msra.mxu1 %v1923_v55 }
 0x5c7   :  { %v9003_v58 = vpop.f32.mrf.mxu3 }
 0x5ca   :  { %v9005_v6 = vpop.f32.mrf.mxu0 }
 0x5cf   :  { %v9007_v11 = vpop.f32.mrf.mxu3 }
 0x5d1   :  { %v9009_v27 = vpop.f32.mrf.mxu1 }
 0x5d2   :  { %v9011_v9 = vpop.f32.mrf.mxu0 }
 0x5d5   :  { %v9013_v60 = vpop.f32.mrf.mxu2 }
 0x5d7   :  { %v1945_v15 = vpop.f32.mrf.mxu3 }
 0x5d8   :  { %v2109_v54 = vsel %vm684_vm6, %v1945_v15, -inf }
 0x5d9   :  { %2110 = vmax.xlane.f32.xlu1 %v2109_v54  ;;  %v9016_v4 = vpop.f32.mrf.mxu1 }
 0x5da   :  { %v1968_v39 = vpop.f32.mrf.mxu0 }
 0x5db   :  { %v2112_v36 = vsel %vm684_vm6, %v1968_v39, -inf }
 0x5dc   :  { %2113 = vmax.xlane.f32.xlu2 %v2112_v36 }
 0x5dd   :  { %v9019_v34 = vpop.f32.mrf.mxu2 }
 0x5df   :  { %v2037_v56 = vpop.f32.mrf.mxu3 }
 0x5e0   :  { %v2121_v62 = vsel %vm684_vm6, %v2037_v56, -inf }
 0x5e1   :  { %v1991_v23 = vpop.f32.mrf.mxu1 }
 0x5e2   :  { %v2115_v48 = vsel %vm684_vm6, %v1991_v23, -inf  ;;  %v2060_v53 = vpop.f32.mrf.mxu0 }
 0x5e3   :  { %2116 = vmax.xlane.f32.xlu0 %v2115_v48  ;;  %v2124_v29 = vsel %vm684_vm6, %v2060_v53, -inf }
 0x5e4   :  { %2122 = vmax.xlane.f32.xlu2 %v2121_v62 }
 0x5e5   :  { %v2014_v41 = vpop.f32.mrf.mxu2 }
 0x5e6   :  { %v2118_v20 = vsel %vm684_vm6, %v2014_v41, -inf }
 0x5e7   :  { %2119 = vmax.xlane.f32.xlu1 %v2118_v20 }
 0x5e9   :  { %v2083_v5 = vpop.f32.mrf.mxu1 }
 0x5ea   :  { %v2127_v7 = vsel %vm684_vm6, %v2083_v5, -inf }
 0x5eb   :  { %2125 = vmax.xlane.f32.xlu0 %v2124_v29 }
 0x5ec   :  { %2128 = vmax.xlane.f32.xlu2 %v2127_v7 }
 0x5ed   :  { %v2106_v21 = vpop.f32.mrf.mxu2 }
 0x64c   :  { %v2111_v28 = vpop.xlane.xlu1 %2110 }
 0x64d   :  { %v2133_v51 = vsub.f32 %v1945_v15, %v2111_v28 }
 0x64f   :  { %v2141_v16 = vmul.f32 1.442695, %v2133_v51  ;;  %v2114_v10 = vpop.xlane.xlu2 %2113  ;;  %v2392_v51 = vld [vmem:[%s11822_s5 + $0x18] sm:$0xff] }
 0x650   :  { %v2134_v59 = vsub.f32 %v1968_v39, %v2114_v10  ;;  %v2130_v39 = vsel %vm684_vm6, %v2106_v21, -inf }
 0x651   :  { %7890 = vpow2.f32 %v2141_v16 }
 0x652   :  { %v2143_v1 = vmul.f32 1.442695, %v2134_v59 }
 0x654   :  { %7892 = vpow2.f32 %v2143_v1 }
 0x656   :  { %v2117_v17 = vpop.xlane.xlu0 %2116 }
 0x657   :  { %v7891_v14 = vpop.eup %7890  ;;  %v2135_v47 = vsub.f32 %v1991_v23, %v2117_v17  ;;  %v2123_v38 = vpop.xlane.xlu2 %2122 }
 0x658   :  { %v2157_v32 = vsel %vm684_vm6, %v7891_v14, 0.0  ;;  %v2137_v52 = vsub.f32 %v2037_v56, %v2123_v38 }
 0x659   :  { %v2145_v18 = vmul.f32 1.442695, %v2135_v47  ;;  %2158 = vadd.xlane.f32.xlu1 %v2157_v32 }
 0x65a   :  { %v7893_v42 = vpop.eup %7892  ;;  %v2120_v22 = vpop.xlane.xlu1 %2119  ;;  %v2149_v37 = vmul.f32 1.442695, %v2137_v52 }
 0x65b   :  { %7894 = vpow2.f32 %v2145_v18  ;;  %v2136_v50 = vsub.f32 %v2014_v41, %v2120_v22  ;;  %v2160_v13 = vsel %vm684_vm6, %v7893_v42, 0.0 }
 0x65c   :  { %2161 = vadd.xlane.f32.xlu0 %v2160_v13 }
 0x65d   :  { %v2147_v12 = vmul.f32 1.442695, %v2136_v50 }
 0x65e   :  { %v2126_v45 = vpop.xlane.xlu0 %2125 }
 0x65f   :  { %7896 = vpow2.f32 %v2147_v12  ;;  %v2129_v30 = vpop.xlane.xlu2 %2128  ;;  %v2138_v31 = vsub.f32 %v2060_v53, %v2126_v45 }
 0x660   :  { %v2139_v61 = vsub.f32 %v2083_v5, %v2129_v30  ;;  %7898 = vpow2.f32 %v2149_v37 }
 0x661   :  { %v7895_v49 = vpop.eup %7894  ;;  %v2151_v55 = vmul.f32 1.442695, %v2138_v31 }
 0x662   :  { %v2153_v15 = vmul.f32 1.442695, %v2139_v61  ;;  %v2163_v54 = vsel %vm684_vm6, %v7895_v49, 0.0 }
 0x663   :  { %2164 = vadd.xlane.f32.xlu1 %v2163_v54  ;;  %v1266_v54 = vadd.f32 %v8899_v2, %v8891_v0  ;;  %v1312_v0 = vadd.f32 %v8915_v3, %v8901_v35 }
 0x664   :  { %7900 = vpow2.f32 %v2153_v15  ;;  %2131 = vmax.xlane.f32.xlu0 %v2130_v39  ;;  %v2389_v15 = vld [vmem:[%s11822_s5] sm:$0xff] }
 0x665   :  { %v7897_v36 = vpop.eup %7896  ;;  %7902 = vpow2.f32 %v2151_v55  ;;  %v2390_v55 = vld [vmem:[%s11822_s5 + $0x8] sm:$0xff] }
 0x666   :  { %v2166_v56 = vsel %vm684_vm6, %v7897_v36, 0.0  ;;  %v7899_v23 = vpop.eup %7898 }
 0x667   :  { %2167 = vadd.xlane.f32.xlu2 %v2166_v56  ;;  %v2169_v62 = vsel %vm684_vm6, %v7899_v23, 0.0 }
 0x66a   :  { %v7901_v48 = vpop.eup %7900 }
 0x66b   :  { %v7903_v41 = vpop.eup %7902  ;;  %v2175_v20 = vsel %vm684_vm6, %v7901_v48, 0.0  ;;  %2170 = vadd.xlane.f32.xlu1 %v2169_v62  ;;  %v1289_v62 = vadd.f32 %v8911_v19, %v8895_v25  ;;  %v1335_v25 = vadd.f32 %v8913_v33, %v8897_v8 }
 0x66c   :  { %2176 = vadd.xlane.f32.xlu0 %v2175_v20  ;;  %v2172_v53 = vsel %vm684_vm6, %v7903_v41, 0.0 }
 0x66f   :  { %2173 = vadd.xlane.f32.xlu2 %v2172_v53  ;;  %v1902_v53 = vadd.f32 %v9005_v6, %v1289_v62  ;;  %v1904_v6 = vadd.f32 %v9013_v60, %v1335_v25  ;;  %v1404_v60 = vadd.f32 %v8922_v24, %v8909_v44  ;;  %v8162_v44 = vld [vmem:[%s11817_s0] sm:$0xff]  ;;  %v8168_v62 = vld [vmem:[%s11817_s0 + $0x30] sm:$0xff] }
 0x6cc   :  { %v2159_v5 = vpop.xlane.xlu1 %2158 }
 0x6cd   :  { %7904 = vrcp.f32 %v2159_v5 }
 0x6cf   :  { %v2162_v7 = vpop.xlane.xlu0 %2161 }
 0x6d0   :  { %7906 = vrcp.f32 %v2162_v7 }
 0x6d3   :  { %v7905_v29 = vpop.eup %7904 }
 0x6d4   :  { %v2189_v28 = vmul.f32 %v7905_v29, %v7891_v14 }
 0x6d6   :  { %v7907_v16 = vpop.eup %7906  ;;  %7459 = vmatmul.msk.f32.vlgmr.msrb.gmra.mxu3 %vm684_vm6, %v2189_v28  ;;  %v2165_v10 = vpop.xlane.xlu1 %2164  ;;  %v1358_v28 = vadd.f32 %v8907_v46, %v8893_v63  ;;  %v1907_v63 = vadd.f32 %v9016_v4, %v1404_v60 }
 0x6d7   :  { %v2190_v59 = vmul.f32 %v7907_v16, %v7893_v42  ;;  %v2132_v1 = vpop.xlane.xlu0 %2131  ;;  %7908 = vrcp.f32 %v2165_v10  ;;  %2433 = vmatpush.msrb.mxu3 %v2392_v51 }
 0x6d8   :  { %v2140_v17 = vsub.f32 %v2106_v21, %v2132_v1  ;;  %v1905_v35 = vadd.f32 %v9007_v11, %v1358_v28  ;;  %v9086_v11 = vld [vmem:[%s11823_s6] ss:$0 sm:$0xff] }
 0x6d9   :  { %7460 = vmatmul.msk.f32.vlgmr.msra.gmra.mxu0 %vm684_vm6, %v2190_v59 }
 0x6da   :  { %v2155_v47 = vmul.f32 1.442695, %v2140_v17  ;;  %v2168_v38 = vpop.xlane.xlu2 %2167 }
 0x6db   :  { %7910 = vrcp.f32 %v2168_v38 }
 0x6dc   :  { %7912 = vpow2.f32 %v2155_v47 }
 0x6dd   :  { %v7909_v14 = vpop.eup %7908 }
 0x6de   :  { %v2191_v32 = vmul.f32 %v7909_v14, %v7895_v49  ;;  %v2171_v18 = vpop.xlane.xlu1 %2170  ;;  %v2391_v49 = vld [vmem:[%s11822_s5 + $0x10] sm:$0xff] }
 0x6df   :  { %v2177_v52 = vpop.xlane.xlu0 %2176  ;;  %7914 = vrcp.f32 %v2171_v18  ;;  %2434 = vmatpush.msrb.mxu3 %v2391_v49 }
 0x6e0   :  { %7916 = vrcp.f32 %v2177_v52  ;;  %7461 = vmatmul.msk.f32.vlgmr.msrb.gmra.mxu1 %vm684_vm6, %v2191_v32 }
 0x6e1   :  { %v7911_v22 = vpop.eup %7910  ;;  %2435 = vmatpush.msrb.mxu3 %v2390_v55 }
 0x6e2   :  { %v7913_v42 = vpop.eup %7912  ;;  %v2192_v50 = vmul.f32 %v7911_v22, %v7897_v36  ;;  %v2174_v13 = vpop.xlane.xlu2 %2173  ;;  %v1901_v36 = vadd.f32 %v9003_v58, %v1266_v54  ;;  %v1903_v58 = vadd.f32 %v9009_v27, %v1312_v0  ;;  %v1381_v27 = vadd.f32 %v8918_v43, %v8903_v40  ;;  %v8164_v22 = vld [vmem:[%s11817_s0 + $0x10] sm:$0xff] }
 0x6e3   :  { %7918 = vrcp.f32 %v2174_v13  ;;  %v2178_v37 = vsel %vm684_vm6, %v7913_v42, 0.0  ;;  %2436 = vmatpush.msrb.mxu3 %v2389_v15 }
 0x6e4   :  { %2179 = vadd.xlane.f32.xlu1 %v2178_v37  ;;  %7462 = vmatmul.msk.f32.vlgmr.msrb.gmra.mxu2 %vm684_vm6, %v2192_v50  ;;  %v1906_v8 = vadd.f32 %v9011_v9, %v1381_v27  ;;  %v11867_v9 = vld [vmem:[#allocation7_spill] sm:$0xff] }
 0x6e5   :  { %v7915_v12 = vpop.eup %7914  ;;  %v1427_v59 = vadd.f32 %v11867_v9, %v8905_v26  ;;  %v8163_v26 = vld [vmem:[%s11817_s0 + $0x8] sm:$0xff] }
 0x6e6   :  { %v7917_v45 = vpop.eup %7916  ;;  %v2193_v30 = vmul.f32 %v7915_v12, %v7899_v23  ;;  %v8165_v12 = vld [vmem:[%s11817_s0 + $0x18] sm:$0xff] }
 0x6e7   :  { %v2195_v31 = vmul.f32 %v7917_v45, %v7901_v48  ;;  %v1908_v4 = vadd.f32 %v9019_v34, %v1427_v59 }
 0x6e8   :  { %7463 = vmatmul.msk.f32.vlgmr.msra.gmra.mxu3 %vm684_vm6, %v2193_v30 }
 0x6e9   :  { %v7919_v21 = vpop.eup %7918  ;;  %7465 = vmatmul.msk.f32.vlgmr.msra.gmra.mxu1 %vm684_vm6, %v2195_v31 }
 0x6ea   :  { %v2194_v61 = vmul.f32 %v7919_v21, %v7903_v41 }
 0x6ec   :  { %7464 = vmatmul.msk.f32.vlgmr.msrb.gmra.mxu0 %vm684_vm6, %v2194_v61  ;;  %v8166_v61 = vld [vmem:[%s11817_s0 + $0x20] sm:$0xff] }
 0x756   :  { %v2240_v41 = vpop.f32.mrf.mxu0 }
 0x757   :  { %v2180_v39 = vpop.xlane.xlu1 %2179  ;;  %v2382_v5 = vadd.f32 %v2240_v41, %v1902_v53 }
 0x758   :  { %7920 = vrcp.f32 %v2180_v39  ;;  %v8167_v39 = vld [vmem:[%s11817_s0 + $0x28] sm:$0xff] }
 0x759   :  { %v2217_v56 = vpop.f32.mrf.mxu3 }
 0x75a   :  { %v2381_v23 = vadd.f32 %v2217_v56, %v1901_v36 }
 0x75c   :  { %7467 = vmatmul.msk.f32.vlgmr.msrb.gmra.mxu3 %vm79_vm0, %v2381_v23 }
 0x75d   :  { %v2263_v2 = vpop.f32.mrf.mxu1 }
 0x75e   :  { %v7921_v48 = vpop.eup %7920  ;;  %v2383_v7 = vadd.f32 %v2263_v2, %v1903_v58 }
 0x75f   :  { %v2196_v20 = vmul.f32 %v7921_v48, %v7913_v42 }
 0x761   :  { %7466 = vmatmul.msk.f32.vlgmr.msra.gmra.mxu2 %vm684_vm6, %v2196_v20 }
 0x764   :  { %7468 = vmatmul.msk.f32.gmra.mxu3 %vm79_vm0, %v2382_v5  ;;  %v11875_v5 = vld [vmem:[#allocation2_spill] sm:$0xff] }
 0x766   :  { %v2355_v10 = vpop.f32.mrf.mxu1 }
 0x767   :  { %v2286_v19 = vpop.f32.mrf.mxu2  ;;  %v2387_v46 = vadd.f32 %v2355_v10, %v1907_v63  ;;  %v8169_v63 = vld [vmem:[%s11817_s0 + $0x38] sm:$0xff] }
 0x768   :  { %v2384_v29 = vadd.f32 %v2286_v19, %v1904_v6 }
 0x769   :  { %v2332_v16 = vpop.f32.mrf.mxu0 }
 0x76a   :  { %v2386_v33 = vadd.f32 %v2332_v16, %v1906_v8 }
 0x76b   :  { %v2309_v51 = vpop.f32.mrf.mxu3 }
 0x76c   :  { %7469 = vmatmul.msk.f32.gmra.mxu3 %vm79_vm0, %v2383_v7  ;;  %v2385_v3 = vadd.f32 %v2309_v51, %v1905_v35 }
 0x774   :  { %7470 = vmatmul.msk.f32.gmra.mxu3 %vm79_vm0, %v2384_v29 }
 0x77c   :  { %7471 = vmatmul.msk.f32.gmra.mxu3 %vm79_vm0, %v2385_v3 }
 0x784   :  { %7472 = vmatmul.msk.f32.gmra.mxu3 %vm79_vm0, %v2386_v33 }
 0x78c   :  { %7473 = vmatmul.msk.f32.gmra.mxu3 %vm79_vm0, %v2387_v46 }
 0x7df   :  { %v2438_v40 = vpop.f32.mrf.mxu3 }
 0x7e0   :  { %v2439_v43 = vadd.f32 %v9086_v11, %v2438_v40 }
 0x7e2   :  { %v9094_v24 = vadd.f32 %v8162_v44, %v2439_v43 }
 0x7e4   :  { %11868 = vst [vmem:[#allocation7_spill] sm:$0xff] %v9094_v24  ;;  %v2472_v1 = vsel %vm79_vm0, %v9094_v24, 0.0  ;;  %v2378_v17 = vpop.f32.mrf.mxu2 }
 0x7e5   :  { %2473 = vadd.xlane.f32.xlu2 %v2472_v1  ;;  %v2388_v47 = vadd.f32 %v2378_v17, %v1908_v4 }
 0x7e7   :  { %v2441_v38 = vpop.f32.mrf.mxu3  ;;  %7474 = vmatmul.msk.f32.gmra.mxu3 %vm79_vm0, %v2388_v47 }
 0x7e8   :  { %v2442_v14 = vadd.f32 %v9086_v11, %v2441_v38 }
 0x7ea   :  { %v9104_v32 = vadd.f32 %v8163_v26, %v2442_v14 }
 0x7ec   :  { %11869 = vst [vmem:[#allocation8_spill] sm:$0xff] %v9104_v32  ;;  %v2475_v34 = vsel %vm79_vm0, %v9104_v32, 0.0 }
 0x7ed   :  { %2476 = vadd.xlane.f32.xlu0 %v2475_v34 }
 0x7ef   :  { %v2444_v18 = vpop.f32.mrf.mxu3 }
 0x7f0   :  { %v2445_v52 = vadd.f32 %v9086_v11, %v2444_v18 }
 0x7f2   :  { %v9112_v42 = vadd.f32 %v8164_v22, %v2445_v52 }
 0x7f4   :  { %11870 = vst [vmem:[#allocation9_spill] sm:$0xff] %v9112_v42  ;;  %v2478_v50 = vsel %vm79_vm0, %v9112_v42, 0.0 }
 0x7f5   :  { %2479 = vadd.xlane.f32.xlu1 %v2478_v50 }
 0x7f7   :  { %v2447_v13 = vpop.f32.mrf.mxu3 }
 0x7f8   :  { %v2448_v37 = vadd.f32 %v9086_v11, %v2447_v13 }
 0x7fa   :  { %v9120_v45 = vadd.f32 %v8165_v12, %v2448_v37  ;;  %v2676_v37 = vld [vmem:[%s11826_s9 + $0x30] sm:$0xff]  ;;  %v2677_v12 = vld [vmem:[%s11826_s9 + $0x38] sm:$0xff] }
 0x7fb   :  { %2720 = vmatpush.msra.mxu0 %v2676_v37  ;;  %2761 = vmatpush.msrb.mxu1 %v2677_v12 }
 0x7fc   :  { %11871 = vst [vmem:[#allocation10_spill] sm:$0xff] %v9120_v45  ;;  %v2481_v30 = vsel %vm79_vm0, %v9120_v45, 0.0 }
 0x7fd   :  { %2482 = vadd.xlane.f32.xlu2 %v2481_v30  ;;  %v2674_v30 = vld [vmem:[%s11826_s9 + $0x20] sm:$0xff] }
 0x7fe   :  { %2721 = vmatpush.msra.mxu0 %v2674_v30 }
 0x7ff   :  { %v2450_v31 = vpop.f32.mrf.mxu3 }
 0x800   :  { %v2451_v21 = vadd.f32 %v9086_v11, %v2450_v31  ;;  %v2675_v31 = vld [vmem:[%s11826_s9 + $0x28] sm:$0xff] }
 0x801   :  { %2762 = vmatpush.msrb.mxu1 %v2675_v31 }
 0x802   :  { %v9128_v49 = vadd.f32 %v8166_v61, %v2451_v21  ;;  %v2672_v21 = vld [vmem:[%s11826_s9 + $0x10] sm:$0xff]  ;;  %v2673_v61 = vld [vmem:[%s11826_s9 + $0x18] sm:$0xff] }
 0x803   :  { %2722 = vmatpush.msra.mxu0 %v2672_v21  ;;  %2763 = vmatpush.msrb.mxu1 %v2673_v61 }
 0x804   :  { %11872 = vst [vmem:[#allocation11_spill] sm:$0xff] %v9128_v49  ;;  %v2484_v55 = vsel %vm79_vm0, %v9128_v49, 0.0 }
 0x805   :  { %2485 = vadd.xlane.f32.xlu0 %v2484_v55  ;;  %v2670_v55 = vld [vmem:[%s11826_s9] sm:$0xff] }
 0x806   :  { %2723 = vmatpush.msra.mxu0 %v2670_v55 }
 0x807   :  { %v2453_v15 = vpop.f32.mrf.mxu3 }
 0x808   :  { %v2454_v54 = vadd.f32 %v9086_v11, %v2453_v15  ;;  %v2671_v15 = vld [vmem:[%s11826_s9 + $0x8] sm:$0xff] }
 0x809   :  { %2764 = vmatpush.msrb.mxu1 %v2671_v15 }
 0x80a   :  { %v9136_v36 = vadd.f32 %v8167_v39, %v2454_v54 }
 0x80c   :  { %11873 = vst [vmem:[#allocation12_spill] sm:$0xff] %v9136_v36  ;;  %v2487_v56 = vsel %vm79_vm0, %v9136_v36, 0.0 }
 0x80d   :  { %2488 = vadd.xlane.f32.xlu1 %v2487_v56 }
 0x80f   :  { %v2456_v23 = vpop.f32.mrf.mxu3 }
 0x810   :  { %v2457_v48 = vadd.f32 %v9086_v11, %v2456_v23 }
 0x812   :  { %v9144_v41 = vadd.f32 %v8168_v62, %v2457_v48 }
 0x814   :  { %11874 = vst [vmem:[#allocation13_spill] sm:$0xff] %v9144_v41  ;;  %v2490_v20 = vsel %vm79_vm0, %v9144_v41, 0.0 }
 0x815   :  { %2491 = vadd.xlane.f32.xlu0 %v2490_v20 }
 0x858   :  { %v2474_v53 = vpop.xlane.xlu2 %2473 }
 0x859   :  { %v2496_v0 = vmul.f32 %v2474_v53, %v11875_v5 }
 0x85b   :  { %v9150_v2 = vsub.f32 %v9094_v24, %v2496_v0 }
 0x85d   :  { %v2512_v58 = vmul.f32 %v9150_v2, %v9150_v2 }
 0x85f   :  { %v2520_v7 = vsel %vm79_vm0, %v2512_v58, 0.0 }
 0x860   :  { %v2477_v25 = vpop.xlane.xlu0 %2476  ;;  %2521 = vadd.xlane.f32.xlu2 %v2520_v7 }
 0x861   :  { %v2497_v19 = vmul.f32 %v2477_v25, %v11875_v5 }
 0x863   :  { %v9157_v6 = vsub.f32 %v9104_v32, %v2497_v19 }
 0x865   :  { %v2513_v29 = vmul.f32 %v9157_v6, %v9157_v6 }
 0x867   :  { %v2523_v28 = vsel %vm79_vm0, %v2513_v29, 0.0 }
 0x868   :  { %2524 = vadd.xlane.f32.xlu1 %v2523_v28  ;;  %v2480_v51 = vpop.xlane.xlu1 %2479 }
 0x869   :  { %v2498_v35 = vmul.f32 %v2480_v51, %v11875_v5 }
 0x86a   :  { %v2459_v27 = vpop.f32.mrf.mxu3 }
 0x86b   :  { %v9164_v3 = vsub.f32 %v9112_v42, %v2498_v35  ;;  %v2460_v8 = vadd.f32 %v9086_v11, %v2459_v27  ;;  %v9235_v27 = vld [vmem:[%s11824_s7] ss:$0 sm:$0xff] }
 0x86d   :  { %v2514_v16 = vmul.f32 %v9164_v3, %v9164_v3  ;;  %v9174_v46 = vadd.f32 %v8169_v63, %v2460_v8 }
 0x86f   :  { %v2526_v33 = vsel %vm79_vm0, %v2514_v16, 0.0  ;;  %11876 = vst [vmem:[#allocation14_spill] sm:$0xff] %v9174_v46  ;;  %v2493_v9 = vsel %vm79_vm0, %v9174_v46, 0.0 }
 0x870   :  { %v2483_v60 = vpop.xlane.xlu2 %2482  ;;  %2527 = vadd.xlane.f32.xlu2 %v2526_v33 }
 0x871   :  { %v2499_v10 = vmul.f32 %v2483_v60, %v11875_v5  ;;  %v9241_v60 = vld [vmem:[%s11825_s8] ss:$0 sm:$0xff] }
 0x873   :  { %v9177_v40 = vsub.f32 %v9120_v45, %v2499_v10 }
 0x875   :  { %v2515_v43 = vmul.f32 %v9177_v40, %v9177_v40 }
 0x877   :  { %v2529_v11 = vsel %vm79_vm0, %v2515_v43, 0.0 }
 0x878   :  { %2530 = vadd.xlane.f32.xlu0 %v2529_v11  ;;  %v2486_v59 = vpop.xlane.xlu0 %2485  ;;  %2494 = vadd.xlane.f32.xlu2 %v2493_v9 }
 0x879   :  { %v2500_v44 = vmul.f32 %v2486_v59, %v11875_v5 }
 0x87b   :  { %v9186_v4 = vsub.f32 %v9128_v49, %v2500_v44 }
 0x87d   :  { %v2516_v1 = vmul.f32 %v9186_v4, %v9186_v4 }
 0x87f   :  { %v2532_v17 = vsel %vm79_vm0, %v2516_v1, 0.0 }
 0x880   :  { %2533 = vadd.xlane.f32.xlu1 %v2532_v17  ;;  %v2489_v47 = vpop.xlane.xlu1 %2488 }
 0x881   :  { %v2501_v38 = vmul.f32 %v2489_v47, %v11875_v5 }
 0x883   :  { %v9193_v14 = vsub.f32 %v9136_v36, %v2501_v38 }
 0x885   :  { %v2517_v26 = vmul.f32 %v9193_v14, %v9193_v14 }
 0x887   :  { %v2535_v34 = vsel %vm79_vm0, %v2517_v26, 0.0 }
 0x888   :  { %v2492_v18 = vpop.xlane.xlu0 %2491  ;;  %2536 = vadd.xlane.f32.xlu0 %v2535_v34 }
 0x889   :  { %v2502_v52 = vmul.f32 %v2492_v18, %v11875_v5 }
 0x88b   :  { %v9200_v22 = vsub.f32 %v9144_v41, %v2502_v52 }
 0x88d   :  { %v2518_v50 = vmul.f32 %v9200_v22, %v9200_v22 }
 0x88f   :  { %v2538_v13 = vsel %vm79_vm0, %v2518_v50, 0.0 }
 0x890   :  { %2539 = vadd.xlane.f32.xlu1 %v2538_v13 }
 0x8d3   :  { %v2522_v54 = vpop.xlane.xlu2 %2521 }
 0x8d4   :  { %v2544_v39 = vmul.f32 %v2522_v54, %v11875_v5 }
 0x8d6   :  { %v2552_v56 = vadd.f32 1e-05, %v2544_v39 }
 0x8d8   :  { %7922 = vrsqrt.f32 %v2552_v56  ;;  %vm2566_vm8 = vweird.f32 %v2552_v56 }
 0x8db   :  { %v2525_v23 = vpop.xlane.xlu1 %2524 }
 0x8dc   :  { %v2545_v48 = vmul.f32 %v2525_v23, %v11875_v5 }
 0x8de   :  { %v7923_v62 = vpop.eup %7922  ;;  %v2553_v20 = vadd.f32 1e-05, %v2545_v48 }
 0x8df   :  { %v2561_v53 = vmul.f32 %v7923_v62, %v2552_v56  ;;  %vm2567_vm7 = vweird.f32 %v7923_v62 }
 0x8e0   :  { %7924 = vrsqrt.f32 %v2553_v20  ;;  %vm2568_vm9 = vmor %vm2566_vm8, %vm2567_vm7  ;;  %vm2576_vm11 = vweird.f32 %v2553_v20 }
 0x8e1   :  { %v2562_v0 = vmul.f32 %v7923_v62, %v2561_v53 }
 0x8e3   :  { %v2563_v58 = vmul.f32 0.5, %v2562_v0  ;;  %v2528_v7 = vpop.xlane.xlu2 %2527 }
 0x8e4   :  { %v2546_v25 = vmul.f32 %v2528_v7, %v11875_v5 }
 0x8e5   :  { %v2564_v19 = vsub.f32 1.5, %v2563_v58 }
 0x8e6   :  { %v7925_v29 = vpop.eup %7924  ;;  %v2554_v28 = vadd.f32 1e-05, %v2546_v25 }
 0x8e7   :  { %v2565_v51 = vmul.f32 %v7923_v62, %v2564_v19  ;;  %v2571_v35 = vmul.f32 %v7925_v29, %v2553_v20  ;;  %vm2577_vm10 = vweird.f32 %v7925_v29 }
 0x8e8   :  { %7926 = vrsqrt.f32 %v2554_v28  ;;  %vm2578_vm12 = vmor %vm2576_vm11, %vm2577_vm10  ;;  %vm2586_vm14 = vweird.f32 %v2554_v28 }
 0x8e9   :  { %v2569_v16 = vsel %vm2568_vm9, %v7923_v62, %v2565_v51  ;;  %v2572_v8 = vmul.f32 %v7925_v29, %v2571_v35 }
 0x8ea   :  { %v2640_v33 = vmul.f32 %v2569_v16, %v9150_v2 }
 0x8eb   :  { %v2573_v10 = vmul.f32 0.5, %v2572_v8  ;;  %v2531_v63 = vpop.xlane.xlu0 %2530  ;;  %v2495_v43 = vpop.xlane.xlu2 %2494 }
 0x8ec   :  { %v2651_v11 = vmul.f32 %v9235_v27, %v2640_v33  ;;  %v2547_v9 = vmul.f32 %v2531_v63, %v11875_v5  ;;  %v2503_v59 = vmul.f32 %v2495_v43, %v11875_v5 }
 0x8ed   :  { %v2574_v44 = vsub.f32 1.5, %v2573_v10 }
 0x8ee   :  { %v7927_v1 = vpop.eup %7926  ;;  %v2555_v17 = vadd.f32 1e-05, %v2547_v9  ;;  %v9247_v2 = vsub.f32 %v9174_v46, %v2503_v59  ;;  %v2662_v47 = vadd.f32 %v9241_v60, %v2651_v11 }
 0x8ef   :  { %v2575_v38 = vmul.f32 %v7925_v29, %v2574_v44  ;;  %v2581_v26 = vmul.f32 %v7927_v1, %v2554_v28  ;;  %vm2587_vm13 = vweird.f32 %v7927_v1 }
 0x8f0   :  { %7928 = vrsqrt.f32 %v2555_v17  ;;  %7475 = vmatmul.msk.f32.vlgmr.msra.gmra.mxu0 %vm79_vm0, %v2662_v47  ;;  %7483 = vmatmul.msk.f32.vlgmr.msrb.gmra.mxu1 %vm79_vm0, %v2662_v47  ;;  %v2519_v34 = vmul.f32 %v9247_v2, %v9247_v2  ;;  %vm2588_vm15 = vmor %vm2586_vm14, %vm2587_vm13  ;;  %vm2596_vm2 = vweird.f32 %v2555_v17 }
 0x8f1   :  { %v2579_v18 = vsel %vm2578_vm12, %v7925_v29, %v2575_v38  ;;  %v2582_v52 = vmul.f32 %v7927_v1, %v2581_v26 }
 0x8f2   :  { %v2641_v50 = vmul.f32 %v2579_v18, %v9157_v6  ;;  %v2541_v13 = vsel %vm79_vm0, %v2519_v34, 0.0 }
 0x8f3   :  { %v2583_v37 = vmul.f32 0.5, %v2582_v52  ;;  %2542 = vadd.xlane.f32.xlu2 %v2541_v13  ;;  %v2534_v12 = vpop.xlane.xlu1 %2533 }
 0x8f4   :  { %v2548_v30 = vmul.f32 %v2534_v12, %v11875_v5  ;;  %v2652_v31 = vmul.f32 %v9235_v27, %v2641_v50 }
 0x8f5   :  { %v2584_v21 = vsub.f32 1.5, %v2583_v37 }
 0x8f6   :  { %v7929_v61 = vpop.eup %7928  ;;  %v2556_v55 = vadd.f32 1e-05, %v2548_v30  ;;  %v2663_v15 = vadd.f32 %v9241_v60, %v2652_v31 }
 0x8f7   :  { %v2585_v54 = vmul.f32 %v7927_v1, %v2584_v21  ;;  %v2591_v39 = vmul.f32 %v7929_v61, %v2555_v17  ;;  %vm2597_vm1 = vweird.f32 %v7929_v61 }
 0x8f8   :  { %7930 = vrsqrt.f32 %v2556_v55  ;;  %7476 = vmatmul.msk.f32.gmra.mxu0 %vm79_vm0, %v2663_v15  ;;  %7484 = vmatmul.msk.f32.gmra.mxu1 %vm79_vm0, %v2663_v15  ;;  %vm2598_vm3 = vmor %vm2596_vm2, %vm2597_vm1  ;;  %vm2606_vm5 = vweird.f32 %v2556_v55 }
 0x8f9   :  { %v2589_v6 = vsel %vm2588_vm15, %v7927_v1, %v2585_v54  ;;  %v2592_v56 = vmul.f32 %v7929_v61, %v2591_v39 }
 0x8fa   :  { %v2642_v23 = vmul.f32 %v2589_v6, %v9164_v3  ;;  %v2678_v6 = vld [vmem:[%s11827_s10] sm:$0x3] }
 0x8fb   :  { %v2593_v48 = vmul.f32 0.5, %v2592_v56  ;;  %v2537_v62 = vpop.xlane.xlu0 %2536 }
 0x8fc   :  { %v2549_v20 = vmul.f32 %v2537_v62, %v11875_v5  ;;  %v2653_v53 = vmul.f32 %v9235_v27, %v2642_v23  ;;  %v9292_v23 = vperm.slane %v2678_v6, 0 }
 0x8fd   :  { %v2594_v0 = vsub.f32 1.5, %v2593_v48  ;;  %v9294_v48 = vperm.slane %v2678_v6, 1 }
 0x8fe   :  { %v7931_v58 = vpop.eup %7930  ;;  %v2557_v7 = vadd.f32 1e-05, %v2549_v20  ;;  %v2664_v25 = vadd.f32 %v9241_v60, %v2653_v53  ;;  %11877 = vst [vmem:[#allocation15_spill] sm:$0xff] %v9292_v23  ;;  %v3509_v53 = vld [vmem:[%s11828_s11 + $0x78] sm:$0xff] }
 0x8ff   :  { %v2595_v19 = vmul.f32 %v7929_v61, %v2594_v0  ;;  %v2601_v29 = vmul.f32 %v7931_v58, %v2556_v55  ;;  %vm2607_vm4 = vweird.f32 %v7931_v58  ;;  %11878 = vst [vmem:[#allocation16_spill] sm:$0xff] %v9294_v48  ;;  %3526 = vmatpush.msrb.mxu2 %v3509_v53 }
 0x900   :  { %7932 = vrsqrt.f32 %v2557_v7  ;;  %7477 = vmatmul.msk.f32.gmra.mxu0 %vm79_vm0, %v2664_v25  ;;  %7485 = vmatmul.msk.f32.gmra.mxu1 %vm79_vm0, %v2664_v25  ;;  %vm2608_vm7 = vmor %vm2606_vm5, %vm2607_vm4  ;;  %vm2616_vm9 = vweird.f32 %v2557_v7 }
 0x901   :  { %v2599_v3 = vsel %vm2598_vm3, %v7929_v61, %v2595_v19  ;;  %v2602_v28 = vmul.f32 %v7931_v58, %v2601_v29 }
 0x902   :  { %v2643_v51 = vmul.f32 %v2599_v3, %v9177_v40  ;;  %v3523_v3 = vld [vmem:[%s11828_s11 + $0xe8] sm:$0xff] }
 0x903   :  { %v2603_v35 = vmul.f32 0.5, %v2602_v28  ;;  %v2540_v16 = vpop.xlane.xlu1 %2539 }
 0x904   :  { %v2550_v8 = vmul.f32 %v2540_v16, %v11875_v5  ;;  %v2654_v33 = vmul.f32 %v9235_v27, %v2643_v51  ;;  %v3508_v16 = vld [vmem:[%s11828_s11 + $0x70] sm:$0xff] }
 0x905   :  { %v2604_v10 = vsub.f32 1.5, %v2603_v35  ;;  %3527 = vmatpush.msrb.mxu2 %v3508_v16 }
 0x906   :  { %v7933_v63 = vpop.eup %7932  ;;  %v2558_v43 = vadd.f32 1e-05, %v2550_v8  ;;  %v2665_v11 = vadd.f32 %v9241_v60, %v2654_v33 }
 0x907   :  { %v2605_v9 = vmul.f32 %v7931_v58, %v2604_v10  ;;  %v2611_v59 = vmul.f32 %v7933_v63, %v2557_v7  ;;  %vm2617_vm8 = vweird.f32 %v7933_v63  ;;  %v3524_v7 = vld [vmem:[%s11828_s11 + $0xf0] sm:$0xff] }
 0x908   :  { %7934 = vrsqrt.f32 %v2558_v43  ;;  %7478 = vmatmul.msk.f32.gmra.mxu0 %vm79_vm0, %v2665_v11  ;;  %7486 = vmatmul.msk.f32.gmra.mxu1 %vm79_vm0, %v2665_v11  ;;  %vm2618_vm10 = vmor %vm2616_vm9, %vm2617_vm8  ;;  %vm2626_vm12 = vweird.f32 %v2558_v43  ;;  %v3507_v11 = vld [vmem:[%s11828_s11 + $0x68] sm:$0xff] }
 0x909   :  { %v2609_v40 = vsel %vm2608_vm7, %v7931_v58, %v2605_v9  ;;  %v2612_v44 = vmul.f32 %v7933_v63, %v2611_v59  ;;  %3528 = vmatpush.msrb.mxu2 %v3507_v11 }
 0x90a   :  { %v2644_v1 = vmul.f32 %v2609_v40, %v9186_v4 }
 0x90b   :  { %v2613_v17 = vmul.f32 0.5, %v2612_v44 }
 0x90c   :  { %v2655_v47 = vmul.f32 %v9235_v27, %v2644_v1 }
 0x90d   :  { %v2614_v38 = vsub.f32 1.5, %v2613_v17 }
 0x90e   :  { %v7935_v26 = vpop.eup %7934  ;;  %v2666_v34 = vadd.f32 %v9241_v60, %v2655_v47 }
 0x90f   :  { %v2615_v18 = vmul.f32 %v7933_v63, %v2614_v38  ;;  %v2621_v52 = vmul.f32 %v7935_v26, %v2558_v43  ;;  %vm2627_vm11 = vweird.f32 %v7935_v26  ;;  %v3522_v38 = vld [vmem:[%s11828_s11 + $0xe0] sm:$0xff] }
 0x910   :  { %7479 = vmatmul.msk.f32.gmra.mxu0 %vm79_vm0, %v2666_v34  ;;  %7487 = vmatmul.msk.f32.gmra.mxu1 %vm79_vm0, %v2666_v34  ;;  %vm2628_vm13 = vmor %vm2626_vm12, %vm2627_vm11 }
 0x911   :  { %v2619_v50 = vsel %vm2618_vm10, %v7933_v63, %v2615_v18  ;;  %v2622_v13 = vmul.f32 %v7935_v26, %v2621_v52 }
 0x912   :  { %v2645_v4 = vmul.f32 %v2619_v50, %v9193_v14 }
 0x913   :  { %v2623_v37 = vmul.f32 0.5, %v2622_v13 }
 0x914   :  { %v2656_v12 = vmul.f32 %v9235_v27, %v2645_v4 }
 0x915   :  { %v2624_v30 = vsub.f32 1.5, %v2623_v37 }
 0x916   :  { %v2667_v31 = vadd.f32 %v9241_v60, %v2656_v12 }
 0x917   :  { %v2625_v21 = vmul.f32 %v7935_v26, %v2624_v30 }
 0x918   :  { %7480 = vmatmul.msk.f32.gmra.mxu0 %vm79_vm0, %v2667_v31  ;;  %7488 = vmatmul.msk.f32.gmra.mxu1 %vm79_vm0, %v2667_v31  ;;  %v3521_v31 = vld [vmem:[%s11828_s11 + $0xd8] sm:$0xff] }
 0x919   :  { %v2629_v61 = vsel %vm2628_vm13, %v7935_v26, %v2625_v21  ;;  %v3506_v26 = vld [vmem:[%s11828_s11 + $0x60] sm:$0xff]  ;;  %v3505_v21 = vld [vmem:[%s11828_s11 + $0x58] sm:$0xff] }
 0x91a   :  { %v2646_v55 = vmul.f32 %v2629_v61, %v9200_v22  ;;  %v3525_v22 = vld [vmem:[%s11828_s11 + $0xf8] sm:$0xff]  ;;  %3529 = vmatpush.msrb.mxu2 %v3506_v26 }
 0x91b   :  { %3567 = vmatpush.msra.mxu3 %v3525_v22  ;;  %v3520_v22 = vld [vmem:[%s11828_s11 + $0xd0] sm:$0xff] }
 0x91c   :  { %v2657_v15 = vmul.f32 %v9235_v27, %v2646_v55  ;;  %3530 = vmatpush.msrb.mxu2 %v3505_v21 }
 0x91d   :  { %3568 = vmatpush.msra.mxu3 %v3524_v7 }
 0x91e   :  { %v2668_v14 = vadd.f32 %v9241_v60, %v2657_v15 }
 0x91f   :  { %3569 = vmatpush.msra.mxu3 %v3523_v3 }
 0x920   :  { %7481 = vmatmul.msk.f32.gmra.mxu0 %vm79_vm0, %v2668_v14  ;;  %7489 = vmatmul.msk.f32.gmra.mxu1 %vm79_vm0, %v2668_v14 }
 0x921   :  { %3570 = vmatpush.msra.mxu3 %v3522_v38 }
 0x923   :  { %3571 = vmatpush.msra.mxu3 %v3521_v31 }
 0x925   :  { %3572 = vmatpush.msra.mxu3 %v3520_v22  ;;  %v3500_v22 = vld [vmem:[%s11828_s11 + $0x30] sm:$0xff] }
 0x966   :  { %v2543_v54 = vpop.xlane.xlu2 %2542 }
 0x967   :  { %v2551_v39 = vmul.f32 %v2543_v54, %v11875_v5 }
 0x969   :  { %v2559_v56 = vadd.f32 1e-05, %v2551_v39 }
 0x96b   :  { %7936 = vrsqrt.f32 %v2559_v56  ;;  %vm2636_vm15 = vweird.f32 %v2559_v56 }
 0x96d   :  { %v2725_v62 = vpop.f32.mrf.mxu0  ;;  %v2766_v20 = vpop.f32.mrf.mxu1 }
 0x96e   :  { %v9303_v0 = vadd.f32 %v2725_v62, %v9292_v23  ;;  %v9306_v58 = vadd.f32 %v2766_v20, %v9294_v48 }
 0x970   :  { %v9312_v25 = vmul.f32 0.70710677, %v9303_v0  ;;  %v9315_v19 = vmul.f32 0.70710677, %v9306_v58 }
 0x971   :  { %v7937_v29 = vpop.eup %7936 }
 0x972   :  { %v2631_v28 = vmul.f32 %v7937_v29, %v2559_v56  ;;  %v2822_v51 = vmul.f32 %v9312_v25, %v9312_v25  ;;  %v2862_v35 = vmul.f32 %v9315_v19, %v9315_v19  ;;  %vm2637_vm14 = vweird.f32 %v7937_v29  ;;  %v3504_v56 = vld [vmem:[%s11828_s11 + $0x50] sm:$0xff] }
 0x973   :  { %vm2638_vm1 = vmor %vm2636_vm15, %vm2637_vm14  ;;  %3531 = vmatpush.msrb.mxu2 %v3504_v56 }
 0x974   :  { %v2632_v8 = vmul.f32 %v7937_v29, %v2631_v28  ;;  %v9327_v33 = vmin.f32 %v2822_v51, 16.0  ;;  %v9329_v10 = vmin.f32 %v2862_v35, 16.0  ;;  %v3503_v35 = vld [vmem:[%s11828_s11 + $0x48] sm:$0xff] }
 0x975   :  { %v2728_v63 = vpop.f32.mrf.mxu0  ;;  %v2769_v43 = vpop.f32.mrf.mxu1  ;;  %3532 = vmatpush.msrb.mxu2 %v3503_v35 }
 0x976   :  { %v2633_v9 = vmul.f32 0.5, %v2632_v8  ;;  %v2824_v59 = vmul.f32 2.1237322e-06, %v9327_v33  ;;  %v2835_v40 = vmul.f32 3.8918573e-05, %v9327_v33  ;;  %v9337_v44 = vadd.f32 %v2728_v63, %v9292_v23 }
 0x977   :  { %v2864_v1 = vmul.f32 2.1237322e-06, %v9329_v10  ;;  %v2875_v17 = vmul.f32 3.8918573e-05, %v9329_v10  ;;  %v9342_v47 = vadd.f32 %v2769_v43, %v9294_v48 }
 0x978   :  { %v2634_v34 = vsub.f32 1.5, %v2633_v9  ;;  %v2825_v18 = vadd.f32 0.00028619796, %v2824_v59  ;;  %v2836_v52 = vadd.f32 0.001143296, %v2835_v40 }
 0x979   :  { %v2865_v50 = vadd.f32 0.00028619796, %v2864_v1  ;;  %v2876_v13 = vadd.f32 0.001143296, %v2875_v17  ;;  %v9351_v4 = vmul.f32 0.70710677, %v9337_v44 }
 0x97a   :  { %v2635_v37 = vmul.f32 %v7937_v29, %v2634_v34  ;;  %v2826_v12 = vmul.f32 %v2825_v18, %v9327_v33  ;;  %v2837_v30 = vmul.f32 %v2836_v52, %v9327_v33  ;;  %v9366_v14 = vmul.f32 0.70710677, %v9342_v47  ;;  %v3502_v52 = vld [vmem:[%s11828_s11 + $0x40] sm:$0xff] }
 0x97b   :  { %v2866_v61 = vmul.f32 %v2865_v50, %v9329_v10  ;;  %v2877_v55 = vmul.f32 %v2876_v13, %v9329_v10  ;;  %v2902_v15 = vmul.f32 %v9351_v4, %v9351_v4  ;;  %v3518_v50 = vld [vmem:[%s11828_s11 + $0xc0] sm:$0xff]  ;;  %3533 = vmatpush.msrb.mxu2 %v3502_v52  ;;  %v3496_v52 = vld [vmem:[%s11828_s11 + $0x10] sm:$0xff] }
 0x97c   :  { %v2639_v54 = vsel %vm2638_vm1, %v7937_v29, %v2635_v37  ;;  %v2827_v39 = vadd.f32 0.0036580483, %v2826_v12  ;;  %v2838_v6 = vadd.f32 0.014752088, %v2837_v30  ;;  %v2942_v51 = vmul.f32 %v9366_v14, %v9366_v14  ;;  %v3517_v30 = vld [vmem:[%s11828_s11 + $0xb8] sm:$0xff] }
 0x97d   :  { %v2647_v62 = vmul.f32 %v2639_v54, %v9247_v2  ;;  %v2867_v20 = vadd.f32 0.0036580483, %v2866_v61  ;;  %v2878_v53 = vadd.f32 0.014752088, %v2877_v55  ;;  %v9375_v7 = vmin.f32 %v2902_v15, 16.0  ;;  %v2731_v3 = vpop.f32.mrf.mxu0  ;;  %v3519_v2 = vld [vmem:[%s11828_s11 + $0xc8] sm:$0xff]  ;;  %v2772_v38 = vpop.f32.mrf.mxu1 }
 0x97e   :  { %v2828_v29 = vmul.f32 %v2827_v39, %v9327_v33  ;;  %v2839_v28 = vmul.f32 %v2838_v6, %v9327_v33  ;;  %v9391_v43 = vadd.f32 %v2731_v3, %v9292_v23  ;;  %3573 = vmatpush.msra.mxu3 %v3519_v2  ;;  %v9393_v59 = vmin.f32 %v2942_v51, 16.0 }
 0x97f   :  { %v2868_v16 = vmul.f32 %v2867_v20, %v9329_v10  ;;  %v2879_v8 = vmul.f32 %v2878_v53, %v9329_v10  ;;  %v2904_v63 = vmul.f32 2.1237322e-06, %v9375_v7  ;;  %v2658_v26 = vmul.f32 %v9235_v27, %v2647_v62  ;;  %v3501_v27 = vld [vmem:[%s11828_s11 + $0x38] sm:$0xff]  ;;  %v3516_v62 = vld [vmem:[%s11828_s11 + $0xb0] sm:$0xff] }
 0x980   :  { %v2829_v11 = vadd.f32 0.05243302, %v2828_v29  ;;  %v2840_v9 = vadd.f32 0.112945676, %v2839_v28  ;;  %v9407_v12 = vmul.f32 0.70710677, %v9391_v43  ;;  %3574 = vmatpush.msra.mxu3 %v3518_v50  ;;  %v9417_v61 = vadd.f32 %v2772_v38, %v9294_v48  ;;  %3534 = vmatpush.msrb.mxu2 %v3501_v27 }
 0x981   :  { %v2869_v40 = vadd.f32 0.05243302, %v2868_v16  ;;  %v2880_v1 = vadd.f32 0.112945676, %v2879_v8  ;;  %v2905_v17 = vadd.f32 0.00028619796, %v2904_v63  ;;  %v2669_v39 = vadd.f32 %v9241_v60, %v2658_v26 }
 0x982   :  { %v2830_v34 = vmul.f32 %v2829_v11, %v9327_v33  ;;  %v2841_v18 = vmul.f32 %v2840_v9, %v9327_v33  ;;  %v2944_v21 = vmul.f32 2.1237322e-06, %v9393_v59  ;;  %3575 = vmatpush.msra.mxu3 %v3517_v30  ;;  %v2982_v3 = vmul.f32 %v9407_v12, %v9407_v12  ;;  %v3499_v60 = vld [vmem:[%s11828_s11 + $0x28] sm:$0xff]  ;;  %3535 = vmatpush.msrb.mxu2 %v3500_v22  ;;  %v3498_v63 = vld [vmem:[%s11828_s11 + $0x20] sm:$0xff]  ;;  %v3512_v50 = vld [vmem:[%s11828_s11 + $0x90] sm:$0xff] }
 0x983   :  { %v2870_v13 = vmul.f32 %v2869_v40, %v9329_v10  ;;  %v2881_v37 = vmul.f32 %v2880_v1, %v9329_v10  ;;  %v2906_v54 = vmul.f32 %v2905_v17, %v9375_v7  ;;  %7482 = vmatmul.msk.f32.gmra.mxu0 %vm79_vm0, %v2669_v39  ;;  %7490 = vmatmul.msk.f32.gmra.mxu1 %vm79_vm0, %v2669_v39  ;;  %v3515_v29 = vld [vmem:[%s11828_s11 + $0xa8] sm:$0xff]  ;;  %v9442_v35 = vmul.f32 0.70710677, %v9417_v61  ;;  %v3514_v11 = vld [vmem:[%s11828_s11 + $0xa0] sm:$0xff]  ;;  %v3497_v1 = vld [vmem:[%s11828_s11 + $0x18] sm:$0xff] }
 0x984   :  { %v2842_v31 = vadd.f32 0.4994258, %v2841_v18  ;;  %v2831_v55 = vadd.f32 0.18741608, %v2830_v34  ;;  %v2945_v51 = vadd.f32 0.00028619796, %v2944_v21  ;;  %3576 = vmatpush.msra.mxu3 %v3516_v62  ;;  %3536 = vmatpush.msrb.mxu2 %v3499_v60 }
 0x985   :  { %v2882_v15 = vadd.f32 0.4994258, %v2881_v37  ;;  %v2734_v6 = vpop.f32.mrf.mxu0  ;;  %v2871_v20 = vadd.f32 0.18741608, %v2870_v13  ;;  %v2907_v8 = vadd.f32 0.0036580483, %v2906_v54  ;;  %v2775_v40 = vpop.f32.mrf.mxu1  ;;  %v3022_v26 = vmul.f32 %v9442_v35, %v9442_v35 }
 0x986   :  { %v2843_v56 = vmul.f32 %v2842_v31, %v9327_v33  ;;  %v2832_v2 = vmul.f32 %v2831_v55, %v9327_v33  ;;  %3577 = vmatpush.msra.mxu3 %v3515_v29  ;;  %v9456_v33 = vmin.f32 %v2982_v3, 16.0  ;;  %v3513_v17 = vld [vmem:[%s11828_s11 + $0x98] sm:$0xff]  ;;  %v2946_v38 = vmul.f32 %v2945_v51, %v9393_v59  ;;  %3537 = vmatpush.msrb.mxu2 %v3498_v63  ;;  %v3495_v30 = vld [vmem:[%s11828_s11 + $0x8] sm:$0xff]  ;;  %v3494_v62 = vld [vmem:[%s11828_s11] sm:$0xff] }
 0x987   :  { %v2883_v53 = vmul.f32 %v2882_v15, %v9329_v10  ;;  %v2872_v9 = vmul.f32 %v2871_v20, %v9329_v10  ;;  %v9468_v10 = vadd.f32 %v2734_v6, %v9292_v23  ;;  %v2908_v18 = vmul.f32 %v2907_v8, %v9375_v7  ;;  %v3511_v54 = vld [vmem:[%s11828_s11 + $0x88] sm:$0xff]  ;;  %v3510_v20 = vld [vmem:[%s11828_s11 + $0x80] sm:$0xff] }
 0x988   :  { %v9439_v28 = vadd.f32 1.0, %v2843_v56  ;;  %3578 = vmatpush.msra.mxu3 %v3514_v11  ;;  %v2833_v34 = vadd.f32 1.1283791, %v2832_v2  ;;  %3538 = vmatpush.msrb.mxu2 %v3497_v1  ;;  %v2984_v37 = vmul.f32 2.1237322e-06, %v9456_v33  ;;  %v9483_v55 = vmin.f32 %v3022_v26, 16.0 }
 0x989   :  { %v9445_v16 = vadd.f32 1.0, %v2883_v53  ;;  %v2873_v13 = vadd.f32 1.1283791, %v2872_v9  ;;  %v9481_v21 = vadd.f32 0.0036580483, %v2946_v38 }
 0x98a   :  { %7938 = vrcp.f32 %v9439_v28  ;;  %3579 = vmatpush.msra.mxu3 %v3513_v17  ;;  %v9486_v15 = vmul.f32 0.70710677, %v9468_v10  ;;  %3539 = vmatpush.msrb.mxu2 %v3496_v52  ;;  %v2834_v6 = vmul.f32 %v2833_v34, %v9312_v25  ;;  %vm2850_vm2 = vweird.f32 %v9439_v28 }
 0x98b   :  { %7940 = vrcp.f32 %v9445_v16  ;;  %v2909_v22 = vadd.f32 0.05243302, %v2908_v18  ;;  %v2854_v53 = vand.u32 2147483647, %v9439_v28  ;;  %v2856_v3 = vand.u32 2147483648, %v9439_v28 }
 0x98c   :  { %3580 = vmatpush.msra.mxu3 %v3512_v50  ;;  %v9504_v25 = vadd.f32 %v2775_v40, %v9294_v48  ;;  %3540 = vmatpush.msrb.mxu2 %v3495_v30  ;;  %v2874_v51 = vmul.f32 %v2873_v13, %v9315_v19  ;;  %v2985_v2 = vadd.f32 0.00028619796, %v2984_v37  ;;  %v3062_v8 = vmul.f32 %v9486_v15, %v9486_v15 }
 0x98d   :  { %v2737_v27 = vpop.f32.mrf.mxu0  ;;  %vm2890_vm3 = vweird.f32 %v9445_v16  ;;  %v3024_v11 = vmul.f32 2.1237322e-06, %v9483_v55  ;;  %v2896_v1 = vand.u32 2147483648, %v9445_v16  ;;  %v2778_v19 = vpop.f32.mrf.mxu1  ;;  %v2894_v26 = vand.u32 2147483647, %v9445_v16 }
 0x98e   :  { %3581 = vmatpush.msra.mxu3 %v3511_v54  ;;  %v9512_v9 = vadd.f32 %v2737_v27, %v9292_v23  ;;  %3541 = vmatpush.msrb.mxu2 %v3494_v62  ;;  %v9515_v17 = vmin.f32 %v3062_v8, 16.0  ;;  %v9519_v34 = vmul.f32 0.70710677, %v9504_v25  ;;  %v2857_v52 = vor.u32 1.1754944e-38, %v2856_v3 }
 0x98f   :  { %v2986_v50 = vmul.f32 %v2985_v2, %v9456_v33  ;;  %v3025_v27 = vadd.f32 0.00028619796, %v3024_v11  ;;  %vm2855_vm8 = vcmp.eq.f32.partialorder %v2854_v53, 8.507059e+37  ;;  %v2897_v62 = vor.u32 1.1754944e-38, %v2896_v1 }
 0x990   :  { %v7939_v31 = vpop.eup %7938  ;;  %3582 = vmatpush.msra.mxu3 %v3510_v20  ;;  %v3064_v13 = vmul.f32 2.1237322e-06, %v9515_v17  ;;  %v3102_v30 = vmul.f32 %v9519_v34, %v9519_v34  ;;  %v9528_v54 = vmul.f32 0.70710677, %v9512_v9  ;;  %vm2895_vm10 = vcmp.eq.f32.partialorder %v2894_v26, 8.507059e+37 }
 0x991   :  { %v7941_v39 = vpop.eup %7940  ;;  %v2846_v56 = vmul.f32 %v7939_v31, %v9439_v28  ;;  %vm2851_vm4 = vweird.f32 %v7939_v31  ;;  %v9535_v11 = vadd.f32 %v2778_v19, %v9294_v48  ;;  %v2790_v1 = vmul.f32 0.5, %v9303_v0 }
 0x992   :  { %v2886_v60 = vmul.f32 %v7941_v39, %v9445_v16  ;;  %vm2891_vm5 = vweird.f32 %v7941_v39  ;;  %vm2852_vm7 = vmor %vm2850_vm2, %vm2851_vm4  ;;  %v3065_v20 = vadd.f32 0.00028619796, %v3064_v13  ;;  %v9532_v28 = vmin.f32 %v3102_v30, 16.0 }
 0x993   :  { %v2847_v29 = vsub.f32 1.0, %v2846_v56  ;;  %vm2892_vm9 = vmor %vm2890_vm3, %vm2891_vm5  ;;  %v3142_v53 = vmul.f32 %v9528_v54, %v9528_v54  ;;  %v2948_v19 = vmul.f32 %v9481_v21, %v9393_v59  ;;  %v9634_v41 = vmul.f32 0.5, %v9512_v9 }
 0x994   :  { %v2887_v63 = vsub.f32 1.0, %v2886_v60  ;;  %v3104_v16 = vmul.f32 2.1237322e-06, %v9532_v28 }
 0x995   :  { %v2848_v40 = vmul.f32 %v7939_v31, %v2847_v29  ;;  %v2740_v3 = vpop.f32.mrf.mxu0  ;;  %v2781_v0 = vpop.f32.mrf.mxu1 }
 0x996   :  { %v2888_v38 = vmul.f32 %v7941_v39, %v2887_v63  ;;  %v2987_v63 = vadd.f32 0.0036580483, %v2986_v50  ;;  %v2791_v50 = vmul.f32 0.5, %v9306_v58  ;;  %v2949_v58 = vadd.f32 0.05243302, %v2948_v19 }
 0x997   :  { %v2849_v18 = vadd.f32 %v7939_v31, %v2848_v40 }
 0x998   :  { %v2889_v37 = vadd.f32 %v7941_v39, %v2888_v38  ;;  %v2910_v38 = vmul.f32 %v2909_v22, %v9375_v7  ;;  %v2988_v13 = vmul.f32 %v2987_v63, %v9456_v33 }
 0x999   :  { %v2853_v56 = vsel %vm2852_vm7, %v7939_v31, %v2849_v18  ;;  %v3026_v31 = vmul.f32 %v3025_v27, %v9483_v55  ;;  %v3105_v18 = vadd.f32 0.00028619796, %v3104_v16 }
 0x99a   :  { %v2858_v60 = vsel %vm2855_vm8, %v2857_v52, %v2853_v56  ;;  %v2893_v29 = vsel %vm2892_vm9, %v7941_v39, %v2889_v37  ;;  %v9551_v37 = vmul.f32 0.70710677, %v9535_v11 }
 0x99b   :  { %v2859_v2 = vmul.f32 %v2858_v60, %v2834_v6  ;;  %v2898_v8 = vsel %vm2895_vm10, %v2897_v62, %v2893_v29  ;;  %v3066_v6 = vmul.f32 %v3065_v20, %v9515_v17  ;;  %v3027_v22 = vadd.f32 0.0036580483, %v3026_v31 }
 0x99c   :  { %v2899_v40 = vmul.f32 %v2898_v8, %v2874_v51  ;;  %v9546_v51 = vmin.f32 %v3142_v53, 16.0  ;;  %v3106_v30 = vmul.f32 %v3105_v18, %v9532_v28  ;;  %v3182_v20 = vmul.f32 %v9551_v37, %v9551_v37 }
 0x99d   :  { %v7491_v39 = vclamps-f32 %v2859_v2, 1.0  ;;  %v3067_v21 = vadd.f32 0.0036580483, %v3066_v6  ;;  %v2911_v29 = vadd.f32 0.18741608, %v2910_v38  ;;  %v9563_v31 = vadd.f32 %v2781_v0, %v9294_v48  ;;  %v2743_v16 = vpop.f32.mrf.mxu0 }
 0x99e   :  { %v7492_v26 = vclamps-f32 %v2899_v40, 1.0  ;;  %v3144_v56 = vmul.f32 2.1237322e-06, %v9546_v51  ;;  %v2989_v8 = vadd.f32 0.05243302, %v2988_v13  ;;  %v9557_v63 = vmin.f32 %v3182_v20, 16.0  ;;  %v2784_v20 = vpop.f32.mrf.mxu1 }
 0x99f   :  { %v3462_v52 = vadd.f32 1.0, %v7491_v39  ;;  %v9560_v40 = vadd.f32 %v2740_v3, %v9292_v23  ;;  %v3028_v53 = vmul.f32 %v3027_v22, %v9483_v55  ;;  %v3068_v38 = vmul.f32 %v3067_v21, %v9515_v17 }
 0x9a0   :  { %v3463_v27 = vadd.f32 1.0, %v7492_v26  ;;  %v3145_v2 = vadd.f32 0.00028619796, %v3144_v56  ;;  %v3184_v6 = vmul.f32 2.1237322e-06, %v9557_v63  ;;  %v2912_v26 = vmul.f32 %v2911_v29, %v9375_v7 }
 0x9a1   :  { %v3478_v62 = vmul.f32 %v3462_v52, %v2790_v1  ;;  %v3107_v1 = vadd.f32 0.0036580483, %v3106_v30  ;;  %v2950_v3 = vmul.f32 %v2949_v58, %v9393_v59  ;;  %v9572_v19 = vmul.f32 0.70710677, %v9560_v40 }
 0x9a2   :  { %v3479_v60 = vmul.f32 %v3463_v27, %v2791_v50  ;;  %v3146_v39 = vmul.f32 %v3145_v2, %v9546_v51  ;;  %v9575_v18 = vadd.f32 %v2743_v16, %v9292_v23  ;;  %v2990_v52 = vmul.f32 %v2989_v8, %v9456_v33 }
 0x9a3   :  { %3542 = vmatmul.f32.vlgmr.msrb.gmra.mxu2 %v3478_v62  ;;  %v3185_v13 = vadd.f32 0.00028619796, %v3184_v6  ;;  %v9579_v0 = vmul.f32 0.70710677, %v9563_v31  ;;  %v3029_v27 = vadd.f32 0.05243302, %v3028_v53  ;;  %v3108_v22 = vmul.f32 %v3107_v1, %v9532_v28 }
 0x9a4   :  { %3583 = vmatmul.f32.vlgmr.msra.gmra.mxu3 %v3479_v60  ;;  %v3147_v50 = vadd.f32 0.0036580483, %v3146_v39  ;;  %v3222_v30 = vmul.f32 %v9572_v19, %v9572_v19  ;;  %v3069_v56 = vadd.f32 0.05243302, %v3068_v38  ;;  %v2951_v60 = vadd.f32 0.18741608, %v2950_v3 }
 0x9a5   :  { %v3186_v62 = vmul.f32 %v3185_v13, %v9557_v63  ;;  %v3262_v21 = vmul.f32 %v9579_v0, %v9579_v0  ;;  %v9588_v29 = vmul.f32 0.70710677, %v9575_v18  ;;  %v9591_v58 = vmul.f32 0.5, %v9337_v44 }
 0x9a6   :  { %v2913_v2 = vadd.f32 1.1283791, %v2912_v26  ;;  %v2991_v8 = vadd.f32 0.18741608, %v2990_v52  ;;  %v3148_v16 = vmul.f32 %v3147_v50, %v9546_v51  ;;  %v9594_v53 = vmin.f32 %v3222_v30, 16.0 }
 0x9a7   :  { %v3030_v1 = vmul.f32 %v3029_v27, %v9483_v55  ;;  %v3109_v39 = vadd.f32 0.05243302, %v3108_v22  ;;  %v3187_v38 = vadd.f32 0.0036580483, %v3186_v62  ;;  %v9598_v6 = vadd.f32 %v2784_v20, %v9294_v48 }
 0x9a8   :  { %v9601_v3 = vmul.f32 0.5, %v9342_v47  ;;  %v3070_v13 = vmul.f32 %v3069_v56, %v9515_v17  ;;  %v9604_v44 = vmin.f32 %v3262_v21, 16.0  ;;  %v2915_v26 = vmul.f32 3.8918573e-05, %v9375_v7 }
 0x9a9   :  { %v2952_v52 = vmul.f32 %v2951_v60, %v9393_v59  ;;  %v9609_v50 = vmul.f32 0.5, %v9391_v43  ;;  %v9612_v27 = vmul.f32 0.5, %v9417_v61  ;;  %v3302_v22 = vmul.f32 %v9588_v29, %v9588_v29 }
 0x9aa   :  { %v2992_v47 = vmul.f32 %v2991_v8, %v9456_v33  ;;  %v9618_v30 = vmul.f32 0.5, %v9468_v10  ;;  %v3149_v56 = vadd.f32 0.05243302, %v3148_v16  ;;  %v3224_v62 = vmul.f32 2.1237322e-06, %v9594_v53 }
 0x9ab   :  { %v9622_v21 = vmul.f32 %v2913_v2, %v9351_v4  ;;  %v3031_v20 = vadd.f32 0.18741608, %v3030_v1  ;;  %v3188_v43 = vmul.f32 %v3187_v38, %v9557_v63  ;;  %v9626_v61 = vmul.f32 0.70710677, %v9598_v6 }
 0x9ac   :  { %v3071_v60 = vadd.f32 0.18741608, %v3070_v13  ;;  %v3110_v57 = vmul.f32 %v3109_v39, %v9532_v28  ;;  %v3264_v8 = vmul.f32 2.1237322e-06, %v9604_v44  ;;  %v2916_v46 = vadd.f32 0.001143296, %v2915_v26 }
 0x9ad   :  { %v2953_v10 = vadd.f32 1.1283791, %v2952_v52  ;;  %v9631_v16 = vmul.f32 0.5, %v9504_v25  ;;  %v9636_v4 = vmin.f32 %v3302_v22, 16.0  ;;  %v2993_v2 = vadd.f32 1.1283791, %v2992_v47 }
 0x9ae   :  { %v3150_v1 = vmul.f32 %v3149_v56, %v9546_v51  ;;  %v3225_v38 = vadd.f32 0.00028619796, %v3224_v62  ;;  %v2917_v13 = vmul.f32 %v2916_v46, %v9375_v7  ;;  %v3032_v39 = vmul.f32 %v3031_v20, %v9483_v55 }
 0x9af   :  { %v3189_v5 = vadd.f32 0.05243302, %v3188_v43  ;;  %v3342_v26 = vmul.f32 %v9626_v61, %v9626_v61  ;;  %v2955_v25 = vmul.f32 3.8918573e-05, %v9393_v59  ;;  %v3072_v52 = vmul.f32 %v3071_v60, %v9515_v17 }
 0x9b0   :  { %v3111_v9 = vadd.f32 0.18741608, %v3110_v57  ;;  %v3265_v36 = vadd.f32 0.00028619796, %v3264_v8  ;;  %v2918_v22 = vadd.f32 0.014752088, %v2917_v13  ;;  %v9646_v47 = vmul.f32 %v2953_v10, %v9366_v14 }
 0x9b1   :  { %v3304_v56 = vmul.f32 2.1237322e-06, %v9636_v4  ;;  %v2956_v62 = vadd.f32 0.001143296, %v2955_v25  ;;  %v2995_v46 = vmul.f32 3.8918573e-05, %v9456_v33  ;;  %v9651_v20 = vmul.f32 %v2993_v2, %v9407_v12 }
 0x9b2   :  { %v3151_v43 = vadd.f32 0.18741608, %v3150_v1  ;;  %v3226_v49 = vmul.f32 %v3225_v38, %v9594_v53  ;;  %v2919_v45 = vmul.f32 %v2918_v22, %v9375_v7  ;;  %v3190_v57 = vmul.f32 %v3189_v5, %v9557_v63 }
 0x9b3   :  { %v9656_v60 = vmin.f32 %v3342_v26, 16.0  ;;  %v2957_v14 = vmul.f32 %v2956_v62, %v9393_v59  ;;  %v2996_v8 = vadd.f32 0.001143296, %v2995_v46  ;;  %v3033_v10 = vadd.f32 1.1283791, %v3032_v39 }
 0x9b4   :  { %v3073_v13 = vadd.f32 1.1283791, %v3072_v52  ;;  %v3266_v25 = vmul.f32 %v3265_v36, %v9604_v44  ;;  %v2920_v42 = vadd.f32 0.112945676, %v2919_v45  ;;  %v3112_v12 = vmul.f32 %v3111_v9, %v9532_v28 }
 0x9b5   :  { %v3305_v2 = vadd.f32 0.00028619796, %v3304_v56  ;;  %v2958_v1 = vadd.f32 0.014752088, %v2957_v14  ;;  %v2997_v38 = vmul.f32 %v2996_v8, %v9456_v33  ;;  %v3152_v22 = vmul.f32 %v3151_v43, %v9546_v51 }
 0x9b6   :  { %v3227_v32 = vadd.f32 0.0036580483, %v3226_v49  ;;  %v2921_v5 = vmul.f32 %v2920_v42, %v9375_v7  ;;  %v3035_v26 = vmul.f32 3.8918573e-05, %v9483_v55  ;;  %v3191_v62 = vadd.f32 0.18741608, %v3190_v57 }
 0x9b7   :  { %v3344_v39 = vmul.f32 2.1237322e-06, %v9656_v60  ;;  %v2959_v52 = vmul.f32 %v2958_v1, %v9393_v59  ;;  %v2998_v36 = vadd.f32 0.014752088, %v2997_v38  ;;  %v9668_v45 = vmul.f32 %v3033_v10, %v9442_v35 }
 0x9b8   :  { %v3267_v9 = vadd.f32 0.0036580483, %v3266_v25  ;;  %v2922_v56 = vadd.f32 0.4994258, %v2921_v5  ;;  %v3036_v46 = vadd.f32 0.001143296, %v3035_v26  ;;  %v3306_v43 = vmul.f32 %v3305_v2, %v9636_v4 }
 0x9b9   :  { %v3113_v14 = vadd.f32 1.1283791, %v3112_v12  ;;  %v2960_v49 = vadd.f32 0.112945676, %v2959_v52  ;;  %v2999_v42 = vmul.f32 %v2998_v36, %v9456_v33  ;;  %v3153_v8 = vadd.f32 1.1283791, %v3152_v22 }
 0x9ba   :  { %v3228_v57 = vmul.f32 %v3227_v32, %v9594_v53  ;;  %v2923_v24 = vmul.f32 %v2922_v56, %v9375_v7  ;;  %v3037_v1 = vmul.f32 %v3036_v46, %v9483_v55  ;;  %v3192_v38 = vmul.f32 %v3191_v62, %v9557_v63 }
 0x9bb   :  { %v3345_v35 = vadd.f32 0.00028619796, %v3344_v39  ;;  %v2961_v10 = vmul.f32 %v2960_v49, %v9393_v59  ;;  %v3000_v25 = vadd.f32 0.112945676, %v2999_v42  ;;  %v9678_v12 = vmul.f32 %v3073_v13, %v9486_v15 }
 0x9bc   :  { %v3268_v2 = vmul.f32 %v3267_v9, %v9604_v44  ;;  %v9681_v5 = vadd.f32 1.0, %v2923_v24  ;;  %v3038_v22 = vadd.f32 0.014752088, %v3037_v1  ;;  %v3307_v26 = vadd.f32 0.0036580483, %v3306_v43 }
 0x9bd   :  { %v2962_v32 = vadd.f32 0.4994258, %v2961_v10  ;;  %v3001_v7 = vmul.f32 %v3000_v25, %v9456_v33  ;;  %v3075_v52 = vmul.f32 3.8918573e-05, %v9515_v17  ;;  %v9686_v62 = vmul.f32 %v3113_v14, %v9519_v34 }
 0x9be   :  { %v9689_v39 = vmul.f32 %v3153_v8, %v9528_v54  ;;  %v3229_v36 = vadd.f32 0.05243302, %v3228_v57  ;;  %7942 = vrcp.f32 %v9681_v5  ;;  %v3193_v15 = vadd.f32 1.1283791, %v3192_v38 }
 0x9bf   :  { %v3346_v24 = vmul.f32 %v3345_v35, %v9656_v60  ;;  %v2963_v13 = vmul.f32 %v2962_v32, %v9393_v59  ;;  %v3002_v9 = vadd.f32 0.4994258, %v3001_v7  ;;  %v3269_v56 = vadd.f32 0.05243302, %v3268_v2 }
 0x9c0   :  { %v3039_v46 = vmul.f32 %v3038_v22, %v9483_v55  ;;  %v3076_v43 = vadd.f32 0.001143296, %v3075_v52  ;;  %v3115_v49 = vmul.f32 3.8918573e-05, %v9532_v28  ;;  %v9697_v34 = vmul.f32 %v3307_v26, %v9636_v4 }
 0x9c1   :  { %v2934_v54 = vand.u32 2147483647, %v9681_v5  ;;  %v9700_v14 = vadd.f32 1.0, %v2963_v13  ;;  %v3003_v42 = vmul.f32 %v3002_v9, %v9456_v33  ;;  %v2936_v8 = vand.u32 2147483648, %v9681_v5 }
 0x9c2   :  { %v3040_v57 = vadd.f32 0.112945676, %v3039_v46  ;;  %v3077_v59 = vmul.f32 %v3076_v43, %v9515_v17  ;;  %v3116_v1 = vadd.f32 0.001143296, %v3115_v49  ;;  %v9706_v38 = vmul.f32 %v3229_v36, %v9594_v53 }
 0x9c3   :  { %v9708_v35 = vadd.f32 0.0036580483, %v3346_v24  ;;  %7944 = vrcp.f32 %v9700_v14  ;;  %v3155_v10 = vmul.f32 3.8918573e-05, %v9546_v51  ;;  %v9712_v2 = vadd.f32 1.0, %v3003_v42 }
 0x9c4   :  { %v7943_v25 = vpop.eup %7942  ;;  %v3041_v33 = vmul.f32 %v3040_v57, %v9483_v55  ;;  %v3078_v22 = vadd.f32 0.014752088, %v3077_v59  ;;  %v3117_v26 = vmul.f32 %v3116_v1, %v9532_v28  ;;  %v9717_v32 = vmul.f32 %v3193_v15, %v9551_v37 }
 0x9c5   :  { %v9720_v7 = vmul.f32 %v3269_v56, %v9604_v44  ;;  %v2926_v52 = vmul.f32 %v7943_v25, %v9681_v5  ;;  %vm2930_vm11 = vweird.f32 %v9681_v5  ;;  %vm9724_vm12 = vcmp.eq.f32.partialorder %v2934_v54, 8.507059e+37 }
 0x9c6   :  { %v2937_v24 = vor.u32 1.1754944e-38, %v2936_v8  ;;  %v2974_v13 = vand.u32 2147483647, %v9700_v14  ;;  %7946 = vrcp.f32 %v9712_v2  ;;  %v3042_v46 = vadd.f32 0.4994258, %v3041_v33 }
 0x9c7   :  { %v2927_v9 = vsub.f32 1.0, %v2926_v52  ;;  %v3079_v37 = vmul.f32 %v3078_v22, %v9515_v17  ;;  %v3118_v15 = vadd.f32 0.014752088, %v3117_v26  ;;  %vm2931_vm13 = vweird.f32 %v7943_v25 }
 0x9c8   :  { %v2976_v56 = vand.u32 2147483648, %v9700_v14  ;;  %v3156_v43 = vadd.f32 0.001143296, %v3155_v10  ;;  %v3195_v49 = vmul.f32 3.8918573e-05, %v9557_v63  ;;  %v3043_v57 = vmul.f32 %v3042_v46, %v9483_v55  ;;  %vm2932_vm1 = vmor %vm2930_vm11, %vm2931_vm13 }
 0x9c9   :  { %v7945_v54 = vpop.eup %7944  ;;  %v2928_v42 = vmul.f32 %v7943_v25, %v2927_v9  ;;  %v3080_v8 = vadd.f32 0.112945676, %v3079_v37  ;;  %v3119_v59 = vmul.f32 %v3118_v15, %v9532_v28  ;;  %vm2970_vm14 = vweird.f32 %v9700_v14 }
 0x9ca   :  { %v2966_v1 = vmul.f32 %v7945_v54, %v9700_v14  ;;  %vm9737_vm15 = vcmp.eq.f32.partialorder %v2974_v13, 8.507059e+37  ;;  %v3157_v22 = vmul.f32 %v3156_v43, %v9546_v51  ;;  %v9742_v26 = vadd.f32 1.0, %v3043_v57 }
 0x9cb   :  { %v2929_v10 = vadd.f32 %v7943_v25, %v2928_v42  ;;  %v3081_v52 = vmul.f32 %v3080_v8, %v9515_v17  ;;  %v3196_v9 = vadd.f32 0.001143296, %v3195_v49  ;;  %v2977_v37 = vor.u32 1.1754944e-38, %v2976_v56 }
 0x9cc   :  { %v7947_v55 = vpop.eup %7946  ;;  %v2967_v46 = vsub.f32 1.0, %v2966_v1  ;;  %v3120_v15 = vadd.f32 0.112945676, %v3119_v59  ;;  %v3158_v13 = vadd.f32 0.014752088, %v3157_v22  ;;  %vm3010_vm2 = vweird.f32 %v9712_v2 }
 0x9cd   :  { %v2933_v48 = vsel %vm2932_vm1, %v7943_v25, %v2929_v10  ;;  %v3006_v23 = vmul.f32 %v7947_v55, %v9712_v2  ;;  %7948 = vrcp.f32 %v9742_v26  ;;  %vm2971_vm3 = vweird.f32 %v7945_v54 }
 0x9ce   :  { %v2938_v43 = vsel %vm9724_vm12, %v2937_v24, %v2933_v48  ;;  %v2968_v49 = vmul.f32 %v7945_v54, %v2967_v46  ;;  %v3016_v42 = vand.u32 2147483648, %v9712_v2  ;;  %v3014_v56 = vand.u32 2147483647, %v9712_v2  ;;  %vm2972_vm4 = vmor %vm2970_vm14, %vm2971_vm3 }
 0x9cf   :  { %v2939_v5 = vmul.f32 %v2938_v43, %v9622_v21  ;;  %v3007_v57 = vsub.f32 1.0, %v3006_v23  ;;  %v3082_v8 = vadd.f32 0.4994258, %v3081_v52  ;;  %v3121_v59 = vmul.f32 %v3120_v15, %v9532_v28 }
 0x9d0   :  { %v2969_v25 = vadd.f32 %v7945_v54, %v2968_v49  ;;  %v3159_v1 = vmul.f32 %v3158_v13, %v9546_v51  ;;  %v3197_v22 = vmul.f32 %v3196_v9, %v9557_v63  ;;  %vm3011_vm5 = vweird.f32 %v7947_v55 }
 0x9d1   :  { %v7493_v10 = vclamps-f32 %v2939_v5, 1.0  ;;  %v3008_v48 = vmul.f32 %v7947_v55, %v3007_v57  ;;  %v3083_v36 = vmul.f32 %v3082_v8, %v9515_v17  ;;  %v3017_v23 = vor.u32 1.1754944e-38, %v3016_v42  ;;  %vm3012_vm7 = vmor %vm3010_vm2, %vm3011_vm5 }
 0x9d2   :  { %v2973_v21 = vsel %vm2972_vm4, %v7945_v54, %v2969_v25  ;;  %v3122_v24 = vadd.f32 0.4994258, %v3121_v59  ;;  %v3160_v46 = vadd.f32 0.112945676, %v3159_v1  ;;  %v3198_v54 = vadd.f32 0.014752088, %v3197_v22 }
 0x9d3   :  { %v7949_v52 = vpop.eup %7948  ;;  %v3464_v43 = vadd.f32 1.0, %v7493_v10  ;;  %v2978_v15 = vsel %vm9737_vm15, %v2977_v37, %v2973_v21  ;;  %v3009_v13 = vadd.f32 %v7947_v55, %v3008_v48  ;;  %v9764_v49 = vadd.f32 1.0, %v3083_v36 }
 0x9d4   :  { %v2979_v9 = vmul.f32 %v2978_v15, %v9646_v47  ;;  %v3046_v14 = vmul.f32 %v7949_v52, %v9742_v26  ;;  %v3123_v17 = vmul.f32 %v3122_v24, %v9532_v28  ;;  %vm3015_vm8 = vcmp.eq.f32.partialorder %v3014_v56, 8.507059e+37 }
 0x9d5   :  { %v3480_v42 = vmul.f32 %v3464_v43, %v9591_v58  ;;  %v3013_v5 = vsel %vm3012_vm7, %v7947_v55, %v3009_v13  ;;  %7950 = vrcp.f32 %v9764_v49  ;;  %v3054_v8 = vand.u32 2147483647, %v9742_v26 }
 0x9d6   :  { %v7494_v33 = vclamps-f32 %v2979_v9, 1.0  ;;  %v3018_v37 = vsel %vm3015_vm8, %v3017_v23, %v3013_v5  ;;  %v3047_v57 = vsub.f32 1.0, %v3046_v14  ;;  %v3056_v2 = vand.u32 2147483648, %v9742_v26 }
 0x9d7   :  { %3545 = vmatmul.f32.gmra.mxu2 %v3480_v42  ;;  %v3019_v47 = vmul.f32 %v3018_v37, %v9651_v20  ;;  %v9776_v25 = vadd.f32 1.0, %v3123_v17  ;;  %v3161_v28 = vmul.f32 %v3160_v46, %v9546_v51  ;;  %vm3051_vm9 = vweird.f32 %v7949_v52 }
 0x9d8   :  { %v3465_v59 = vadd.f32 1.0, %v7494_v33  ;;  %v3048_v58 = vmul.f32 %v7949_v52, %v3047_v57  ;;  %v3199_v55 = vmul.f32 %v3198_v54, %v9557_v63  ;;  %v9781_v56 = vadd.f32 0.05243302, %v9697_v34 }
 0x9d9   :  { %v7495_v1 = vclamps-f32 %v3019_v47, 1.0  ;;  %7952 = vrcp.f32 %v9776_v25  ;;  %v3235_v22 = vmul.f32 3.8918573e-05, %v9594_v53  ;;  %vm3050_vm10 = vweird.f32 %v9742_v26 }
 0x9da   :  { %v3481_v20 = vmul.f32 %v3465_v59, %v9601_v3  ;;  %v3049_v10 = vadd.f32 %v7949_v52, %v3048_v58  ;;  %v3094_v48 = vand.u32 2147483647, %v9764_v49  ;;  %vm3052_vm11 = vmor %vm3050_vm10, %vm3051_vm9  ;;  %v3057_v23 = vor.u32 1.1754944e-38, %v3056_v2 }
 0x9db   :  { %v7951_v36 = vpop.eup %7950  ;;  %v3466_v21 = vadd.f32 1.0, %v7495_v1  ;;  %v3162_v24 = vadd.f32 0.4994258, %v3161_v28  ;;  %v3200_v46 = vadd.f32 0.112945676, %v3199_v55  ;;  %vm3055_vm12 = vcmp.eq.f32.partialorder %v3054_v8, 8.507059e+37 }
 0x9dc   :  { %v9789_v34 = vadd.f32 0.18741608, %v9706_v38  ;;  %3586 = vmatmul.f32.gmra.mxu3 %v3481_v20  ;;  %v3053_v43 = vsel %vm3052_vm11, %v7949_v52, %v3049_v10  ;;  %v3086_v15 = vmul.f32 %v7951_v36, %v9764_v49  ;;  %v3096_v26 = vand.u32 2147483648, %v9764_v49 }
 0x9dd   :  { %v3482_v3 = vmul.f32 %v3466_v21, %v9609_v50  ;;  %v3058_v13 = vsel %vm3055_vm12, %v3057_v23, %v3053_v43  ;;  %v3163_v9 = vmul.f32 %v3162_v24, %v9546_v51  ;;  %vm3090_vm13 = vweird.f32 %v9764_v49 }
 0x9de   :  { %v3059_v14 = vmul.f32 %v3058_v13, %v9668_v45  ;;  %v3087_v17 = vsub.f32 1.0, %v3086_v15  ;;  %v3201_v38 = vmul.f32 %v3200_v46, %v9557_v63  ;;  %vm9798_vm14 = vcmp.eq.f32.partialorder %v3094_v48, 8.507059e+37 }
 0x9df   :  { %v7953_v54 = vpop.eup %7952  ;;  %3548 = vmatmul.f32.gmra.mxu2 %v3482_v3  ;;  %v9802_v42 = vadd.f32 1.0, %v3163_v9  ;;  %v3236_v50 = vadd.f32 0.001143296, %v3235_v22  ;;  %v3275_v5 = vmul.f32 3.8918573e-05, %v9604_v44  ;;  %vm3091_vm15 = vweird.f32 %v7951_v36 }
 0x9e0   :  { %v7496_v33 = vclamps-f32 %v3059_v14, 1.0  ;;  %v3088_v51 = vmul.f32 %v7951_v36, %v3087_v17  ;;  %v3126_v45 = vmul.f32 %v7953_v54, %v9776_v25  ;;  %v3097_v37 = vor.u32 1.1754944e-38, %v3096_v26  ;;  %vm3092_vm1 = vmor %vm3090_vm13, %vm3091_vm15 }
 0x9e1   :  { %v3134_v57 = vand.u32 2147483647, %v9776_v25  ;;  %7954 = vrcp.f32 %v9802_v42  ;;  %v3315_v8 = vmul.f32 3.8918573e-05, %v9636_v4  ;;  %v3202_v59 = vadd.f32 0.4994258, %v3201_v38 }
 0x9e2   :  { %v3467_v47 = vadd.f32 1.0, %v7496_v33  ;;  %v3089_v2 = vadd.f32 %v7951_v36, %v3088_v51  ;;  %v3127_v28 = vsub.f32 1.0, %v3126_v45  ;;  %vm3131_vm2 = vweird.f32 %v7953_v54 }
 0x9e3   :  { %v3136_v58 = vand.u32 2147483648, %v9776_v25  ;;  %v3237_v55 = vmul.f32 %v3236_v50, %v9594_v53  ;;  %v3276_v1 = vadd.f32 0.001143296, %v3275_v5  ;;  %v3203_v48 = vmul.f32 %v3202_v59, %v9557_v63 }
 0x9e4   :  { %v3483_v22 = vmul.f32 %v3467_v47, %v9612_v27  ;;  %v3093_v20 = vsel %vm3092_vm1, %v7951_v36, %v3089_v2  ;;  %v3128_v10 = vmul.f32 %v7953_v54, %v3127_v28  ;;  %v3316_v49 = vadd.f32 0.001143296, %v3315_v8 }
 0x9e5   :  { %v3098_v21 = vsel %vm9798_vm14, %v3097_v37, %v3093_v20  ;;  %v3238_v23 = vadd.f32 0.014752088, %v3237_v55  ;;  %v3277_v24 = vmul.f32 %v3276_v1, %v9604_v44  ;;  %vm3130_vm3 = vweird.f32 %v9776_v25 }
 0x9e6   :  { %3589 = vmatmul.f32.gmra.mxu3 %v3483_v22  ;;  %v3099_v46 = vmul.f32 %v3098_v21, %v9678_v12  ;;  %v3129_v43 = vadd.f32 %v7953_v54, %v3128_v10  ;;  %v9820_v15 = vadd.f32 1.0, %v3203_v48  ;;  %vm3132_vm4 = vmor %vm3130_vm3, %vm3131_vm2  ;;  %v3137_v36 = vor.u32 1.1754944e-38, %v3136_v58 }
 0x9e7   :  { %v7955_v27 = vpop.eup %7954  ;;  %v3239_v63 = vmul.f32 %v3238_v23, %v9594_v53  ;;  %v3278_v3 = vadd.f32 0.014752088, %v3277_v24  ;;  %v3317_v13 = vmul.f32 %v3316_v49, %v9636_v4  ;;  %vm3135_vm5 = vcmp.eq.f32.partialorder %v3134_v57, 8.507059e+37 }
 0x9e8   :  { %v7497_v26 = vclamps-f32 %v3099_v46, 1.0  ;;  %v3133_v9 = vsel %vm3132_vm4, %v7953_v54, %v3129_v43  ;;  %v3166_v14 = vmul.f32 %v7955_v27, %v9802_v42  ;;  %v3348_v12 = vmul.f32 %v9708_v35, %v9656_v60 }
 0x9e9   :  { %v3138_v25 = vsel %vm3135_vm5, %v3137_v36, %v3133_v9  ;;  %7956 = vrcp.f32 %v9820_v15  ;;  %v3355_v17 = vmul.f32 3.8918573e-05, %v9656_v60  ;;  %v3176_v5 = vand.u32 2147483648, %v9802_v42 }
 0x9ea   :  { %v3468_v38 = vadd.f32 1.0, %v7497_v26  ;;  %v3139_v52 = vmul.f32 %v3138_v25, %v9686_v62  ;;  %v3167_v50 = vsub.f32 1.0, %v3166_v14  ;;  %v3174_v33 = vand.u32 2147483647, %v9802_v42 }
 0x9eb   :  { %v3240_v54 = vadd.f32 0.112945676, %v3239_v63  ;;  %v3279_v51 = vmul.f32 %v3278_v3, %v9604_v44  ;;  %v3318_v45 = vadd.f32 0.014752088, %v3317_v13  ;;  %vm3171_vm7 = vweird.f32 %v7955_v27 }
 0x9ec   :  { %v3484_v37 = vmul.f32 %v3468_v38, %v9618_v30  ;;  %v7498_v35 = vclamps-f32 %v3139_v52, 1.0  ;;  %v3168_v57 = vmul.f32 %v7955_v27, %v3167_v50  ;;  %v3356_v62 = vadd.f32 0.001143296, %v3355_v17 }
 0x9ed   :  { %v3241_v8 = vmul.f32 %v3240_v54, %v9594_v53  ;;  %v3280_v47 = vadd.f32 0.112945676, %v3279_v51  ;;  %v3319_v2 = vmul.f32 %v3318_v45, %v9636_v4  ;;  %vm3170_vm8 = vweird.f32 %v9802_v42 }
 0x9ee   :  { %3551 = vmatmul.f32.gmra.mxu2 %v3484_v37  ;;  %v3469_v28 = vadd.f32 1.0, %v7498_v35  ;;  %v3169_v59 = vadd.f32 %v7955_v27, %v3168_v57  ;;  %v3177_v58 = vor.u32 1.1754944e-38, %v3176_v5  ;;  %vm3172_vm9 = vmor %vm3170_vm8, %vm3171_vm7  ;;  %v3357_v20 = vmul.f32 %v3356_v62, %v9656_v60 }
 0x9ef   :  { %v7957_v55 = vpop.eup %7956  ;;  %v3242_v1 = vadd.f32 0.4994258, %v3241_v8  ;;  %v3281_v30 = vmul.f32 %v3280_v47, %v9604_v44  ;;  %v3320_v22 = vadd.f32 0.112945676, %v3319_v2  ;;  %vm3175_vm10 = vcmp.eq.f32.partialorder %v3174_v33, 8.507059e+37 }
 0x9f0   :  { %v3485_v10 = vmul.f32 %v3469_v28, %v9631_v16  ;;  %v3173_v48 = vsel %vm3172_vm9, %v7955_v27, %v3169_v59  ;;  %v3206_v21 = vmul.f32 %v7957_v55, %v9820_v15  ;;  %v3214_v36 = vand.u32 2147483647, %v9820_v15 }
 0x9f1   :  { %v3178_v23 = vsel %vm3175_vm10, %v3177_v58, %v3173_v48  ;;  %v3243_v24 = vmul.f32 %v3242_v1, %v9594_v53  ;;  %v3282_v49 = vadd.f32 0.4994258, %v3281_v30  ;;  %v3321_v42 = vmul.f32 %v3320_v22, %v9636_v4 }
 0x9f2   :  { %3592 = vmatmul.f32.gmra.mxu3 %v3485_v10  ;;  %v3179_v46 = vmul.f32 %v3178_v23, %v9689_v39  ;;  %v3207_v43 = vsub.f32 1.0, %v3206_v21  ;;  %v3358_v63 = vadd.f32 0.014752088, %v3357_v20  ;;  %v3216_v3 = vand.u32 2147483648, %v9820_v15 }
 0x9f3   :  { %v9847_v16 = vadd.f32 1.0, %v3243_v24  ;;  %v3283_v27 = vmul.f32 %v3282_v49, %v9604_v44  ;;  %v3322_v13 = vadd.f32 0.4994258, %v3321_v42  ;;  %vm3211_vm11 = vweird.f32 %v7957_v55 }
 0x9f4   :  { %v7499_v26 = vclamps-f32 %v3179_v46, 1.0  ;;  %v3208_v9 = vmul.f32 %v7957_v55, %v3207_v43  ;;  %v3359_v14 = vmul.f32 %v3358_v63, %v9656_v60  ;;  %v3271_v25 = vadd.f32 0.18741608, %v9720_v7 }
 0x9f5   :  { %v3310_v39 = vmul.f32 %v9781_v56, %v9636_v4  ;;  %vm3210_vm12 = vweird.f32 %v9820_v15  ;;  %7958 = vrcp.f32 %v9847_v16  ;;  %v9856_v52 = vadd.f32 1.0, %v3283_v27 }
 0x9f6   :  { %v3470_v17 = vadd.f32 1.0, %v7499_v26  ;;  %v3209_v38 = vadd.f32 %v7957_v55, %v3208_v9  ;;  %v3323_v50 = vmul.f32 %v3322_v13, %v9636_v4  ;;  %v3232_v5 = vmul.f32 %v9789_v34, %v9594_v53  ;;  %vm3212_vm13 = vmor %vm3210_vm12, %vm3211_vm11 }
 0x9f7   :  { %v3349_v33 = vadd.f32 0.05243302, %v3348_v12  ;;  %v3217_v54 = vor.u32 1.1754944e-38, %v3216_v3  ;;  %v3360_v7 = vadd.f32 0.112945676, %v3359_v14  ;;  %vm3215_vm14 = vcmp.eq.f32.partialorder %v3214_v36, 8.507059e+37 }
 0x9f8   :  { %v3486_v51 = vmul.f32 %v3470_v17, %v9634_v41  ;;  %v3213_v56 = vsel %vm3212_vm13, %v7957_v55, %v3209_v38  ;;  %7960 = vrcp.f32 %v9856_v52  ;;  %v3311_v15 = vadd.f32 0.18741608, %v3310_v39 }
 0x9f9   :  { %v3218_v45 = vsel %vm3215_vm14, %v3217_v54, %v3213_v56  ;;  %v9863_v37 = vadd.f32 1.0, %v3323_v50  ;;  %v3272_v35 = vmul.f32 %v3271_v25, %v9604_v44  ;;  %v3361_v53 = vmul.f32 %v3360_v7, %v9656_v60 }
 0x9fa   :  { %3554 = vmatmul.f32.gmra.mxu2 %v3486_v51  ;;  %v3219_v57 = vmul.f32 %v3218_v45, %v9717_v32  ;;  %v3233_v12 = vadd.f32 1.1283791, %v3232_v5  ;;  %v3350_v8 = vmul.f32 %v3349_v33, %v9656_v60  ;;  %v2799_v2 = vmul.f32 0.5, %v9535_v11 }
 0x9fb   :  { %v7959_v34 = vpop.eup %7958  ;;  %7962 = vrcp.f32 %v9863_v37  ;;  %v3312_v62 = vmul.f32 %v3311_v15, %v9636_v4  ;;  %v3362_v28 = vadd.f32 0.4994258, %v3361_v53  ;;  %v3273_v59 = vadd.f32 1.1283791, %v3272_v35 }
 0x9fc   :  { %v7500_v41 = vclamps-f32 %v3219_v57, 1.0  ;;  %v3246_v47 = vmul.f32 %v7959_v34, %v9847_v16  ;;  %v3256_v55 = vand.u32 2147483648, %v9847_v16  ;;  %v3234_v1 = vmul.f32 %v3233_v12, %v9572_v19 }
 0x9fd   :  { %v3351_v30 = vadd.f32 0.18741608, %v3350_v8  ;;  %v3363_v20 = vmul.f32 %v3362_v28, %v9656_v60  ;;  %vm3251_vm15 = vweird.f32 %v7959_v34  ;;  %v3254_v11 = vand.u32 2147483647, %v9847_v16 }
 0x9fe   :  { %v7961_v44 = vpop.eup %7960  ;;  %v3471_v58 = vadd.f32 1.0, %v7500_v41  ;;  %v3247_v32 = vsub.f32 1.0, %v3246_v47  ;;  %v3313_v21 = vadd.f32 1.1283791, %v3312_v62  ;;  %v3296_v24 = vand.u32 2147483648, %v9856_v52 }
 0x9ff   :  { %v3286_v22 = vmul.f32 %v7961_v44, %v9856_v52  ;;  %v9879_v49 = vadd.f32 1.0, %v3363_v20  ;;  %vm3250_vm1 = vweird.f32 %v9847_v16  ;;  %v3257_v19 = vor.u32 1.1754944e-38, %v3256_v55 }
 0xa00   :  { %v3487_v10 = vmul.f32 %v3471_v58, %v2799_v2  ;;  %v3248_v48 = vmul.f32 %v7959_v34, %v3247_v32  ;;  %vm3252_vm2 = vmor %vm3250_vm1, %vm3251_vm15  ;;  %vm3291_vm3 = vweird.f32 %v7961_v44  ;;  %v3294_v36 = vand.u32 2147483647, %v9856_v52 }
 0xa01   :  { %v7963_v4 = vpop.eup %7962  ;;  %v3287_v23 = vsub.f32 1.0, %v3286_v22  ;;  %7964 = vrcp.f32 %v9879_v49  ;;  %vm3255_vm4 = vcmp.eq.f32.partialorder %v3254_v11, 8.507059e+37  ;;  %vm3290_vm5 = vweird.f32 %v9856_v52  ;;  %v11885_v11 = vld [vmem:[#allocation15_spill] sm:$0xff] }
 0xa02   :  { %3595 = vmatmul.f32.gmra.mxu3 %v3487_v10  ;;  %v3249_v42 = vadd.f32 %v7959_v34, %v3248_v48  ;;  %v3326_v46 = vmul.f32 %v7963_v4, %v9863_v37  ;;  %v3297_v26 = vor.u32 1.1754944e-38, %v3296_v24  ;;  %v3336_v16 = vand.u32 2147483648, %v9863_v37  ;;  %vm3292_vm7 = vmor %vm3290_vm5, %vm3291_vm3  ;;  %v2746_v10 = vpop.f32.mrf.mxu0  ;;  %v2787_v48 = vpop.f32.mrf.mxu1 }
 0xa03   :  { %v3288_v43 = vmul.f32 %v7961_v44, %v3287_v23  ;;  %vm3331_vm8 = vweird.f32 %v7963_v4  ;;  %v3334_v25 = vand.u32 2147483647, %v9863_v37  ;;  %v2800_v39 = vmul.f32 0.5, %v9560_v40 }
 0xa04   :  { %v3253_v63 = vsel %vm3252_vm2, %v7959_v34, %v3249_v42  ;;  %v3327_v3 = vsub.f32 1.0, %v3326_v46  ;;  %v3274_v17 = vmul.f32 %v3273_v59, %v9579_v0  ;;  %vm3295_vm9 = vcmp.eq.f32.partialorder %v3294_v36, 8.507059e+37 }
 0xa05   :  { %v3258_v27 = vsel %vm3255_vm4, %v3257_v19, %v3253_v63  ;;  %v3289_v13 = vadd.f32 %v7961_v44, %v3288_v43  ;;  %vm3330_vm10 = vweird.f32 %v9863_v37  ;;  %v3314_v54 = vmul.f32 %v3313_v21, %v9588_v29  ;;  %v11886_v21 = vld [vmem:[#allocation16_spill] sm:$0xff]  ;;  %v9916_v19 = vld [vmem:[%s11829_s12] ss:$0 sm:$0xff]  ;;  %v11887_v43 = vld [vmem:[#allocation7_spill] sm:$0xff] }
 0xa06   :  { %v3259_v9 = vmul.f32 %v3258_v27, %v3234_v1  ;;  %v3328_v14 = vmul.f32 %v7963_v4, %v3327_v3  ;;  %v3352_v7 = vmul.f32 %v3351_v30, %v9656_v60  ;;  %vm3332_vm11 = vmor %vm3330_vm10, %vm3331_vm8  ;;  %v3337_v56 = vor.u32 1.1754944e-38, %v3336_v16 }
 0xa07   :  { %v3293_v38 = vsel %vm3292_vm7, %v7961_v44, %v3289_v13  ;;  %v7965_v33 = vpop.eup %7964  ;;  %vm3335_vm12 = vcmp.eq.f32.partialorder %v3334_v25, 8.507059e+37  ;;  %v2801_v37 = vmul.f32 0.5, %v9563_v31  ;;  %v3376_v29 = vand.u32 2147483648, %v9879_v49 }
 0xa08   :  { %v7501_v50 = vclamps-f32 %v3259_v9, 1.0  ;;  %v3298_v52 = vsel %vm3295_vm9, %v3297_v26, %v3293_v38  ;;  %v3329_v5 = vadd.f32 %v7963_v4, %v3328_v14  ;;  %v3366_v40 = vmul.f32 %v7965_v33, %v9879_v49 }
 0xa09   :  { %v3299_v51 = vmul.f32 %v3298_v52, %v3274_v17  ;;  %v3353_v12 = vadd.f32 1.1283791, %v3352_v7  ;;  %vm3371_vm13 = vweird.f32 %v7965_v33  ;;  %v3374_v47 = vand.u32 2147483647, %v9879_v49 }
 0xa0a   :  { %v3472_v15 = vadd.f32 1.0, %v7501_v50  ;;  %v3333_v45 = vsel %vm3332_vm11, %v7963_v4, %v3329_v5  ;;  %v3367_v34 = vsub.f32 1.0, %v3366_v40  ;;  %v2802_v62 = vmul.f32 0.5, %v9575_v18 }
 0xa0b   :  { %v7502_v0 = vclamps-f32 %v3299_v51, 1.0  ;;  %v3338_v35 = vsel %vm3335_vm12, %v3337_v56, %v3333_v45  ;;  %vm3370_vm14 = vweird.f32 %v9879_v49  ;;  %v3377_v31 = vor.u32 1.1754944e-38, %v3376_v29 }
 0xa0c   :  { %v3488_v57 = vmul.f32 %v3472_v15, %v2800_v39  ;;  %v3339_v53 = vmul.f32 %v3338_v35, %v3314_v54  ;;  %v3368_v41 = vmul.f32 %v7965_v33, %v3367_v34  ;;  %vm3372_vm15 = vmor %vm3370_vm14, %vm3371_vm13  ;;  %v3354_v59 = vmul.f32 %v3353_v12, %v9626_v61 }
 0xa0d   :  { %v3473_v8 = vadd.f32 1.0, %v7502_v0  ;;  %vm3375_vm1 = vcmp.eq.f32.partialorder %v3374_v47, 8.507059e+37  ;;  %v2803_v22 = vmul.f32 0.5, %v9598_v6  ;;  %v9902_v4 = vadd.f32 %v2746_v10, %v11885_v11 }
 0xa0e   :  { %3557 = vmatmul.f32.gmra.mxu2 %v3488_v57  ;;  %v7503_v60 = vclamps-f32 %v3339_v53, 1.0  ;;  %v3369_v44 = vadd.f32 %v7965_v33, %v3368_v41  ;;  %v9905_v23 = vadd.f32 %v2787_v48, %v11886_v21 }
 0xa0f   :  { %v3489_v2 = vmul.f32 %v3473_v8, %v2801_v37  ;;  %v9908_v61 = vmul.f32 0.70710677, %v9902_v4 }
 0xa10   :  { %v3474_v28 = vadd.f32 1.0, %v7503_v60  ;;  %v3373_v32 = vsel %vm3372_vm15, %v7965_v33, %v3369_v44  ;;  %v9911_v42 = vmul.f32 0.70710677, %v9905_v23 }
 0xa11   :  { %3598 = vmatmul.f32.gmra.mxu3 %v3489_v2  ;;  %v3378_v55 = vsel %vm3375_vm1, %v3377_v31, %v3373_v32  ;;  %v3382_v46 = vmul.f32 %v9908_v61, %v9908_v61 }
 0xa12   :  { %v3490_v58 = vmul.f32 %v3474_v28, %v2802_v62  ;;  %v3379_v1 = vmul.f32 %v3378_v55, %v3354_v59  ;;  %v3422_v63 = vmul.f32 %v9911_v42, %v9911_v42 }
 0xa13   :  { %v3383_v27 = vmin.f32 %v3382_v46, 16.0 }
 0xa14   :  { %v7504_v30 = vclamps-f32 %v3379_v1, 1.0  ;;  %v3423_v26 = vmin.f32 %v3422_v63, 16.0 }
 0xa15   :  { %v3384_v16 = vmul.f32 2.1237322e-06, %v3383_v27  ;;  %v3395_v39 = vmul.f32 3.8918573e-05, %v3383_v27 }
 0xa16   :  { %3560 = vmatmul.f32.gmra.mxu2 %v3490_v58  ;;  %v3475_v20 = vadd.f32 1.0, %v7504_v30  ;;  %v3424_v9 = vmul.f32 2.1237322e-06, %v3423_v26  ;;  %v3435_v17 = vmul.f32 3.8918573e-05, %v3423_v26 }
 0xa17   :  { %v3385_v14 = vadd.f32 0.00028619796, %v3384_v16  ;;  %v3396_v50 = vadd.f32 0.001143296, %v3395_v39 }
 0xa18   :  { %v3491_v18 = vmul.f32 %v3475_v20, %v2803_v22  ;;  %v3425_v25 = vadd.f32 0.00028619796, %v3424_v9  ;;  %v3436_v52 = vadd.f32 0.001143296, %v3435_v17 }
 0xa19   :  { %v3386_v38 = vmul.f32 %v3385_v14, %v3383_v27  ;;  %v3397_v33 = vmul.f32 %v3396_v50, %v3383_v27 }
 0xa1a   :  { %3601 = vmatmul.f32.gmra.mxu3 %v3491_v18  ;;  %v3426_v5 = vmul.f32 %v3425_v25, %v3423_v26  ;;  %v3437_v54 = vmul.f32 %v3436_v52, %v3423_v26  ;;  %v2804_v52 = vmul.f32 0.5, %v9902_v4 }
 0xa1b   :  { %v3387_v7 = vadd.f32 0.0036580483, %v3386_v38  ;;  %v3398_v51 = vadd.f32 0.014752088, %v3397_v33  ;;  %v2805_v33 = vmul.f32 0.5, %v9905_v23 }
 0xa1c   :  { %v3438_v56 = vadd.f32 0.014752088, %v3437_v54  ;;  %v3427_v15 = vadd.f32 0.0036580483, %v3426_v5 }
 0xa1d   :  { %v3399_v45 = vmul.f32 %v3398_v51, %v3383_v27  ;;  %v3388_v0 = vmul.f32 %v3387_v7, %v3383_v27 }
 0xa1e   :  { %v3439_v40 = vmul.f32 %v3438_v56, %v3423_v26  ;;  %v3428_v53 = vmul.f32 %v3427_v15, %v3423_v26 }
 0xa1f   :  { %v3400_v35 = vadd.f32 0.112945676, %v3399_v45  ;;  %v3389_v12 = vadd.f32 0.05243302, %v3388_v0 }
 0xa20   :  { %v3440_v57 = vadd.f32 0.112945676, %v3439_v40  ;;  %v3429_v60 = vadd.f32 0.05243302, %v3428_v53 }
 0xa21   :  { %v3401_v34 = vmul.f32 %v3400_v35, %v3383_v27  ;;  %v3390_v2 = vmul.f32 %v3389_v12, %v3383_v27 }
 0xa22   :  { %v3441_v37 = vmul.f32 %v3440_v57, %v3423_v26  ;;  %v3430_v44 = vmul.f32 %v3429_v60, %v3423_v26  ;;  %v11889_v57 = vld [vmem:[#allocation9_spill] sm:$0xff]  ;;  %v11890_v60 = vld [vmem:[#allocation10_spill] sm:$0xff] }
 0xa23   :  { %v3402_v8 = vadd.f32 0.4994258, %v3401_v34  ;;  %v3391_v31 = vadd.f32 0.18741608, %v3390_v2 }
 0xa24   :  { %v3442_v29 = vadd.f32 0.4994258, %v3441_v37  ;;  %v3431_v59 = vadd.f32 0.18741608, %v3430_v44 }
 0xa25   :  { %v3403_v41 = vmul.f32 %v3402_v8, %v3383_v27  ;;  %v3392_v32 = vmul.f32 %v3391_v31, %v3383_v27  ;;  %v11891_v31 = vld [vmem:[#allocation11_spill] sm:$0xff] }
 0xa26   :  { %v3543_v24 = vpop.f32.mrf.mxu2  ;;  %v3443_v47 = vmul.f32 %v3442_v29, %v3423_v26  ;;  %v3432_v30 = vmul.f32 %v3431_v59, %v3423_v26 }
 0xa27   :  { %v3584_v49 = vpop.f32.mrf.mxu3  ;;  %v3404_v62 = vadd.f32 1.0, %v3403_v41  ;;  %v3393_v18 = vadd.f32 1.1283791, %v3392_v32 }
 0xa28   :  { %v3585_v6 = vadd.f32 %v3584_v49, %v3543_v24  ;;  %v3444_v28 = vadd.f32 1.0, %v3443_v47  ;;  %v3433_v49 = vadd.f32 1.1283791, %v3432_v30 }
 0xa29   :  { %7966 = vrcp.f32 %v3404_v62  ;;  %v3416_v10 = vand.u32 2147483648, %v3404_v62  ;;  %v3414_v21 = vand.u32 2147483647, %v3404_v62  ;;  %vm3410_vm4 = vweird.f32 %v3404_v62 }
 0xa2a   :  { %v3608_v36 = vadd.f32 %v3585_v6, %v11887_v43  ;;  %7968 = vrcp.f32 %v3444_v28  ;;  %v3456_v24 = vand.u32 2147483648, %v3444_v28  ;;  %v3454_v46 = vand.u32 2147483647, %v3444_v28 }
 0xa2b   :  { %vm3450_vm7 = vweird.f32 %v3444_v28  ;;  %v3394_v27 = vmul.f32 %v3393_v18, %v9908_v61  ;;  %vm3415_vm8 = vcmp.eq.f32.partialorder %v3414_v21, 8.507059e+37  ;;  %v3434_v16 = vmul.f32 %v3433_v49, %v9911_v42  ;;  %v11888_v42 = vld [vmem:[#allocation8_spill] sm:$0xff]  ;;  %v11893_v21 = vld [vmem:[#allocation2_spill] sm:$0xff] }
 0xa2c   :  { %v9924_v3 = vadd.f32 %v9916_v19, %v3608_v36  ;;  %v3417_v36 = vor.u32 1.1754944e-38, %v3416_v10  ;;  %v3457_v26 = vor.u32 1.1754944e-38, %v3456_v24  ;;  %vm3455_vm10 = vcmp.eq.f32.partialorder %v3454_v46, 8.507059e+37 }
 0xa2e   :  { %v3632_v13 = vsel %vm79_vm0, %v9924_v3, 0.0 }
 0xa2f   :  { %3633 = vadd.xlane.f32.xlu0 %v3632_v13  ;;  %v7967_v58 = vpop.eup %7966 }
 0xa30   :  { %v7969_v55 = vpop.eup %7968  ;;  %v3406_v1 = vmul.f32 %v7967_v58, %v3404_v62  ;;  %vm3411_vm2 = vweird.f32 %v7967_v58 }
 0xa31   :  { %v3446_v22 = vmul.f32 %v7969_v55, %v3444_v28  ;;  %vm3451_vm3 = vweird.f32 %v7969_v55  ;;  %vm3412_vm5 = vmor %vm3410_vm4, %vm3411_vm2 }
 0xa32   :  { %v3407_v20 = vsub.f32 1.0, %v3406_v1  ;;  %vm3452_vm9 = vmor %vm3450_vm7, %vm3451_vm3 }
 0xa33   :  { %v3447_v48 = vsub.f32 1.0, %v3446_v22  ;;  %v11892_v22 = vld [vmem:[#allocation12_spill] sm:$0xff] }
 0xa34   :  { %v3408_v11 = vmul.f32 %v7967_v58, %v3407_v20 }
 0xa35   :  { %v3448_v6 = vmul.f32 %v7969_v55, %v3447_v48 }
 0xa36   :  { %v3409_v43 = vadd.f32 %v7967_v58, %v3408_v11 }
 0xa37   :  { %v3449_v63 = vadd.f32 %v7969_v55, %v3448_v6 }
 0xa38   :  { %v3413_v13 = vsel %vm3412_vm5, %v7967_v58, %v3409_v43  ;;  %v11894_v43 = vld [vmem:[#allocation13_spill] sm:$0xff] }
 0xa39   :  { %v3418_v9 = vsel %vm3415_vm8, %v3417_v36, %v3413_v13  ;;  %v3453_v14 = vsel %vm3452_vm9, %v7969_v55, %v3449_v63 }
 0xa3a   :  { %v3419_v25 = vmul.f32 %v3418_v9, %v3394_v27  ;;  %v3458_v39 = vsel %vm3455_vm10, %v3457_v26, %v3453_v14 }
 0xa3b   :  { %v3459_v17 = vmul.f32 %v3458_v39, %v3434_v16 }
 0xa3c   :  { %v7505_v38 = vclamps-f32 %v3419_v25, 1.0 }
 0xa3d   :  { %v7506_v50 = vclamps-f32 %v3459_v17, 1.0 }
 0xa3e   :  { %v3476_v5 = vadd.f32 1.0, %v7505_v38 }
 0xa3f   :  { %v3477_v54 = vadd.f32 1.0, %v7506_v50 }
 0xa40   :  { %v3492_v7 = vmul.f32 %v3476_v5, %v2804_v52 }
 0xa41   :  { %v3493_v56 = vmul.f32 %v3477_v54, %v2805_v33  ;;  %v11896_v54 = vld [vmem:[#allocation14_spill] sm:$0xff] }
 0xa42   :  { %3563 = vmatmul.f32.gmra.mxu2 %v3492_v7 }
 0xa43   :  { %3604 = vmatmul.f32.gmra.mxu3 %v3493_v56 }
 0xa5a   :  { %v3546_v61 = vpop.f32.mrf.mxu2 }
 0xa5f   :  { %v3587_v51 = vpop.f32.mrf.mxu3 }
 0xa60   :  { %v3588_v15 = vadd.f32 %v3587_v51, %v3546_v61 }
 0xa62   :  { %v3609_v45 = vadd.f32 %v3588_v15, %v11888_v42  ;;  %v3549_v4 = vpop.f32.mrf.mxu2 }
 0xa64   :  { %v9934_v40 = vadd.f32 %v9916_v19, %v3609_v45 }
 0xa66   :  { %v3635_v0 = vsel %vm79_vm0, %v9934_v40, 0.0 }
 0xa67   :  { %3636 = vadd.xlane.f32.xlu1 %v3635_v0 }
 0xa69   :  { %v3590_v35 = vpop.f32.mrf.mxu3 }
 0xa6a   :  { %v3591_v23 = vadd.f32 %v3590_v35, %v3549_v4 }
 0xa6c   :  { %v3610_v53 = vadd.f32 %v3591_v23, %v11889_v57 }
 0xa6e   :  { %v9940_v34 = vadd.f32 %v9916_v19, %v3610_v53 }
 0xa70   :  { %v3638_v37 = vsel %vm79_vm0, %v9940_v34, 0.0 }
 0xa71   :  { %3639 = vadd.xlane.f32.xlu2 %v3638_v37  ;;  %v3552_v12 = vpop.f32.mrf.mxu2 }
 0xa75   :  { %v3593_v8 = vpop.f32.mrf.mxu3 }
 0xa76   :  { %v3594_v29 = vadd.f32 %v3593_v8, %v3552_v12 }
 0xa78   :  { %v3611_v41 = vadd.f32 %v3594_v29, %v11890_v60  ;;  %v7525_v60 = vld [vmem:[%s11820_s3 + $0x98] sm:$0xff] }
 0xa79   :  { %3927 = vmatpush.msra.mxu1 %v7525_v60 }
 0xa7a   :  { %v9946_v47 = vadd.f32 %v9916_v19, %v3611_v41  ;;  %v7512_v41 = vld [vmem:[%s11820_s3 + $0x78] sm:$0xff] }
 0xa7b   :  { %3876 = vmatpush.msrb.mxu0 %v7512_v41 }
 0xa7c   :  { %v3641_v2 = vsel %vm79_vm0, %v9946_v47, 0.0 }
 0xa7d   :  { %3642 = vadd.xlane.f32.xlu0 %v3641_v2  ;;  %v3555_v62 = vpop.f32.mrf.mxu2 }
 0xa85   :  { %v3596_v28 = vpop.f32.mrf.mxu3 }
 0xa86   :  { %v3597_v44 = vadd.f32 %v3596_v28, %v3555_v62 }
 0xa88   :  { %v3612_v59 = vadd.f32 %v3597_v44, %v11891_v31 }
 0xa8a   :  { %v9952_v58 = vadd.f32 %v9916_v19, %v3612_v59 }
 0xa8c   :  { %v3644_v32 = vsel %vm79_vm0, %v9952_v58, 0.0 }
 0xa8d   :  { %3645 = vadd.xlane.f32.xlu1 %v3644_v32 }
 0xa91   :  { %v3558_v55 = vpop.f32.mrf.mxu2 }
 0xa94   :  { %v3599_v1 = vpop.f32.mrf.mxu3 }
 0xa95   :  { %v3600_v30 = vadd.f32 %v3599_v1, %v3558_v55 }
 0xa97   :  { %v3613_v20 = vadd.f32 %v3600_v30, %v11892_v22 }
 0xa99   :  { %v9958_v18 = vadd.f32 %v9916_v19, %v3613_v20  ;;  %v3561_v48 = vpop.f32.mrf.mxu2 }
 0xa9b   :  { %v3647_v10 = vsel %vm79_vm0, %v9958_v18, 0.0 }
 0xa9c   :  { %3648 = vadd.xlane.f32.xlu2 %v3647_v10 }
 0xa9d   :  { %v3602_v49 = vpop.f32.mrf.mxu3 }
 0xa9e   :  { %v3603_v6 = vadd.f32 %v3602_v49, %v3561_v48 }
 0xaa0   :  { %v3614_v36 = vadd.f32 %v3603_v6, %v11894_v43 }
 0xaa2   :  { %v3634_v11 = vpop.xlane.xlu0 %3633  ;;  %v9970_v27 = vadd.f32 %v9916_v19, %v3614_v36  ;;  %v7524_v36 = vld [vmem:[%s11820_s3 + $0x90] sm:$0xff] }
 0xaa3   :  { %v3656_v24 = vmul.f32 %v3634_v11, %v11893_v21  ;;  %3928 = vmatpush.msra.mxu1 %v7524_v36 }
 0xaa4   :  { %11895 = vst [vmem:[#allocation15_spill] sm:$0xff] %v9970_v27  ;;  %v3650_v26 = vsel %vm79_vm0, %v9970_v27, 0.0 }
 0xaa5   :  { %v9964_v46 = vsub.f32 %v9924_v3, %v3656_v24  ;;  %3651 = vadd.xlane.f32.xlu1 %v3650_v26  ;;  %v10043_v26 = vld [vmem:[%s11818_s1 + $0x1] ss:$0 sm:$0xff] }
 0xaa7   :  { %v3672_v63 = vmul.f32 %v9964_v46, %v9964_v46 }
 0xaa9   :  { %v3680_v13 = vsel %vm79_vm0, %v3672_v63, 0.0  ;;  %v7511_v63 = vld [vmem:[%s11820_s3 + $0x70] sm:$0xff] }
 0xaaa   :  { %3681 = vadd.xlane.f32.xlu0 %v3680_v13  ;;  %v7538_v13 = vld [vmem:[%s11820_s3 + $0xb8] sm:$0xff]  ;;  %3877 = vmatpush.msrb.mxu0 %v7511_v63 }
 0xaab   :  { %3978 = vmatpush.msra.mxu2 %v7538_v13  ;;  %7749 = vmatpush.msrb.mxu3 %v7538_v13 }
 0xac5   :  { %v3564_v17 = vpop.f32.mrf.mxu2 }
 0xac6   :  { %v3605_v50 = vpop.f32.mrf.mxu3 }
 0xac7   :  { %v3606_v5 = vadd.f32 %v3605_v50, %v3564_v17  ;;  %v7510_v50 = vld [vmem:[%s11820_s3 + $0x68] sm:$0xff] }
 0xac8   :  { %3878 = vmatpush.msrb.mxu0 %v7510_v50 }
 0xac9   :  { %v3615_v7 = vadd.f32 %v3606_v5, %v11896_v54  ;;  %v7536_v5 = vld [vmem:[%s11820_s3 + $0xa8] sm:$0xff] }
 0xacb   :  { %v9991_v56 = vadd.f32 %v9916_v19, %v3615_v7 }
 0xacd   :  { %11897 = vst [vmem:[#allocation16_spill] sm:$0xff] %v9991_v56  ;;  %v3653_v45 = vsel %vm79_vm0, %v9991_v56, 0.0 }
 0xada   :  { %v3637_v16 = vpop.xlane.xlu1 %3636 }
 0xadb   :  { %v3657_v9 = vmul.f32 %v3637_v16, %v11893_v21 }
 0xadd   :  { %v9977_v14 = vsub.f32 %v9934_v40, %v3657_v9  ;;  %v7537_v9 = vld [vmem:[%s11820_s3 + $0xb0] sm:$0xff] }
 0xade   :  { %3979 = vmatpush.msra.mxu2 %v7537_v9  ;;  %7750 = vmatpush.msrb.mxu3 %v7537_v9 }
 0xadf   :  { %v3673_v25 = vmul.f32 %v9977_v14, %v9977_v14 }
 0xae0   :  { %3980 = vmatpush.msra.mxu2 %v7536_v5  ;;  %7751 = vmatpush.msrb.mxu3 %v7536_v5 }
 0xae1   :  { %v3683_v39 = vsel %vm79_vm0, %v3673_v25, 0.0 }
 0xae2   :  { %3684 = vadd.xlane.f32.xlu2 %v3683_v39  ;;  %v10052_v39 = vld [vmem:[%s11819_s2 + $0x1] ss:$0 sm:$0xff] }
 0xae4   :  { %v3640_v38 = vpop.xlane.xlu2 %3639 }
 0xae5   :  { %v3658_v52 = vmul.f32 %v3640_v38, %v11893_v21 }
 0xae7   :  { %v9984_v33 = vsub.f32 %v9940_v34, %v3658_v52  ;;  %v7523_v52 = vld [vmem:[%s11820_s3 + $0x88] sm:$0xff] }
 0xae8   :  { %3929 = vmatpush.msra.mxu1 %v7523_v52 }
 0xae9   :  { %v3674_v61 = vmul.f32 %v9984_v33, %v9984_v33 }
 0xaeb   :  { %v3686_v51 = vsel %vm79_vm0, %v3674_v61, 0.0 }
 0xaec   :  { %3687 = vadd.xlane.f32.xlu0 %v3686_v51  ;;  %v7509_v51 = vld [vmem:[%s11820_s3 + $0x60] sm:$0xff] }
 0xaed   :  { %3879 = vmatpush.msrb.mxu0 %v7509_v51 }
 0xaf0   :  { %v3643_v15 = vpop.xlane.xlu0 %3642 }
 0xaf1   :  { %v3659_v42 = vmul.f32 %v3643_v15, %v11893_v21  ;;  %v7522_v15 = vld [vmem:[%s11820_s3 + $0x80] sm:$0xff] }
 0xaf2   :  { %3930 = vmatpush.msra.mxu1 %v7522_v15 }
 0xaf3   :  { %v9997_v0 = vsub.f32 %v9946_v47, %v3659_v42  ;;  %v7535_v42 = vld [vmem:[%s11820_s3 + $0xa0] sm:$0xff] }
 0xaf4   :  { %3654 = vadd.xlane.f32.xlu0 %v3653_v45  ;;  %3981 = vmatpush.msra.mxu2 %v7535_v42 }
 0xaf5   :  { %v3675_v4 = vmul.f32 %v9997_v0, %v9997_v0  ;;  %7752 = vmatpush.msrb.mxu3 %v7535_v42 }
 0xaf7   :  { %v3689_v35 = vsel %vm79_vm0, %v3675_v4, 0.0 }
 0xaf8   :  { %3690 = vadd.xlane.f32.xlu1 %v3689_v35 }
 0xb00   :  { %v3646_v23 = vpop.xlane.xlu1 %3645 }
 0xb01   :  { %v3660_v19 = vmul.f32 %v3646_v23, %v11893_v21 }
 0xb03   :  { %v10004_v57 = vsub.f32 %v9952_v58, %v3660_v19 }
 0xb05   :  { %v3676_v53 = vmul.f32 %v10004_v57, %v10004_v57 }
 0xb07   :  { %v3692_v37 = vsel %vm79_vm0, %v3676_v53, 0.0 }
 0xb08   :  { %3693 = vadd.xlane.f32.xlu2 %v3692_v37 }
 0xb0f   :  { %v3649_v12 = vpop.xlane.xlu2 %3648 }
 0xb10   :  { %v3661_v8 = vmul.f32 %v3649_v12, %v11893_v21 }
 0xb12   :  { %v10011_v29 = vsub.f32 %v9958_v18, %v3661_v8 }
 0xb14   :  { %v3677_v2 = vmul.f32 %v10011_v29, %v10011_v29 }
 0xb16   :  { %v3695_v62 = vsel %vm79_vm0, %v3677_v2, 0.0 }
 0xb17   :  { %3696 = vadd.xlane.f32.xlu1 %v3695_v62 }
 0xb18   :  { %v3652_v28 = vpop.xlane.xlu1 %3651 }
 0xb19   :  { %v3662_v44 = vmul.f32 %v3652_v28, %v11893_v21 }
 0xb1b   :  { %v10024_v31 = vsub.f32 %v9970_v27, %v3662_v44 }
 0xb1d   :  { %v3678_v59 = vmul.f32 %v10024_v31, %v10024_v31  ;;  %v3682_v55 = vpop.xlane.xlu0 %3681 }
 0xb1e   :  { %v3704_v1 = vmul.f32 %v3682_v55, %v11893_v21 }
 0xb1f   :  { %v3698_v32 = vsel %vm79_vm0, %v3678_v59, 0.0 }
 0xb20   :  { %3699 = vadd.xlane.f32.xlu2 %v3698_v32  ;;  %v3712_v30 = vadd.f32 1e-05, %v3704_v1 }
 0xb22   :  { %7970 = vrsqrt.f32 %v3712_v30  ;;  %vm3726_vm12 = vweird.f32 %v3712_v30 }
 0xb28   :  { %v7971_v22 = vpop.eup %7970 }
 0xb29   :  { %v3721_v20 = vmul.f32 %v7971_v22, %v3712_v30  ;;  %vm3727_vm11 = vweird.f32 %v7971_v22 }
 0xb2a   :  { %vm3728_vm13 = vmor %vm3726_vm12, %vm3727_vm11 }
 0xb2b   :  { %v3722_v10 = vmul.f32 %v7971_v22, %v3721_v20 }
 0xb2d   :  { %v3723_v48 = vmul.f32 0.5, %v3722_v10 }
 0xb2f   :  { %v3724_v11 = vsub.f32 1.5, %v3723_v48 }
 0xb31   :  { %v3725_v24 = vmul.f32 %v7971_v22, %v3724_v11 }
 0xb33   :  { %v3729_v49 = vsel %vm3728_vm13, %v7971_v22, %v3725_v24 }
 0xb34   :  { %v3800_v16 = vmul.f32 %v3729_v49, %v9964_v46 }
 0xb36   :  { %v3811_v17 = vmul.f32 %v10043_v26, %v3800_v16 }
 0xb38   :  { %v3822_v46 = vadd.f32 %v10052_v39, %v3811_v17 }
 0xb3a   :  { %7514 = vmatmul.msk.f32.vlgmr.msrb.gmra.mxu0 %vm79_vm0, %v3822_v46  ;;  %7527 = vmatmul.msk.f32.vlgmr.msra.gmra.mxu1 %vm79_vm0, %v3822_v46 }
 0xb3b   :  { %7540 = vmatmul.msk.f32.vlgmr.msra.gmra.mxu2 %vm79_vm0, %v3822_v46 }
 0xb55   :  { %v3685_v6 = vpop.xlane.xlu2 %3684 }
 0xb56   :  { %v3705_v43 = vmul.f32 %v3685_v6, %v11893_v21 }
 0xb58   :  { %v3713_v25 = vadd.f32 1e-05, %v3705_v43 }
 0xb5a   :  { %7972 = vrsqrt.f32 %v3713_v25  ;;  %vm3736_vm15 = vweird.f32 %v3713_v25 }
 0xb5f   :  { %v3688_v38 = vpop.xlane.xlu0 %3687 }
 0xb60   :  { %v7973_v61 = vpop.eup %7972  ;;  %v3706_v54 = vmul.f32 %v3688_v38, %v11893_v21 }
 0xb61   :  { %v3731_v7 = vmul.f32 %v7973_v61, %v3713_v25  ;;  %vm3737_vm14 = vweird.f32 %v7973_v61 }
 0xb62   :  { %v3714_v45 = vadd.f32 1e-05, %v3706_v54  ;;  %vm3738_vm1 = vmor %vm3736_vm15, %vm3737_vm14 }
 0xb63   :  { %v3732_v4 = vmul.f32 %v7973_v61, %v3731_v7 }
 0xb64   :  { %7974 = vrsqrt.f32 %v3714_v45  ;;  %vm3746_vm3 = vweird.f32 %v3714_v45 }
 0xb65   :  { %v3733_v35 = vmul.f32 0.5, %v3732_v4 }
 0xb67   :  { %v3734_v23 = vsub.f32 1.5, %v3733_v35  ;;  %v3655_v19 = vpop.xlane.xlu0 %3654 }
 0xb68   :  { %v3663_v53 = vmul.f32 %v3655_v19, %v11893_v21 }
 0xb69   :  { %v3735_v37 = vmul.f32 %v7973_v61, %v3734_v23 }
 0xb6a   :  { %v7975_v12 = vpop.eup %7974  ;;  %v10080_v8 = vsub.f32 %v9991_v56, %v3663_v53 }
 0xb6b   :  { %v3739_v60 = vsel %vm3738_vm1, %v7973_v61, %v3735_v37  ;;  %v3741_v41 = vmul.f32 %v7975_v12, %v3714_v45  ;;  %v3691_v2 = vpop.xlane.xlu1 %3690  ;;  %vm3747_vm2 = vweird.f32 %v7975_v12 }
 0xb6c   :  { %v3801_v62 = vmul.f32 %v3739_v60, %v9977_v14  ;;  %v3707_v28 = vmul.f32 %v3691_v2, %v11893_v21  ;;  %v3679_v44 = vmul.f32 %v10080_v8, %v10080_v8  ;;  %vm3748_vm4 = vmor %vm3746_vm3, %vm3747_vm2 }
 0xb6d   :  { %v3742_v59 = vmul.f32 %v7975_v12, %v3741_v41 }
 0xb6e   :  { %v3715_v32 = vadd.f32 1e-05, %v3707_v28  ;;  %v3701_v55 = vsel %vm79_vm0, %v3679_v44, 0.0  ;;  %v3812_v1 = vmul.f32 %v10043_v26, %v3801_v62 }
 0xb6f   :  { %v3743_v30 = vmul.f32 0.5, %v3742_v59  ;;  %3702 = vadd.xlane.f32.xlu0 %v3701_v55 }
 0xb70   :  { %7976 = vrsqrt.f32 %v3715_v32  ;;  %v3823_v22 = vadd.f32 %v10052_v39, %v3812_v1  ;;  %vm3756_vm7 = vweird.f32 %v3715_v32 }
 0xb71   :  { %v3744_v20 = vsub.f32 1.5, %v3743_v30 }
 0xb72   :  { %7515 = vmatmul.msk.f32.gmra.mxu0 %vm79_vm0, %v3823_v22  ;;  %7528 = vmatmul.msk.f32.gmra.mxu1 %vm79_vm0, %v3823_v22 }
 0xb73   :  { %v3745_v14 = vmul.f32 %v7975_v12, %v3744_v20  ;;  %7541 = vmatmul.msk.f32.gmra.mxu2 %vm79_vm0, %v3823_v22 }
 0xb75   :  { %v3749_v10 = vsel %vm3748_vm4, %v7975_v12, %v3745_v14 }
 0xb76   :  { %v7977_v48 = vpop.eup %7976  ;;  %v3802_v11 = vmul.f32 %v3749_v10, %v9984_v33 }
 0xb77   :  { %v3751_v24 = vmul.f32 %v7977_v48, %v3715_v32  ;;  %vm3757_vm5 = vweird.f32 %v7977_v48 }
 0xb78   :  { %v3813_v49 = vmul.f32 %v10043_v26, %v3802_v11  ;;  %vm3758_vm8 = vmor %vm3756_vm7, %vm3757_vm5  ;;  %v10128_v11 = vld [vmem:[%s11821_s4 + $0x4] ss:$0 sm:$0xff] }
 0xb79   :  { %v3752_v6 = vmul.f32 %v7977_v48, %v3751_v24 }
 0xb7a   :  { %v3824_v43 = vadd.f32 %v10052_v39, %v3813_v49 }
 0xb7b   :  { %v3753_v36 = vmul.f32 0.5, %v3752_v6  ;;  %v3694_v63 = vpop.xlane.xlu2 %3693 }
 0xb7c   :  { %v3708_v13 = vmul.f32 %v3694_v63, %v11893_v21  ;;  %7516 = vmatmul.msk.f32.gmra.mxu0 %vm79_vm0, %v3824_v43  ;;  %7529 = vmatmul.msk.f32.gmra.mxu1 %vm79_vm0, %v3824_v43 }
 0xb7d   :  { %v3754_v16 = vsub.f32 1.5, %v3753_v36  ;;  %7542 = vmatmul.msk.f32.gmra.mxu2 %vm79_vm0, %v3824_v43 }
 0xb7e   :  { %v3716_v9 = vadd.f32 1e-05, %v3708_v13 }
 0xb7f   :  { %v3755_v33 = vmul.f32 %v7977_v48, %v3754_v16 }
 0xb80   :  { %7978 = vrsqrt.f32 %v3716_v9  ;;  %vm3766_vm10 = vweird.f32 %v3716_v9 }
 0xb81   :  { %v3759_v25 = vsel %vm3758_vm8, %v7977_v48, %v3755_v33 }
 0xb82   :  { %v3803_v17 = vmul.f32 %v3759_v25, %v9997_v0 }
 0xb84   :  { %v3814_v46 = vmul.f32 %v10043_v26, %v3803_v17 }
 0xb86   :  { %v7979_v38 = vpop.eup %7978  ;;  %v3825_v50 = vadd.f32 %v10052_v39, %v3814_v46 }
 0xb87   :  { %v3761_v52 = vmul.f32 %v7979_v38, %v3716_v9  ;;  %vm3767_vm9 = vweird.f32 %v7979_v38 }
 0xb88   :  { %7517 = vmatmul.msk.f32.gmra.mxu0 %vm79_vm0, %v3825_v50  ;;  %7530 = vmatmul.msk.f32.gmra.mxu1 %vm79_vm0, %v3825_v50  ;;  %vm3768_vm11 = vmor %vm3766_vm10, %vm3767_vm9 }
 0xb89   :  { %v3762_v5 = vmul.f32 %v7979_v38, %v3761_v52  ;;  %7543 = vmatmul.msk.f32.gmra.mxu2 %vm79_vm0, %v3825_v50 }
 0xb8a   :  { %v3697_v61 = vpop.xlane.xlu1 %3696 }
 0xb8b   :  { %v3763_v54 = vmul.f32 0.5, %v3762_v5  ;;  %v3709_v7 = vmul.f32 %v3697_v61, %v11893_v21 }
 0xb8d   :  { %v3764_v51 = vsub.f32 1.5, %v3763_v54  ;;  %v3717_v0 = vadd.f32 1e-05, %v3709_v7 }
 0xb8f   :  { %v3765_v15 = vmul.f32 %v7979_v38, %v3764_v51  ;;  %7980 = vrsqrt.f32 %v3717_v0  ;;  %vm3776_vm13 = vweird.f32 %v3717_v0 }
 0xb91   :  { %v3769_v42 = vsel %vm3768_vm11, %v7979_v38, %v3765_v15 }
 0xb92   :  { %v3804_v45 = vmul.f32 %v3769_v42, %v10004_v57  ;;  %v10152_v42 = vld [vmem:[%s11821_s4 + $0x3] ss:$0 sm:$0xff] }
 0xb93   :  { %v3700_v23 = vpop.xlane.xlu2 %3699 }
 0xb94   :  { %v3815_v4 = vmul.f32 %v10043_v26, %v3804_v45  ;;  %v3710_v53 = vmul.f32 %v3700_v23, %v11893_v21  ;;  %v11898_v45 = vld [vmem:[#allocation5_spill] sm:$0xff] }
 0xb95   :  { %v7981_v35 = vpop.eup %7980 }
 0xb96   :  { %v3771_v19 = vmul.f32 %v7981_v35, %v3717_v0  ;;  %v3826_v37 = vadd.f32 %v10052_v39, %v3815_v4  ;;  %v3718_v60 = vadd.f32 1e-05, %v3710_v53  ;;  %vm3777_vm12 = vweird.f32 %v7981_v35 }
 0xb97   :  { %vm3778_vm14 = vmor %vm3776_vm13, %vm3777_vm12 }
 0xb98   :  { %v3772_v12 = vmul.f32 %v7981_v35, %v3771_v19  ;;  %7518 = vmatmul.msk.f32.gmra.mxu0 %vm79_vm0, %v3826_v37  ;;  %7531 = vmatmul.msk.f32.gmra.mxu1 %vm79_vm0, %v3826_v37  ;;  %7982 = vrsqrt.f32 %v3718_v60  ;;  %vm3786_vm1 = vweird.f32 %v3718_v60 }
 0xb99   :  { %7544 = vmatmul.msk.f32.gmra.mxu2 %vm79_vm0, %v3826_v37 }
 0xb9a   :  { %v3773_v41 = vmul.f32 0.5, %v3772_v12 }
 0xb9c   :  { %v3774_v57 = vsub.f32 1.5, %v3773_v41 }
 0xb9e   :  { %v3775_v2 = vmul.f32 %v7981_v35, %v3774_v57  ;;  %v7983_v62 = vpop.eup %7982  ;;  %v10190_v57 = vld [vmem:[%s11821_s4 + $0x5] ss:$0 sm:$0xff] }
 0xb9f   :  { %v3781_v59 = vmul.f32 %v7983_v62, %v3718_v60  ;;  %vm3787_vm15 = vweird.f32 %v7983_v62 }
 0xba0   :  { %v3779_v28 = vsel %vm3778_vm14, %v7981_v35, %v3775_v2  ;;  %vm3788_vm2 = vmor %vm3786_vm1, %vm3787_vm15 }
 0xba1   :  { %v3805_v44 = vmul.f32 %v3779_v28, %v10011_v29  ;;  %v3782_v32 = vmul.f32 %v7983_v62, %v3781_v59 }
 0xba3   :  { %v3816_v55 = vmul.f32 %v10043_v26, %v3805_v44  ;;  %v3783_v1 = vmul.f32 0.5, %v3782_v32 }
 0xba5   :  { %v3827_v30 = vadd.f32 %v10052_v39, %v3816_v55  ;;  %v3784_v22 = vsub.f32 1.5, %v3783_v1  ;;  %v11899_v1 = vld [vmem:[#allocation6_spill] sm:$0xff] }
 0xba7   :  { %7519 = vmatmul.msk.f32.gmra.mxu0 %vm79_vm0, %v3827_v30  ;;  %7532 = vmatmul.msk.f32.gmra.mxu1 %vm79_vm0, %v3827_v30  ;;  %v3785_v20 = vmul.f32 %v7983_v62, %v3784_v22 }
 0xba8   :  { %7545 = vmatmul.msk.f32.vlgmr.msrb.gmra.mxu3 %vm79_vm0, %v3827_v30 }
 0xba9   :  { %v3789_v14 = vsel %vm3788_vm2, %v7983_v62, %v3785_v20 }
 0xbaa   :  { %v3806_v29 = vmul.f32 %v3789_v14, %v10024_v31 }
 0xbac   :  { %v3817_v10 = vmul.f32 %v10043_v26, %v3806_v29 }
 0xbae   :  { %v3828_v48 = vadd.f32 %v10052_v39, %v3817_v10 }
 0xbb0   :  { %7520 = vmatmul.msk.f32.gmra.mxu0 %vm79_vm0, %v3828_v48  ;;  %7533 = vmatmul.msk.f32.gmra.mxu1 %vm79_vm0, %v3828_v48 }
 0xbb1   :  { %7546 = vmatmul.msk.f32.gmra.mxu3 %vm79_vm0, %v3828_v48 }
 0xbb7   :  { %v3932_v24 = vpop.f32.mrf.mxu1  ;;  %v3881_v36 = vpop.f32.mrf.mxu0 }
 0xbb8   :  { %v10131_v6 = vadd.f32 %v10128_v11, %v3932_v24 }
 0xbba   :  { %7548 = vmatpush.xpose.msk.msra.mxu3 %vm79_vm0, %v10131_v6 }
 0xbbe   :  { %v3983_v46 = vpop.f32.mrf.mxu2 }
 0xbbf   :  { %v10194_v62 = vadd.f32 %v10190_v57, %v3983_v46 }
 0xbc1   :  { %v4327_v22 = vmul.f32 %v11899_v1, %v10194_v62 }
 0xbe2   :  { %v3703_v49 = vpop.xlane.xlu0 %3702 }
 0xbe3   :  { %v3711_v31 = vmul.f32 %v3703_v49, %v11893_v21 }
 0xbe5   :  { %v3719_v43 = vadd.f32 1e-05, %v3711_v31 }
 0xbe7   :  { %7984 = vrsqrt.f32 %v3719_v43  ;;  %vm3796_vm4 = vweird.f32 %v3719_v43 }
 0xbed   :  { %v7985_v63 = vpop.eup %7984 }
 0xbee   :  { %v3791_v13 = vmul.f32 %v7985_v63, %v3719_v43  ;;  %vm3797_vm3 = vweird.f32 %v7985_v63 }
 0xbef   :  { %v3935_v16 = vpop.f32.mrf.mxu1  ;;  %v3884_v38 = vpop.f32.mrf.mxu0  ;;  %vm3798_vm5 = vmor %vm3796_vm4, %vm3797_vm3 }
 0xbf0   :  { %v3792_v9 = vmul.f32 %v7985_v63, %v3791_v13  ;;  %v10137_v33 = vadd.f32 %v10128_v11, %v3935_v16 }
 0xbf2   :  { %v3793_v25 = vmul.f32 0.5, %v3792_v9  ;;  %7550 = vmatpush.xpose.msk.msra.mxu0 %vm79_vm0, %v10137_v33 }
 0xbf4   :  { %v3794_v17 = vsub.f32 1.5, %v3793_v25 }
 0xbf6   :  { %v3795_v50 = vmul.f32 %v7985_v63, %v3794_v17  ;;  %v3986_v0 = vpop.f32.mrf.mxu2 }
 0xbf7   :  { %v10253_v25 = vadd.f32 %v10190_v57, %v3986_v0 }
 0xbf8   :  { %v3799_v52 = vsel %vm3798_vm5, %v7985_v63, %v3795_v50 }
 0xbf9   :  { %v3807_v5 = vmul.f32 %v3799_v52, %v10080_v8  ;;  %v3938_v61 = vpop.f32.mrf.mxu1  ;;  %v3887_v15 = vpop.f32.mrf.mxu0 }
 0xbfa   :  { %v10143_v54 = vadd.f32 %v10128_v11, %v3938_v61  ;;  %v10161_v8 = vadd.f32 %v10152_v42, %v3887_v15 }
 0xbfb   :  { %v3818_v7 = vmul.f32 %v10043_v26, %v3807_v5  ;;  %v10158_v26 = vadd.f32 %v10152_v42, %v3884_v38  ;;  %v4328_v38 = vmul.f32 %v11899_v1, %v10253_v25 }
 0xbfc   :  { %7552 = vmatpush.xpose.msk.msrb.mxu1 %vm79_vm0, %v10143_v54  ;;  %v4009_v35 = vmul.f32 %v11898_v45, %v10161_v8 }
 0xbfd   :  { %v3829_v51 = vadd.f32 %v10052_v39, %v3818_v7  ;;  %v10164_v39 = vadd.f32 %v10152_v42, %v3881_v36  ;;  %v4008_v4 = vmul.f32 %v11898_v45, %v10158_v26  ;;  %v4320_v46 = vmul.f32 %v11899_v1, %v10158_v26 }
 0xbff   :  { %7521 = vmatmul.msk.f32.gmra.mxu0 %vm79_vm0, %v3829_v51  ;;  %7534 = vmatmul.msk.f32.gmra.mxu1 %vm79_vm0, %v3829_v51  ;;  %v4007_v53 = vmul.f32 %v11898_v45, %v10164_v39  ;;  %v4319_v16 = vmul.f32 %v11899_v1, %v10164_v39 }
 0xc00   :  { %7547 = vmatmul.msk.f32.gmra.mxu3 %vm79_vm0, %v3829_v51  ;;  %v10177_v37 = vpop.f32.mrf.mxu2 }
 0xc05   :  { %v3941_v23 = vpop.f32.mrf.mxu1  ;;  %v3890_v12 = vpop.f32.mrf.mxu0 }
 0xc06   :  { %v10171_v19 = vadd.f32 %v10128_v11, %v3941_v23  ;;  %v10183_v60 = vadd.f32 %v10152_v42, %v3890_v12 }
 0xc07   :  { %7551 = vmatmul.msk.f32.vlgmr.msra.gmra.mxu0 %vm79_vm0, %v4008_v4  ;;  %7553 = vmatmul.msk.f32.vlgmr.msrb.gmra.mxu1 %vm79_vm0, %v4009_v35 }
 0xc08   :  { %7554 = vmatpush.xpose.msk.msrb.mxu3 %vm79_vm0, %v10171_v19  ;;  %v4010_v41 = vmul.f32 %v11898_v45, %v10183_v60  ;;  %v4322_v17 = vmul.f32 %v11899_v1, %v10183_v60 }
 0xc09   :  { %7549 = vmatmul.msk.f32.vlgmr.msra.gmra.mxu3 %vm79_vm0, %v4007_v53 }
 0xc0c   :  { %v3992_v2 = vpop.f32.mrf.mxu2 }
 0xc0d   :  { %v10272_v7 = vadd.f32 %v10190_v57, %v3992_v2 }
 0xc0f   :  { %v4330_v12 = vmul.f32 %v11899_v1, %v10272_v7 }
 0xc11   :  { %7555 = vmatmul.msk.f32.vlgmr.msrb.gmra.mxu3 %vm79_vm0, %v4010_v41  ;;  %v10301_v41 = vadd.f32 %v10190_v57, %v10177_v37 }
 0xc15   :  { %v3893_v28 = vpop.f32.mrf.mxu0  ;;  %v3944_v44 = vpop.f32.mrf.mxu1 }
 0xc16   :  { %v10197_v59 = vadd.f32 %v10152_v42, %v3893_v28  ;;  %v10200_v32 = vadd.f32 %v10128_v11, %v3944_v44  ;;  %v4321_v28 = vmul.f32 %v11899_v1, %v10161_v8  ;;  %v4329_v44 = vmul.f32 %v11899_v1, %v10301_v41 }
 0xc18   :  { %v4011_v55 = vmul.f32 %v11898_v45, %v10197_v59  ;;  %v4323_v30 = vmul.f32 %v11899_v1, %v10197_v59  ;;  %7556 = vmatpush.xpose.msk.msrb.mxu0 %vm79_vm0, %v10200_v32  ;;  %7572 = vmatpush.xpose.msk.msrb.mxu2 %vm79_vm0, %v10200_v32 }
 0xc1b   :  { %7557 = vmatmul.msk.f32.vlgmr.msrb.gmra.mxu0 %vm79_vm0, %v4011_v55  ;;  %7573 = vmatmul.msk.f32.vlgmr.msrb.gmra.mxu2 %vm79_vm0, %v4323_v30 }
 0xc1c   :  { %4625 = vmatpush.msra.mxu2 %v4327_v22  ;;  %v3995_v20 = vpop.f32.mrf.mxu2 }
 0xc1d   :  { %v10215_v14 = vadd.f32 %v10190_v57, %v3995_v20 }
 0xc1f   :  { %v4331_v29 = vmul.f32 %v11899_v1, %v10215_v14 }
 0xc21   :  { %4717 = vmatpush.msrb.mxu2 %v4331_v29 }
 0xc24   :  { %v3896_v10 = vpop.f32.mrf.mxu0  ;;  %v3947_v48 = vpop.f32.mrf.mxu1 }
 0xc25   :  { %v10220_v24 = vadd.f32 %v10152_v42, %v3896_v10  ;;  %v10223_v49 = vadd.f32 %v10128_v11, %v3947_v48 }
 0xc27   :  { %v4012_v31 = vmul.f32 %v11898_v45, %v10220_v24  ;;  %7558 = vmatpush.xpose.msk.msra.mxu1 %vm79_vm0, %v10223_v49  ;;  %v4324_v5 = vmul.f32 %v11899_v1, %v10220_v24 }
 0xc2a   :  { %7559 = vmatmul.msk.f32.vlgmr.msra.gmra.mxu1 %vm79_vm0, %v4012_v31 }
 0xc2b   :  { %7564 = vmatpush.xpose.msk.msrb.mxu1 %vm79_vm0, %v10131_v6  ;;  %v3998_v50 = vpop.f32.mrf.mxu3 }
 0xc2c   :  { %v10264_v52 = vadd.f32 %v10190_v57, %v3998_v50 }
 0xc2d   :  { %v3899_v43 = vpop.f32.mrf.mxu0  ;;  %v3950_v36 = vpop.f32.mrf.mxu1 }
 0xc2e   :  { %v10235_v63 = vadd.f32 %v10152_v42, %v3899_v43  ;;  %v10238_v13 = vadd.f32 %v10128_v11, %v3950_v36  ;;  %v4332_v61 = vmul.f32 %v11899_v1, %v10264_v52 }
 0xc2f   :  { %7570 = vmatpush.xpose.msk.msra.mxu1 %vm79_vm0, %v10171_v19 }
 0xc30   :  { %v4013_v9 = vmul.f32 %v11898_v45, %v10235_v63  ;;  %7560 = vmatpush.xpose.msk.msra.mxu3 %vm79_vm0, %v10238_v13  ;;  %v4325_v37 = vmul.f32 %v11899_v1, %v10235_v63 }
 0xc32   :  { %7565 = vmatmul.msk.f32.vlgmr.msrb.gmra.mxu1 %vm79_vm0, %v4319_v16 }
 0xc33   :  { %7561 = vmatmul.msk.f32.vlgmr.msra.gmra.mxu3 %vm79_vm0, %v4013_v9 }
 0xc34   :  { %7566 = vmatpush.xpose.msk.msrb.mxu3 %vm79_vm0, %v10137_v33  ;;  %v4001_v51 = vpop.f32.mrf.mxu3 }
 0xc35   :  { %v10311_v55 = vadd.f32 %v10190_v57, %v4001_v51 }
 0xc37   :  { %v4333_v30 = vmul.f32 %v11899_v1, %v10311_v55 }
 0xc38   :  { %7574 = vmatpush.xpose.msk.msra.mxu3 %vm79_vm0, %v10223_v49 }
 0xc3a   :  { %7571 = vmatmul.msk.f32.vlgmr.msra.gmra.mxu1 %vm79_vm0, %v4322_v17 }
 0xc3b   :  { %7567 = vmatmul.msk.f32.vlgmr.msrb.gmra.mxu3 %vm79_vm0, %v4320_v46 }
 0xc3c   :  { %4648 = vmatpush.msrb.mxu3 %v4328_v38 }
 0xc43   :  { %7575 = vmatmul.msk.f32.vlgmr.msra.gmra.mxu3 %vm79_vm0, %v4324_v5 }
 0xc44   :  { %4740 = vmatpush.msra.mxu3 %v4332_v61 }
 0xc7c   :  { %v3902_v0 = vpop.f32.mrf.mxu0  ;;  %v3953_v15 = vpop.f32.mrf.mxu1 }
 0xc7d   :  { %v10275_v4 = vadd.f32 %v10152_v42, %v3902_v0  ;;  %v10278_v35 = vadd.f32 %v10128_v11, %v3953_v15 }
 0xc7f   :  { %v4014_v23 = vmul.f32 %v11898_v45, %v10275_v4  ;;  %v4326_v53 = vmul.f32 %v11899_v1, %v10275_v4  ;;  %7562 = vmatpush.xpose.msk.msra.mxu0 %vm79_vm0, %v10278_v35  ;;  %7578 = vmatpush.xpose.msk.msrb.mxu1 %vm79_vm0, %v10278_v35 }
 0xc82   :  { %7563 = vmatmul.msk.f32.vlgmr.msra.gmra.mxu0 %vm79_vm0, %v4014_v23  ;;  %7579 = vmatmul.msk.f32.vlgmr.msrb.gmra.mxu1 %vm79_vm0, %v4326_v53 }
 0xc83   :  { %7568 = vmatpush.xpose.msk.msrb.mxu0 %vm79_vm0, %v10143_v54  ;;  %4694 = vmatpush.msra.mxu1 %v4330_v12  ;;  %v4004_v11 = vpop.f32.mrf.mxu3 }
 0xc84   :  { %v10297_v42 = vadd.f32 %v10190_v57, %v4004_v11  ;;  %v10318_v22 = vpop.f32.mrf.mxu1  ;;  %v4072_v10 = vpop.f32.mrf.mxu0 }
 0xc85   :  { %v4234_v31 = vsel %vm684_vm6, %v4072_v10, -inf }
 0xc86   :  { %v4334_v2 = vmul.f32 %v11899_v1, %v10297_v42 }
 0xc87   :  { %7576 = vmatpush.xpose.msk.msra.mxu0 %vm79_vm0, %v10238_v13 }
 0xc88   :  { %4786 = vmatpush.msrb.mxu1 %v4334_v2 }
 0xc8a   :  { %7569 = vmatmul.msk.f32.vlgmr.msrb.gmra.mxu0 %vm79_vm0, %v4321_v28 }
 0xc8b   :  { %4671 = vmatpush.msrb.mxu0 %v4329_v44 }
 0xc8c   :  { %v10321_v48 = vpop.f32.mrf.mxu3 }
 0xc8d   :  { %v4231_v9 = vsel %vm684_vm6, %v10321_v48, -inf }
 0xc92   :  { %7577 = vmatmul.msk.f32.vlgmr.msra.gmra.mxu0 %vm79_vm0, %v4325_v37  ;;  %v4237_v37 = vsel %vm684_vm6, %v10318_v22, -inf }
 0xc93   :  { %4763 = vmatpush.msra.mxu0 %v4333_v30 }
 0xc94   :  { %v10326_v43 = vpop.f32.mrf.mxu3 }
 0xc98   :  { %v10333_v17 = vpop.f32.mrf.mxu0 }
 0xc99   :  { %v4243_v50 = vsel %vm684_vm6, %v10333_v17, -inf }
 0xc9e   :  { %v4447_v20 = vpop.f32.mrf.mxu2 }
 0xc9f   :  { %v4531_v29 = vsel %vm684_vm6, %v4447_v20, -inf }
 0xca0   :  { %4532 = vmax.xlane.f32.xlu0 %v4531_v29 }
 0xca7   :  { %v10323_v57 = vpop.f32.mrf.mxu1 }
 0xca8   :  { %4235 = vmax.xlane.f32.xlu0 %v4234_v31  ;;  %v4246_v15 = vsel %vm684_vm6, %v10323_v57, -inf }
 0xcaf   :  { %v4355_v1 = vpop.f32.mrf.mxu1 }
 0xcb0   :  { %v4519_v36 = vsel %vm684_vm6, %v4355_v1, -inf }
 0xcb1   :  { %4520 = vmax.xlane.f32.xlu1 %v4519_v36 }
 0xcb6   :  { %v10329_v16 = vpop.f32.mrf.mxu3 }
 0xcb7   :  { %v10338_v5 = vpop.f32.mrf.mxu1  ;;  %v4249_v28 = vsel %vm684_vm6, %v10329_v16, -inf }
 0xcb8   :  { %v4528_v0 = vsel %vm684_vm6, %v10338_v5, -inf }
 0xcb9   :  { %4232 = vmax.xlane.f32.xlu1 %v4231_v9 }
 0xcbe   :  { %v4378_v46 = vpop.f32.mrf.mxu3 }
 0xcbf   :  { %v4522_v38 = vsel %vm684_vm6, %v4378_v46, -inf }
 0xcc0   :  { %4523 = vmax.xlane.f32.xlu2 %v4522_v38  ;;  %v4240_v38 = vsel %vm684_vm6, %v10326_v43, -inf }
 0xcc1   :  { %4244 = vmax.xlane.f32.xlu1 %v4243_v50 }
 0xcc6   :  { %v4470_v61 = vpop.f32.mrf.mxu3 }
 0xcc7   :  { %v4534_v51 = vsel %vm684_vm6, %v4470_v61, -inf }
 0xcc8   :  { %4535 = vmax.xlane.f32.xlu2 %v4534_v51 }
 0xcc9   :  { %4529 = vmax.xlane.f32.xlu1 %v4528_v0 }
 0xcd0   :  { %4247 = vmax.xlane.f32.xlu2 %v4246_v15 }
 0xcff   :  { %v10345_v23 = vpop.f32.mrf.mxu0  ;;  %v10347_v53 = vpop.f32.mrf.mxu1 }
 0xd00   :  { %v4540_v12 = vsel %vm684_vm6, %v10347_v53, -inf  ;;  %v4252_v29 = vsel %vm684_vm6, %v10345_v23, -inf }
 0xd01   :  { %4541 = vmax.xlane.f32.xlu1 %v4540_v12 }
 0xd07   :  { %v10351_v11 = vpop.f32.mrf.mxu0 }
 0xd08   :  { %v4525_v2 = vsel %vm684_vm6, %v10351_v11, -inf }
 0xd09   :  { %4526 = vmax.xlane.f32.xlu0 %v4525_v2  ;;  %4250 = vmax.xlane.f32.xlu1 %v4249_v28 }
 0xd0f   :  { %v10357_v44 = vpop.f32.mrf.mxu0 }
 0xd10   :  { %v4537_v30 = vsel %vm684_vm6, %v10357_v44, -inf }
 0xd11   :  { %4238 = vmax.xlane.f32.xlu0 %v4237_v37  ;;  %4538 = vmax.xlane.f32.xlu2 %v4537_v30 }
 0xd12   :  { %4253 = vmax.xlane.f32.xlu1 %v4252_v29 }
 0xd13   :  { %v4533_v31 = vpop.xlane.xlu0 %4532 }
 0xd14   :  { %v4547_v36 = vsub.f32 %v4447_v20, %v4533_v31 }
 0xd16   :  { %v4559_v9 = vmul.f32 1.442695, %v4547_v36 }
 0xd18   :  { %7986 = vpow2.f32 %v4559_v9 }
 0xd19   :  { %4241 = vmax.xlane.f32.xlu0 %v4240_v38 }
 0xd1b   :  { %v4236_v50 = vpop.xlane.xlu0 %4235 }
 0xd1c   :  { %v4256_v51 = vsub.f32 %v4072_v10, %v4236_v50 }
 0xd1e   :  { %v10367_v0 = vpop.eup %7986  ;;  %v4265_v15 = vmul.f32 1.442695, %v4256_v51 }
 0xd1f   :  { %v4579_v12 = vsel %vm684_vm6, %v10367_v0, 0.0 }
 0xd20   :  { %7988 = vpow2.f32 %v4265_v15 }
 0xd21   :  { %4580 = vadd.xlane.f32.xlu0 %v4579_v12 }
 0xd24   :  { %v4521_v2 = vpop.xlane.xlu1 %4520 }
 0xd25   :  { %v4543_v28 = vsub.f32 %v4355_v1, %v4521_v2 }
 0xd26   :  { %v10371_v37 = vpop.eup %7988 }
 0xd27   :  { %v4551_v20 = vmul.f32 1.442695, %v4543_v28  ;;  %v4282_v30 = vsel %vm684_vm6, %v10371_v37, 0.0 }
 0xd28   :  { %4283 = vadd.xlane.f32.xlu1 %v4282_v30 }
 0xd29   :  { %7990 = vpow2.f32 %v4551_v20 }
 0xd2c   :  { %v4233_v10 = vpop.xlane.xlu1 %4232 }
 0xd2d   :  { %v4255_v38 = vsub.f32 %v10321_v48, %v4233_v10 }
 0xd2f   :  { %v10375_v29 = vpop.eup %7990  ;;  %v4263_v51 = vmul.f32 1.442695, %v4255_v38 }
 0xd30   :  { %v4567_v31 = vsel %vm684_vm6, %v10375_v29, 0.0 }
 0xd31   :  { %4568 = vadd.xlane.f32.xlu2 %v4567_v31 }
 0xd33   :  { %v4524_v36 = vpop.xlane.xlu2 %4523 }
 0xd34   :  { %v4544_v9 = vsub.f32 %v4378_v46, %v4524_v36  ;;  %v4245_v50 = vpop.xlane.xlu1 %4244 }
 0xd35   :  { %v4259_v28 = vsub.f32 %v10333_v17, %v4245_v50 }
 0xd36   :  { %v4553_v1 = vmul.f32 1.442695, %v4544_v9 }
 0xd37   :  { %v4271_v46 = vmul.f32 1.442695, %v4259_v28 }
 0xd38   :  { %7992 = vpow2.f32 %v4553_v1 }
 0xd39   :  { %7994 = vpow2.f32 %v4263_v51 }
 0xd3b   :  { %v4536_v15 = vpop.xlane.xlu2 %4535 }
 0xd3c   :  { %v4548_v12 = vsub.f32 %v4470_v61, %v4536_v15  ;;  %v4530_v31 = vpop.xlane.xlu1 %4529 }
 0xd3d   :  { %v4546_v61 = vsub.f32 %v10338_v5, %v4530_v31 }
 0xd3e   :  { %v10380_v2 = vpop.eup %7992  ;;  %v4561_v20 = vmul.f32 1.442695, %v4548_v12 }
 0xd3f   :  { %v4570_v30 = vsel %vm684_vm6, %v10380_v2, 0.0  ;;  %v10385_v10 = vpop.eup %7994  ;;  %v4557_v50 = vmul.f32 1.442695, %v4546_v61 }
 0xd40   :  { %7996 = vpow2.f32 %v4561_v20  ;;  %4571 = vadd.xlane.f32.xlu2 %v4570_v30  ;;  %v4279_v1 = vsel %vm684_vm6, %v10385_v10, 0.0 }
 0xd41   :  { %7998 = vpow2.f32 %v4271_v46 }
 0xd43   :  { %v4248_v48 = vpop.xlane.xlu2 %4247 }
 0xd44   :  { %v4260_v36 = vsub.f32 %v10323_v57, %v4248_v48 }
 0xd46   :  { %v10388_v9 = vpop.eup %7996  ;;  %v4273_v38 = vmul.f32 1.442695, %v4260_v36 }
 0xd47   :  { %v4582_v17 = vsel %vm684_vm6, %v10388_v9, 0.0  ;;  %v10395_v51 = vpop.eup %7998 }
 0xd48   :  { %8000 = vpow2.f32 %v4273_v38  ;;  %4583 = vadd.xlane.f32.xlu0 %v4582_v17  ;;  %4280 = vadd.xlane.f32.xlu2 %v4279_v1  ;;  %v4291_v57 = vsel %vm684_vm6, %v10395_v51, 0.0 }
 0xd49   :  { %8002 = vpow2.f32 %v4557_v50 }
 0xd4e   :  { %v10397_v15 = vpop.eup %8000 }
 0xd4f   :  { %v4294_v5 = vsel %vm684_vm6, %v10397_v15, 0.0  ;;  %v10403_v12 = vpop.eup %8002 }
 0xd50   :  { %4292 = vadd.xlane.f32.xlu2 %v4291_v57  ;;  %4295 = vadd.xlane.f32.xlu0 %v4294_v5  ;;  %v4576_v28 = vsel %vm684_vm6, %v10403_v12, 0.0 }
 0xd58   :  { %4577 = vadd.xlane.f32.xlu2 %v4576_v28 }
 0xd74   :  { %v4542_v20 = vpop.xlane.xlu1 %4541 }
 0xd75   :  { %v4550_v30 = vsub.f32 %v10347_v53, %v4542_v20 }
 0xd77   :  { %v4565_v46 = vmul.f32 1.442695, %v4550_v30 }
 0xd79   :  { %8004 = vpow2.f32 %v4565_v46 }
 0xd7c   :  { %v4527_v31 = vpop.xlane.xlu0 %4526  ;;  %v4251_v36 = vpop.xlane.xlu1 %4250 }
 0xd7d   :  { %v4545_v48 = vsub.f32 %v10351_v11, %v4527_v31  ;;  %v4261_v11 = vsub.f32 %v10329_v16, %v4251_v36 }
 0xd7f   :  { %v4555_v61 = vmul.f32 1.442695, %v4545_v48  ;;  %v10409_v38 = vpop.eup %8004 }
 0xd80   :  { %v4588_v17 = vsel %vm684_vm6, %v10409_v38, 0.0 }
 0xd81   :  { %8006 = vpow2.f32 %v4555_v61  ;;  %4589 = vadd.xlane.f32.xlu2 %v4588_v17  ;;  %v4275_v61 = vmul.f32 1.442695, %v4261_v11 }
 0xd84   :  { %v4239_v1 = vpop.xlane.xlu0 %4238  ;;  %v4539_v50 = vpop.xlane.xlu2 %4538 }
 0xd85   :  { %v4257_v57 = vsub.f32 %v10318_v22, %v4239_v1  ;;  %v4254_v5 = vpop.xlane.xlu1 %4253  ;;  %v4549_v53 = vsub.f32 %v10357_v44, %v4539_v50 }
 0xd86   :  { %v4262_v28 = vsub.f32 %v10345_v23, %v4254_v5 }
 0xd87   :  { %v10416_v20 = vpop.eup %8006  ;;  %v4267_v30 = vmul.f32 1.442695, %v4257_v57  ;;  %v4563_v46 = vmul.f32 1.442695, %v4549_v53 }
 0xd88   :  { %v4277_v31 = vmul.f32 1.442695, %v4262_v28  ;;  %v4573_v48 = vsel %vm684_vm6, %v10416_v20, 0.0 }
 0xd89   :  { %8008 = vpow2.f32 %v4267_v30  ;;  %4574 = vadd.xlane.f32.xlu1 %v4573_v48  ;;  %v4015_v48 = vmul.f32 %v11898_v45, %v10194_v62 }
 0xd8a   :  { %8010 = vpow2.f32 %v4277_v31 }
 0xd8b   :  { %8012 = vpow2.f32 %v4563_v46 }
 0xd8c   :  { %v4242_v22 = vpop.xlane.xlu0 %4241  ;;  %8014 = vpow2.f32 %v4275_v61 }
 0xd8d   :  { %v4258_v44 = vsub.f32 %v10326_v43, %v4242_v22 }
 0xd8f   :  { %v10422_v17 = vpop.eup %8008  ;;  %v4269_v23 = vmul.f32 1.442695, %v4258_v44 }
 0xd90   :  { %v10424_v1 = vpop.eup %8010  ;;  %v4285_v16 = vsel %vm684_vm6, %v10422_v17, 0.0 }
 0xd91   :  { %v10428_v36 = vpop.eup %8012  ;;  %8016 = vpow2.f32 %v4269_v23  ;;  %4286 = vadd.xlane.f32.xlu1 %v4285_v16  ;;  %v4300_v50 = vsel %vm684_vm6, %v10424_v1, 0.0  ;;  %v4019_v23 = vmul.f32 %v11898_v45, %v10215_v14 }
 0xd92   :  { %4301 = vadd.xlane.f32.xlu2 %v4300_v50  ;;  %v4585_v43 = vsel %vm684_vm6, %v10428_v36, 0.0  ;;  %v10434_v57 = vpop.eup %8014 }
 0xd93   :  { %4586 = vadd.xlane.f32.xlu0 %v4585_v43  ;;  %v4297_v53 = vsel %vm684_vm6, %v10434_v57, 0.0 }
 0xd94   :  { %v4581_v30 = vpop.xlane.xlu0 %4580 }
 0xd97   :  { %v10436_v5 = vpop.eup %8016 }
 0xd98   :  { %v4288_v28 = vsel %vm684_vm6, %v10436_v5, 0.0 }
 0xd99   :  { %4298 = vadd.xlane.f32.xlu1 %v4297_v53  ;;  %v4016_v53 = vmul.f32 %v11898_v45, %v10253_v25 }
 0xd9b   :  { %4289 = vadd.xlane.f32.xlu0 %v4288_v28 }
 0xda4   :  { %v4569_v11 = vpop.xlane.xlu2 %4568 }
 0xda5   :  { %8018 = vrcp.f32 %v4569_v11 }
 0xda6   :  { %8020 = vrcp.f32 %v4581_v30 }
 0xdab   :  { %v8019_v46 = vpop.eup %8018 }
 0xdac   :  { %v4599_v31 = vmul.f32 %v8019_v46, %v10375_v29  ;;  %v8021_v61 = vpop.eup %8020 }
 0xdad   :  { %v4603_v22 = vmul.f32 %v8021_v61, %v10367_v0  ;;  %v4284_v0 = vpop.xlane.xlu1 %4283 }
 0xdae   :  { %7580 = vmatmul.msk.f32.vlgmr.msra.gmra.mxu2 %vm684_vm6, %v4599_v31 }
 0xdaf   :  { %4809 = vmatpush.msra.mxu2 %v4015_v48 }
 0xdb3   :  { %v4572_v44 = vpop.xlane.xlu2 %4571 }
 0xdb4   :  { %8022 = vrcp.f32 %v4572_v44 }
 0xdb6   :  { %7584 = vmatmul.msk.f32.vlgmr.msrb.gmra.mxu2 %vm684_vm6, %v4603_v22 }
 0xdb7   :  { %4901 = vmatpush.msrb.mxu2 %v4019_v23 }
 0xdba   :  { %v8023_v16 = vpop.eup %8022 }
 0xdbb   :  { %v4600_v29 = vmul.f32 %v8023_v16, %v10380_v2  ;;  %v4584_v50 = vpop.xlane.xlu0 %4583  ;;  %v4281_v43 = vpop.xlane.xlu2 %4280  ;;  %v4020_v2 = vmul.f32 %v11898_v45, %v10264_v52 }
 0xdbc   :  { %8024 = vrcp.f32 %v4584_v50  ;;  %v11900_v50 = vld [vmem:[#allocation3_spill] sm:$0xff] }
 0xdbd   :  { %8026 = vrcp.f32 %v4281_v43  ;;  %7581 = vmatmul.msk.f32.vlgmr.msrb.gmra.mxu3 %vm684_vm6, %v4600_v29  ;;  %v4018_v43 = vmul.f32 %v11898_v45, %v10272_v7 }
 0xdbe   :  { %4832 = vmatpush.msrb.mxu3 %v4016_v53  ;;  %8028 = vrcp.f32 %v4284_v0  ;;  %v4983_v53 = vmul.f32 %v11900_v50, %v10194_v62  ;;  %v4984_v0 = vmul.f32 %v11900_v50, %v10253_v25 }
 0xdc2   :  { %v8025_v28 = vpop.eup %8024 }
 0xdc3   :  { %v8027_v11 = vpop.eup %8026  ;;  %v4604_v30 = vmul.f32 %v8025_v28, %v10388_v9  ;;  %v4293_v46 = vpop.xlane.xlu2 %4292  ;;  %v4987_v28 = vmul.f32 %v11900_v50, %v10215_v14 }
 0xdc4   :  { %v4311_v31 = vmul.f32 %v8027_v11, %v10385_v10  ;;  %8030 = vrcp.f32 %v4293_v46  ;;  %v4296_v48 = vpop.xlane.xlu0 %4295  ;;  %v8029_v61 = vpop.eup %8028  ;;  %v4980_v11 = vmul.f32 %v11900_v50, %v10220_v24 }
 0xdc5   :  { %7585 = vmatmul.msk.f32.vlgmr.msra.gmra.mxu3 %vm684_vm6, %v4604_v30  ;;  %8032 = vrcp.f32 %v4296_v48  ;;  %v4312_v9 = vmul.f32 %v8029_v61, %v10371_v37  ;;  %v4988_v30 = vmul.f32 %v11900_v50, %v10264_v52  ;;  %v4022_v61 = vmul.f32 %v11898_v45, %v10297_v42 }
 0xdc6   :  { %7588 = vmatmul.msk.f32.vlgmr.msra.gmra.mxu2 %vm684_vm6, %v4311_v31  ;;  %4924 = vmatpush.msra.mxu3 %v4020_v2 }
 0xdc7   :  { %7596 = vmatpush.xpose.msk.msra.mxu2 %vm79_vm0, %v10131_v6 }
 0xdca   :  { %v8031_v22 = vpop.eup %8030 }
 0xdcb   :  { %v4578_v44 = vpop.xlane.xlu2 %4577  ;;  %v4315_v10 = vmul.f32 %v8031_v22, %v10395_v51  ;;  %v8033_v23 = vpop.eup %8032  ;;  %v4975_v51 = vmul.f32 %v11900_v50, %v10164_v39 }
 0xdcc   :  { %8034 = vrcp.f32 %v4578_v44  ;;  %v4316_v29 = vmul.f32 %v8033_v23, %v10397_v15  ;;  %v4976_v15 = vmul.f32 %v11900_v50, %v10158_v26  ;;  %v4017_v44 = vmul.f32 %v11898_v45, %v10301_v41 }
 0xdcd   :  { %7589 = vmatmul.msk.f32.vlgmr.msrb.gmra.mxu3 %vm684_vm6, %v4312_v9 }
 0xdce   :  { %7592 = vmatmul.msk.f32.vlgmr.msrb.gmra.mxu2 %vm684_vm6, %v4315_v10  ;;  %7598 = vmatpush.xpose.msk.msrb.mxu3 %vm79_vm0, %v10137_v33 }
 0xdcf   :  { %7604 = vmatpush.xpose.msk.msrb.mxu2 %vm79_vm0, %v10200_v32 }
 0xdd2   :  { %v8035_v16 = vpop.eup %8034 }
 0xdd3   :  { %v4602_v37 = vmul.f32 %v8035_v16, %v10403_v12  ;;  %v4979_v12 = vmul.f32 %v11900_v50, %v10197_v59 }
 0xdd5   :  { %7583 = vmatmul.msk.f32.vlgmr.msra.gmra.mxu1 %vm684_vm6, %v4602_v37  ;;  %7593 = vmatmul.msk.f32.vlgmr.msra.gmra.mxu3 %vm684_vm6, %v4316_v29  ;;  %v4021_v37 = vmul.f32 %v11898_v45, %v10311_v55 }
 0xdd6   :  { %4878 = vmatpush.msra.mxu1 %v4018_v43  ;;  %7597 = vmatmul.msk.f32.vlgmr.msra.gmra.mxu2 %vm79_vm0, %v4975_v51 }
 0xdd7   :  { %7606 = vmatpush.xpose.msk.msra.mxu3 %vm79_vm0, %v10223_v49  ;;  %5281 = vmatpush.msra.mxu2 %v4983_v53 }
 0xddd   :  { %7599 = vmatmul.msk.f32.vlgmr.msrb.gmra.mxu3 %vm79_vm0, %v4976_v15 }
 0xdde   :  { %7605 = vmatmul.msk.f32.vlgmr.msrb.gmra.mxu2 %vm79_vm0, %v4979_v12  ;;  %5304 = vmatpush.msrb.mxu3 %v4984_v0 }
 0xddf   :  { %5373 = vmatpush.msrb.mxu2 %v4987_v28 }
 0xde5   :  { %7607 = vmatmul.msk.f32.vlgmr.msra.gmra.mxu3 %vm79_vm0, %v4980_v11  ;;  %v4981_v11 = vmul.f32 %v11900_v50, %v10235_v63 }
 0xde6   :  { %5396 = vmatpush.msra.mxu3 %v4988_v30  ;;  %v4982_v30 = vmul.f32 %v11900_v50, %v10275_v4 }
 0xdf4   :  { %v4590_v46 = vpop.xlane.xlu2 %4589 }
 0xdf5   :  { %8036 = vrcp.f32 %v4590_v46  ;;  %v4989_v46 = vmul.f32 %v11900_v50, %v10311_v55 }
 0xdfb   :  { %v8037_v31 = vpop.eup %8036 }
 0xdfc   :  { %v4575_v2 = vpop.xlane.xlu1 %4574  ;;  %v4606_v48 = vmul.f32 %v8037_v31, %v10409_v38  ;;  %v4990_v31 = vmul.f32 %v11900_v50, %v10297_v42 }
 0xdfd   :  { %8038 = vrcp.f32 %v4575_v2 }
 0xdfe   :  { %7587 = vmatmul.msk.f32.vlgmr.msrb.gmra.mxu1 %vm684_vm6, %v4606_v48 }
 0xdff   :  { %4970 = vmatpush.msrb.mxu1 %v4022_v61 }
 0xe03   :  { %v8039_v22 = vpop.eup %8038 }
 0xe04   :  { %v4601_v9 = vmul.f32 %v8039_v22, %v10416_v20  ;;  %v4287_v23 = vpop.xlane.xlu1 %4286 }
 0xe05   :  { %v4302_v20 = vpop.xlane.xlu2 %4301 }
 0xe06   :  { %v4587_v10 = vpop.xlane.xlu0 %4586  ;;  %7582 = vmatmul.msk.f32.vlgmr.msrb.gmra.mxu0 %vm684_vm6, %v4601_v9 }
 0xe07   :  { %8040 = vrcp.f32 %v4587_v10  ;;  %4855 = vmatpush.msrb.mxu0 %v4017_v44 }
 0xe08   :  { %8042 = vrcp.f32 %v4287_v23 }
 0xe0c   :  { %v4299_v51 = vpop.xlane.xlu1 %4298 }
 0xe0d   :  { %v8041_v38 = vpop.eup %8040 }
 0xe0e   :  { %v4605_v16 = vmul.f32 %v8041_v38, %v10428_v36  ;;  %v4290_v29 = vpop.xlane.xlu0 %4289  ;;  %v8043_v43 = vpop.eup %8042 }
 0xe0f   :  { %8044 = vrcp.f32 %v4290_v29  ;;  %v4313_v15 = vmul.f32 %v8043_v43, %v10422_v17  ;;  %v4977_v17 = vmul.f32 %v11900_v50, %v10161_v8 }
 0xe10   :  { %7586 = vmatmul.msk.f32.vlgmr.msra.gmra.mxu0 %vm684_vm6, %v4605_v16  ;;  %8046 = vrcp.f32 %v4302_v20 }
 0xe11   :  { %4947 = vmatpush.msra.mxu0 %v4021_v37  ;;  %8048 = vrcp.f32 %v4299_v51 }
 0xe15   :  { %v8045_v53 = vpop.eup %8044 }
 0xe16   :  { %v4314_v12 = vmul.f32 %v8045_v53, %v10436_v5  ;;  %v8047_v45 = vpop.eup %8046  ;;  %v4978_v5 = vmul.f32 %v11900_v50, %v10183_v60 }
 0xe17   :  { %v8049_v36 = vpop.eup %8048  ;;  %v4318_v0 = vmul.f32 %v8047_v45, %v10424_v1  ;;  %v4985_v1 = vmul.f32 %v11900_v50, %v10301_v41 }
 0xe18   :  { %7590 = vmatmul.msk.f32.vlgmr.msrb.gmra.mxu0 %vm684_vm6, %v4313_v15  ;;  %7591 = vmatmul.msk.f32.vlgmr.msra.gmra.mxu1 %vm684_vm6, %v4314_v12  ;;  %v4317_v28 = vmul.f32 %v8049_v36, %v10434_v57  ;;  %v4986_v57 = vmul.f32 %v11900_v50, %v10272_v7 }
 0xe19   :  { %7600 = vmatpush.xpose.msk.msrb.mxu0 %vm79_vm0, %v10143_v54  ;;  %7602 = vmatpush.xpose.msk.msra.mxu1 %vm79_vm0, %v10171_v19 }
 0xe20   :  { %7594 = vmatmul.msk.f32.vlgmr.msra.gmra.mxu0 %vm684_vm6, %v4317_v28  ;;  %7595 = vmatmul.msk.f32.vlgmr.msrb.gmra.mxu1 %vm684_vm6, %v4318_v0 }
 0xe21   :  { %7608 = vmatpush.xpose.msk.msra.mxu0 %vm79_vm0, %v10238_v13  ;;  %7610 = vmatpush.xpose.msk.msrb.mxu1 %vm79_vm0, %v10278_v35 }
 0xe28   :  { %7601 = vmatmul.msk.f32.vlgmr.msrb.gmra.mxu0 %vm79_vm0, %v4977_v17  ;;  %7603 = vmatmul.msk.f32.vlgmr.msra.gmra.mxu1 %vm79_vm0, %v4978_v5 }
 0xe29   :  { %5327 = vmatpush.msrb.mxu0 %v4985_v1  ;;  %5350 = vmatpush.msra.mxu1 %v4986_v57 }
 0xe30   :  { %7609 = vmatmul.msk.f32.vlgmr.msra.gmra.mxu0 %vm79_vm0, %v4981_v11  ;;  %7611 = vmatmul.msk.f32.vlgmr.msrb.gmra.mxu1 %vm79_vm0, %v4982_v30 }
 0xe31   :  { %5419 = vmatpush.msra.mxu0 %v4989_v46  ;;  %5442 = vmatpush.msrb.mxu1 %v4990_v31  ;;  %v10546_v2 = vpop.f32.mrf.mxu2 }
 0xe39   :  { %v10548_v61 = vpop.f32.mrf.mxu2 }
 0xe40   :  { %v4650_v48 = vpop.f32.mrf.mxu3 }
 0xe48   :  { %v4742_v22 = vpop.f32.mrf.mxu3 }
 0xe49   :  { %v10550_v9 = vpop.f32.mrf.mxu2 }
 0xe50   :  { %v4834_v44 = vpop.f32.mrf.mxu3 }
 0xe51   :  { %v10552_v10 = vadd.f32 %v4834_v44, %v4650_v48  ;;  %v10554_v23 = vpop.f32.mrf.mxu2 }
 0xe52   :  { %v4696_v45 = vpop.f32.mrf.mxu1 }
 0xe58   :  { %v4926_v50 = vpop.f32.mrf.mxu3 }
 0xe59   :  { %v10556_v38 = vadd.f32 %v4926_v50, %v4742_v22  ;;  %v5011_v16 = vpop.f32.mrf.mxu2 }
 0xe5a   :  { %v5175_v29 = vsel %vm684_vm6, %v5011_v16, -inf }
 0xe5b   :  { %5176 = vmax.xlane.f32.xlu0 %v5175_v29 }
 0xe60   :  { %v5034_v37 = vpop.f32.mrf.mxu3 }
 0xe61   :  { %v5103_v20 = vpop.f32.mrf.mxu2  ;;  %v5178_v51 = vsel %vm684_vm6, %v5034_v37, -inf }
 0xe62   :  { %5179 = vmax.xlane.f32.xlu1 %v5178_v51  ;;  %v5187_v43 = vsel %vm684_vm6, %v5103_v20, -inf }
 0xe63   :  { %5188 = vmax.xlane.f32.xlu2 %v5187_v43 }
 0xe68   :  { %v5126_v53 = vpop.f32.mrf.mxu3 }
 0xe69   :  { %v5190_v15 = vsel %vm684_vm6, %v5126_v53, -inf }
 0xe6a   :  { %5191 = vmax.xlane.f32.xlu0 %v5190_v15 }
 0xe7b   :  { %v4788_v36 = vpop.f32.mrf.mxu1 }
 0xe83   :  { %v4673_v12 = vpop.f32.mrf.mxu0 }
 0xe8d   :  { %v4765_v0 = vpop.f32.mrf.mxu0 }
 0xe95   :  { %v4857_v28 = vpop.f32.mrf.mxu0  ;;  %v4880_v17 = vpop.f32.mrf.mxu1 }
 0xe96   :  { %v10562_v5 = vadd.f32 %v4857_v28, %v4673_v12  ;;  %v10564_v1 = vadd.f32 %v4880_v17, %v4696_v45 }
 0xe9d   :  { %v4949_v57 = vpop.f32.mrf.mxu0  ;;  %v4972_v11 = vpop.f32.mrf.mxu1 }
 0xe9e   :  { %v10566_v30 = vadd.f32 %v4949_v57, %v4765_v0  ;;  %v10568_v46 = vadd.f32 %v4972_v11, %v4788_v36 }
 0xea5   :  { %v5057_v31 = vpop.f32.mrf.mxu0  ;;  %v5080_v48 = vpop.f32.mrf.mxu1 }
 0xea6   :  { %v5181_v22 = vsel %vm684_vm6, %v5057_v31, -inf  ;;  %v5184_v44 = vsel %vm684_vm6, %v5080_v48, -inf }
 0xea7   :  { %5182 = vmax.xlane.f32.xlu1 %v5181_v22  ;;  %5185 = vmax.xlane.f32.xlu2 %v5184_v44 }
 0xead   :  { %v5149_v50 = vpop.f32.mrf.mxu0  ;;  %v5172_v29 = vpop.f32.mrf.mxu1 }
 0xeae   :  { %v5193_v51 = vsel %vm684_vm6, %v5149_v50, -inf  ;;  %v5196_v43 = vsel %vm684_vm6, %v5172_v29, -inf }
 0xeaf   :  { %5194 = vmax.xlane.f32.xlu0 %v5193_v51  ;;  %5197 = vmax.xlane.f32.xlu1 %v5196_v43 }
 0xece   :  { %v5177_v15 = vpop.xlane.xlu0 %5176 }
 0xecf   :  { %v5199_v12 = vsub.f32 %v5011_v16, %v5177_v15 }
 0xed1   :  { %v5207_v45 = vmul.f32 1.442695, %v5199_v12 }
 0xed3   :  { %8050 = vpow2.f32 %v5207_v45 }
 0xed5   :  { %v5180_v36 = vpop.xlane.xlu1 %5179 }
 0xed6   :  { %v5200_v0 = vsub.f32 %v5034_v37, %v5180_v36  ;;  %v5189_v28 = vpop.xlane.xlu2 %5188 }
 0xed7   :  { %v5203_v17 = vsub.f32 %v5103_v20, %v5189_v28 }
 0xed8   :  { %v5209_v57 = vmul.f32 1.442695, %v5200_v0 }
 0xed9   :  { %v8051_v11 = vpop.eup %8050  ;;  %v5215_v22 = vmul.f32 1.442695, %v5203_v17 }
 0xeda   :  { %8052 = vpow2.f32 %v5209_v57  ;;  %v5223_v44 = vsel %vm684_vm6, %v8051_v11, 0.0 }
 0xedb   :  { %8054 = vpow2.f32 %v5215_v22  ;;  %5224 = vadd.xlane.f32.xlu2 %v5223_v44 }
 0xedd   :  { %v5192_v56 = vpop.xlane.xlu0 %5191 }
 0xede   :  { %v5204_v21 = vsub.f32 %v5126_v53, %v5192_v56 }
 0xee0   :  { %v8053_v51 = vpop.eup %8052  ;;  %v5217_v43 = vmul.f32 1.442695, %v5204_v21 }
 0xee1   :  { %v8055_v27 = vpop.eup %8054  ;;  %v5226_v16 = vsel %vm684_vm6, %v8053_v51, 0.0 }
 0xee2   :  { %8056 = vpow2.f32 %v5217_v43  ;;  %5227 = vadd.xlane.f32.xlu0 %v5226_v16  ;;  %v5235_v37 = vsel %vm684_vm6, %v8055_v27, 0.0 }
 0xee3   :  { %5236 = vadd.xlane.f32.xlu1 %v5235_v37 }
 0xee8   :  { %v8057_v20 = vpop.eup %8056 }
 0xee9   :  { %v5238_v15 = vsel %vm684_vm6, %v8057_v20, 0.0 }
 0xeea   :  { %5239 = vadd.xlane.f32.xlu2 %v5238_v15 }
 0xf1a   :  { %v5183_v12 = vpop.xlane.xlu1 %5182  ;;  %v5186_v45 = vpop.xlane.xlu2 %5185 }
 0xf1b   :  { %v5201_v36 = vsub.f32 %v5057_v31, %v5183_v12  ;;  %v5202_v0 = vsub.f32 %v5080_v48, %v5186_v45 }
 0xf1d   :  { %v5211_v28 = vmul.f32 1.442695, %v5201_v36  ;;  %v5213_v56 = vmul.f32 1.442695, %v5202_v0 }
 0xf1f   :  { %8058 = vpow2.f32 %v5211_v28 }
 0xf20   :  { %8060 = vpow2.f32 %v5213_v56 }
 0xf22   :  { %v5195_v21 = vpop.xlane.xlu0 %5194  ;;  %v5198_v53 = vpop.xlane.xlu1 %5197 }
 0xf23   :  { %v5205_v17 = vsub.f32 %v5149_v50, %v5195_v21  ;;  %v5206_v57 = vsub.f32 %v5172_v29, %v5198_v53 }
 0xf25   :  { %v8059_v22 = vpop.eup %8058  ;;  %v5219_v44 = vmul.f32 1.442695, %v5205_v17  ;;  %v5221_v43 = vmul.f32 1.442695, %v5206_v57 }
 0xf26   :  { %v8061_v16 = vpop.eup %8060  ;;  %v5229_v37 = vsel %vm684_vm6, %v8059_v22, 0.0 }
 0xf27   :  { %8062 = vpow2.f32 %v5219_v44  ;;  %5230 = vadd.xlane.f32.xlu0 %v5229_v37  ;;  %v5232_v15 = vsel %vm684_vm6, %v8061_v16, 0.0 }
 0xf28   :  { %8064 = vpow2.f32 %v5221_v43  ;;  %5233 = vadd.xlane.f32.xlu1 %v5232_v15 }
 0xf2d   :  { %v10580_v31 = vpop.eup %8062 }
 0xf2e   :  { %v10582_v48 = vpop.eup %8064  ;;  %v5241_v50 = vsel %vm684_vm6, %v10580_v31, 0.0 }
 0xf2f   :  { %5242 = vadd.xlane.f32.xlu2 %v5241_v50  ;;  %v5244_v29 = vsel %vm684_vm6, %v10582_v48, 0.0 }
 0xf30   :  { %5245 = vadd.xlane.f32.xlu0 %v5244_v29 }
 0xf4e   :  { %v5225_v12 = vpop.xlane.xlu2 %5224 }
 0xf4f   :  { %8066 = vrcp.f32 %v5225_v12 }
 0xf55   :  { %v8067_v45 = vpop.eup %8066  ;;  %v5228_v36 = vpop.xlane.xlu0 %5227 }
 0xf56   :  { %v5255_v0 = vmul.f32 %v8067_v45, %v8051_v11  ;;  %8068 = vrcp.f32 %v5228_v36  ;;  %v5237_v28 = vpop.xlane.xlu1 %5236 }
 0xf57   :  { %8070 = vrcp.f32 %v5237_v28 }
 0xf58   :  { %7612 = vmatmul.msk.f32.vlgmr.msra.gmra.mxu2 %vm684_vm6, %v5255_v0 }
 0xf59   :  { %7620 = vmatpush.xpose.msk.msra.mxu2 %vm79_vm0, %v10131_v6  ;;  %v11901_v6 = vld [vmem:[#allocation4_spill] sm:$0xff] }
 0xf5a   :  { %v5455_v43 = vmul.f32 %v11901_v6, %v10164_v39  ;;  %v5464_v39 = vmul.f32 %v11901_v6, %v10253_v25 }
 0xf5c   :  { %v8069_v56 = vpop.eup %8068 }
 0xf5d   :  { %v8071_v21 = vpop.eup %8070  ;;  %v5256_v53 = vmul.f32 %v8069_v56, %v8053_v51  ;;  %v5240_v17 = vpop.xlane.xlu2 %5239 }
 0xf5e   :  { %v5259_v57 = vmul.f32 %v8071_v21, %v8055_v27  ;;  %8072 = vrcp.f32 %v5240_v17  ;;  %v5463_v27 = vmul.f32 %v11901_v6, %v10194_v62  ;;  %v5467_v62 = vmul.f32 %v11901_v6, %v10215_v14 }
 0xf5f   :  { %7613 = vmatmul.msk.f32.vlgmr.msrb.gmra.mxu3 %vm684_vm6, %v5256_v53 }
 0xf60   :  { %7616 = vmatmul.msk.f32.vlgmr.msrb.gmra.mxu2 %vm684_vm6, %v5259_v57  ;;  %7622 = vmatpush.xpose.msk.msrb.mxu3 %vm79_vm0, %v10137_v33  ;;  %v5456_v33 = vmul.f32 %v11901_v6, %v10158_v26  ;;  %v5468_v26 = vmul.f32 %v11901_v6, %v10264_v52 }
 0xf61   :  { %7628 = vmatpush.xpose.msk.msrb.mxu2 %vm79_vm0, %v10200_v32  ;;  %v5459_v32 = vmul.f32 %v11901_v6, %v10197_v59 }
 0xf64   :  { %v8073_v11 = vpop.eup %8072 }
 0xf65   :  { %v5260_v44 = vmul.f32 %v8073_v11, %v8057_v20 }
 0xf67   :  { %7617 = vmatmul.msk.f32.vlgmr.msra.gmra.mxu3 %vm684_vm6, %v5260_v44 }
 0xf68   :  { %7621 = vmatmul.msk.f32.vlgmr.msra.gmra.mxu2 %vm79_vm0, %v5455_v43  ;;  %7630 = vmatpush.xpose.msk.msra.mxu3 %vm79_vm0, %v10223_v49  ;;  %v5460_v49 = vmul.f32 %v11901_v6, %v10220_v24 }
 0xf69   :  { %5761 = vmatpush.msra.mxu2 %v5463_v27 }
 0xf6f   :  { %7623 = vmatmul.msk.f32.vlgmr.msrb.gmra.mxu3 %vm79_vm0, %v5456_v33 }
 0xf70   :  { %7629 = vmatmul.msk.f32.vlgmr.msrb.gmra.mxu2 %vm79_vm0, %v5459_v32  ;;  %5784 = vmatpush.msrb.mxu3 %v5464_v39 }
 0xf71   :  { %5853 = vmatpush.msrb.mxu2 %v5467_v62 }
 0xf77   :  { %7631 = vmatmul.msk.f32.vlgmr.msra.gmra.mxu3 %vm79_vm0, %v5460_v49 }
 0xf78   :  { %5876 = vmatpush.msra.mxu3 %v5468_v26 }
 0xf9a   :  { %v5231_v59 = vpop.xlane.xlu0 %5230 }
 0xf9b   :  { %8074 = vrcp.f32 %v5231_v59  ;;  %v5234_v25 = vpop.xlane.xlu1 %5233 }
 0xf9c   :  { %8076 = vrcp.f32 %v5234_v25 }
 0xfa1   :  { %v8075_v51 = vpop.eup %8074 }
 0xfa2   :  { %v8077_v20 = vpop.eup %8076  ;;  %v5257_v14 = vmul.f32 %v8075_v51, %v8059_v22  ;;  %v5243_v37 = vpop.xlane.xlu2 %5242 }
 0xfa3   :  { %v5258_v15 = vmul.f32 %v8077_v20, %v8061_v16  ;;  %v5246_v50 = vpop.xlane.xlu0 %5245  ;;  %8078 = vrcp.f32 %v5243_v37  ;;  %v5465_v16 = vmul.f32 %v11901_v6, %v10301_v41 }
 0xfa4   :  { %8080 = vrcp.f32 %v5246_v50  ;;  %7614 = vmatmul.msk.f32.vlgmr.msrb.gmra.mxu0 %vm684_vm6, %v5257_v14 }
 0xfa5   :  { %7615 = vmatmul.msk.f32.vlgmr.msra.gmra.mxu1 %vm684_vm6, %v5258_v15  ;;  %7624 = vmatpush.xpose.msk.msrb.mxu0 %vm79_vm0, %v10143_v54  ;;  %v5457_v54 = vmul.f32 %v11901_v6, %v10161_v8  ;;  %v5462_v8 = vmul.f32 %v11901_v6, %v10275_v4 }
 0xfa6   :  { %7626 = vmatpush.xpose.msk.msra.mxu1 %vm79_vm0, %v10171_v19  ;;  %v5458_v19 = vmul.f32 %v11901_v6, %v10183_v60  ;;  %v5469_v60 = vmul.f32 %v11901_v6, %v10311_v55 }
 0xfa9   :  { %v8079_v24 = vpop.eup %8078 }
 0xfaa   :  { %v8081_v52 = vpop.eup %8080  ;;  %v5261_v29 = vmul.f32 %v8079_v24, %v10580_v31  ;;  %v5466_v31 = vmul.f32 %v11901_v6, %v10272_v7 }
 0xfab   :  { %v5262_v22 = vmul.f32 %v8081_v52, %v10582_v48 }
 0xfac   :  { %7618 = vmatmul.msk.f32.vlgmr.msra.gmra.mxu0 %vm684_vm6, %v5261_v29 }
 0xfad   :  { %7619 = vmatmul.msk.f32.vlgmr.msrb.gmra.mxu1 %vm684_vm6, %v5262_v22  ;;  %7632 = vmatpush.xpose.msk.msra.mxu0 %vm79_vm0, %v10238_v13  ;;  %v5461_v13 = vmul.f32 %v11901_v6, %v10235_v63 }
 0xfae   :  { %7634 = vmatpush.xpose.msk.msrb.mxu1 %vm79_vm0, %v10278_v35  ;;  %v5470_v35 = vmul.f32 %v11901_v6, %v10297_v42 }
 0xfb4   :  { %7625 = vmatmul.msk.f32.vlgmr.msrb.gmra.mxu0 %vm79_vm0, %v5457_v54 }
 0xfb5   :  { %7627 = vmatmul.msk.f32.vlgmr.msra.gmra.mxu1 %vm79_vm0, %v5458_v19  ;;  %5807 = vmatpush.msrb.mxu0 %v5465_v16 }
 0xfb6   :  { %5830 = vmatpush.msra.mxu1 %v5466_v31 }
 0xfbc   :  { %7633 = vmatmul.msk.f32.vlgmr.msra.gmra.mxu0 %vm79_vm0, %v5461_v13 }
 0xfbd   :  { %7635 = vmatmul.msk.f32.vlgmr.msrb.gmra.mxu1 %vm79_vm0, %v5462_v8  ;;  %5899 = vmatpush.msra.mxu0 %v5469_v60 }
 0xfbe   :  { %5922 = vmatpush.msrb.mxu1 %v5470_v35 }
 0xfdb   :  { %v10654_v7 = vpop.f32.mrf.mxu2 }
 0xfe2   :  { %v5306_v41 = vpop.f32.mrf.mxu3 }
 0xfe3   :  { %v10657_v63 = vadd.f32 %v5306_v41, %v10552_v10  ;;  %v10659_v48 = vpop.f32.mrf.mxu2 }
 0xfea   :  { %v5398_v4 = vpop.f32.mrf.mxu3 }
 0xfeb   :  { %v10662_v55 = vadd.f32 %v5398_v4, %v10556_v38  ;;  %v5491_v12 = vpop.f32.mrf.mxu2 }
 0xfec   :  { %v5655_v45 = vsel %vm684_vm6, %v5491_v12, -inf }
 0xfed   :  { %5656 = vmax.xlane.f32.xlu1 %v5655_v45 }
 0xff2   :  { %v5514_v42 = vpop.f32.mrf.mxu3 }
 0xff3   :  { %v5658_v36 = vsel %vm684_vm6, %v5514_v42, -inf  ;;  %v5583_v0 = vpop.f32.mrf.mxu2 }
 0xff4   :  { %5659 = vmax.xlane.f32.xlu2 %v5658_v36  ;;  %v5667_v28 = vsel %vm684_vm6, %v5583_v0, -inf }
 0xffc   :  { %5668 = vmax.xlane.f32.xlu2 %v5667_v28 }
0x1021   :  { %v5329_v10 = vpop.f32.mrf.mxu0 }
0x1022   :  { %v10668_v56 = vadd.f32 %v5329_v10, %v10562_v5  ;;  %v5352_v21 = vpop.f32.mrf.mxu1  ;;  %v5606_v5 = vpop.f32.mrf.mxu3 }
0x1023   :  { %v10671_v38 = vadd.f32 %v5352_v21, %v10564_v1  ;;  %v5670_v1 = vsel %vm684_vm6, %v5606_v5, -inf }
0x1029   :  { %v5421_v53 = vpop.f32.mrf.mxu0 }
0x102a   :  { %v10674_v17 = vadd.f32 %v5421_v53, %v10566_v30  ;;  %v5444_v57 = vpop.f32.mrf.mxu1 }
0x102b   :  { %v10677_v11 = vadd.f32 %v5444_v57, %v10568_v46 }
0x1031   :  { %v5537_v44 = vpop.f32.mrf.mxu0 }
0x1032   :  { %v5560_v6 = vpop.f32.mrf.mxu1  ;;  %v5661_v43 = vsel %vm684_vm6, %v5537_v44, -inf }
0x1033   :  { %v5664_v27 = vsel %vm684_vm6, %v5560_v6, -inf  ;;  %5662 = vmax.xlane.f32.xlu0 %v5661_v43 }
0x1034   :  { %5665 = vmax.xlane.f32.xlu1 %v5664_v27 }
0x1039   :  { %v5629_v33 = vpop.f32.mrf.mxu0 }
0x103a   :  { %v5673_v32 = vsel %vm684_vm6, %v5629_v33, -inf  ;;  %v5652_v14 = vpop.f32.mrf.mxu1 }
0x103b   :  { %5671 = vmax.xlane.f32.xlu0 %v5670_v1  ;;  %5674 = vmax.xlane.f32.xlu2 %v5673_v32  ;;  %v5676_v24 = vsel %vm684_vm6, %v5652_v14, -inf }
0x1060   :  { %v5657_v30 = vpop.xlane.xlu1 %5656 }
0x1061   :  { %v5679_v39 = vsub.f32 %v5491_v12, %v5657_v30 }
0x1063   :  { %v5687_v46 = vmul.f32 1.442695, %v5679_v39 }
0x1065   :  { %8082 = vpow2.f32 %v5687_v46 }
0x1067   :  { %v5660_v62 = vpop.xlane.xlu2 %5659 }
0x1068   :  { %v5680_v49 = vsub.f32 %v5514_v42, %v5660_v62 }
0x106a   :  { %v5689_v26 = vmul.f32 1.442695, %v5680_v49 }
0x106b   :  { %v8083_v59 = vpop.eup %8082 }
0x106c   :  { %8084 = vpow2.f32 %v5689_v26  ;;  %v5703_v25 = vsel %vm684_vm6, %v8083_v59, 0.0 }
0x106d   :  { %5704 = vadd.xlane.f32.xlu1 %v5703_v25 }
0x106f   :  { %v5669_v51 = vpop.xlane.xlu2 %5668 }
0x1070   :  { %v5683_v20 = vsub.f32 %v5583_v0, %v5669_v51 }
0x1072   :  { %v8085_v37 = vpop.eup %8084  ;;  %v5695_v15 = vmul.f32 1.442695, %v5683_v20 }
0x1073   :  { %v5706_v50 = vsel %vm684_vm6, %v8085_v37, 0.0 }
0x1074   :  { %8086 = vpow2.f32 %v5695_v15  ;;  %5707 = vadd.xlane.f32.xlu0 %v5706_v50 }
0x1075   :  { %5677 = vmax.xlane.f32.xlu1 %v5676_v24 }
0x107a   :  { %v8087_v52 = vpop.eup %8086 }
0x107b   :  { %v5715_v29 = vsel %vm684_vm6, %v8087_v52, 0.0 }
0x107d   :  { %5716 = vadd.xlane.f32.xlu1 %v5715_v29 }
0x10a6   :  { %v5663_v22 = vpop.xlane.xlu0 %5662 }
0x10a7   :  { %v5666_v54 = vpop.xlane.xlu1 %5665  ;;  %v5681_v19 = vsub.f32 %v5537_v44, %v5663_v22  ;;  %v7647_v22 = vld [vmem:[%s11822_s5 + $0x38] sm:$0xff] }
0x10a8   :  { %v5682_v16 = vsub.f32 %v5560_v6, %v5666_v54  ;;  %v7646_v54 = vld [vmem:[%s11822_s5 + $0x30] sm:$0xff] }
0x10a9   :  { %v5691_v31 = vmul.f32 1.442695, %v5681_v19  ;;  %v7645_v19 = vld [vmem:[%s11822_s5 + $0x28] sm:$0xff] }
0x10aa   :  { %v5693_v13 = vmul.f32 1.442695, %v5682_v16  ;;  %v7644_v16 = vld [vmem:[%s11822_s5 + $0x20] sm:$0xff] }
0x10ab   :  { %8088 = vpow2.f32 %v5691_v31 }
0x10ac   :  { %8090 = vpow2.f32 %v5693_v13  ;;  %v4812_v13 = vadd.f32 %v10550_v9, %v10546_v2 }
0x10ae   :  { %v5672_v8 = vpop.xlane.xlu0 %5671  ;;  %v5675_v60 = vpop.xlane.xlu2 %5674 }
0x10af   :  { %v5684_v35 = vsub.f32 %v5606_v5, %v5672_v8  ;;  %v5685_v41 = vsub.f32 %v5629_v33, %v5675_v60  ;;  %v5447_v8 = vadd.f32 %v10654_v7, %v4812_v13  ;;  %v4904_v7 = vadd.f32 %v10554_v23, %v10548_v61  ;;  %v7772_v61 = vld [vmem:[%s11823_s6 + $0x1] ss:$0 sm:$0xff] }
0x10b1   :  { %v8089_v4 = vpop.eup %8088  ;;  %v5697_v12 = vmul.f32 1.442695, %v5684_v35  ;;  %v5699_v45 = vmul.f32 1.442695, %v5685_v41 }
0x10b2   :  { %v8091_v42 = vpop.eup %8090  ;;  %v5709_v36 = vsel %vm684_vm6, %v8089_v4, 0.0 }
0x10b3   :  { %8092 = vpow2.f32 %v5697_v12  ;;  %5710 = vadd.xlane.f32.xlu2 %v5709_v36  ;;  %v5712_v0 = vsel %vm684_vm6, %v8091_v42, 0.0 }
0x10b4   :  { %8094 = vpow2.f32 %v5699_v45  ;;  %5713 = vadd.xlane.f32.xlu0 %v5712_v0 }
0x10b9   :  { %v8093_v28 = vpop.eup %8092 }
0x10ba   :  { %v8095_v10 = vpop.eup %8094  ;;  %v5718_v21 = vsel %vm684_vm6, %v8093_v28, 0.0 }
0x10bb   :  { %5719 = vadd.xlane.f32.xlu2 %v5718_v21  ;;  %v5721_v53 = vsel %vm684_vm6, %v8095_v10, 0.0 }
0x10bc   :  { %5722 = vadd.xlane.f32.xlu0 %v5721_v53 }
0x10e0   :  { %v5705_v57 = vpop.xlane.xlu1 %5704 }
0x10e1   :  { %8096 = vrcp.f32 %v5705_v57 }
0x10e7   :  { %v8097_v44 = vpop.eup %8096  ;;  %v5708_v6 = vpop.xlane.xlu0 %5707 }
0x10e8   :  { %v5735_v43 = vmul.f32 %v8097_v44, %v8083_v59  ;;  %v5678_v27 = vpop.xlane.xlu1 %5677  ;;  %8098 = vrcp.f32 %v5708_v6 }
0x10e9   :  { %v5686_v5 = vsub.f32 %v5652_v14, %v5678_v27 }
0x10ea   :  { %7636 = vmatmul.msk.f32.vlgmr.msra.gmra.mxu2 %vm684_vm6, %v5735_v43 }
0x10eb   :  { %v5701_v33 = vmul.f32 1.442695, %v5686_v5  ;;  %5981 = vmatpush.msra.mxu2 %v7647_v22 }
0x10ed   :  { %8100 = vpow2.f32 %v5701_v33  ;;  %5982 = vmatpush.msra.mxu2 %v7646_v54 }
0x10ee   :  { %v8099_v1 = vpop.eup %8098 }
0x10ef   :  { %v5736_v32 = vmul.f32 %v8099_v1, %v8085_v37  ;;  %5983 = vmatpush.msra.mxu2 %v7645_v19 }
0x10f0   :  { %v5717_v30 = vpop.xlane.xlu1 %5716 }
0x10f1   :  { %8102 = vrcp.f32 %v5717_v30  ;;  %7637 = vmatmul.msk.f32.vlgmr.msrb.gmra.mxu3 %vm684_vm6, %v5736_v32  ;;  %5984 = vmatpush.msra.mxu2 %v7644_v16 }
0x10f3   :  { %v8101_v39 = vpop.eup %8100 }
0x10f4   :  { %v5724_v46 = vsel %vm684_vm6, %v8101_v39, 0.0 }
0x10f5   :  { %5725 = vadd.xlane.f32.xlu1 %v5724_v46 }
0x10f7   :  { %v8103_v62 = vpop.eup %8102 }
0x10f8   :  { %v5739_v49 = vmul.f32 %v8103_v62, %v8087_v52 }
0x10fa   :  { %7640 = vmatmul.msk.f32.vlgmr.msrb.gmra.mxu2 %vm684_vm6, %v5739_v49 }
0x1126   :  { %v5711_v26 = vpop.xlane.xlu2 %5710 }
0x1127   :  { %v5714_v59 = vpop.xlane.xlu0 %5713  ;;  %8104 = vrcp.f32 %v5711_v26 }
0x1128   :  { %8106 = vrcp.f32 %v5714_v59 }
0x112d   :  { %v8105_v25 = vpop.eup %8104 }
0x112e   :  { %v8107_v51 = vpop.eup %8106  ;;  %v5737_v20 = vmul.f32 %v8105_v25, %v8089_v4  ;;  %v5720_v14 = vpop.xlane.xlu2 %5719 }
0x112f   :  { %v5738_v37 = vmul.f32 %v8107_v51, %v8091_v42  ;;  %v5723_v15 = vpop.xlane.xlu0 %5722  ;;  %8108 = vrcp.f32 %v5720_v14 }
0x1130   :  { %8110 = vrcp.f32 %v5723_v15  ;;  %7638 = vmatmul.msk.f32.vlgmr.msrb.gmra.mxu0 %vm684_vm6, %v5737_v20  ;;  %v11903_v20 = vld [vmem:[#allocation15_spill] sm:$0xff]  ;;  %v11905_v15 = vld [vmem:[#allocation2_spill] sm:$0xff] }
0x1131   :  { %7639 = vmatmul.msk.f32.vlgmr.msra.gmra.mxu1 %vm684_vm6, %v5738_v37 }
0x1135   :  { %v8109_v50 = vpop.eup %8108 }
0x1136   :  { %v8111_v24 = vpop.eup %8110  ;;  %v5740_v52 = vmul.f32 %v8109_v50, %v8093_v28  ;;  %v5451_v28 = vadd.f32 %v10659_v48, %v4904_v7 }
0x1137   :  { %v5741_v29 = vmul.f32 %v8111_v24, %v8095_v10 }
0x1138   :  { %7641 = vmatmul.msk.f32.vlgmr.msra.gmra.mxu3 %vm684_vm6, %v5740_v52 }
0x1139   :  { %7642 = vmatmul.msk.f32.vlgmr.msra.gmra.mxu0 %vm684_vm6, %v5741_v29 }
0x1168   :  { %v5726_v31 = vpop.xlane.xlu1 %5725 }
0x1169   :  { %8112 = vrcp.f32 %v5726_v31  ;;  %v11906_v31 = vld [vmem:[#allocation16_spill] sm:$0xff] }
0x116d   :  { %v5763_v60 = vpop.f32.mrf.mxu2 }
0x116e   :  { %v5927_v35 = vadd.f32 %v5763_v60, %v5447_v8 }
0x116f   :  { %v8113_v41 = vpop.eup %8112 }
0x1170   :  { %v5742_v4 = vmul.f32 %v8113_v41, %v8101_v39  ;;  %7649 = vmatmul.msk.f32.vlgmr.msra.gmra.mxu2 %vm79_vm0, %v5927_v35 }
0x1172   :  { %7643 = vmatmul.msk.f32.vlgmr.msrb.gmra.mxu1 %vm684_vm6, %v5742_v4 }
0x1174   :  { %v5786_v12 = vpop.f32.mrf.mxu3 }
0x1175   :  { %v5928_v45 = vadd.f32 %v5786_v12, %v10657_v63 }
0x1178   :  { %7650 = vmatmul.msk.f32.gmra.mxu2 %vm79_vm0, %v5928_v45 }
0x117d   :  { %v5855_v0 = vpop.f32.mrf.mxu2 }
0x117e   :  { %v5931_v10 = vadd.f32 %v5855_v0, %v5451_v28 }
0x11ad   :  { %v5809_v42 = vpop.f32.mrf.mxu0 }
0x11ae   :  { %v5929_v36 = vadd.f32 %v5809_v42, %v10668_v56  ;;  %v5832_v2 = vpop.f32.mrf.mxu1 }
0x11af   :  { %v5930_v9 = vadd.f32 %v5832_v2, %v10671_v38 }
0x11b0   :  { %7651 = vmatmul.msk.f32.gmra.mxu2 %vm79_vm0, %v5929_v36 }
0x11b6   :  { %v5901_v56 = vpop.f32.mrf.mxu0 }
0x11b7   :  { %v5933_v53 = vadd.f32 %v5901_v56, %v10674_v17 }
0x11b8   :  { %7652 = vmatmul.msk.f32.gmra.mxu2 %vm79_vm0, %v5930_v9 }
0x11bb   :  { %v5878_v63 = vpop.f32.mrf.mxu3 }
0x11bc   :  { %v5932_v21 = vadd.f32 %v5878_v63, %v10662_v55 }
0x11c0   :  { %7653 = vmatmul.msk.f32.gmra.mxu2 %vm79_vm0, %v5931_v10 }
0x11c8   :  { %7654 = vmatmul.msk.f32.gmra.mxu2 %vm79_vm0, %v5932_v21 }
0x11d0   :  { %7655 = vmatmul.msk.f32.gmra.mxu2 %vm79_vm0, %v5933_v53 }
0x11ef   :  { %v5924_v38 = vpop.f32.mrf.mxu1 }
0x11f0   :  { %v5934_v57 = vadd.f32 %v5924_v38, %v10677_v11 }
0x11f2   :  { %7656 = vmatmul.msk.f32.gmra.mxu2 %vm79_vm0, %v5934_v57 }
0x11f3   :  { %v5986_v23 = vpop.f32.mrf.mxu2 }
0x11f4   :  { %v5987_v48 = vadd.f32 %v7772_v61, %v5986_v23 }
0x11f6   :  { %v10736_v55 = vadd.f32 %v5987_v48, %v9924_v3 }
0x11f8   :  { %v6022_v44 = vsel %vm79_vm0, %v10736_v55, 0.0 }
0x11f9   :  { %6023 = vadd.xlane.f32.xlu2 %v6022_v44 }
0x11fb   :  { %v5989_v17 = vpop.f32.mrf.mxu2 }
0x11fc   :  { %v5990_v6 = vadd.f32 %v7772_v61, %v5989_v17 }
0x11fe   :  { %v10741_v43 = vadd.f32 %v5990_v6, %v9934_v40 }
0x1200   :  { %v6025_v11 = vsel %vm79_vm0, %v10741_v43, 0.0 }
0x1201   :  { %6026 = vadd.xlane.f32.xlu0 %v6025_v11 }
0x1233   :  { %v5992_v27 = vpop.f32.mrf.mxu2 }
0x1234   :  { %v5993_v5 = vadd.f32 %v7772_v61, %v5992_v27  ;;  %v7665_v27 = vld [vmem:[%s11826_s9 + $0x70] sm:$0xff] }
0x1235   :  { %6272 = vmatpush.msrb.mxu3 %v7665_v27 }
0x1236   :  { %v10746_v33 = vadd.f32 %v5993_v5, %v9940_v34  ;;  %v7666_v5 = vld [vmem:[%s11826_s9 + $0x78] sm:$0xff] }
0x1237   :  { %6313 = vmatpush.msrb.mxu0 %v7666_v5 }
0x1238   :  { %v6028_v3 = vsel %vm79_vm0, %v10746_v33, 0.0 }
0x1239   :  { %6029 = vadd.xlane.f32.xlu1 %v6028_v3  ;;  %v7663_v3 = vld [vmem:[%s11826_s9 + $0x60] sm:$0xff] }
0x123a   :  { %6273 = vmatpush.msrb.mxu3 %v7663_v3 }
0x123b   :  { %v5995_v1 = vpop.f32.mrf.mxu2 }
0x123c   :  { %v5996_v32 = vadd.f32 %v7772_v61, %v5995_v1  ;;  %v7664_v1 = vld [vmem:[%s11826_s9 + $0x68] sm:$0xff] }
0x123d   :  { %6314 = vmatpush.msrb.mxu0 %v7664_v1 }
0x123e   :  { %v10751_v30 = vadd.f32 %v5996_v32, %v9946_v47  ;;  %v7661_v32 = vld [vmem:[%s11826_s9 + $0x50] sm:$0xff] }
0x123f   :  { %6274 = vmatpush.msrb.mxu3 %v7661_v32 }
0x1240   :  { %11902 = vst [vmem:[#allocation7_spill] sm:$0xff] %v10751_v30  ;;  %v6031_v40 = vsel %vm79_vm0, %v10751_v30, 0.0 }
0x1241   :  { %6032 = vadd.xlane.f32.xlu2 %v6031_v40  ;;  %v7662_v40 = vld [vmem:[%s11826_s9 + $0x58] sm:$0xff] }
0x1242   :  { %6315 = vmatpush.msrb.mxu0 %v7662_v40 }
0x1243   :  { %v5998_v39 = vpop.f32.mrf.mxu2 }
0x1244   :  { %v5999_v46 = vadd.f32 %v7772_v61, %v5998_v39  ;;  %v7659_v39 = vld [vmem:[%s11826_s9 + $0x40] sm:$0xff] }
0x1245   :  { %6275 = vmatpush.msrb.mxu3 %v7659_v39 }
0x1246   :  { %v10756_v62 = vadd.f32 %v5999_v46, %v9952_v58  ;;  %v7660_v46 = vld [vmem:[%s11826_s9 + $0x48] sm:$0xff] }
0x1247   :  { %6316 = vmatpush.msrb.mxu0 %v7660_v46 }
0x1248   :  { %v6034_v34 = vsel %vm79_vm0, %v10756_v62, 0.0 }
0x1249   :  { %6035 = vadd.xlane.f32.xlu0 %v6034_v34 }
0x124b   :  { %v6001_v49 = vpop.f32.mrf.mxu2 }
0x124c   :  { %v6002_v26 = vadd.f32 %v7772_v61, %v6001_v49 }
0x124e   :  { %v10761_v59 = vadd.f32 %v6002_v26, %v9958_v18 }
0x1250   :  { %v6037_v47 = vsel %vm79_vm0, %v10761_v59, 0.0 }
0x1251   :  { %6038 = vadd.xlane.f32.xlu1 %v6037_v47 }
0x1253   :  { %v6004_v25 = vpop.f32.mrf.mxu2 }
0x1254   :  { %v6005_v51 = vadd.f32 %v7772_v61, %v6004_v25 }
0x1256   :  { %v10766_v14 = vadd.f32 %v6005_v51, %v11903_v20 }
0x1258   :  { %11904 = vst [vmem:[#allocation8_spill] sm:$0xff] %v10766_v14  ;;  %v6040_v58 = vsel %vm79_vm0, %v10766_v14, 0.0 }
0x1259   :  { %6041 = vadd.xlane.f32.xlu0 %v6040_v58 }
0x126c   :  { %v6024_v37 = vpop.xlane.xlu2 %6023 }
0x126d   :  { %v6046_v50 = vmul.f32 %v6024_v37, %v11905_v15 }
0x126f   :  { %v10772_v24 = vsub.f32 %v10736_v55, %v6046_v50 }
0x1271   :  { %v6062_v18 = vmul.f32 %v10772_v24, %v10772_v24 }
0x1273   :  { %v6070_v52 = vsel %vm79_vm0, %v6062_v18, 0.0 }
0x1274   :  { %v6027_v29 = vpop.xlane.xlu0 %6026  ;;  %6071 = vadd.xlane.f32.xlu2 %v6070_v52 }
0x1275   :  { %v6047_v22 = vmul.f32 %v6027_v29, %v11905_v15  ;;  %v6007_v54 = vpop.f32.mrf.mxu2 }
0x1276   :  { %v6008_v19 = vadd.f32 %v7772_v61, %v6007_v54 }
0x1277   :  { %v10779_v16 = vsub.f32 %v10741_v43, %v6047_v22 }
0x1278   :  { %v10782_v13 = vadd.f32 %v6008_v19, %v11906_v31 }
0x1279   :  { %v6063_v8 = vmul.f32 %v10779_v16, %v10779_v16 }
0x127a   :  { %11907 = vst [vmem:[#allocation9_spill] sm:$0xff] %v10782_v13  ;;  %v6043_v60 = vsel %vm79_vm0, %v10782_v13, 0.0 }
0x127b   :  { %v6073_v35 = vsel %vm79_vm0, %v6063_v8, 0.0 }
0x127c   :  { %6074 = vadd.xlane.f32.xlu1 %v6073_v35  ;;  %6044 = vadd.xlane.f32.xlu2 %v6043_v60  ;;  %v10860_v35 = vld [vmem:[%s11824_s7 + $0x1] ss:$0 sm:$0xff] }
0x12ac   :  { %v6030_v41 = vpop.xlane.xlu1 %6029 }
0x12ad   :  { %v6048_v4 = vmul.f32 %v6030_v41, %v11905_v15 }
0x12af   :  { %v10791_v12 = vsub.f32 %v10746_v33, %v6048_v4 }
0x12b1   :  { %v6064_v45 = vmul.f32 %v10791_v12, %v10791_v12 }
0x12b3   :  { %v6076_v42 = vsel %vm79_vm0, %v6064_v45, 0.0  ;;  %v10865_v45 = vld [vmem:[%s11825_s8 + $0x1] ss:$0 sm:$0xff] }
0x12b4   :  { %6077 = vadd.xlane.f32.xlu0 %v6076_v42  ;;  %v6033_v36 = vpop.xlane.xlu2 %6032 }
0x12b5   :  { %v6049_v2 = vmul.f32 %v6033_v36, %v11905_v15 }
0x12b7   :  { %v10798_v9 = vsub.f32 %v10751_v30, %v6049_v2 }
0x12b9   :  { %v6065_v7 = vmul.f32 %v10798_v9, %v10798_v9 }
0x12bb   :  { %v6079_v0 = vsel %vm79_vm0, %v6065_v7, 0.0 }
0x12bc   :  { %v6036_v28 = vpop.xlane.xlu0 %6035  ;;  %6080 = vadd.xlane.f32.xlu1 %v6079_v0 }
0x12bd   :  { %v6050_v10 = vmul.f32 %v6036_v28, %v11905_v15 }
0x12bf   :  { %v10805_v63 = vsub.f32 %v10756_v62, %v6050_v10 }
0x12c1   :  { %v6066_v21 = vmul.f32 %v10805_v63, %v10805_v63 }
0x12c3   :  { %v6082_v56 = vsel %vm79_vm0, %v6066_v21, 0.0 }
0x12c4   :  { %v6039_v53 = vpop.xlane.xlu1 %6038  ;;  %6083 = vadd.xlane.f32.xlu2 %v6082_v56 }
0x12c5   :  { %v6051_v38 = vmul.f32 %v6039_v53, %v11905_v15 }
0x12c7   :  { %v10812_v57 = vsub.f32 %v10761_v59, %v6051_v38 }
0x12c9   :  { %v6067_v61 = vmul.f32 %v10812_v57, %v10812_v57 }
0x12cb   :  { %v6085_v23 = vsel %vm79_vm0, %v6067_v61, 0.0 }
0x12cc   :  { %v6042_v48 = vpop.xlane.xlu0 %6041  ;;  %6086 = vadd.xlane.f32.xlu0 %v6085_v23 }
0x12cd   :  { %v6052_v44 = vmul.f32 %v6042_v48, %v11905_v15 }
0x12cf   :  { %v10819_v17 = vsub.f32 %v10766_v14, %v6052_v44 }
0x12d1   :  { %v6068_v6 = vmul.f32 %v10819_v17, %v10819_v17 }
0x12d3   :  { %v6088_v11 = vsel %vm79_vm0, %v6068_v6, 0.0 }
0x12d4   :  { %6089 = vadd.xlane.f32.xlu1 %v6088_v11 }
0x12e7   :  { %v6072_v34 = vpop.xlane.xlu2 %6071 }
0x12e8   :  { %v6094_v49 = vmul.f32 %v6072_v34, %v11905_v15 }
0x12ea   :  { %v6102_v26 = vadd.f32 1e-05, %v6094_v49 }
0x12ec   :  { %8114 = vrsqrt.f32 %v6102_v26  ;;  %vm6116_vm7 = vweird.f32 %v6102_v26 }
0x12ef   :  { %v6075_v47 = vpop.xlane.xlu1 %6074  ;;  %v6045_v25 = vpop.xlane.xlu2 %6044 }
0x12f0   :  { %v6095_v51 = vmul.f32 %v6075_v47, %v11905_v15  ;;  %v6053_v20 = vmul.f32 %v6045_v25, %v11905_v15 }
0x12f2   :  { %v8115_v58 = vpop.eup %8114  ;;  %v6103_v37 = vadd.f32 1e-05, %v6095_v51  ;;  %v10852_v50 = vsub.f32 %v10782_v13, %v6053_v20 }
0x12f3   :  { %v6111_v18 = vmul.f32 %v8115_v58, %v6102_v26  ;;  %vm6117_vm6 = vweird.f32 %v8115_v58 }
0x12f4   :  { %8116 = vrsqrt.f32 %v6103_v37  ;;  %v6069_v52 = vmul.f32 %v10852_v50, %v10852_v50  ;;  %vm6118_vm8 = vmor %vm6116_vm7, %vm6117_vm6  ;;  %vm6126_vm10 = vweird.f32 %v6103_v37 }
0x12f5   :  { %v6112_v29 = vmul.f32 %v8115_v58, %v6111_v18 }
0x12f6   :  { %v6091_v22 = vsel %vm79_vm0, %v6069_v52, 0.0 }
0x12f7   :  { %v6113_v54 = vmul.f32 0.5, %v6112_v29  ;;  %6092 = vadd.xlane.f32.xlu2 %v6091_v22 }
0x12f9   :  { %v6114_v19 = vsub.f32 1.5, %v6113_v54 }
0x12fa   :  { %v8117_v31 = vpop.eup %8116 }
0x12fb   :  { %v6115_v8 = vmul.f32 %v8115_v58, %v6114_v19  ;;  %v6121_v60 = vmul.f32 %v8117_v31, %v6103_v37  ;;  %vm6127_vm9 = vweird.f32 %v8117_v31 }
0x12fc   :  { %vm6128_vm11 = vmor %vm6126_vm10, %vm6127_vm9 }
0x12fd   :  { %v6119_v41 = vsel %vm6118_vm8, %v8115_v58, %v6115_v8  ;;  %v6122_v4 = vmul.f32 %v8117_v31, %v6121_v60 }
0x12fe   :  { %v6190_v42 = vmul.f32 %v6119_v41, %v10772_v24 }
0x12ff   :  { %v6123_v36 = vmul.f32 0.5, %v6122_v4 }
0x1300   :  { %v6201_v2 = vmul.f32 %v10860_v35, %v6190_v42 }
0x1301   :  { %v6124_v7 = vsub.f32 1.5, %v6123_v36 }
0x1302   :  { %v6212_v0 = vadd.f32 %v10865_v45, %v6201_v2 }
0x1303   :  { %v6125_v28 = vmul.f32 %v8117_v31, %v6124_v7 }
0x1304   :  { %7668 = vmatmul.msk.f32.vlgmr.msrb.gmra.mxu3 %vm79_vm0, %v6212_v0  ;;  %7676 = vmatmul.msk.f32.vlgmr.msrb.gmra.mxu0 %vm79_vm0, %v6212_v0 }
0x1305   :  { %v6129_v10 = vsel %vm6128_vm11, %v8117_v31, %v6125_v28 }
0x1306   :  { %v6191_v21 = vmul.f32 %v6129_v10, %v10779_v16 }
0x1308   :  { %v6202_v56 = vmul.f32 %v10860_v35, %v6191_v21 }
0x130a   :  { %v6213_v24 = vadd.f32 %v10865_v45, %v6202_v56 }
0x130c   :  { %7669 = vmatmul.msk.f32.gmra.mxu3 %vm79_vm0, %v6213_v24  ;;  %7677 = vmatmul.msk.f32.gmra.mxu0 %vm79_vm0, %v6213_v24 }
0x1327   :  { %v6078_v53 = vpop.xlane.xlu0 %6077 }
0x1328   :  { %v6096_v38 = vmul.f32 %v6078_v53, %v11905_v15 }
0x132a   :  { %v6104_v61 = vadd.f32 1e-05, %v6096_v38 }
0x132c   :  { %8118 = vrsqrt.f32 %v6104_v61  ;;  %vm6136_vm13 = vweird.f32 %v6104_v61 }
0x132f   :  { %v6081_v23 = vpop.xlane.xlu1 %6080 }
0x1330   :  { %v6097_v48 = vmul.f32 %v6081_v23, %v11905_v15 }
0x1332   :  { %v8119_v44 = vpop.eup %8118  ;;  %v6105_v6 = vadd.f32 1e-05, %v6097_v48 }
0x1333   :  { %v6131_v11 = vmul.f32 %v8119_v44, %v6104_v61  ;;  %vm6137_vm12 = vweird.f32 %v8119_v44 }
0x1334   :  { %8120 = vrsqrt.f32 %v6105_v6  ;;  %vm6138_vm14 = vmor %vm6136_vm13, %vm6137_vm12  ;;  %vm6146_vm1 = vweird.f32 %v6105_v6 }
0x1335   :  { %v6132_v16 = vmul.f32 %v8119_v44, %v6131_v11 }
0x1337   :  { %v6133_v27 = vmul.f32 0.5, %v6132_v16  ;;  %v6084_v5 = vpop.xlane.xlu2 %6083 }
0x1338   :  { %v6098_v3 = vmul.f32 %v6084_v5, %v11905_v15 }
0x1339   :  { %v6134_v1 = vsub.f32 1.5, %v6133_v27 }
0x133a   :  { %v8121_v32 = vpop.eup %8120  ;;  %v6106_v40 = vadd.f32 1e-05, %v6098_v3 }
0x133b   :  { %v6135_v39 = vmul.f32 %v8119_v44, %v6134_v1  ;;  %v6141_v46 = vmul.f32 %v8121_v32, %v6105_v6  ;;  %vm6147_vm15 = vweird.f32 %v8121_v32 }
0x133c   :  { %8122 = vrsqrt.f32 %v6106_v40  ;;  %vm6148_vm2 = vmor %vm6146_vm1, %vm6147_vm15  ;;  %vm6156_vm4 = vweird.f32 %v6106_v40 }
0x133d   :  { %v6139_v34 = vsel %vm6138_vm14, %v8119_v44, %v6135_v39  ;;  %v6142_v49 = vmul.f32 %v8121_v32, %v6141_v46 }
0x133e   :  { %v6192_v26 = vmul.f32 %v6139_v34, %v10791_v12 }
0x133f   :  { %v6143_v47 = vmul.f32 0.5, %v6142_v49  ;;  %v6087_v25 = vpop.xlane.xlu0 %6086 }
0x1340   :  { %v6099_v51 = vmul.f32 %v6087_v25, %v11905_v15  ;;  %v6203_v20 = vmul.f32 %v10860_v35, %v6192_v26 }
0x1341   :  { %v6144_v58 = vsub.f32 1.5, %v6143_v47 }
0x1342   :  { %v8123_v37 = vpop.eup %8122  ;;  %v6107_v18 = vadd.f32 1e-05, %v6099_v51  ;;  %v6214_v52 = vadd.f32 %v10865_v45, %v6203_v20 }
0x1343   :  { %v6145_v29 = vmul.f32 %v8121_v32, %v6144_v58  ;;  %v6151_v22 = vmul.f32 %v8123_v37, %v6106_v40  ;;  %vm6157_vm3 = vweird.f32 %v8123_v37 }
0x1344   :  { %8124 = vrsqrt.f32 %v6107_v18  ;;  %7670 = vmatmul.msk.f32.gmra.mxu3 %vm79_vm0, %v6214_v52  ;;  %7678 = vmatmul.msk.f32.gmra.mxu0 %vm79_vm0, %v6214_v52  ;;  %vm6158_vm5 = vmor %vm6156_vm4, %vm6157_vm3  ;;  %vm6166_vm7 = vweird.f32 %v6107_v18  ;;  %v7730_v52 = vld [vmem:[%s11828_s11 + $0x1f0] sm:$0xff] }
0x1345   :  { %v6149_v12 = vsel %vm6148_vm2, %v8121_v32, %v6145_v29  ;;  %v6152_v54 = vmul.f32 %v8123_v37, %v6151_v22 }
0x1346   :  { %v6193_v19 = vmul.f32 %v6149_v12, %v10798_v9  ;;  %v7729_v12 = vld [vmem:[%s11828_s11 + $0x1e8] sm:$0xff] }
0x1347   :  { %v6153_v31 = vmul.f32 0.5, %v6152_v54  ;;  %v6090_v8 = vpop.xlane.xlu1 %6089 }
0x1348   :  { %v6100_v60 = vmul.f32 %v6090_v8, %v11905_v15  ;;  %v6204_v41 = vmul.f32 %v10860_v35, %v6193_v19 }
0x1349   :  { %v6154_v4 = vsub.f32 1.5, %v6153_v31  ;;  %v7715_v31 = vld [vmem:[%s11828_s11 + $0x178] sm:$0xff] }
0x134a   :  { %v8125_v42 = vpop.eup %8124  ;;  %v6108_v36 = vadd.f32 1e-05, %v6100_v60  ;;  %v6215_v2 = vadd.f32 %v10865_v45, %v6204_v41  ;;  %7079 = vmatpush.msra.mxu1 %v7715_v31  ;;  %v7727_v41 = vld [vmem:[%s11828_s11 + $0x1d8] sm:$0xff] }
0x134b   :  { %v6155_v7 = vmul.f32 %v8123_v37, %v6154_v4  ;;  %v6161_v0 = vmul.f32 %v8125_v42, %v6107_v18  ;;  %vm6167_vm6 = vweird.f32 %v8125_v42  ;;  %v7707_v31 = vld [vmem:[%s11828_s11 + $0x138] sm:$0xff] }
0x134c   :  { %8126 = vrsqrt.f32 %v6108_v36  ;;  %7671 = vmatmul.msk.f32.gmra.mxu3 %vm79_vm0, %v6215_v2  ;;  %7679 = vmatmul.msk.f32.gmra.mxu0 %vm79_vm0, %v6215_v2  ;;  %vm6168_vm8 = vmor %vm6166_vm7, %vm6167_vm6  ;;  %vm6176_vm10 = vweird.f32 %v6108_v36  ;;  %v7713_v2 = vld [vmem:[%s11828_s11 + $0x168] sm:$0xff] }
0x134d   :  { %v6159_v9 = vsel %vm6158_vm5, %v8123_v37, %v6155_v7  ;;  %v6162_v28 = vmul.f32 %v8125_v42, %v6161_v0  ;;  %v7726_v7 = vld [vmem:[%s11828_s11 + $0x1d0] sm:$0xff] }
0x134e   :  { %v6194_v10 = vmul.f32 %v6159_v9, %v10805_v63 }
0x134f   :  { %v6163_v21 = vmul.f32 0.5, %v6162_v28 }
0x1350   :  { %v6205_v56 = vmul.f32 %v10860_v35, %v6194_v10 }
0x1351   :  { %v6164_v24 = vsub.f32 1.5, %v6163_v21  ;;  %v7712_v21 = vld [vmem:[%s11828_s11 + $0x160] sm:$0xff] }
0x1352   :  { %v8127_v53 = vpop.eup %8126  ;;  %v6216_v38 = vadd.f32 %v10865_v45, %v6205_v56  ;;  %v7725_v56 = vld [vmem:[%s11828_s11 + $0x1c8] sm:$0xff] }
0x1353   :  { %v6165_v61 = vmul.f32 %v8125_v42, %v6164_v24  ;;  %v6171_v23 = vmul.f32 %v8127_v53, %v6108_v36  ;;  %vm6177_vm9 = vweird.f32 %v8127_v53 }
0x1354   :  { %7672 = vmatmul.msk.f32.gmra.mxu3 %vm79_vm0, %v6216_v38  ;;  %7680 = vmatmul.msk.f32.gmra.mxu0 %vm79_vm0, %v6216_v38  ;;  %vm6178_vm11 = vmor %vm6176_vm10, %vm6177_vm9 }
0x1355   :  { %v6169_v48 = vsel %vm6168_vm8, %v8125_v42, %v6165_v61  ;;  %v6172_v44 = vmul.f32 %v8127_v53, %v6171_v23  ;;  %v7711_v23 = vld [vmem:[%s11828_s11 + $0x158] sm:$0xff] }
0x1356   :  { %v6195_v63 = vmul.f32 %v6169_v48, %v10812_v57  ;;  %v7724_v48 = vld [vmem:[%s11828_s11 + $0x1c0] sm:$0xff] }
0x1357   :  { %v6173_v6 = vmul.f32 0.5, %v6172_v44 }
0x1358   :  { %v6206_v11 = vmul.f32 %v10860_v35, %v6195_v63 }
0x1359   :  { %v6174_v16 = vsub.f32 1.5, %v6173_v6 }
0x135a   :  { %v6217_v27 = vadd.f32 %v10865_v45, %v6206_v11 }
0x135b   :  { %v6175_v5 = vmul.f32 %v8127_v53, %v6174_v16 }
0x135c   :  { %7673 = vmatmul.msk.f32.gmra.mxu3 %vm79_vm0, %v6217_v27  ;;  %7681 = vmatmul.msk.f32.gmra.mxu0 %vm79_vm0, %v6217_v27  ;;  %v7710_v27 = vld [vmem:[%s11828_s11 + $0x150] sm:$0xff] }
0x135d   :  { %v6179_v3 = vsel %vm6178_vm11, %v8127_v53, %v6175_v5  ;;  %v7723_v5 = vld [vmem:[%s11828_s11 + $0x1b8] sm:$0xff] }
0x135e   :  { %v6196_v1 = vmul.f32 %v6179_v3, %v10819_v17  ;;  %v7667_v17 = vld [vmem:[%s11827_s10 + $0x2] sm:$0x3] }
0x135f   :  { %v10911_v20 = vperm.slane %v7667_v17, 1  ;;  %v10930_v19 = vperm.slane %v7667_v17, 0 }
0x1360   :  { %v6207_v32 = vmul.f32 %v10860_v35, %v6196_v1 }
0x1362   :  { %v6218_v57 = vadd.f32 %v10865_v45, %v6207_v32 }
0x1364   :  { %7674 = vmatmul.msk.f32.gmra.mxu3 %vm79_vm0, %v6218_v57  ;;  %7682 = vmatmul.msk.f32.gmra.mxu0 %vm79_vm0, %v6218_v57 }
0x136a   :  { %v6093_v40 = vpop.xlane.xlu2 %6092 }
0x136b   :  { %v6101_v39 = vmul.f32 %v6093_v40, %v11905_v15  ;;  %v7731_v15 = vld [vmem:[%s11828_s11 + $0x1f8] sm:$0xff] }
0x136c   :  { %7120 = vmatpush.msrb.mxu2 %v7731_v15 }
0x136d   :  { %v6109_v46 = vadd.f32 1e-05, %v6101_v39 }
0x136e   :  { %7121 = vmatpush.msrb.mxu2 %v7730_v52 }
0x136f   :  { %8128 = vrsqrt.f32 %v6109_v46  ;;  %vm6186_vm13 = vweird.f32 %v6109_v46 }
0x1370   :  { %7122 = vmatpush.msrb.mxu2 %v7729_v12  ;;  %v7708_v12 = vld [vmem:[%s11828_s11 + $0x140] sm:$0xff] }
0x1375   :  { %v8129_v34 = vpop.eup %8128 }
0x1376   :  { %v6181_v49 = vmul.f32 %v8129_v34, %v6109_v46  ;;  %vm6187_vm12 = vweird.f32 %v8129_v34  ;;  %v7709_v46 = vld [vmem:[%s11828_s11 + $0x148] sm:$0xff] }
0x1377   :  { %vm6188_vm14 = vmor %vm6186_vm13, %vm6187_vm12 }
0x1378   :  { %v6182_v26 = vmul.f32 %v8129_v34, %v6181_v49 }
0x137a   :  { %v6183_v47 = vmul.f32 0.5, %v6182_v26 }
0x137c   :  { %v6184_v25 = vsub.f32 1.5, %v6183_v47  ;;  %v7722_v47 = vld [vmem:[%s11828_s11 + $0x1b0] sm:$0xff] }
0x137e   :  { %v6185_v51 = vmul.f32 %v8129_v34, %v6184_v25 }
0x1380   :  { %v6189_v58 = vsel %vm6188_vm14, %v8129_v34, %v6185_v51 }
0x1381   :  { %v6197_v37 = vmul.f32 %v6189_v58, %v10852_v50  ;;  %v6318_v18 = vpop.f32.mrf.mxu0 }
0x1382   :  { %v10921_v29 = vadd.f32 %v6318_v18, %v10911_v20 }
0x1383   :  { %v6208_v22 = vmul.f32 %v10860_v35, %v6197_v37  ;;  %v7728_v35 = vld [vmem:[%s11828_s11 + $0x1e0] sm:$0xff] }
0x1384   :  { %v10928_v54 = vmul.f32 0.70710677, %v10921_v29  ;;  %7123 = vmatpush.msrb.mxu2 %v7728_v35 }
0x1385   :  { %v6219_v50 = vadd.f32 %v10865_v45, %v6208_v22  ;;  %v7714_v45 = vld [vmem:[%s11828_s11 + $0x170] sm:$0xff] }
0x1386   :  { %v6414_v8 = vmul.f32 %v10928_v54, %v10928_v54  ;;  %7080 = vmatpush.msra.mxu1 %v7714_v45  ;;  %7124 = vmatpush.msrb.mxu2 %v7727_v41  ;;  %v7720_v41 = vld [vmem:[%s11828_s11 + $0x1a0] sm:$0xff] }
0x1387   :  { %v6277_v60 = vpop.f32.mrf.mxu3  ;;  %7675 = vmatmul.msk.f32.gmra.mxu3 %vm79_vm0, %v6219_v50  ;;  %7683 = vmatmul.msk.f32.gmra.mxu0 %vm79_vm0, %v6219_v50  ;;  %v7721_v50 = vld [vmem:[%s11828_s11 + $0x1a8] sm:$0xff] }
0x1388   :  { %v10949_v4 = vmin.f32 %v6414_v8, 16.0  ;;  %v10952_v42 = vadd.f32 %v6277_v60, %v10930_v19  ;;  %7081 = vmatpush.msra.mxu1 %v7713_v2  ;;  %7125 = vmatpush.msrb.mxu2 %v7726_v7 }
0x1389   :  { %v6321_v36 = vpop.f32.mrf.mxu0 }
0x138a   :  { %v6416_v0 = vmul.f32 2.1237322e-06, %v10949_v4  ;;  %v6427_v9 = vmul.f32 3.8918573e-05, %v10949_v4  ;;  %v10963_v28 = vadd.f32 %v6321_v36, %v10911_v20  ;;  %v10966_v10 = vmul.f32 0.70710677, %v10952_v42  ;;  %7082 = vmatpush.msra.mxu1 %v7712_v21  ;;  %7126 = vmatpush.msrb.mxu2 %v7725_v56 }
0x138c   :  { %v6417_v24 = vadd.f32 0.00028619796, %v6416_v0  ;;  %v6428_v53 = vadd.f32 0.001143296, %v6427_v9  ;;  %v6374_v38 = vmul.f32 %v10966_v10, %v10966_v10  ;;  %v10977_v61 = vmul.f32 0.70710677, %v10963_v28  ;;  %7083 = vmatpush.msra.mxu1 %v7711_v23  ;;  %7127 = vmatpush.msrb.mxu2 %v7724_v48 }
0x138d   :  { %v7706_v0 = vld [vmem:[%s11828_s11 + $0x130] sm:$0xff]  ;;  %v7719_v9 = vld [vmem:[%s11828_s11 + $0x198] sm:$0xff]  ;;  %v7705_v23 = vld [vmem:[%s11828_s11 + $0x128] sm:$0xff] }
0x138e   :  { %v6418_v44 = vmul.f32 %v6417_v24, %v10949_v4  ;;  %v6429_v63 = vmul.f32 %v6428_v53, %v10949_v4  ;;  %v10987_v6 = vmin.f32 %v6374_v38, 16.0  ;;  %v6494_v11 = vmul.f32 %v10977_v61, %v10977_v61  ;;  %7084 = vmatpush.msra.mxu1 %v7710_v27  ;;  %7128 = vmatpush.msrb.mxu2 %v7723_v5  ;;  %v7718_v48 = vld [vmem:[%s11828_s11 + $0x190] sm:$0xff] }
0x138f   :  { %v6280_v16 = vpop.f32.mrf.mxu3 }
0x1390   :  { %v6419_v3 = vadd.f32 0.0036580483, %v6418_v44  ;;  %v6430_v1 = vadd.f32 0.014752088, %v6429_v63  ;;  %v10998_v32 = vadd.f32 %v6280_v16, %v10930_v19  ;;  %v6376_v57 = vmul.f32 2.1237322e-06, %v10987_v6  ;;  %7085 = vmatpush.msra.mxu1 %v7709_v46  ;;  %7129 = vmatpush.msrb.mxu2 %v7722_v47 }
0x1391   :  { %v6387_v40 = vmul.f32 3.8918573e-05, %v10987_v6  ;;  %v11002_v39 = vmin.f32 %v6494_v11, 16.0  ;;  %v7704_v46 = vld [vmem:[%s11828_s11 + $0x120] sm:$0xff]  ;;  %v7703_v47 = vld [vmem:[%s11828_s11 + $0x118] sm:$0xff] }
0x1392   :  { %v6420_v34 = vmul.f32 %v6419_v3, %v10949_v4  ;;  %v6431_v49 = vmul.f32 %v6430_v1, %v10949_v4  ;;  %v11010_v26 = vmul.f32 0.70710677, %v10998_v32  ;;  %v6377_v17 = vadd.f32 0.00028619796, %v6376_v57  ;;  %7086 = vmatpush.msra.mxu1 %v7708_v12  ;;  %7130 = vmatpush.msrb.mxu2 %v7721_v50  ;;  %v7701_v50 = vld [vmem:[%s11828_s11 + $0x108] sm:$0xff] }
0x1393   :  { %v6388_v25 = vadd.f32 0.001143296, %v6387_v40  ;;  %v6496_v51 = vmul.f32 2.1237322e-06, %v11002_v39  ;;  %v6507_v58 = vmul.f32 3.8918573e-05, %v11002_v39 }
0x1394   :  { %v6432_v15 = vadd.f32 0.112945676, %v6431_v49  ;;  %v6454_v37 = vmul.f32 %v11010_v26, %v11010_v26  ;;  %v6378_v18 = vmul.f32 %v6377_v17, %v10987_v6  ;;  %v6421_v35 = vadd.f32 0.05243302, %v6420_v34  ;;  %7087 = vmatpush.msra.mxu1 %v7707_v31  ;;  %7131 = vmatpush.msrb.mxu2 %v7720_v41  ;;  %v7717_v34 = vld [vmem:[%s11828_s11 + $0x188] sm:$0xff]  ;;  %v7716_v17 = vld [vmem:[%s11828_s11 + $0x180] sm:$0xff] }
0x1395   :  { %v6389_v52 = vmul.f32 %v6388_v25, %v10987_v6  ;;  %v6497_v22 = vadd.f32 0.00028619796, %v6496_v51  ;;  %v6508_v60 = vadd.f32 0.001143296, %v6507_v58 }
0x1396   :  { %v6433_v8 = vmul.f32 %v6432_v15, %v10949_v4  ;;  %v11031_v45 = vmin.f32 %v6454_v37, 16.0  ;;  %v6379_v36 = vadd.f32 0.0036580483, %v6378_v18  ;;  %v6422_v44 = vmul.f32 %v6421_v35, %v10949_v4  ;;  %7088 = vmatpush.msra.mxu1 %v7706_v0  ;;  %7132 = vmatpush.msrb.mxu2 %v7719_v9  ;;  %v7702_v37 = vld [vmem:[%s11828_s11 + $0x110] sm:$0xff] }
0x1397   :  { %v6390_v2 = vadd.f32 0.014752088, %v6389_v52  ;;  %v6498_v7 = vmul.f32 %v6497_v22, %v11002_v39  ;;  %v6509_v56 = vmul.f32 %v6508_v60, %v11002_v39 }
0x1398   :  { %v6434_v21 = vadd.f32 0.4994258, %v6433_v8  ;;  %v6456_v24 = vmul.f32 2.1237322e-06, %v11031_v45  ;;  %v6467_v38 = vmul.f32 3.8918573e-05, %v11031_v45  ;;  %v6380_v16 = vmul.f32 %v6379_v36, %v10987_v6  ;;  %7089 = vmatpush.msra.mxu1 %v7705_v23  ;;  %7133 = vmatpush.msrb.mxu2 %v7718_v48 }
0x1399   :  { %v6391_v53 = vmul.f32 %v6390_v2, %v10987_v6  ;;  %v6510_v11 = vadd.f32 0.014752088, %v6509_v56  ;;  %v6499_v5 = vadd.f32 0.0036580483, %v6498_v7  ;;  %v6423_v25 = vadd.f32 0.18741608, %v6422_v44 }
0x139a   :  { %v6435_v63 = vmul.f32 %v6434_v21, %v10949_v4  ;;  %v6468_v3 = vadd.f32 0.001143296, %v6467_v38  ;;  %v6457_v40 = vadd.f32 0.00028619796, %v6456_v24  ;;  %7090 = vmatpush.msra.mxu1 %v7704_v46  ;;  %7134 = vmatpush.msrb.mxu2 %v7717_v34  ;;  %v6381_v15 = vadd.f32 0.05243302, %v6380_v16 }
0x139b   :  { %v6392_v27 = vadd.f32 0.112945676, %v6391_v53  ;;  %v6511_v57 = vmul.f32 %v6510_v11, %v11002_v39  ;;  %v6500_v18 = vmul.f32 %v6499_v5, %v11002_v39  ;;  %v6424_v31 = vmul.f32 %v6423_v25, %v10949_v4  ;;  %v7700_v36 = vld [vmem:[%s11828_s11 + $0x100] sm:$0xff] }
0x139c   :  { %v11056_v1 = vadd.f32 1.0, %v6435_v63  ;;  %v6469_v51 = vmul.f32 %v6468_v3, %v11031_v45  ;;  %v6458_v22 = vmul.f32 %v6457_v40, %v11031_v45  ;;  %7091 = vmatpush.msra.mxu1 %v7703_v47  ;;  %7135 = vmatpush.msrb.mxu2 %v7716_v17  ;;  %v6382_v60 = vmul.f32 %v6381_v15, %v10987_v6 }
0x139d   :  { %v6393_v49 = vmul.f32 %v6392_v27, %v10987_v6  ;;  %v6512_v52 = vadd.f32 0.112945676, %v6511_v57  ;;  %v6501_v7 = vadd.f32 0.05243302, %v6500_v18  ;;  %v6425_v56 = vadd.f32 1.1283791, %v6424_v31 }
0x139e   :  { %8130 = vrcp.f32 %v11056_v1  ;;  %v6470_v8 = vadd.f32 0.014752088, %v6469_v51  ;;  %7092 = vmatpush.msra.mxu1 %v7702_v37  ;;  %v6459_v9 = vadd.f32 0.0036580483, %v6458_v22  ;;  %v6383_v53 = vadd.f32 0.18741608, %v6382_v60 }
0x139f   :  { %v6394_v58 = vadd.f32 0.4994258, %v6393_v49  ;;  %v6513_v35 = vmul.f32 %v6512_v52, %v11002_v39  ;;  %v6446_v48 = vand.u32 2147483647, %v11056_v1  ;;  %v6448_v44 = vand.u32 2147483648, %v11056_v1 }
0x13a0   :  { %v6471_v21 = vmul.f32 %v6470_v8, %v11031_v45  ;;  %7093 = vmatpush.msra.mxu1 %v7701_v50  ;;  %v6502_v63 = vmul.f32 %v6501_v7, %v11002_v39  ;;  %v6460_v11 = vmul.f32 %v6459_v9, %v11031_v45  ;;  %vm6442_vm1 = vweird.f32 %v11056_v1 }
0x13a1   :  { %v6395_v12 = vmul.f32 %v6394_v58, %v10987_v6  ;;  %v6514_v0 = vadd.f32 0.4994258, %v6513_v35  ;;  %v6384_v40 = vmul.f32 %v6383_v53, %v10987_v6  ;;  %v6426_v46 = vmul.f32 %v6425_v56, %v10928_v54 }
0x13a2   :  { %7094 = vmatpush.msra.mxu1 %v7700_v36  ;;  %v6472_v23 = vadd.f32 0.112945676, %v6471_v21  ;;  %v6449_v34 = vor.u32 1.1754944e-38, %v6448_v44  ;;  %v6503_v47 = vadd.f32 0.18741608, %v6502_v63  ;;  %vm6447_vm3 = vcmp.eq.f32.partialorder %v6446_v48, 8.507059e+37 }
0x13a3   :  { %v11086_v41 = vadd.f32 1.0, %v6395_v12  ;;  %v6515_v38 = vmul.f32 %v6514_v0, %v11002_v39  ;;  %v6461_v25 = vadd.f32 0.05243302, %v6460_v11  ;;  %v6385_v18 = vadd.f32 1.1283791, %v6384_v40 }
0x13a4   :  { %v8131_v2 = vpop.eup %8130  ;;  %v6473_v5 = vmul.f32 %v6472_v23, %v11031_v45  ;;  %v6504_v22 = vmul.f32 %v6503_v47, %v11002_v39  ;;  %v6343_v8 = vmul.f32 0.5, %v10921_v29  ;;  %v6342_v44 = vmul.f32 0.5, %v10952_v42 }
0x13a5   :  { %v6438_v4 = vmul.f32 %v8131_v2, %v11056_v1  ;;  %8132 = vrcp.f32 %v11086_v41  ;;  %vm6443_vm15 = vweird.f32 %v8131_v2  ;;  %v11099_v27 = vadd.f32 1.0, %v6515_v38 }
0x13a6   :  { %vm6444_vm2 = vmor %vm6442_vm1, %vm6443_vm15  ;;  %v6474_v51 = vadd.f32 0.4994258, %v6473_v5  ;;  %v6408_v1 = vand.u32 2147483648, %v11086_v41  ;;  %v6406_v54 = vand.u32 2147483647, %v11086_v41  ;;  %v6462_v31 = vmul.f32 %v6461_v25, %v11031_v45 }
0x13a7   :  { %v6439_v24 = vsub.f32 1.0, %v6438_v4  ;;  %8134 = vrcp.f32 %v11099_v27  ;;  %vm6402_vm5 = vweird.f32 %v11086_v41  ;;  %v6386_v7 = vmul.f32 %v6385_v18, %v10966_v10 }
0x13a8   :  { %v6475_v6 = vmul.f32 %v6474_v51, %v11031_v45  ;;  %v6409_v0 = vor.u32 1.1754944e-38, %v6408_v1  ;;  %vm6407_vm7 = vcmp.eq.f32.partialorder %v6406_v54, 8.507059e+37  ;;  %v6505_v39 = vadd.f32 1.1283791, %v6504_v22 }
0x13a9   :  { %v6440_v16 = vmul.f32 %v8131_v2, %v6439_v24  ;;  %v6528_v24 = vand.u32 2147483648, %v11099_v27  ;;  %v6463_v29 = vadd.f32 0.18741608, %v6462_v31  ;;  %vm6522_vm9 = vweird.f32 %v11099_v27 }
0x13aa   :  { %v6476_v35 = vadd.f32 1.0, %v6475_v6  ;;  %v6506_v63 = vmul.f32 %v6505_v39, %v10977_v61  ;;  %v6345_v61 = vmul.f32 0.5, %v10963_v28 }
0x13ab   :  { %v8133_v3 = vpop.eup %8132  ;;  %v6441_v57 = vadd.f32 %v8131_v2, %v6440_v16  ;;  %v6529_v11 = vor.u32 1.1754944e-38, %v6528_v24  ;;  %v6464_v16 = vmul.f32 %v6463_v29, %v11031_v45 }
0x13ac   :  { %v6398_v49 = vmul.f32 %v8133_v3, %v11086_v41  ;;  %vm6403_vm4 = vweird.f32 %v8133_v3  ;;  %8136 = vrcp.f32 %v6476_v35  ;;  %v6526_v41 = vand.u32 2147483647, %v11099_v27 }
0x13ad   :  { %v6445_v17 = vsel %vm6444_vm2, %v8131_v2, %v6441_v57  ;;  %v8135_v12 = vpop.eup %8134  ;;  %vm6404_vm6 = vmor %vm6402_vm5, %vm6403_vm4  ;;  %v6465_v47 = vadd.f32 1.1283791, %v6464_v16  ;;  %v6486_v25 = vand.u32 2147483647, %v6476_v35  ;;  %vm6482_vm13 = vweird.f32 %v6476_v35 }
0x13ae   :  { %v6450_v15 = vsel %vm6447_vm3, %v6449_v34, %v6445_v17  ;;  %v6399_v58 = vsub.f32 1.0, %v6398_v49  ;;  %v6518_v36 = vmul.f32 %v8135_v12, %v11099_v27  ;;  %vm6523_vm8 = vweird.f32 %v8135_v12 }
0x13af   :  { %v6451_v37 = vmul.f32 %v6450_v15, %v6426_v46  ;;  %vm6524_vm10 = vmor %vm6522_vm9, %vm6523_vm8  ;;  %vm6527_vm11 = vcmp.eq.f32.partialorder %v6526_v41, 8.507059e+37  ;;  %v6488_v17 = vand.u32 2147483648, %v6476_v35  ;;  %vm6487_vm15 = vcmp.eq.f32.partialorder %v6486_v25, 8.507059e+37 }
0x13b0   :  { %v6400_v52 = vmul.f32 %v8133_v3, %v6399_v58  ;;  %v6519_v21 = vsub.f32 1.0, %v6518_v36 }
0x13b1   :  { %v7685_v50 = vclamps-f32 %v6451_v37, 1.0  ;;  %v6466_v37 = vmul.f32 %v6465_v47, %v11010_v26  ;;  %v6489_v18 = vor.u32 1.1754944e-38, %v6488_v17 }
0x13b2   :  { %v6401_v60 = vadd.f32 %v8133_v3, %v6400_v52  ;;  %v6520_v38 = vmul.f32 %v8135_v12, %v6519_v21  ;;  %v8137_v48 = vpop.eup %8136 }
0x13b3   :  { %v7015_v2 = vadd.f32 1.0, %v7685_v50  ;;  %v6478_v57 = vmul.f32 %v8137_v48, %v6476_v35  ;;  %vm6483_vm12 = vweird.f32 %v8137_v48 }
0x13b4   :  { %v6405_v9 = vsel %vm6404_vm6, %v8133_v3, %v6401_v60  ;;  %v6521_v10 = vadd.f32 %v8135_v12, %v6520_v38  ;;  %vm6484_vm14 = vmor %vm6482_vm13, %vm6483_vm12 }
0x13b5   :  { %v7031_v4 = vmul.f32 %v7015_v2, %v6343_v8  ;;  %v6410_v56 = vsel %vm6407_vm7, %v6409_v0, %v6405_v9  ;;  %v6479_v49 = vsub.f32 1.0, %v6478_v57  ;;  %v6344_v8 = vmul.f32 0.5, %v10998_v32 }
0x13b6   :  { %v6411_v53 = vmul.f32 %v6410_v56, %v6386_v7  ;;  %v6525_v3 = vsel %vm6524_vm10, %v8135_v12, %v6521_v10 }
0x13b7   :  { %7136 = vmatmul.f32.vlgmr.msrb.gmra.mxu2 %v7031_v4  ;;  %v6530_v40 = vsel %vm6527_vm11, %v6529_v11, %v6525_v3  ;;  %v6480_v27 = vmul.f32 %v8137_v48, %v6479_v49 }
0x13b8   :  { %v7684_v23 = vclamps-f32 %v6411_v53, 1.0  ;;  %v6531_v34 = vmul.f32 %v6530_v40, %v6506_v63 }
0x13b9   :  { %v6481_v15 = vadd.f32 %v8137_v48, %v6480_v27 }
0x13ba   :  { %v7014_v5 = vadd.f32 1.0, %v7684_v23  ;;  %v7687_v42 = vclamps-f32 %v6531_v34, 1.0 }
0x13bb   :  { %v6485_v1 = vsel %vm6484_vm14, %v8137_v48, %v6481_v15 }
0x13bc   :  { %v7030_v46 = vmul.f32 %v7014_v5, %v6342_v44  ;;  %v7017_v45 = vadd.f32 1.0, %v7687_v42  ;;  %v6490_v54 = vsel %vm6487_vm15, %v6489_v18, %v6485_v1 }
0x13bd   :  { %v6491_v22 = vmul.f32 %v6490_v54, %v6466_v37 }
0x13be   :  { %7095 = vmatmul.f32.vlgmr.msra.gmra.mxu1 %v7030_v46  ;;  %v7033_v6 = vmul.f32 %v7017_v45, %v6345_v61 }
0x13bf   :  { %v7686_v50 = vclamps-f32 %v6491_v22, 1.0 }
0x13c0   :  { %7139 = vmatmul.f32.gmra.mxu2 %v7033_v6 }
0x13c1   :  { %v6324_v51 = vpop.f32.mrf.mxu0  ;;  %v7016_v60 = vadd.f32 1.0, %v7686_v50 }
0x13c2   :  { %v11124_v58 = vadd.f32 %v6324_v51, %v10911_v20 }
0x13c3   :  { %v7032_v9 = vmul.f32 %v7016_v60, %v6344_v8 }
0x13c4   :  { %v11128_v52 = vmul.f32 0.70710677, %v11124_v58 }
0x13c6   :  { %v6574_v28 = vmul.f32 %v11128_v52, %v11128_v52  ;;  %7098 = vmatmul.f32.gmra.mxu1 %v7032_v9 }
0x13c7   :  { %v6283_v12 = vpop.f32.mrf.mxu3 }
0x13c8   :  { %v11132_v31 = vmin.f32 %v6574_v28, 16.0  ;;  %v11135_v26 = vadd.f32 %v6283_v12, %v10930_v19 }
0x13c9   :  { %v6327_v35 = vpop.f32.mrf.mxu0 }
0x13ca   :  { %v6576_v36 = vmul.f32 2.1237322e-06, %v11132_v31  ;;  %v6587_v2 = vmul.f32 3.8918573e-05, %v11132_v31  ;;  %v11141_v7 = vmul.f32 0.70710677, %v11135_v26  ;;  %v11144_v0 = vadd.f32 %v6327_v35, %v10911_v20 }
0x13cc   :  { %v6588_v39 = vadd.f32 0.001143296, %v6587_v2  ;;  %v6577_v21 = vadd.f32 0.00028619796, %v6576_v36  ;;  %v6534_v4 = vmul.f32 %v11141_v7, %v11141_v7  ;;  %v11149_v56 = vmul.f32 0.70710677, %v11144_v0 }
0x13ce   :  { %v6589_v32 = vmul.f32 %v6588_v39, %v11132_v31  ;;  %v11152_v24 = vmin.f32 %v6534_v4, 16.0  ;;  %v6654_v29 = vmul.f32 %v11149_v56, %v11149_v56  ;;  %v6578_v23 = vmul.f32 %v6577_v21, %v11132_v31 }
0x13cf   :  { %v6286_v53 = vpop.f32.mrf.mxu3 }
0x13d0   :  { %v6590_v38 = vadd.f32 0.014752088, %v6589_v32  ;;  %v11157_v41 = vadd.f32 %v6286_v53, %v10930_v19  ;;  %v6536_v10 = vmul.f32 2.1237322e-06, %v11152_v24  ;;  %v6547_v48 = vmul.f32 3.8918573e-05, %v11152_v24 }
0x13d1   :  { %v11162_v44 = vmin.f32 %v6654_v29, 16.0  ;;  %v6579_v34 = vadd.f32 0.0036580483, %v6578_v23  ;;  %v6330_v45 = vpop.f32.mrf.mxu0 }
0x13d2   :  { %v6591_v63 = vmul.f32 %v6590_v38, %v11132_v31  ;;  %v11166_v11 = vmul.f32 0.70710677, %v11157_v41  ;;  %v6537_v16 = vadd.f32 0.00028619796, %v6536_v10  ;;  %v6548_v5 = vadd.f32 0.001143296, %v6547_v48 }
0x13d3   :  { %v6656_v3 = vmul.f32 2.1237322e-06, %v11162_v44  ;;  %v6667_v40 = vmul.f32 3.8918573e-05, %v11162_v44  ;;  %v6580_v37 = vmul.f32 %v6579_v34, %v11132_v31  ;;  %v6331_v35 = vadd.f32 %v6330_v45, %v10911_v20 }
0x13d4   :  { %v6592_v57 = vadd.f32 0.112945676, %v6591_v63  ;;  %v6614_v46 = vmul.f32 %v11166_v11, %v11166_v11  ;;  %v6549_v49 = vmul.f32 %v6548_v5, %v11152_v24  ;;  %v6538_v42 = vmul.f32 %v6537_v16, %v11152_v24 }
0x13d5   :  { %v6657_v47 = vadd.f32 0.00028619796, %v6656_v3  ;;  %v6668_v27 = vadd.f32 0.001143296, %v6667_v40  ;;  %v6581_v60 = vadd.f32 0.05243302, %v6580_v37 }
0x13d6   :  { %v6593_v17 = vmul.f32 %v6592_v57, %v11132_v31  ;;  %v11174_v25 = vmin.f32 %v6614_v46, 16.0  ;;  %v6550_v61 = vadd.f32 0.014752088, %v6549_v49  ;;  %v6539_v28 = vadd.f32 0.0036580483, %v6538_v42 }
0x13d7   :  { %v6669_v15 = vmul.f32 %v6668_v27, %v11162_v44  ;;  %v6658_v1 = vmul.f32 %v6657_v47, %v11162_v44  ;;  %v11191_v32 = vmul.f32 0.70710677, %v6331_v35  ;;  %v6582_v53 = vmul.f32 %v6581_v60, %v11132_v31  ;;  %v6289_v34 = vpop.f32.mrf.mxu3 }
0x13d8   :  { %v6594_v51 = vadd.f32 0.4994258, %v6593_v17  ;;  %v6551_v18 = vmul.f32 %v6550_v61, %v11152_v24  ;;  %v6627_v6 = vmul.f32 3.8918573e-05, %v11174_v25  ;;  %v6616_v39 = vmul.f32 2.1237322e-06, %v11174_v25 }
0x13d9   :  { %v6670_v22 = vadd.f32 0.014752088, %v6669_v15  ;;  %v6659_v2 = vadd.f32 0.0036580483, %v6658_v1  ;;  %v6540_v4 = vmul.f32 %v6539_v28, %v11152_v24  ;;  %v6734_v16 = vmul.f32 %v11191_v32, %v11191_v32 }
0x13da   :  { %v6595_v54 = vmul.f32 %v6594_v51, %v11132_v31  ;;  %v6552_v12 = vadd.f32 0.112945676, %v6551_v18  ;;  %v6628_v50 = vadd.f32 0.001143296, %v6627_v6  ;;  %v6617_v10 = vadd.f32 0.00028619796, %v6616_v39 }
0x13db   :  { %v6671_v8 = vmul.f32 %v6670_v22, %v11162_v44  ;;  %v6660_v23 = vmul.f32 %v6659_v2, %v11162_v44  ;;  %v6541_v63 = vadd.f32 0.05243302, %v6540_v4  ;;  %v6583_v57 = vadd.f32 0.18741608, %v6582_v53 }
0x13dc   :  { %v6553_v36 = vmul.f32 %v6552_v12, %v11152_v24  ;;  %v11186_v9 = vadd.f32 1.0, %v6595_v54  ;;  %v6629_v21 = vmul.f32 %v6628_v50, %v11174_v25  ;;  %v6618_v49 = vmul.f32 %v6617_v10, %v11174_v25 }
0x13dd   :  { %v6672_v29 = vadd.f32 0.112945676, %v6671_v8  ;;  %v6661_v46 = vadd.f32 0.05243302, %v6660_v23  ;;  %v6542_v47 = vmul.f32 %v6541_v63, %v11152_v24  ;;  %v11203_v27 = vmin.f32 %v6734_v16, 16.0 }
0x13de   :  { %v6554_v38 = vadd.f32 0.4994258, %v6553_v36  ;;  %8138 = vrcp.f32 %v11186_v9  ;;  %v6630_v48 = vadd.f32 0.014752088, %v6629_v21  ;;  %v11208_v51 = vadd.f32 %v6289_v34, %v10930_v19 }
0x13df   :  { %v6673_v5 = vmul.f32 %v6672_v29, %v11162_v44  ;;  %v6584_v15 = vmul.f32 %v6583_v57, %v11132_v31  ;;  %v6662_v37 = vmul.f32 %v6661_v46, %v11162_v44  ;;  %v6619_v18 = vadd.f32 0.0036580483, %v6618_v49  ;;  %v6292_v57 = vpop.f32.mrf.mxu3 }
0x13e0   :  { %v6631_v3 = vmul.f32 %v6630_v48, %v11174_v25  ;;  %v6555_v40 = vmul.f32 %v6554_v38, %v11152_v24  ;;  %v6543_v54 = vadd.f32 0.18741608, %v6542_v47  ;;  %v6736_v22 = vmul.f32 2.1237322e-06, %v11203_v27 }
0x13e1   :  { %v6674_v61 = vadd.f32 0.4994258, %v6673_v5  ;;  %v6747_v28 = vmul.f32 3.8918573e-05, %v11203_v27  ;;  %v11220_v12 = vmul.f32 0.5, %v11124_v58  ;;  %v11227_v60 = vmul.f32 0.5, %v11135_v26  ;;  %v6333_v5 = vpop.f32.mrf.mxu0 }
0x13e2   :  { %v6632_v17 = vadd.f32 0.112945676, %v6631_v3  ;;  %v11211_v45 = vadd.f32 1.0, %v6555_v40  ;;  %v11224_v50 = vmul.f32 0.70710677, %v11208_v51  ;;  %v6608_v2 = vand.u32 2147483648, %v11186_v9 }
0x13e3   :  { %v6675_v31 = vmul.f32 %v6674_v61, %v11162_v44  ;;  %v6585_v8 = vadd.f32 1.1283791, %v6584_v15  ;;  %v6663_v36 = vadd.f32 0.18741608, %v6662_v37  ;;  %v11232_v39 = vmul.f32 0.5, %v11144_v0 }
0x13e4   :  { %v11205_v42 = vpop.eup %8138  ;;  %v6633_v1 = vmul.f32 %v6632_v17, %v11174_v25  ;;  %8140 = vrcp.f32 %v11211_v45  ;;  %v6620_v58 = vmul.f32 %v6619_v18, %v11174_v25  ;;  %v6544_v29 = vmul.f32 %v6543_v54, %v11152_v24 }
0x13e5   :  { %v6598_v6 = vmul.f32 %v11205_v42, %v11186_v9  ;;  %v6737_v53 = vadd.f32 0.00028619796, %v6736_v22  ;;  %v6748_v38 = vadd.f32 0.001143296, %v6747_v28  ;;  %v11236_v23 = vadd.f32 1.0, %v6675_v31 }
0x13e6   :  { %v6634_v21 = vadd.f32 0.4994258, %v6633_v1  ;;  %v11239_v26 = vmul.f32 0.5, %v11157_v41  ;;  %v11241_v10 = vmul.f32 0.5, %v6331_v35  ;;  %v6694_v48 = vmul.f32 %v11224_v50, %v11224_v50 }
0x13e7   :  { %v6599_v4 = vsub.f32 1.0, %v6598_v6  ;;  %v11246_v0 = vmul.f32 %v6585_v8, %v11128_v52  ;;  %v6606_v63 = vand.u32 2147483647, %v11186_v9  ;;  %v6664_v16 = vmul.f32 %v6663_v36, %v11162_v44 }
0x13e8   :  { %v6749_v24 = vmul.f32 %v6748_v38, %v11203_v27  ;;  %vm6602_vm1 = vweird.f32 %v11186_v9  ;;  %v6621_v3 = vadd.f32 0.05243302, %v6620_v58  ;;  %v6635_v41 = vmul.f32 %v6634_v21, %v11174_v25 }
0x13e9   :  { %v11253_v35 = vmin.f32 %v6694_v48, 16.0  ;;  %v6600_v52 = vmul.f32 %v11205_v42, %v6599_v4  ;;  %v6609_v46 = vor.u32 1.1754944e-38, %v6608_v2  ;;  %v6545_v34 = vadd.f32 1.1283791, %v6544_v29 }
0x13ea   :  { %v11255_v40 = vpop.eup %8140  ;;  %v6738_v49 = vmul.f32 %v6737_v53, %v11203_v27  ;;  %vm6603_vm2 = vweird.f32 %v11205_v42  ;;  %8142 = vrcp.f32 %v11236_v23  ;;  %v6750_v44 = vadd.f32 0.014752088, %v6749_v24 }
0x13eb   :  { %v11262_v47 = vadd.f32 %v6333_v5, %v10911_v20  ;;  %vm11264_vm3 = vcmp.eq.f32.partialorder %v6606_v63, 8.507059e+37  ;;  %v6568_v61 = vand.u32 2147483648, %v11211_v45  ;;  %v6665_v15 = vadd.f32 1.1283791, %v6664_v16  ;;  %vm11302_vm4 = vmor %vm6602_vm1, %vm6603_vm2 }
0x13ec   :  { %v6696_v37 = vmul.f32 2.1237322e-06, %v11253_v35  ;;  %v11271_v18 = vadd.f32 %v6292_v57, %v10930_v19  ;;  %v6558_v1 = vmul.f32 %v11255_v40, %v11211_v45  ;;  %v6622_v6 = vmul.f32 %v6621_v3, %v11174_v25 }
0x13ed   :  { %v11276_v54 = vadd.f32 1.0, %v6635_v41  ;;  %v6751_v22 = vmul.f32 %v6750_v44, %v11203_v27  ;;  %v6601_v28 = vadd.f32 %v11205_v42, %v6600_v52  ;;  %v6566_v31 = vand.u32 2147483647, %v11211_v45 }
0x13ee   :  { %v6739_v8 = vadd.f32 0.0036580483, %v6738_v49  ;;  %v6707_v36 = vmul.f32 3.8918573e-05, %v11253_v35  ;;  %v11283_v2 = vmul.f32 %v6545_v34, %v11141_v7  ;;  %v6697_v21 = vadd.f32 0.00028619796, %v6696_v37 }
0x13ef   :  { %v6752_v58 = vadd.f32 0.112945676, %v6751_v22  ;;  %v11286_v4 = vmul.f32 0.70710677, %v11262_v47  ;;  %v11288_v29 = vor.u32 1.1754944e-38, %v6568_v61  ;;  %v11291_v53 = vmul.f32 %v6665_v15, %v11149_v56  ;;  %v6336_v15 = vpop.f32.mrf.mxu0 }
0x13f0   :  { %v6708_v38 = vadd.f32 0.001143296, %v6707_v36  ;;  %v11294_v48 = vmul.f32 0.70710677, %v11271_v18  ;;  %v11296_v63 = vpop.eup %8142  ;;  %v6559_v16 = vsub.f32 1.0, %v6558_v1  ;;  %8144 = vrcp.f32 %v11276_v54 }
0x13f1   :  { %v6623_v24 = vadd.f32 0.18741608, %v6622_v6  ;;  %v11308_v56 = vmul.f32 0.5, %v11208_v51  ;;  %v6605_v5 = vsel %vm11302_vm4, %v11205_v42, %v6601_v28  ;;  %v6740_v3 = vmul.f32 %v6739_v8, %v11203_v27 }
0x13f2   :  { %v6753_v41 = vmul.f32 %v6752_v58, %v11203_v27  ;;  %v6709_v9 = vmul.f32 %v6708_v38, %v11253_v35  ;;  %v6686_v57 = vand.u32 2147483647, %v11236_v23  ;;  %v6688_v52 = vand.u32 2147483648, %v11236_v23 }
0x13f3   :  { %v6698_v34 = vmul.f32 %v6697_v21, %v11253_v35  ;;  %v6814_v51 = vmul.f32 %v11286_v4, %v11286_v4  ;;  %v6678_v49 = vmul.f32 %v11296_v63, %v11236_v23  ;;  %v6774_v61 = vmul.f32 %v11294_v48, %v11294_v48 }
0x13f4   :  { %v6754_v44 = vadd.f32 0.4994258, %v6753_v41  ;;  %v6710_v42 = vadd.f32 0.014752088, %v6709_v9  ;;  %v6610_v37 = vsel %vm11264_vm3, %v6609_v46, %v6605_v5  ;;  %v6560_v1 = vmul.f32 %v11255_v40, %v6559_v16 }
0x13f5   :  { %v6624_v6 = vmul.f32 %v6623_v24, %v11174_v25  ;;  %v11329_v22 = vmin.f32 %v6814_v51, 16.0  ;;  %vm6562_vm5 = vweird.f32 %v11211_v45  ;;  %v6741_v28 = vadd.f32 0.05243302, %v6740_v3 }
0x13f6   :  { %v6755_v8 = vmul.f32 %v6754_v44, %v11203_v27  ;;  %v6711_v36 = vmul.f32 %v6710_v42, %v11253_v35  ;;  %v11334_v58 = vmin.f32 %v6774_v61, 16.0  ;;  %v11336_v21 = vpop.eup %8144  ;;  %v6699_v38 = vadd.f32 0.0036580483, %v6698_v34 }
0x13f7   :  { %v6816_v46 = vmul.f32 2.1237322e-06, %v11329_v22  ;;  %v6827_v17 = vmul.f32 3.8918573e-05, %v11329_v22  ;;  %v11341_v25 = vadd.f32 %v6336_v15, %v10911_v20  ;;  %v6679_v7 = vsub.f32 1.0, %v6678_v49 }
0x13f8   :  { %v11343_v16 = vadd.f32 1.0, %v6755_v8  ;;  %v6712_v24 = vadd.f32 0.112945676, %v6711_v36  ;;  %v6776_v5 = vmul.f32 2.1237322e-06, %v11334_v58  ;;  %vm6563_vm6 = vweird.f32 %v11255_v40 }
0x13f9   :  { %v6817_v3 = vadd.f32 0.00028619796, %v6816_v46  ;;  %v6828_v41 = vadd.f32 0.001143296, %v6827_v17  ;;  %v6787_v9 = vmul.f32 3.8918573e-05, %v11334_v58  ;;  %v11349_v34 = vmul.f32 %v6610_v37, %v11246_v0  ;;  %vm11377_vm9 = vmor %vm6562_vm5, %vm6563_vm6 }
0x13fa   :  { %vm11351_vm7 = vcmp.eq.f32.partialorder %v6566_v31, 8.507059e+37  ;;  %v11355_v44 = vor.u32 1.1754944e-38, %v6688_v52  ;;  %v6625_v49 = vadd.f32 1.1283791, %v6624_v6  ;;  %v6638_v42 = vmul.f32 %v11336_v21, %v11276_v54 }
0x13fb   :  { %v6561_v61 = vadd.f32 %v11255_v40, %v6560_v1  ;;  %vm6682_vm8 = vweird.f32 %v11236_v23  ;;  %v6742_v15 = vmul.f32 %v6741_v28, %v11203_v27  ;;  %v6713_v8 = vmul.f32 %v6712_v24, %v11253_v35 }
0x13fc   :  { %v11364_v0 = vmul.f32 0.70710677, %v11341_v25  ;;  %v6680_v31 = vmul.f32 %v11296_v63, %v6679_v7  ;;  %v6700_v52 = vmul.f32 %v6699_v38, %v11253_v35  ;;  %v6829_v37 = vmul.f32 %v6828_v41, %v11329_v22 }
0x13fd   :  { %v6777_v6 = vadd.f32 0.00028619796, %v6776_v5  ;;  %8146 = vrcp.f32 %v11343_v16  ;;  %v6714_v36 = vadd.f32 0.4994258, %v6713_v8  ;;  %v6818_v1 = vmul.f32 %v6817_v3, %v11329_v22 }
0x13fe   :  { %v6788_v46 = vadd.f32 0.001143296, %v6787_v9  ;;  %v6639_v17 = vsub.f32 1.0, %v6638_v42  ;;  %v6646_v28 = vand.u32 2147483647, %v11276_v54  ;;  %v6648_v7 = vand.u32 2147483648, %v11276_v54 }
0x13ff   :  { %v6830_v24 = vadd.f32 0.014752088, %v6829_v37  ;;  %v6778_v13 = vmul.f32 %v6777_v6, %v11334_v58  ;;  %v6715_v5 = vmul.f32 %v6714_v36, %v11253_v35  ;;  %v6894_v41 = vmul.f32 %v11364_v0, %v11364_v0 }
0x1400   :  { %v6789_v3 = vmul.f32 %v6788_v46, %v11334_v58  ;;  %v6565_v9 = vsel %vm11377_vm9, %v11255_v40, %v6561_v61  ;;  %vm11389_vm10 = vcmp.eq.f32.partialorder %v6686_v57, 8.507059e+37  ;;  %v6743_v45 = vadd.f32 0.18741608, %v6742_v15 }
0x1401   :  { %v6701_v8 = vadd.f32 0.05243302, %v6700_v52  ;;  %v6831_v37 = vmul.f32 %v6830_v24, %v11329_v22  ;;  %v6681_v6 = vadd.f32 %v11296_v63, %v6680_v31  ;;  %vm6683_vm11 = vweird.f32 %v11296_v63 }
0x1402   :  { %v11397_v36 = vmul.f32 %v6625_v49, %v11166_v11  ;;  %v6819_v46 = vadd.f32 0.0036580483, %v6818_v1  ;;  %v6640_v30 = vmul.f32 %v11336_v21, %v6639_v17  ;;  %v6779_v40 = vadd.f32 0.0036580483, %v6778_v13  ;;  %vm11412_vm13 = vmor %vm6682_vm8, %vm6683_vm11 }
0x1403   :  { %v6832_v38 = vadd.f32 0.112945676, %v6831_v37  ;;  %v6790_v57 = vadd.f32 0.014752088, %v6789_v3  ;;  %v11400_v61 = vpop.eup %8146  ;;  %v6570_v15 = vsel %vm11351_vm7, %v11288_v29, %v6565_v9  ;;  %vm6642_vm12 = vweird.f32 %v11276_v54  ;;  %v6295_v37 = vpop.f32.mrf.mxu3 }
0x1404   :  { %v11406_v31 = vadd.f32 1.0, %v6715_v5  ;;  %v11408_v52 = vmin.f32 %v6894_v41, 16.0  ;;  %vm11416_vm14 = vcmp.eq.f32.partialorder %v6646_v28, 8.507059e+37  ;;  %v6649_v49 = vor.u32 1.1754944e-38, %v6648_v7 }
0x1405   :  { %v6744_v51 = vmul.f32 %v6743_v45, %v11203_v27  ;;  %v6702_v29 = vmul.f32 %v6701_v8, %v11253_v35  ;;  %v6833_v1 = vmul.f32 %v6832_v38, %v11329_v22  ;;  %v6685_v17 = vsel %vm11412_vm13, %v11296_v63, %v6681_v6 }
0x1406   :  { %vm6643_vm15 = vweird.f32 %v11336_v21  ;;  %v6820_v23 = vmul.f32 %v6819_v46, %v11329_v22  ;;  %v6791_v28 = vmul.f32 %v6790_v57, %v11334_v58  ;;  %v6641_v24 = vadd.f32 %v11336_v21, %v6640_v30 }
0x1407   :  { %v6758_v7 = vmul.f32 %v11400_v61, %v11343_v16  ;;  %v6834_v27 = vadd.f32 0.4994258, %v6833_v1  ;;  %v6780_v5 = vmul.f32 %v6779_v40, %v11334_v58  ;;  %8148 = vrcp.f32 %v11406_v31  ;;  %vm11447_vm1 = vmor %vm6642_vm12, %vm6643_vm15 }
0x1408   :  { %v6792_v3 = vadd.f32 0.112945676, %v6791_v28  ;;  %v6896_v41 = vmul.f32 2.1237322e-06, %v11408_v52  ;;  %v6907_v63 = vmul.f32 3.8918573e-05, %v11408_v52  ;;  %v11437_v9 = vmul.f32 %v6570_v15, %v11283_v2 }
0x1409   :  { %v6745_v45 = vadd.f32 1.1283791, %v6744_v51  ;;  %v6703_v8 = vadd.f32 0.18741608, %v6702_v29  ;;  %v6835_v30 = vmul.f32 %v6834_v27, %v11329_v22  ;;  %v6690_v6 = vsel %vm11389_vm10, %v11355_v44, %v6685_v17 }
0x140a   :  { %v6821_v38 = vadd.f32 0.05243302, %v6820_v23  ;;  %v6793_v2 = vmul.f32 %v6792_v3, %v11334_v58  ;;  %v6908_v40 = vadd.f32 0.001143296, %v6907_v63  ;;  %v6645_v57 = vsel %vm11447_vm1, %v11336_v21, %v6641_v24  ;;  %v6339_v3 = vpop.f32.mrf.mxu0 }
0x140b   :  { %v6759_v15 = vsub.f32 1.0, %v6758_v7  ;;  %v11456_v42 = vmul.f32 0.5, %v11262_v47  ;;  %v6781_v44 = vadd.f32 0.05243302, %v6780_v5  ;;  %v11458_v11 = vadd.f32 1.0, %v6835_v30 }
0x140c   :  { %v6794_v54 = vadd.f32 0.4994258, %v6793_v2  ;;  %v6897_v51 = vadd.f32 0.00028619796, %v6896_v41  ;;  %v11461_v29 = vadd.f32 %v6295_v37, %v10930_v19  ;;  %v11464_v1 = vmul.f32 %v6690_v6, %v11291_v53 }
0x140d   :  { %v6766_v17 = vand.u32 2147483647, %v11343_v16  ;;  %v6704_v23 = vmul.f32 %v6703_v8, %v11253_v35  ;;  %v6909_v21 = vmul.f32 %v6908_v40, %v11408_v52  ;;  %v11469_v28 = vpop.eup %8148  ;;  %v6650_v47 = vsel %vm11416_vm14, %v6649_v49, %v6645_v57 }
0x140e   :  { %v11474_v24 = vmul.f32 %v6745_v45, %v11191_v32  ;;  %v6822_v7 = vmul.f32 %v6821_v38, %v11329_v22  ;;  %8150 = vrcp.f32 %v11458_v11  ;;  %v6760_v53 = vmul.f32 %v11400_v61, %v6759_v15  ;;  %v6298_v38 = vpop.f32.mrf.mxu3 }
0x140f   :  { %vm6762_vm2 = vweird.f32 %v11343_v16  ;;  %v6768_v35 = vand.u32 2147483648, %v11343_v16  ;;  %v6782_v27 = vmul.f32 %v6781_v44, %v11334_v58  ;;  %v6795_v5 = vmul.f32 %v6794_v54, %v11334_v58 }
0x1410   :  { %v6898_v13 = vmul.f32 %v6897_v51, %v11408_v52  ;;  %v6910_v49 = vadd.f32 0.014752088, %v6909_v21  ;;  %v11485_v32 = vmul.f32 0.70710677, %v11461_v29  ;;  %v11488_v41 = vmul.f32 %v6650_v47, %v11397_v36 }
0x1411   :  { %vm11490_vm3 = vcmp.eq.f32.partialorder %v6766_v17, 8.507059e+37  ;;  %v6705_v45 = vadd.f32 1.1283791, %v6704_v23  ;;  %v6718_v8 = vmul.f32 %v11469_v28, %v11406_v31  ;;  %v6728_v30 = vand.u32 2147483648, %v11406_v31 }
0x1412   :  { %v6823_v37 = vadd.f32 0.18741608, %v6822_v7  ;;  %v6911_v6 = vmul.f32 %v6910_v49, %v11408_v52  ;;  %v6854_v46 = vmul.f32 %v11485_v32, %v11485_v32  ;;  %v6761_v36 = vadd.f32 %v11400_v61, %v6760_v53 }
0x1413   :  { %vm6763_vm4 = vweird.f32 %v11400_v61  ;;  %v6783_v2 = vadd.f32 0.18741608, %v6782_v27  ;;  %v11503_v40 = vadd.f32 %v6339_v3, %v10911_v20  ;;  %v6769_v15 = vor.u32 1.1754944e-38, %v6768_v35 }
0x1414   :  { %v11505_v57 = vpop.eup %8150  ;;  %v11507_v44 = vadd.f32 1.0, %v6795_v5  ;;  %v6899_v54 = vadd.f32 0.0036580483, %v6898_v13  ;;  %v6912_v51 = vadd.f32 0.112945676, %v6911_v6  ;;  %v11510_v17 = vmul.f32 %v6705_v45, %v11224_v50  ;;  %vm11518_vm5 = vmor %vm6762_vm2, %vm6763_vm4 }
0x1415   :  { %v6719_v23 = vsub.f32 1.0, %v6718_v8  ;;  %v6726_v21 = vand.u32 2147483647, %v11406_v31  ;;  %v11514_v47 = vadd.f32 %v6298_v38, %v10930_v19  ;;  %v6729_v7 = vor.u32 1.1754944e-38, %v6728_v30 }
0x1416   :  { %v6824_v53 = vmul.f32 %v6823_v37, %v11329_v22  ;;  %v6913_v35 = vmul.f32 %v6912_v51, %v11408_v52  ;;  %v11524_v27 = vmin.f32 %v6854_v46, 16.0  ;;  %v6765_v50 = vsel %vm11518_vm5, %v11400_v61, %v6761_v36 }
0x1417   :  { %vm6722_vm6 = vweird.f32 %v11406_v31  ;;  %v6838_v19 = vmul.f32 %v11505_v57, %v11458_v11  ;;  %v6784_v16 = vmul.f32 %v6783_v2, %v11334_v58  ;;  %v11534_v5 = vmul.f32 0.70710677, %v11503_v40 }
0x1418   :  { %8152 = vrcp.f32 %v11507_v44  ;;  %v6900_v22 = vmul.f32 %v6899_v54, %v11408_v52  ;;  %v6914_v13 = vadd.f32 0.4994258, %v6913_v35  ;;  %v6856_v49 = vmul.f32 2.1237322e-06, %v11524_v27 }
0x1419   :  { %v6720_v3 = vmul.f32 %v11469_v28, %v6719_v23  ;;  %v6867_v61 = vmul.f32 3.8918573e-05, %v11524_v27  ;;  %v6974_v45 = vmul.f32 %v11534_v5, %v11534_v5  ;;  %v11544_v8 = vmul.f32 0.70710677, %v11514_v47 }
0x141a   :  { %v6770_v58 = vsel %vm11490_vm3, %v6769_v15, %v6765_v50  ;;  %v6825_v30 = vadd.f32 1.1283791, %v6824_v53  ;;  %v6848_v37 = vand.u32 2147483648, %v11458_v11  ;;  %v6915_v6 = vmul.f32 %v6914_v13, %v11408_v52 }
0x141b   :  { %vm11550_vm7 = vcmp.eq.f32.partialorder %v6726_v21, 8.507059e+37  ;;  %v6839_v38 = vsub.f32 1.0, %v6838_v19  ;;  %v6857_v36 = vadd.f32 0.00028619796, %v6856_v49  ;;  %v6868_v2 = vadd.f32 0.001143296, %v6867_v61 }
0x141c   :  { %v11554_v54 = vmin.f32 %v6974_v45, 16.0  ;;  %vm6723_vm8 = vweird.f32 %v11469_v28  ;;  %v6785_v51 = vadd.f32 1.1283791, %v6784_v16  ;;  %v6901_v23 = vadd.f32 0.05243302, %v6900_v22 }
0x141d   :  { %v11557_v63 = vadd.f32 1.0, %v6915_v6  ;;  %v11560_v15 = vmul.f32 %v6770_v58, %v11474_v24  ;;  %v6721_v20 = vadd.f32 %v11469_v28, %v6720_v3  ;;  %v6869_v21 = vmul.f32 %v6868_v2, %v11524_v27  ;;  %vm11581_vm10 = vmor %vm6722_vm6, %vm6723_vm8 }
0x141e   :  { %v6934_v53 = vmul.f32 %v11544_v8, %v11544_v8  ;;  %v11566_v35 = vpop.eup %8152  ;;  %v11569_v50 = vmul.f32 %v6825_v30, %v11286_v4  ;;  %vm6842_vm9 = vweird.f32 %v11458_v11  ;;  %v6846_v19 = vand.u32 2147483647, %v11458_v11 }
0x141f   :  { %v6976_v16 = vmul.f32 2.1237322e-06, %v11554_v54  ;;  %v6840_v24 = vmul.f32 %v11505_v57, %v6839_v38  ;;  %v6849_v22 = vor.u32 1.1754944e-38, %v6848_v37  ;;  %8154 = vrcp.f32 %v11557_v63 }
0x1420   :  { %v6858_v13 = vmul.f32 %v6857_v36, %v11524_v27  ;;  %v11586_v49 = vmul.f32 %v6785_v51, %v11294_v48  ;;  %v6902_v3 = vmul.f32 %v6901_v23, %v11408_v52  ;;  %v6870_v61 = vadd.f32 0.014752088, %v6869_v21 }
0x1421   :  { %v6987_v45 = vmul.f32 3.8918573e-05, %v11554_v54  ;;  %v6725_v58 = vsel %vm11581_vm10, %v11469_v28, %v6721_v20  ;;  %vm6843_vm11 = vweird.f32 %v11505_v57  ;;  %v6798_v31 = vmul.f32 %v11566_v35, %v11507_v44 }
0x1422   :  { %v11596_v30 = vmin.f32 %v6934_v53, 16.0  ;;  %vm11598_vm12 = vcmp.eq.f32.partialorder %v6846_v19, 8.507059e+37  ;;  %v6871_v48 = vmul.f32 %v6870_v61, %v11524_v27  ;;  %v6977_v6 = vadd.f32 0.00028619796, %v6976_v16  ;;  %vm11618_vm13 = vmor %vm6842_vm9, %vm6843_vm11 }
0x1423   :  { %v6988_v38 = vadd.f32 0.001143296, %v6987_v45  ;;  %v7689_v36 = vclamps-f32 %v11349_v34, 1.0  ;;  %v6841_v2 = vadd.f32 %v11505_v57, %v6840_v24  ;;  %v6859_v28 = vadd.f32 0.0036580483, %v6858_v13 }
0x1424   :  { %v6936_v51 = vmul.f32 2.1237322e-06, %v11596_v30  ;;  %v6947_v23 = vmul.f32 3.8918573e-05, %v11596_v30  ;;  %v6730_v20 = vsel %vm11550_vm7, %v6729_v7, %v6725_v58  ;;  %v6806_v21 = vand.u32 2147483647, %v11507_v44 }
0x1425   :  { %v6872_v53 = vadd.f32 0.112945676, %v6871_v48  ;;  %v6989_v19 = vmul.f32 %v6988_v38, %v11554_v54  ;;  %v11611_v4 = vpop.eup %8154  ;;  %v6799_v16 = vsub.f32 1.0, %v6798_v31  ;;  %v6808_v34 = vand.u32 2147483648, %v11507_v44 }
0x1426   :  { %v6903_v61 = vadd.f32 0.18741608, %v6902_v3  ;;  %v6937_v24 = vadd.f32 0.00028619796, %v6936_v51  ;;  %v6978_v46 = vmul.f32 %v6977_v6, %v11554_v54  ;;  %v6948_v58 = vadd.f32 0.001143296, %v6947_v23 }
0x1427   :  { %v6873_v7 = vmul.f32 %v6872_v53, %v11524_v27  ;;  %v6990_v45 = vadd.f32 0.014752088, %v6989_v19  ;;  %v6845_v31 = vsel %vm11618_vm13, %v11505_v57, %v6841_v2  ;;  %v6860_v3 = vmul.f32 %v6859_v28, %v11524_v27 }
0x1428   :  { %v6938_v48 = vmul.f32 %v6937_v24, %v11596_v30  ;;  %v7019_v38 = vadd.f32 1.0, %v7689_v36  ;;  %vm6802_vm14 = vweird.f32 %v11507_v44  ;;  %v6918_v11 = vmul.f32 %v11611_v4, %v11557_v63 }
0x1429   :  { %v6874_v51 = vadd.f32 0.4994258, %v6873_v7  ;;  %v6991_v53 = vmul.f32 %v6990_v45, %v11554_v54  ;;  %v6949_v6 = vmul.f32 %v6948_v58, %v11596_v30  ;;  %v11635_v23 = vmul.f32 %v6730_v20, %v11510_v17 }
0x142a   :  { %v6800_v57 = vmul.f32 %v11566_v35, %v6799_v16  ;;  %v6904_v2 = vmul.f32 %v6903_v61, %v11408_v52  ;;  %v7035_v28 = vmul.f32 %v7019_v38, %v11220_v12  ;;  %v6979_v19 = vadd.f32 0.0036580483, %v6978_v46 }
0x142b   :  { %v6875_v36 = vmul.f32 %v6874_v51, %v11524_v27  ;;  %v6992_v24 = vadd.f32 0.112945676, %v6991_v53  ;;  %v6950_v13 = vadd.f32 0.014752088, %v6949_v6  ;;  %v6850_v7 = vsel %vm11598_vm12, %v6849_v22, %v6845_v31 }
0x142c   :  { %v6861_v45 = vadd.f32 0.05243302, %v6860_v3  ;;  %v6939_v14 = vadd.f32 0.0036580483, %v6938_v48  ;;  %7142 = vmatmul.f32.gmra.mxu2 %v7035_v28  ;;  %v7688_v17 = vclamps-f32 %v11437_v9, 1.0  ;;  %v6919_v20 = vsub.f32 1.0, %v6918_v11 }
0x142d   :  { %v11644_v58 = vadd.f32 1.0, %v6875_v36  ;;  %v6993_v52 = vmul.f32 %v6992_v24, %v11554_v54  ;;  %v6951_v12 = vmul.f32 %v6950_v13, %v11596_v30  ;;  %vm11648_vm15 = vcmp.eq.f32.partialorder %v6806_v21, 8.507059e+37 }
0x142e   :  { %v6809_v61 = vor.u32 1.1754944e-38, %v6808_v34  ;;  %v11652_v46 = vadd.f32 1.1283791, %v6904_v2  ;;  %v7018_v22 = vadd.f32 1.0, %v7688_v17  ;;  %v6801_v37 = vadd.f32 %v11566_v35, %v6800_v57 }
0x142f   :  { %vm6803_vm1 = vweird.f32 %v11566_v35  ;;  %8156 = vrcp.f32 %v11644_v58  ;;  %v6980_v9 = vmul.f32 %v6979_v19, %v11554_v54  ;;  %v11659_v31 = vmul.f32 %v6850_v7, %v11569_v50 }
0x1430   :  { %vm6922_vm2 = vweird.f32 %v11557_v63  ;;  %v6994_v21 = vadd.f32 0.4994258, %v6993_v52  ;;  %v6940_v3 = vmul.f32 %v6939_v14, %v11596_v30  ;;  %v6920_v34 = vmul.f32 %v11611_v4, %v6919_v20  ;;  %vm11668_vm3 = vmor %vm6802_vm14, %vm6803_vm1 }
0x1431   :  { %v6862_v48 = vmul.f32 %v6861_v45, %v11524_v27  ;;  %v6952_v38 = vadd.f32 0.112945676, %v6951_v12  ;;  %v7034_v11 = vmul.f32 %v7018_v22, %v11227_v60  ;;  %v6926_v50 = vand.u32 2147483647, %v11557_v63 }
0x1432   :  { %v6928_v53 = vand.u32 2147483648, %v11557_v63  ;;  %v6995_v6 = vmul.f32 %v6994_v21, %v11554_v54  ;;  %v7691_v14 = vclamps-f32 %v11464_v1, 1.0  ;;  %v6805_v57 = vsel %vm11668_vm3, %v11566_v35, %v6801_v37 }
0x1433   :  { %v6981_v2 = vadd.f32 0.05243302, %v6980_v9  ;;  %v6953_v60 = vmul.f32 %v6952_v38, %v11596_v30  ;;  %7101 = vmatmul.f32.gmra.mxu1 %v7034_v11  ;;  %v7690_v44 = vclamps-f32 %v11488_v41, 1.0  ;;  %vm6923_vm4 = vweird.f32 %v11611_v4 }
0x1434   :  { %v11682_v28 = vadd.f32 1.0, %v6995_v6  ;;  %v6941_v36 = vadd.f32 0.05243302, %v6940_v3  ;;  %v7021_v19 = vadd.f32 1.0, %v7691_v14  ;;  %v6921_v13 = vadd.f32 %v11611_v4, %v6920_v34  ;;  %vm11701_vm6 = vmor %vm6922_vm2, %vm6923_vm4 }
0x1435   :  { %v8157_v24 = vpop.eup %8156  ;;  %v6863_v1 = vadd.f32 0.18741608, %v6862_v48  ;;  %v6954_v7 = vadd.f32 0.4994258, %v6953_v60  ;;  %v7020_v45 = vadd.f32 1.0, %v7690_v44  ;;  %vm11685_vm5 = vcmp.eq.f32.partialorder %v6926_v50, 8.507059e+37 }
0x1436   :  { %v6878_v17 = vmul.f32 %v8157_v24, %v11644_v58  ;;  %8158 = vrcp.f32 %v11682_v28  ;;  %v7693_v41 = vclamps-f32 %v11560_v15, 1.0  ;;  %v6810_v20 = vsel %vm11648_vm15, %v6809_v61, %v6805_v57 }
0x1437   :  { %v6982_v52 = vmul.f32 %v6981_v2, %v11554_v54  ;;  %v6955_v12 = vmul.f32 %v6954_v7, %v11596_v30  ;;  %v7692_v22 = vclamps-f32 %v11635_v23, 1.0  ;;  %v6942_v15 = vmul.f32 %v6941_v36, %v11596_v30 }
0x1438   :  { %v6879_v9 = vsub.f32 1.0, %v6878_v17  ;;  %v7037_v16 = vmul.f32 %v7021_v19, %v11232_v39  ;;  %v7036_v61 = vmul.f32 %v7020_v45, %v11239_v26  ;;  %v6925_v21 = vsel %vm11701_vm6, %v11611_v4, %v6921_v13 }
0x1439   :  { %v6929_v23 = vor.u32 1.1754944e-38, %v6928_v53  ;;  %v6864_v3 = vmul.f32 %v6863_v1, %v11524_v27  ;;  %v11712_v34 = vadd.f32 1.0, %v6955_v12  ;;  %vm6883_vm7 = vweird.f32 %v8157_v24  ;;  %v7190_v27 = vld [vmem:[%s11830_s13 + $0x18] sm:$0xff] }
0x143a   :  { %v6880_v63 = vmul.f32 %v8157_v24, %v6879_v9  ;;  %v6888_v48 = vand.u32 2147483648, %v11644_v58  ;;  %7145 = vmatmul.f32.gmra.mxu2 %v7037_v16  ;;  %v7023_v38 = vadd.f32 1.0, %v7693_v41  ;;  %v6811_v11 = vmul.f32 %v6810_v20, %v11586_v49  ;;  %7206 = vmatpush.msra.mxu3 %v7190_v27 }
0x143b   :  { %v6886_v39 = vand.u32 2147483647, %v11644_v58  ;;  %8160 = vrcp.f32 %v11712_v34  ;;  %7104 = vmatmul.f32.gmra.mxu1 %v7036_v61  ;;  %v7022_v26 = vadd.f32 1.0, %v7692_v22  ;;  %vm6882_vm8 = vweird.f32 %v11644_v58 }
0x143c   :  { %v8159_v4 = vpop.eup %8158  ;;  %v6881_v51 = vadd.f32 %v8157_v24, %v6880_v63  ;;  %v6983_v50 = vadd.f32 0.18741608, %v6982_v52  ;;  %v6943_v53 = vadd.f32 0.18741608, %v6942_v15  ;;  %v6906_v49 = vmul.f32 %v11652_v46, %v11364_v0  ;;  %vm6884_vm9 = vmor %vm6882_vm8, %vm6883_vm7 }
0x143d   :  { %v6930_v6 = vsel %vm11685_vm5, %v6929_v23, %v6925_v21  ;;  %v6865_v14 = vadd.f32 1.1283791, %v6864_v3  ;;  %v6998_v57 = vmul.f32 %v8159_v4, %v11682_v28  ;;  %v6889_v60 = vor.u32 1.1754944e-38, %v6888_v48 }
0x143e   :  { %v6885_v2 = vsel %vm6884_vm9, %v8157_v24, %v6881_v51  ;;  %v7039_v44 = vmul.f32 %v7023_v38, %v11241_v10  ;;  %v7695_v58 = vclamps-f32 %v11659_v31, 1.0  ;;  %vm6887_vm10 = vcmp.eq.f32.partialorder %v6886_v39, 8.507059e+37 }
0x143f   :  { %v6999_v36 = vsub.f32 1.0, %v6998_v57  ;;  %v7038_v19 = vmul.f32 %v7022_v26, %v11308_v56  ;;  %v7694_v13 = vclamps-f32 %v6811_v11, 1.0  ;;  %v6890_v0 = vsel %vm6887_vm10, %v6889_v60, %v6885_v2 }
0x1440   :  { %v6984_v46 = vmul.f32 %v6983_v50, %v11554_v54  ;;  %v7006_v1 = vand.u32 2147483647, %v11682_v28  ;;  %v6944_v7 = vmul.f32 %v6943_v53, %v11596_v30  ;;  %v6866_v24 = vmul.f32 %v6865_v14, %v11485_v32 }
0x1441   :  { %v8161_v45 = vpop.eup %8160  ;;  %v7000_v35 = vmul.f32 %v8159_v4, %v6999_v36  ;;  %vm7003_vm11 = vweird.f32 %v8159_v4  ;;  %v7008_v10 = vand.u32 2147483648, %v11682_v28  ;;  %v6352_v31 = vmul.f32 0.5, %v11271_v18 }
0x1442   :  { %v6931_v17 = vmul.f32 %v6930_v6, %v6906_v49  ;;  %v6958_v56 = vmul.f32 %v8161_v45, %v11712_v34  ;;  %7148 = vmatmul.f32.gmra.mxu2 %v7039_v44  ;;  %v7025_v41 = vadd.f32 1.0, %v7695_v58  ;;  %v6891_v20 = vmul.f32 %v6890_v0, %v6866_v24  ;;  %v7137_v44 = vpop.f32.mrf.mxu2  ;;  %v7189_v58 = vld [vmem:[%s11830_s13 + $0x10] sm:$0xff] }
0x1443   :  { %v7001_v54 = vadd.f32 %v8159_v4, %v7000_v35  ;;  %vm7002_vm12 = vweird.f32 %v11682_v28  ;;  %7107 = vmatmul.f32.gmra.mxu1 %v7038_v19  ;;  %v7024_v30 = vadd.f32 1.0, %v7694_v13  ;;  %v6985_v52 = vadd.f32 1.1283791, %v6984_v46  ;;  %7207 = vmatpush.msra.mxu3 %v7189_v58  ;;  %v7736_v19 = vld [vmem:[%s11830_s13 + $0x30] sm:$0xff]  ;;  %v7187_v13 = vld [vmem:[%s11830_s13] sm:$0xff] }
0x1444   :  { %vm7004_vm13 = vmor %vm7002_vm12, %vm7003_vm11  ;;  %vm7007_vm14 = vcmp.eq.f32.partialorder %v7006_v1, 8.507059e+37  ;;  %v6945_v32 = vadd.f32 1.1283791, %v6944_v7  ;;  %v6959_v12 = vsub.f32 1.0, %v6958_v56  ;;  %v7009_v37 = vor.u32 1.1754944e-38, %v7008_v10  ;;  %v7735_v1 = vld [vmem:[%s11830_s13 + $0x28] sm:$0xff] }
0x1445   :  { %v7005_v22 = vsel %vm7004_vm13, %v8159_v4, %v7001_v54  ;;  %v6966_v18 = vand.u32 2147483647, %v11712_v34  ;;  %v6968_v9 = vand.u32 2147483648, %v11712_v34  ;;  %vm6963_vm15 = vweird.f32 %v8161_v45  ;;  %v7734_v7 = vld [vmem:[%s11830_s13 + $0x20] sm:$0xff]  ;;  %v7741_v35 = vld [vmem:[%s11830_s13 + $0x50] sm:$0xff]  ;;  %v7740_v10 = vld [vmem:[%s11830_s13 + $0x48] sm:$0xff] }
0x1446   :  { %v6960_v15 = vmul.f32 %v8161_v45, %v6959_v12  ;;  %v7041_v16 = vmul.f32 %v7025_v41, %v11456_v42  ;;  %v7697_v61 = vclamps-f32 %v6931_v17, 1.0  ;;  %v7010_v21 = vsel %vm7007_vm14, %v7009_v37, %v7005_v22  ;;  %v7746_v54 = vld [vmem:[%s11830_s13 + $0x70] sm:$0xff]  ;;  %v7775_v22 = vld [vmem:[%s11829_s12 + $0x1] ss:$0 sm:$0xff]  ;;  %s8172_s12 = smov 16  }
0x1447   :  { %v7040_v28 = vmul.f32 %v7024_v30, %v6352_v31  ;;  %v7696_v23 = vclamps-f32 %v6891_v20, 1.0  ;;  %v6986_v3 = vmul.f32 %v6985_v52, %v11534_v5  ;;  %vm6962_vm1 = vweird.f32 %v11712_v34  ;;  %v7739_v31 = vld [vmem:[%s11830_s13 + $0x40] sm:$0xff]  ;;  %v7747_v20 = vld [vmem:[%s11830_s13 + $0x78] sm:$0xff] }
0x1448   :  { %v6961_v63 = vadd.f32 %v8161_v45, %v6960_v15  ;;  %v6946_v48 = vmul.f32 %v6945_v32, %v11544_v8  ;;  %vm6964_vm2 = vmor %vm6962_vm1, %vm6963_vm15  ;;  %v6969_v38 = vor.u32 1.1754944e-38, %v6968_v9  ;;  %vm6967_vm3 = vcmp.eq.f32.partialorder %v6966_v18, 8.507059e+37  ;;  %v7745_v32 = vld [vmem:[%s11830_s13 + $0x68] sm:$0xff]  ;;  %v7744_v18 = vld [vmem:[%s11830_s13 + $0x60] sm:$0xff] }
0x1449   :  { %v7011_v11 = vmul.f32 %v7010_v21, %v6986_v3  ;;  %v7027_v26 = vadd.f32 1.0, %v7697_v61  ;;  %v7026_v42 = vadd.f32 1.0, %v7696_v23  ;;  %v6355_v4 = vmul.f32 0.5, %v11341_v25  ;;  %v7737_v25 = vld [vmem:[%s11830_s13 + $0x38] sm:$0xff] }
0x144a   :  { %v6965_v39 = vsel %vm6964_vm2, %v8161_v45, %v6961_v63  ;;  %7151 = vmatmul.f32.gmra.mxu2 %v7041_v16  ;;  %v6354_v5 = vmul.f32 0.5, %v11461_v29  ;;  %v6357_v14 = vmul.f32 0.5, %v11503_v40  ;;  %v6356_v57 = vmul.f32 0.5, %v11514_v47  ;;  %7238 = vmatpush.msra.mxu0 %v7737_v25  ;;  %v7096_v29 = vpop.f32.mrf.mxu1  ;;  %v7140_v40 = vpop.f32.mrf.mxu2  ;;  %v7188_v47 = vld [vmem:[%s11830_s13 + $0x8] sm:$0xff]  ;;  %v7742_v45 = vld [vmem:[%s11830_s13 + $0x58] sm:$0xff]  ;;  %s8173_s13 = smov 32  }
0x144b   :  { %v6970_v27 = vsel %vm6967_vm3, %v6969_v38, %v6965_v39  ;;  %7110 = vmatmul.f32.gmra.mxu1 %v7040_v28  ;;  %v7043_v50 = vmul.f32 %v7027_v26, %v6355_v4  ;;  %v7699_v53 = vclamps-f32 %v7011_v11, 1.0  ;;  %7208 = vmatpush.msra.mxu3 %v7188_v47  ;;  %v7138_v41 = vadd.f32 %v7137_v44, %v7096_v29 }
0x144c   :  { %v6971_v51 = vmul.f32 %v6970_v27, %v6946_v48  ;;  %v7042_v34 = vmul.f32 %v7026_v42, %v6354_v5  ;;  %7239 = vmatpush.msra.mxu0 %v7736_v19  ;;  %vm7185_vm4 = vcmask 1040384   ;;  %vm7322_vm5 = vcmask 130048  }
0x144d   :  { %v7029_v8 = vadd.f32 1.0, %v7699_v53  ;;  %7209 = vmatpush.msra.mxu3 %v7187_v13  ;;  %v7161_v12 = vadd.f32 %v7138_v41, %v10736_v55  ;;  %vm7325_vm6 = vcmask 392192   ;;  %vm7327_vm7 = vcmask 517120  }
0x144e   :  { %v7698_v49 = vclamps-f32 %v6971_v51, 1.0  ;;  %7240 = vmatpush.msra.mxu0 %v7735_v1  ;;  %v11944_v51 = vld [vmem:[#allocation8_spill] sm:$0xff] }
0x144f   :  { %v7045_v2 = vmul.f32 %v7029_v8, %v6357_v14  ;;  %7270 = vmatpush.msrb.mxu3 %v7742_v45  ;;  %v7174_v16 = vadd.f32 %v7775_v22, %v7161_v12  ;;  %v11945_v14 = vld [vmem:[#allocation7_spill] sm:$0xff] }
0x1450   :  { %v7028_v6 = vadd.f32 1.0, %v7698_v49  ;;  %7241 = vmatpush.msra.mxu0 %v7734_v7 }
0x1451   :  { %7271 = vmatpush.msrb.mxu3 %v7741_v35 }
0x1452   :  { %7154 = vmatmul.f32.gmra.mxu2 %v7043_v50  ;;  %v7044_v60 = vmul.f32 %v7028_v6, %v6356_v57  ;;  %v7099_v36 = vpop.f32.mrf.mxu1  ;;  %7302 = vmatpush.msrb.mxu0 %v7747_v20 }
0x1453   :  { %7113 = vmatmul.f32.gmra.mxu1 %v7042_v34  ;;  %7272 = vmatpush.msrb.mxu3 %v7740_v10  ;;  %v7141_v61 = vadd.f32 %v7140_v40, %v7099_v36 }
0x1454   :  { %7303 = vmatpush.msrb.mxu0 %v7746_v54 }
0x1455   :  { %7273 = vmatpush.msrb.mxu3 %v7739_v31 }
0x1456   :  { %7304 = vmatpush.msrb.mxu0 %v7745_v32 }
0x1458   :  { %7305 = vmatpush.msrb.mxu0 %v7744_v18 }
0x145a   :  { %7157 = vmatmul.f32.gmra.mxu2 %v7045_v2  ;;  %v11946_v2 = vld [vmem:[#allocation9_spill] sm:$0xff] }
0x145b   :  { %7116 = vmatmul.f32.gmra.mxu1 %v7044_v60 }
0x14af   :  { %v7143_v46 = vpop.f32.mrf.mxu2 }
0x14b0   :  { %v7102_v0 = vpop.f32.mrf.mxu1 }
0x14b1   :  { %v7144_v11 = vadd.f32 %v7143_v46, %v7102_v0 }
0x14b3   :  { %v7163_v4 = vadd.f32 %v7144_v11, %v10746_v33 }
0x14b8   :  { %v7105_v24 = vpop.f32.mrf.mxu1 }
0x14bd   :  { %v7146_v17 = vpop.f32.mrf.mxu2 }
0x14be   :  { %v7147_v34 = vadd.f32 %v7146_v17, %v7105_v24 }
0x14c0   :  { %v7108_v56 = vpop.f32.mrf.mxu1  ;;  %v7164_v57 = vadd.f32 %v7147_v34, %v11945_v14 }
0x14c2   :  { %v7177_v29 = vadd.f32 %v7775_v22, %v7164_v57 }
0x14c5   :  { %v7149_v30 = vpop.f32.mrf.mxu2 }
0x14c6   :  { %v7150_v52 = vadd.f32 %v7149_v30, %v7108_v56 }
0x14c8   :  { %v7165_v37 = vadd.f32 %v7150_v52, %v10756_v62  ;;  %v7111_v9 = vpop.f32.mrf.mxu1  ;;  %v7162_v62 = vadd.f32 %v7141_v61, %v10741_v43  ;;  %v7176_v43 = vadd.f32 %v7775_v22, %v7163_v4 }
0x14ca   :  { %v7178_v15 = vadd.f32 %v7775_v22, %v7165_v37  ;;  %v7175_v38 = vadd.f32 %v7775_v22, %v7162_v62 }
0x14cc   :  { %v7183_v21 = vrot.slane %v7178_v15, 7 }
0x14cd   :  { %v7152_v28 = vpop.f32.mrf.mxu2 }
0x14ce   :  { %v7153_v55 = vadd.f32 %v7152_v28, %v7111_v9  ;;  %v7186_v23 = vsel %vm7185_vm4, %v7174_v16, %v7183_v21 }
0x14cf   :  { %7733 = vmatmul.msk.f32.vlgmr.msra.gmra.mxu3 %vm79_vm0, %v7186_v23 }
0x14d0   :  { %v7166_v3 = vadd.f32 %v7153_v55, %v10761_v59  ;;  %v7114_v48 = vpop.f32.mrf.mxu1 }
0x14d2   :  { %v7179_v63 = vadd.f32 %v7775_v22, %v7166_v3 }
0x14d4   :  { %v7215_v39 = vrot.slane %v7179_v63, 7 }
0x14d5   :  { %v7155_v26 = vpop.f32.mrf.mxu2 }
0x14d6   :  { %v7156_v27 = vadd.f32 %v7155_v26, %v7114_v48  ;;  %v7217_v42 = vsel %vm7185_vm4, %v7175_v38, %v7215_v39 }
0x14d7   :  { %7738 = vmatmul.msk.f32.vlgmr.msra.gmra.mxu0 %vm79_vm0, %v7217_v42 }
0x14d8   :  { %v7167_v5 = vadd.f32 %v7156_v27, %v11944_v51  ;;  %v7117_v53 = vpop.f32.mrf.mxu1 }
0x14da   :  { %v7180_v50 = vadd.f32 %v7775_v22, %v7167_v5 }
0x14dc   :  { %v7247_v59 = vrot.slane %v7180_v50, 7 }
0x14dd   :  { %v7158_v49 = vpop.f32.mrf.mxu2 }
0x14de   :  { %v7249_v8 = vsel %vm7185_vm4, %v7176_v43, %v7247_v59  ;;  %v7159_v6 = vadd.f32 %v7158_v49, %v7117_v53 }
0x14df   :  { %7743 = vmatmul.msk.f32.vlgmr.msrb.gmra.mxu3 %vm79_vm0, %v7249_v8 }
0x14e0   :  { %v7168_v60 = vadd.f32 %v7159_v6, %v11946_v2 }
0x14e2   :  { %v7181_v25 = vadd.f32 %v7775_v22, %v7168_v60 }
0x14e4   :  { %v7279_v33 = vrot.slane %v7181_v25, 7 }
0x14e6   :  { %v7281_v44 = vsel %vm7185_vm4, %v7177_v29, %v7279_v33 }
0x14e7   :  { %7748 = vmatmul.msk.f32.vlgmr.msrb.gmra.mxu0 %vm79_vm0, %v7281_v44 }
0x1552   :  { %v7211_v36 = vpop.f32.mrf.mxu3 }
0x1554   :  { %v7243_v58 = vpop.f32.mrf.mxu0 }
0x1555   :  { %7311 = vrot.lane.b32.xlu0 %v7243_v58, %s8172_s12 }
0x1562   :  { %v7275_v40 = vpop.f32.mrf.mxu3 }
0x1563   :  { %7315 = vrot.lane.b32.xlu1 %v7275_v40, %s8173_s13 }
0x1564   :  { %v7307_v47 = vpop.f32.mrf.mxu0 }
0x1565   :  { %7319 = vrot.lane.b32.xlu2 %v7307_v47, %s8174_s22 }
0x15bf   :  { %v7320_v46 = vpop.permute.xlu2 %7319 }
0x15c7   :  { %v7312_v19 = vpop.permute.xlu0 %7311 }
0x15c8   :  { %v7323_v13 = vsel %vm7322_vm5, %v7211_v36, %v7312_v19 }
0x15d5   :  { %v7316_v0 = vpop.permute.xlu1 %7315 }
0x15d6   :  { %v7324_v1 = vsel %vm79_vm0, %v7323_v13, %v7316_v0 }
0x15d7   :  { %v7326_v7 = vsel %vm7325_vm6, %v7324_v1, %v7320_v46 }
0x15d8   :  { %7328 = vst.msk [vmem:[%s11831_s14] sm:$0x3] %vm7327_vm7, %v7326_v7 }

</bundles_post_ra>
